<compile_context>
chip_gen: v7x
topology: tpu7x:2x2x1
jax: 0.10.0
libtpu: 0.0.40
codegen_flags: <defaults>
</compile_context>

<pallas_src>
import functools

import jax
import jax.numpy as jnp
from jax import lax
from jax.experimental import pallas as pl
from jax.experimental.pallas import tpu as pltpu

EPS = 1e-5


# ----------------------------- fused kernel -------------------------------- #

def _fused_kernel(patch_ref, w1_ref, prm_ref, mask_ref, wl_ref, bl_ref, o_ref,
                  *, N, RI, TOP, Wo):
    # patch_ref: (RP, 28) bf16  im2col over the halo grid, col 27 = ring indicator
    # w1_ref:    (28, C)  bf16  conv1 weight * BN1 scale; row 27 = -1e30 penalty
    # prm_ref:   (11, C)  f32   rows: 0 = fused bias1, 1 = fused bias2, 2:11 = dw weight*scale2
    # mask_ref:  (R, 1)   f32   interior indicator / (H*W), 0 on ring & pad rows
    # wl_ref:    (C, NCp) bf16  classifier weight (zero-padded to 1024 lanes)
    # bl_ref:    (1, NCp) f32
    # o_ref:     (N, NCp) f32
    R = N * RI
    prm = prm_ref[...]                                            # (11, C)

    # conv1 (BN scale pre-folded) + bias + ReLU: one K=28 MXU matmul; the -1e30
    # penalty column drives every halo/pad row to exactly 0 after the ReLU, so
    # y1 is the exactly zero-padded activation the depthwise conv needs.
    y1 = jnp.dot(patch_ref[...], w1_ref[...],
                 preferred_element_type=jnp.float32)              # (RP, C)
    y1 = jnp.maximum(y1 + prm[0:1, :], 0.0)

    # depthwise 3x3 (BN scale pre-folded) as 9 constant-row-offset shifted loads
    # of the flat halo activation; f32 accumulation on the VPU.
    acc2 = jnp.zeros((R, y1.shape[1]), jnp.float32)
    for kh in range(3):
        for kw in range(3):
            off = TOP + (kh - 1) * Wo + (kw - 1)                  # static offset
            acc2 = acc2 + y1[off:off + R, :] * prm[2 + kh * 3 + kw][None, :]
    y2 = jnp.maximum(acc2 + prm[1:2, :], 0.0)                     # (R, C)

    # AdaptiveAvgPool2d(1): masked VPU row reduction (mask carries 1/(H*W) and
    # zeroes the garbage ring/pad rows).  RI is 8-aligned so the per-image split
    # is layout-preserving.
    pooled = (y2 * mask_ref[...]).reshape(N, RI, -1).sum(axis=1)  # (N, C) f32

    # classifier into a lane-dense 1024-wide output.
    o_ref[...] = jnp.dot(pooled.astype(jnp.bfloat16), wl_ref[...],
                         preferred_element_type=jnp.float32) + bl_ref[...]


# ----------------------------- wrapper -------------------------------------- #

@jax.jit
def dwconv_model_forward(x_nchw, p):
    x = jnp.transpose(x_nchw, (0, 2, 3, 1))                       # NCHW -> NHWC
    N, H, W, Cin = x.shape
    C = p["w1"].shape[-1]
    NC = p["wl"].shape[-1]
    NCp = ((NC + 127) // 128) * 128
    Ho, Wo = H + 2, W + 2
    HW = H * W
    K = 9 * Cin                                                   # 27
    RI = ((Ho * Wo + 7) // 8) * 8          # per-image rows, 8-aligned (328)
    TOP = ((Wo + 1 + 7) // 8) * 8          # global halo rows, >= Wo+1, 8-aligned
    R = N * RI
    RP = TOP + R + TOP

    # Fold (conv bias, BN running stats, BN affine) into per-channel scale/bias,
    # then fold the scales into the conv weights (drops two VPU broadcasts and
    # two operands from the kernel).
    s1 = p["g1"] / jnp.sqrt(p["v1"] + EPS)
    fb1 = (p["b1"] - p["m1"]) * s1 + p["be1"]
    s2 = p["g2"] / jnp.sqrt(p["v2"] + EPS)
    fb2 = (p["bdw"] - p["m2"]) * s2 + p["be2"]
    w1 = (p["w1"] * s1).reshape(K, C)                             # (27, C)
    w1 = jnp.concatenate(
        [w1, jnp.full((1, C), -1e30, jnp.float32)], axis=0).astype(jnp.bfloat16)
    wdw = (p["wdw"] * s2).reshape(9, C)                           # (9, C)
    prm = jnp.concatenate([fb1[None], fb2[None], wdw], axis=0)    # (11, C) f32

    # im2col of the raw input over the halo-extended (Ho, Wo) grid, plus the
    # ring-indicator penalty column (one tiny fused XLA op on the ~6 KB input).
    xp2 = jnp.pad(x, ((0, 0), (2, 2), (2, 2), (0, 0)))
    cols = [xp2[:, kh:kh + Ho, kw:kw + Wo, :]
            for kh in range(3) for kw in range(3)]
    patch = jnp.concatenate(cols, axis=-1).reshape(N, Ho * Wo, K)
    row_in = (jnp.arange(Ho) >= 1) & (jnp.arange(Ho) <= H)
    col_in = (jnp.arange(Wo) >= 1) & (jnp.arange(Wo) <= W)
    interior = (row_in[:, None] & col_in[None, :]).reshape(Ho * Wo)
    interior = interior.astype(jnp.float32)                       # (Ho*Wo,)
    ring = jnp.broadcast_to((1.0 - interior)[None, :, None], (N, Ho * Wo, 1))
    patch = jnp.concatenate([patch, ring], axis=-1)               # (N, Ho*Wo, 28)
    pad_row = jnp.concatenate([jnp.zeros((K,), jnp.float32),
                               jnp.ones((1,), jnp.float32)])[None, None]
    patch = jnp.concatenate(
        [patch, jnp.broadcast_to(pad_row, (N, RI - Ho * Wo, K + 1))], axis=1)
    patch = patch.reshape(R, K + 1)
    edge = jnp.broadcast_to(pad_row[0], (TOP, K + 1))
    patch = jnp.concatenate([edge, patch, edge], axis=0).astype(jnp.bfloat16)

    # Interior mask (also carries the 1/(H*W) of AdaptiveAvgPool2d(1)).
    mask = jnp.concatenate([interior, jnp.zeros((RI - Ho * Wo,), jnp.float32)])
    mask = (jnp.tile(mask, N) / float(HW)).reshape(R, 1)

    wl = jnp.pad(p["wl"], ((0, 0), (0, NCp - NC))).astype(jnp.bfloat16)
    bl = jnp.pad(p["bl"], ((0, NCp - NC)))[None, :]

    flops = 2 * RP * (K + 1) * C + 2 * R * 9 * C + 2 * N * C * NCp
    bytes_accessed = (patch.size * 2 + w1.size * 2 + prm.size * 4 + mask.size * 4
                      + wl.size * 2 + bl.size * 4 + N * NCp * 4)

    vmem = pl.BlockSpec(memory_space=pltpu.MemorySpace.VMEM)
    out = pl.pallas_call(
        functools.partial(_fused_kernel, N=N, RI=RI, TOP=TOP, Wo=Wo),
        out_shape=jax.ShapeDtypeStruct((N, NCp), jnp.float32),
        in_specs=[vmem] * 6,
        out_specs=vmem,
        cost_estimate=pl.CostEstimate(flops=flops, transcendentals=0,
                                      bytes_accessed=bytes_accessed),
    )(patch, w1, prm, mask, wl, bl)
    return out[:, :NC]


# ----------------------------- pure-JAX reference --------------------------- #

def reference_forward(x_nchw, p):
    x = jnp.transpose(x_nchw, (0, 2, 3, 1))
    dn = ("NHWC", "HWIO", "NHWC")
    y = lax.conv_general_dilated(x, p["w1"], (1, 1), "SAME",
                                 dimension_numbers=dn,
                                 precision=lax.Precision.HIGHEST) + p["b1"]
    y = (y - p["m1"]) / jnp.sqrt(p["v1"] + EPS) * p["g1"] + p["be1"]
    y = jnp.maximum(y, 0.0)
    wdw_hwio = p["wdw"][:, :, None, :]                 # (3,3,1,C)
    y = lax.conv_general_dilated(y, wdw_hwio, (1, 1), "SAME",
                                 dimension_numbers=dn,
                                 feature_group_count=p["wdw"].shape[-1],
                                 precision=lax.Precision.HIGHEST) + p["bdw"]
    y = (y - p["m2"]) / jnp.sqrt(p["v2"] + EPS) * p["g2"] + p["be2"]
    y = jnp.maximum(y, 0.0)
    pooled = jnp.mean(y, axis=(1, 2))                  # (N, C)
    return pooled @ p["wl"] + p["bl"]


# ----------------------------- main ------------------------------------------ #

if __name__ == "__main__":
    N, H, W, Cin, C, NC = 2, 16, 16, 3, 48, 1000
    keys = jax.random.split(jax.random.PRNGKey(0), 16)

    # PyTorch input layout: NCHW (2, 3, 16, 16).
    x = jax.random.normal(keys[0], (N, Cin, H, W), jnp.float32)

    # Weights kept in JAX-friendly layouts (HWIO conv, HWC depthwise, (in,out) linear);
    # they are transposed views of the equivalent PyTorch parameters.
    p = {
        "w1":  jax.random.normal(keys[1], (3, 3, Cin, C), jnp.float32) * 0.1,
        "b1":  jax.random.normal(keys[2], (C,), jnp.float32) * 0.1,
        "g1":  1.0 + 0.1 * jax.random.normal(keys[3], (C,), jnp.float32),
        "be1": 0.1 * jax.random.normal(keys[4], (C,), jnp.float32),
        "m1":  0.1 * jax.random.normal(keys[5], (C,), jnp.float32),
        "v1":  jax.random.uniform(keys[6], (C,), jnp.float32, 0.5, 1.5),
        "wdw": jax.random.normal(keys[7], (3, 3, C), jnp.float32) * 0.1,
        "bdw": jax.random.normal(keys[8], (C,), jnp.float32) * 0.1,
        "g2":  1.0 + 0.1 * jax.random.normal(keys[9], (C,), jnp.float32),
        "be2": 0.1 * jax.random.normal(keys[10], (C,), jnp.float32),
        "m2":  0.1 * jax.random.normal(keys[11], (C,), jnp.float32),
        "v2":  jax.random.uniform(keys[12], (C,), jnp.float32, 0.5, 1.5),
        "wl":  jax.random.normal(keys[13], (C, NC), jnp.float32) * 0.05,
        "bl":  jax.random.normal(keys[14], (NC,), jnp.float32) * 0.1,
    }

    out = jax.block_until_ready(dwconv_model_forward(x, p))
    ref = jax.block_until_ready(reference_forward(x, p))

    assert out.shape == (N, NC), out.shape
    err = float(jnp.max(jnp.abs(out - ref)))
    # bf16 MXU operands (f32 accumulation) vs the f32-HIGHEST reference.
    if err > 2e-2:
        raise AssertionError(f"mismatch vs reference, max abs err = {err}")
    print("KERNEL_OK")
</pallas_src>

<mosaic_0001>
module attributes {stable_mosaic.version = 11 : i64} {
  func.func @_fused_kernel(%arg0: memref<704x28xbf16, #tpu.memory_space<vmem>>, %arg1: memref<28x48xbf16, #tpu.memory_space<vmem>>, %arg2: memref<11x48xf32, #tpu.memory_space<vmem>>, %arg3: memref<656x1xf32, #tpu.memory_space<vmem>>, %arg4: memref<48x1024xbf16, #tpu.memory_space<vmem>>, %arg5: memref<1x1024xf32, #tpu.memory_space<vmem>>, %arg6: memref<2x1024xf32, #tpu.memory_space<vmem>>) attributes {dimension_semantics = [], scalar_prefetch = 0 : i64, scratch_operands = 0 : i64, tpu.core_type = #tpu.core_type<tc>} {
    %c0 = arith.constant 0 : index
    %c0_0 = arith.constant 0 : index
    %0 = vector.load %arg2[%c0, %c0_0] : memref<11x48xf32, #tpu.memory_space<vmem>>, vector<11x48xf32>
    %c0_1 = arith.constant 0 : index
    %c0_2 = arith.constant 0 : index
    %1 = vector.load %arg0[%c0_1, %c0_2] : memref<704x28xbf16, #tpu.memory_space<vmem>>, vector<704x28xbf16>
    %c0_3 = arith.constant 0 : index
    %c0_4 = arith.constant 0 : index
    %2 = vector.load %arg1[%c0_3, %c0_4] : memref<28x48xbf16, #tpu.memory_space<vmem>>, vector<28x48xbf16>
    %cst = arith.constant dense<0.000000e+00> : vector<704x48xf32>
    %3 = tpu.matmul %1, %2, %cst {dimension_numbers = #tpu.dot_dimension_numbers<[1], [0], [0], [1], [0, 0, 1, 1], [], []>} : vector<704x28xbf16>, vector<28x48xbf16>, vector<704x48xf32> -> vector<704x48xf32>
    %4 = vector.extract_strided_slice %0 {offsets = [0, 0], sizes = [1, 48], strides = [1, 1]} : vector<11x48xf32> to vector<1x48xf32>
    %5 = vector.broadcast %4 : vector<1x48xf32> to vector<704x48xf32>
    %6 = arith.addf %3, %5 : vector<704x48xf32>
    %cst_5 = arith.constant 0.000000e+00 : f32
    %7 = vector.broadcast %cst_5 : f32 to vector<704x48xf32>
    %8 = arith.maximumf %6, %7 : vector<704x48xf32>
    %cst_6 = arith.constant 0.000000e+00 : f32
    %9 = vector.broadcast %cst_6 : f32 to vector<656x48xf32>
    %10 = vector.extract_strided_slice %8 {offsets = [5, 0], sizes = [656, 48], strides = [1, 1]} : vector<704x48xf32> to vector<656x48xf32>
    %11 = vector.extract_strided_slice %0 {offsets = [2, 0], sizes = [1, 48], strides = [1, 1]} : vector<11x48xf32> to vector<1x48xf32>
    %12 = vector.shape_cast %11 : vector<1x48xf32> to vector<48xf32>
    %13 = vector.shape_cast %12 : vector<48xf32> to vector<1x48xf32>
    %14 = vector.broadcast %13 : vector<1x48xf32> to vector<656x48xf32>
    %15 = arith.mulf %10, %14 : vector<656x48xf32>
    %16 = arith.addf %9, %15 : vector<656x48xf32>
    %17 = vector.extract_strided_slice %8 {offsets = [6, 0], sizes = [656, 48], strides = [1, 1]} : vector<704x48xf32> to vector<656x48xf32>
    %18 = vector.extract_strided_slice %0 {offsets = [3, 0], sizes = [1, 48], strides = [1, 1]} : vector<11x48xf32> to vector<1x48xf32>
    %19 = vector.shape_cast %18 : vector<1x48xf32> to vector<48xf32>
    %20 = vector.shape_cast %19 : vector<48xf32> to vector<1x48xf32>
    %21 = vector.broadcast %20 : vector<1x48xf32> to vector<656x48xf32>
    %22 = arith.mulf %17, %21 : vector<656x48xf32>
    %23 = arith.addf %16, %22 : vector<656x48xf32>
    %24 = vector.extract_strided_slice %8 {offsets = [7, 0], sizes = [656, 48], strides = [1, 1]} : vector<704x48xf32> to vector<656x48xf32>
    %25 = vector.extract_strided_slice %0 {offsets = [4, 0], sizes = [1, 48], strides = [1, 1]} : vector<11x48xf32> to vector<1x48xf32>
    %26 = vector.shape_cast %25 : vector<1x48xf32> to vector<48xf32>
    %27 = vector.shape_cast %26 : vector<48xf32> to vector<1x48xf32>
    %28 = vector.broadcast %27 : vector<1x48xf32> to vector<656x48xf32>
    %29 = arith.mulf %24, %28 : vector<656x48xf32>
    %30 = arith.addf %23, %29 : vector<656x48xf32>
    %31 = vector.extract_strided_slice %8 {offsets = [23, 0], sizes = [656, 48], strides = [1, 1]} : vector<704x48xf32> to vector<656x48xf32>
    %32 = vector.extract_strided_slice %0 {offsets = [5, 0], sizes = [1, 48], strides = [1, 1]} : vector<11x48xf32> to vector<1x48xf32>
    %33 = vector.shape_cast %32 : vector<1x48xf32> to vector<48xf32>
    %34 = vector.shape_cast %33 : vector<48xf32> to vector<1x48xf32>
    %35 = vector.broadcast %34 : vector<1x48xf32> to vector<656x48xf32>
    %36 = arith.mulf %31, %35 : vector<656x48xf32>
    %37 = arith.addf %30, %36 : vector<656x48xf32>
    %38 = vector.extract_strided_slice %8 {offsets = [24, 0], sizes = [656, 48], strides = [1, 1]} : vector<704x48xf32> to vector<656x48xf32>
    %39 = vector.extract_strided_slice %0 {offsets = [6, 0], sizes = [1, 48], strides = [1, 1]} : vector<11x48xf32> to vector<1x48xf32>
    %40 = vector.shape_cast %39 : vector<1x48xf32> to vector<48xf32>
    %41 = vector.shape_cast %40 : vector<48xf32> to vector<1x48xf32>
    %42 = vector.broadcast %41 : vector<1x48xf32> to vector<656x48xf32>
    %43 = arith.mulf %38, %42 : vector<656x48xf32>
    %44 = arith.addf %37, %43 : vector<656x48xf32>
    %45 = vector.extract_strided_slice %8 {offsets = [25, 0], sizes = [656, 48], strides = [1, 1]} : vector<704x48xf32> to vector<656x48xf32>
    %46 = vector.extract_strided_slice %0 {offsets = [7, 0], sizes = [1, 48], strides = [1, 1]} : vector<11x48xf32> to vector<1x48xf32>
    %47 = vector.shape_cast %46 : vector<1x48xf32> to vector<48xf32>
    %48 = vector.shape_cast %47 : vector<48xf32> to vector<1x48xf32>
    %49 = vector.broadcast %48 : vector<1x48xf32> to vector<656x48xf32>
    %50 = arith.mulf %45, %49 : vector<656x48xf32>
    %51 = arith.addf %44, %50 : vector<656x48xf32>
    %52 = vector.extract_strided_slice %8 {offsets = [41, 0], sizes = [656, 48], strides = [1, 1]} : vector<704x48xf32> to vector<656x48xf32>
    %53 = vector.extract_strided_slice %0 {offsets = [8, 0], sizes = [1, 48], strides = [1, 1]} : vector<11x48xf32> to vector<1x48xf32>
    %54 = vector.shape_cast %53 : vector<1x48xf32> to vector<48xf32>
    %55 = vector.shape_cast %54 : vector<48xf32> to vector<1x48xf32>
    %56 = vector.broadcast %55 : vector<1x48xf32> to vector<656x48xf32>
    %57 = arith.mulf %52, %56 : vector<656x48xf32>
    %58 = arith.addf %51, %57 : vector<656x48xf32>
    %59 = vector.extract_strided_slice %8 {offsets = [42, 0], sizes = [656, 48], strides = [1, 1]} : vector<704x48xf32> to vector<656x48xf32>
    %60 = vector.extract_strided_slice %0 {offsets = [9, 0], sizes = [1, 48], strides = [1, 1]} : vector<11x48xf32> to vector<1x48xf32>
    %61 = vector.shape_cast %60 : vector<1x48xf32> to vector<48xf32>
    %62 = vector.shape_cast %61 : vector<48xf32> to vector<1x48xf32>
    %63 = vector.broadcast %62 : vector<1x48xf32> to vector<656x48xf32>
    %64 = arith.mulf %59, %63 : vector<656x48xf32>
    %65 = arith.addf %58, %64 : vector<656x48xf32>
    %66 = vector.extract_strided_slice %8 {offsets = [43, 0], sizes = [656, 48], strides = [1, 1]} : vector<704x48xf32> to vector<656x48xf32>
    %67 = vector.extract_strided_slice %0 {offsets = [10, 0], sizes = [1, 48], strides = [1, 1]} : vector<11x48xf32> to vector<1x48xf32>
    %68 = vector.shape_cast %67 : vector<1x48xf32> to vector<48xf32>
    %69 = vector.shape_cast %68 : vector<48xf32> to vector<1x48xf32>
    %70 = vector.broadcast %69 : vector<1x48xf32> to vector<656x48xf32>
    %71 = arith.mulf %66, %70 : vector<656x48xf32>
    %72 = arith.addf %65, %71 : vector<656x48xf32>
    %73 = vector.extract_strided_slice %0 {offsets = [1, 0], sizes = [1, 48], strides = [1, 1]} : vector<11x48xf32> to vector<1x48xf32>
    %74 = vector.broadcast %73 : vector<1x48xf32> to vector<656x48xf32>
    %75 = arith.addf %72, %74 : vector<656x48xf32>
    %cst_7 = arith.constant 0.000000e+00 : f32
    %76 = vector.broadcast %cst_7 : f32 to vector<656x48xf32>
    %77 = arith.maximumf %75, %76 : vector<656x48xf32>
    %c0_8 = arith.constant 0 : index
    %c0_9 = arith.constant 0 : index
    %78 = vector.load %arg3[%c0_8, %c0_9] : memref<656x1xf32, #tpu.memory_space<vmem>>, vector<656x1xf32>
    %79 = vector.broadcast %78 : vector<656x1xf32> to vector<656x48xf32>
    %80 = arith.mulf %77, %79 : vector<656x48xf32>
    %81 = vector.shape_cast %80 : vector<656x48xf32> to vector<2x328x48xf32>
    %cst_10 = arith.constant dense<0.000000e+00> : vector<2x48xf32>
    %82 = vector.multi_reduction <add>, %81, %cst_10 [1] : vector<2x328x48xf32> to vector<2x48xf32>
    %83 = arith.truncf %82 : vector<2x48xf32> to vector<2x48xbf16>
    %c0_11 = arith.constant 0 : index
    %c0_12 = arith.constant 0 : index
    %84 = vector.load %arg4[%c0_11, %c0_12] : memref<48x1024xbf16, #tpu.memory_space<vmem>>, vector<48x1024xbf16>
    %cst_13 = arith.constant dense<0.000000e+00> : vector<2x1024xf32>
    %85 = tpu.matmul %83, %84, %cst_13 {dimension_numbers = #tpu.dot_dimension_numbers<[1], [0], [0], [1], [0, 0, 1, 1], [], []>} : vector<2x48xbf16>, vector<48x1024xbf16>, vector<2x1024xf32> -> vector<2x1024xf32>
    %c0_14 = arith.constant 0 : index
    %c0_15 = arith.constant 0 : index
    %86 = vector.load %arg5[%c0_14, %c0_15] : memref<1x1024xf32, #tpu.memory_space<vmem>>, vector<1x1024xf32>
    %87 = vector.broadcast %86 : vector<1x1024xf32> to vector<2x1024xf32>
    %88 = arith.addf %85, %87 : vector<2x1024xf32>
    %c0_16 = arith.constant 0 : index
    %c0_17 = arith.constant 0 : index
    %89 = vector.load %arg6[%c0_16, %c0_17] : memref<2x1024xf32, #tpu.memory_space<vmem>>, vector<2x1024xf32>
    tpu.vector_store %arg6[%c0_16, %c0_17], %88 {strides = array<i32>} : memref<2x1024xf32, #tpu.memory_space<vmem>>, vector<2x1024xf32>,
    return
  }
}

</mosaic_0001>

<bundles_post_ra>
// kernel: dwconv_model_forward.1
= control target key start
LH: loop header
LB: loop body
LE: loop exit
PB: predicated region body
PF: predicated region fallthrough
CT: control target
= control target key end

     0   :  { %v15811_v2 = vmov 0   ;;  %vm487_vm0 = vcmask 1045504   ;;  %vm354_vm1 = vcmask 228352   ;;  %s15801_s0 = inlined_call_operand.vmem [shape: bf16[704,28], index: 0, kind: input, shape index: {}]   ;;  %s15802_s1 = inlined_call_operand.vmem [shape: bf16[28,48], index: 1, kind: input, shape index: {}]   ;;  %s15803_s2 = inlined_call_operand.vmem [shape: f32[11,48], index: 2, kind: input, shape index: {}]   ;;  %s15804_s3 = inlined_call_operand.vmem [shape: f32[656,1], index: 3, kind: input, shape index: {}]   ;;  %s15805_s4 = inlined_call_operand.vmem [shape: bf16[48,1024], index: 4, kind: input, shape index: {}]   ;;  %s15806_s5 = inlined_call_operand.vmem [shape: f32[1,1024], index: 5, kind: input, shape index: {}]   ;;  %s15807_s6 = inlined_call_operand.hbm [shape: f32[2,1024], index: 6, kind: output, shape index: {}]  }
   0x1   :  { %v5315_v0 = vld [vmem:[%s15804_s3 + $0x10] sm:$0xff]  ;;  %v5313_v1 = vld [vmem:[%s15804_s3] sm:$0xff]  ;;  %7245 = vset.pattern.permute.xlu1 %v15811_v2  ;;  %7244 = vset.pattern.permute.xlu0 %v15811_v2  ;;  %v5314_v5 = vld [vmem:[%s15804_s3 + $0x8] sm:$0xff] }
   0x2   :  { %v7246_v3 = vld [vmem:[%s15802_s1] sm:$0xff]   ;;  %5405 = vperm.xlu1 %7245, %v5315_v0   ;;  %5397 = vperm.xlu0 %7244, %v5313_v1   ;;  %v7247_v6 = vld [vmem:[%s15802_s1 + $0x8] sm:$0x3f]   ;;  %v5355_v9 = vld [vmem:[%s15804_s3 + $0x150] sm:$0xff] }
   0x3   :  { %7143 = vmatprep.subr.bf16.mxu0 %v7246_v3  ;;  %7235 = vmatprep.subr.bf16.mxu1 %v7246_v3  ;;  %v5353_v4 = vld [vmem:[%s15804_s3 + $0x140] sm:$0xff]  ;;  %v489_v8 = vsel %vm487_vm0, %v7247_v6, 0  ;;  %v5354_v10 = vld [vmem:[%s15804_s3 + $0x148] sm:$0xff]  ;;  %v5316_v14 = vld [vmem:[%s15804_s3 + $0x18] sm:$0xff] }
   0x4   :  { %7144 = vmatpush3.bf16.msra.mxu0 %v7246_v3  ;;  %7237 = vmatpush3.bf16.msra.mxu1 %v7246_v3  ;;  %v7248_v7 = vld [vmem:[%s15801_s0] sm:$0xff]   ;;  %v7250_v12 = vld [vmem:[%s15801_s0 + $0x8] sm:$0xff]   ;;  %v5356_v15 = vld [vmem:[%s15804_s3 + $0x158] sm:$0xff] }
   0x5   :  { %7239 = vmatprep.subr.msk.bf16.mxu0 %vm487_vm0, %v7247_v6  ;;  %7240 = vmatprep.subr.msk.bf16.mxu1 %vm487_vm0, %v7247_v6  ;;  %v7249_v11 = vld [vmem:[%s15801_s0 + $0xe0] sm:$0xff]   ;;  %v7251_v13 = vld [vmem:[%s15801_s0 + $0xe8] sm:$0xff]   ;;  %v7252_v16 = vld [vmem:[%s15801_s0 + $0x10] sm:$0xff]  }
   0x6   :  { %5557 = vperm.xlu1 %7245, %v5353_v4   ;;  %5401 = vperm.xlu0 %7244, %v5314_v5   ;;  %v7253_v17 = vld [vmem:[%s15801_s0 + $0xf0] sm:$0xff]   ;;  %v5317_v18 = vld [vmem:[%s15804_s3 + $0x20] sm:$0xff]  ;;  %v7254_v20 = vld [vmem:[%s15801_s0 + $0x18] sm:$0xff]  }
   0x7   :  { %7147 = vmatprep.mubr.msk.bf16.mxu0 %vm354_vm1, %v7248_v7  ;;  %7203 = vmatprep.mubr.msk.bf16.mxu1 %vm354_vm1, %v7249_v11  ;;  %v5357_v19 = vld [vmem:[%s15804_s3 + $0x160] sm:$0xff]  ;;  %v7255_v21 = vld [vmem:[%s15801_s0 + $0xf8] sm:$0xff]   ;;  %v5318_v24 = vld [vmem:[%s15804_s3 + $0x28] sm:$0xff] }
   0x8   :  { %7146 = vmatpush3.bf16.msra.mxu0 %v489_v8  ;;  %7238 = vmatpush3.bf16.msra.mxu1 %v489_v8  ;;  %v7256_v22 = vld [vmem:[%s15801_s0 + $0x20] sm:$0xff]   ;;  %v5358_v25 = vld [vmem:[%s15804_s3 + $0x168] sm:$0xff]  ;;  %v5319_v26 = vld [vmem:[%s15804_s3 + $0x30] sm:$0xff] }
   0x9   :  { %v7257_v23 = vld [vmem:[%s15801_s0 + $0x100] sm:$0xff]   ;;  %v5359_v27 = vld [vmem:[%s15804_s3 + $0x170] sm:$0xff]  ;;  %v7258_v28 = vld [vmem:[%s15801_s0 + $0x28] sm:$0xff]  }
   0xa   :  { %5565 = vperm.xlu1 %7245, %v5355_v9   ;;  %5561 = vperm.xlu0 %7244, %v5354_v10   ;;  %v7259_v29 = vld [vmem:[%s15801_s0 + $0x108] sm:$0xff]   ;;  %v7260_v30 = vld [vmem:[%s15801_s0 + $0x30] sm:$0xff]   ;;  %v5320_v32 = vld [vmem:[%s15804_s3 + $0x38] sm:$0xff] }
   0xb   :  { %7148 = vmatmul.mubr.msk.bf16.vlgmr.msra.gmra.mrb[0].mxu0 %vm354_vm1, %v7250_v12  ;;  %7204 = vmatmul.mubr.msk.bf16.vlgmr.msra.gmra.mrb[0].mxu1 %vm354_vm1, %v7251_v13  ;;  %v7261_v31 = vld [vmem:[%s15801_s0 + $0x110] sm:$0xff]   ;;  %v5360_v33 = vld [vmem:[%s15804_s3 + $0x178] sm:$0xff]  ;;  %v5321_v34 = vld [vmem:[%s15804_s3 + $0x40] sm:$0xff] }
   0xc   :  { %7151 = vmatprep.mubr.msk.bf16.mxu0 %vm354_vm1, %v7252_v16  ;;  %7207 = vmatprep.mubr.msk.bf16.mxu1 %vm354_vm1, %v7253_v17  ;;  %v5361_v35 = vld [vmem:[%s15804_s3 + $0x180] sm:$0xff]  ;;  %v7262_v36 = vld [vmem:[%s15801_s0 + $0x38] sm:$0xff]   ;;  %v5322_v40 = vld [vmem:[%s15804_s3 + $0x48] sm:$0xff] }
   0xd   :  { %v7263_v37 = vld [vmem:[%s15801_s0 + $0x118] sm:$0xff]   ;;  %v7264_v38 = vld [vmem:[%s15801_s0 + $0x40] sm:$0xff]   ;;  %v5362_v41 = vld [vmem:[%s15804_s3 + $0x188] sm:$0xff] }
   0xe   :  { %5409 = vperm.xlu1 %7245, %v5316_v14   ;;  %5569 = vperm.xlu0 %7244, %v5356_v15   ;;  %v7265_v39 = vld [vmem:[%s15801_s0 + $0x120] sm:$0xff]   ;;  %v5323_v42 = vld [vmem:[%s15804_s3 + $0x50] sm:$0xff]  ;;  %v7266_v44 = vld [vmem:[%s15801_s0 + $0x48] sm:$0xff]  }
   0xf   :  { %v5363_v43 = vld [vmem:[%s15804_s3 + $0x190] sm:$0xff]  ;;  %v7267_v45 = vld [vmem:[%s15801_s0 + $0x128] sm:$0xff]   ;;  %v5324_v48 = vld [vmem:[%s15804_s3 + $0x58] sm:$0xff] }
  0x10   :  { %v7268_v46 = vld [vmem:[%s15801_s0 + $0x50] sm:$0xff]   ;;  %v5364_v49 = vld [vmem:[%s15804_s3 + $0x198] sm:$0xff]  ;;  %v5325_v50 = vld [vmem:[%s15804_s3 + $0x60] sm:$0xff] }
  0x11   :  { %v7269_v47 = vld [vmem:[%s15801_s0 + $0x130] sm:$0xff]   ;;  %v5365_v51 = vld [vmem:[%s15804_s3 + $0x1a0] sm:$0xff]  ;;  %v7270_v52 = vld [vmem:[%s15801_s0 + $0x58] sm:$0xff]  }
  0x12   :  { %5413 = vperm.xlu1 %7245, %v5317_v18   ;;  %5573 = vperm.xlu0 %7244, %v5357_v19   ;;  %v7271_v53 = vld [vmem:[%s15801_s0 + $0x138] sm:$0xff]   ;;  %v7272_v54 = vld [vmem:[%s15801_s0 + $0x60] sm:$0xff]   ;;  %v5326_v56 = vld [vmem:[%s15804_s3 + $0x68] sm:$0xff] }
  0x13   :  { %7152 = vmatmul.mubr.msk.bf16.gmra.mrb[4].mxu0 %vm354_vm1, %v7254_v20  ;;  %7208 = vmatmul.mubr.msk.bf16.gmra.mrb[4].mxu1 %vm354_vm1, %v7255_v21  ;;  %v7273_v55 = vld [vmem:[%s15801_s0 + $0x140] sm:$0xff]   ;;  %v5366_v57 = vld [vmem:[%s15804_s3 + $0x1a8] sm:$0xff]  ;;  %v5327_v58 = vld [vmem:[%s15804_s3 + $0x70] sm:$0xff] }
  0x14   :  { %7155 = vmatprep.mubr.msk.bf16.mxu0 %vm354_vm1, %v7256_v22  ;;  %7211 = vmatprep.mubr.msk.bf16.mxu1 %vm354_vm1, %v7257_v23  ;;  %v5367_v59 = vld [vmem:[%s15804_s3 + $0x1b0] sm:$0xff]  ;;  %v7274_v60 = vld [vmem:[%s15801_s0 + $0x68] sm:$0xff]   ;;  %v5328_v0 = vld [vmem:[%s15804_s3 + $0x78] sm:$0xff] }
  0x15   :  { %v7275_v61 = vld [vmem:[%s15801_s0 + $0x148] sm:$0xff]   ;;  %v7276_v62 = vld [vmem:[%s15801_s0 + $0x70] sm:$0xff]   ;;  %v5368_v1 = vld [vmem:[%s15804_s3 + $0x1b8] sm:$0xff] }
  0x16   :  { %5417 = vperm.xlu1 %7245, %v5318_v24   ;;  %5577 = vperm.xlu0 %7244, %v5358_v25   ;;  %v7277_v63 = vld [vmem:[%s15801_s0 + $0x150] sm:$0xff]   ;;  %v5329_v3 = vld [vmem:[%s15804_s3 + $0x80] sm:$0xff]  ;;  %v7278_v5 = vld [vmem:[%s15801_s0 + $0x78] sm:$0xff]  }
  0x17   :  { %v5369_v4 = vld [vmem:[%s15804_s3 + $0x1c0] sm:$0xff]  ;;  %v7279_v6 = vld [vmem:[%s15801_s0 + $0x158] sm:$0xff]   ;;  %v5330_v8 = vld [vmem:[%s15804_s3 + $0x88] sm:$0xff] }
  0x18   :  { %v7280_v7 = vld [vmem:[%s15801_s0 + $0x80] sm:$0xff]   ;;  %v5370_v9 = vld [vmem:[%s15804_s3 + $0x1c8] sm:$0xff]  ;;  %v5331_v10 = vld [vmem:[%s15804_s3 + $0x90] sm:$0xff] }
  0x19   :  { %v5371_v11 = vld [vmem:[%s15804_s3 + $0x1d0] sm:$0xff]  ;;  %v7281_v12 = vld [vmem:[%s15801_s0 + $0x88] sm:$0xff]  }
  0x1a   :  { %5421 = vperm.xlu1 %7245, %v5319_v26   ;;  %5581 = vperm.xlu0 %7244, %v5359_v27   ;;  %v7282_v13 = vld [vmem:[%s15801_s0 + $0x90] sm:$0xff]  }
  0x1b   :  { %7156 = vmatmul.mubr.msk.bf16.gmra.mrb[8].mxu0 %vm354_vm1, %v7258_v28  ;;  %7212 = vmatmul.mubr.msk.bf16.gmra.mrb[8].mxu1 %vm354_vm1, %v7259_v29 }
  0x1c   :  { %7159 = vmatprep.mubr.msk.bf16.mxu0 %vm354_vm1, %v7260_v30  ;;  %7215 = vmatprep.mubr.msk.bf16.mxu1 %vm354_vm1, %v7261_v31 }
  0x1e   :  { %5425 = vperm.xlu1 %7245, %v5320_v32   ;;  %5585 = vperm.xlu0 %7244, %v5360_v33  }
  0x22   :  { %5429 = vperm.xlu1 %7245, %v5321_v34   ;;  %5589 = vperm.xlu0 %7244, %v5361_v35  }
  0x23   :  { %7160 = vmatmul.mubr.msk.bf16.gmra.mrb[12].mxu0 %vm354_vm1, %v7262_v36  ;;  %7216 = vmatmul.mubr.msk.bf16.gmra.mrb[12].mxu1 %vm354_vm1, %v7263_v37 }
  0x24   :  { %7163 = vmatprep.mubr.msk.bf16.mxu0 %vm354_vm1, %v7264_v38  ;;  %7219 = vmatprep.mubr.msk.bf16.mxu1 %vm354_vm1, %v7265_v39 }
  0x26   :  { %5433 = vperm.xlu1 %7245, %v5322_v40   ;;  %5593 = vperm.xlu0 %7244, %v5362_v41  }
  0x2a   :  { %5437 = vperm.xlu1 %7245, %v5323_v42   ;;  %5597 = vperm.xlu0 %7244, %v5363_v43  }
  0x2b   :  { %7164 = vmatmul.mubr.msk.bf16.gmra.mrb[16].mxu0 %vm354_vm1, %v7266_v44  ;;  %7220 = vmatmul.mubr.msk.bf16.gmra.mrb[16].mxu1 %vm354_vm1, %v7267_v45 }
  0x2c   :  { %7167 = vmatprep.mubr.msk.bf16.mxu0 %vm354_vm1, %v7268_v46  ;;  %7223 = vmatprep.mubr.msk.bf16.mxu1 %vm354_vm1, %v7269_v47 }
  0x2e   :  { %5441 = vperm.xlu1 %7245, %v5324_v48   ;;  %5601 = vperm.xlu0 %7244, %v5364_v49  }
  0x32   :  { %5445 = vperm.xlu1 %7245, %v5325_v50   ;;  %5605 = vperm.xlu0 %7244, %v5365_v51  }
  0x33   :  { %7168 = vmatmul.mubr.msk.bf16.gmra.mrb[20].mxu0 %vm354_vm1, %v7270_v52  ;;  %7224 = vmatmul.mubr.msk.bf16.gmra.mrb[20].mxu1 %vm354_vm1, %v7271_v53 }
  0x34   :  { %7171 = vmatprep.mubr.msk.bf16.mxu0 %vm354_vm1, %v7272_v54  ;;  %7227 = vmatprep.mubr.msk.bf16.mxu1 %vm354_vm1, %v7273_v55 }
  0x36   :  { %5449 = vperm.xlu1 %7245, %v5326_v56   ;;  %5609 = vperm.xlu0 %7244, %v5366_v57  }
  0x3a   :  { %5453 = vperm.xlu1 %7245, %v5327_v58   ;;  %5613 = vperm.xlu0 %7244, %v5367_v59  }
  0x3b   :  { %7172 = vmatmul.mubr.msk.bf16.gmra.mrb[24].mxu0 %vm354_vm1, %v7274_v60  ;;  %7228 = vmatmul.mubr.msk.bf16.gmra.mrb[24].mxu1 %vm354_vm1, %v7275_v61 }
  0x3c   :  { %7175 = vmatprep.mubr.msk.bf16.mxu0 %vm354_vm1, %v7276_v62  ;;  %7231 = vmatprep.mubr.msk.bf16.mxu1 %vm354_vm1, %v7277_v63 }
  0x3e   :  { %5457 = vperm.xlu1 %7245, %v5328_v0   ;;  %5617 = vperm.xlu0 %7244, %v5368_v1  }
  0x42   :  { %5461 = vperm.xlu1 %7245, %v5329_v3   ;;  %5621 = vperm.xlu0 %7244, %v5369_v4  }
  0x43   :  { %7176 = vmatmul.mubr.msk.bf16.gmra.mrb[28].mxu0 %vm354_vm1, %v7278_v5  ;;  %7232 = vmatmul.mubr.msk.bf16.gmra.mrb[28].mxu1 %vm354_vm1, %v7279_v6 }
  0x44   :  { %7179 = vmatprep.mubr.msk.bf16.mxu0 %vm354_vm1, %v7280_v7  ;;  %6787 = vmatprep.mubr.bf16.mxu1 %v15811_v2 }
  0x46   :  { %5465 = vperm.xlu1 %7245, %v5330_v8   ;;  %5625 = vperm.xlu0 %7244, %v5370_v9  }
  0x47   :  { %11 = vsyncpa [#allocation3], 0  ;;  %v5332_v14 = vld [vmem:[%s15804_s3 + $0x98] sm:$0xff]  ;;  %v5333_v16 = vld [vmem:[%s15804_s3 + $0xa0] sm:$0xff]  ;;  %vm2806_vm2 = vcmask 1044480   ;;  %vm1304_vm3 = vcmask 1046528  }
  0x48   :  { %v5372_v15 = vld [vmem:[%s15804_s3 + $0x1d8] sm:$0xff]  ;;  %v5373_v17 = vld [vmem:[%s15804_s3 + $0x1e0] sm:$0xff]  ;;  %v5334_v20 = vld [vmem:[%s15804_s3 + $0xa8] sm:$0xff]  ;;  %vm3306_vm4 = vcmask 1043456   ;;  %vm4309_vm5 = vcmask 1042432   ;;  %vm4811_vm6 = vcmask 1041408  }
  0x49   :  { %v7283_v18 = vld [vmem:[%s15801_s0 + $0x98] sm:$0xff]   ;;  %v7284_v19 = vld [vmem:[%s15801_s0 + $0xa0] sm:$0xff]   ;;  %v5374_v21 = vld [vmem:[%s15804_s3 + $0x1e8] sm:$0xff]  ;;  %vm6382_vm7 = vcmask 392192   ;;  %vm6629_vm8 = vcmask 1041409  }
  0x4a   :  { %5469 = vperm.xlu1 %7245, %v5331_v10   ;;  %5629 = vperm.xlu0 %7244, %v5371_v11   ;;  %v5335_v22 = vld [vmem:[%s15804_s3 + $0xb0] sm:$0xff]  ;;  %v7285_v24 = vld [vmem:[%s15801_s0 + $0xa8] sm:$0xff]   ;;  %v5336_v26 = vld [vmem:[%s15804_s3 + $0xb8] sm:$0xff] }
  0x4b   :  { %7180 = vmatmul.mubr.msk.bf16.gmra.mrb[32].mxu0 %vm354_vm1, %v7281_v12  ;;  %v5375_v23 = vld [vmem:[%s15804_s3 + $0x1f0] sm:$0xff]  ;;  %v5376_v27 = vld [vmem:[%s15804_s3 + $0x1f8] sm:$0xff]  ;;  %v5337_v28 = vld [vmem:[%s15804_s3 + $0xc0] sm:$0xff] }
  0x4c   :  { %7183 = vmatprep.mubr.msk.bf16.mxu0 %vm354_vm1, %v7282_v13  ;;  %v7286_v25 = vld [vmem:[%s15801_s0 + $0xb0] sm:$0xff]   ;;  %v5377_v29 = vld [vmem:[%s15804_s3 + $0x200] sm:$0xff]  ;;  %v7287_v30 = vld [vmem:[%s15801_s0 + $0xb8] sm:$0xff]  }
  0x4d   :  { %v7288_v31 = vld [vmem:[%s15801_s0 + $0xc0] sm:$0xff]   ;;  %v5338_v32 = vld [vmem:[%s15804_s3 + $0xc8] sm:$0xff]  ;;  %v5339_v34 = vld [vmem:[%s15804_s3 + $0xd0] sm:$0xff] }
  0x4e   :  { %5473 = vperm.xlu1 %7245, %v5332_v14   ;;  %5633 = vperm.xlu0 %7244, %v5372_v15   ;;  %v5378_v33 = vld [vmem:[%s15804_s3 + $0x208] sm:$0xff]  ;;  %v5379_v35 = vld [vmem:[%s15804_s3 + $0x210] sm:$0xff]  ;;  %v5340_v38 = vld [vmem:[%s15804_s3 + $0xd8] sm:$0xff] }
  0x4f   :  { %v7289_v36 = vld [vmem:[%s15801_s0 + $0xc8] sm:$0xff]   ;;  %v7290_v37 = vld [vmem:[%s15801_s0 + $0xd0] sm:$0xff]   ;;  %v5380_v39 = vld [vmem:[%s15804_s3 + $0x218] sm:$0xff] }
  0x50   :  { %v5341_v40 = vld [vmem:[%s15804_s3 + $0xe0] sm:$0xff]  ;;  %v7291_v42 = vld [vmem:[%s15801_s0 + $0xd8] sm:$0xff]   ;;  %v5342_v43 = vld [vmem:[%s15804_s3 + $0xe8] sm:$0xff] }
  0x51   :  { %v5381_v41 = vld [vmem:[%s15804_s3 + $0x220] sm:$0xff]  ;;  %v5382_v44 = vld [vmem:[%s15804_s3 + $0x228] sm:$0xff]  ;;  %v5343_v45 = vld [vmem:[%s15804_s3 + $0xf0] sm:$0xff] }
  0x52   :  { %5477 = vperm.xlu1 %7245, %v5333_v16   ;;  %5637 = vperm.xlu0 %7244, %v5373_v17   ;;  %v5383_v46 = vld [vmem:[%s15804_s3 + $0x230] sm:$0xff]  ;;  %v5344_v47 = vld [vmem:[%s15804_s3 + $0xf8] sm:$0xff]  ;;  %v5345_v49 = vld [vmem:[%s15804_s3 + $0x100] sm:$0xff] }
  0x53   :  { %7184 = vmatmul.mubr.msk.bf16.gmra.mrb[36].mxu0 %vm354_vm1, %v7283_v18  ;;  %v5384_v48 = vld [vmem:[%s15804_s3 + $0x238] sm:$0xff]  ;;  %v5385_v50 = vld [vmem:[%s15804_s3 + $0x240] sm:$0xff]  ;;  %v5346_v53 = vld [vmem:[%s15804_s3 + $0x108] sm:$0xff] }
  0x54   :  { %7187 = vmatprep.mubr.msk.bf16.mxu0 %vm354_vm1, %v7284_v19  ;;  %v5386_v54 = vld [vmem:[%s15804_s3 + $0x248] sm:$0xff]  ;;  %v5347_v60 = vld [vmem:[%s15804_s3 + $0x110] sm:$0xff]  ;;  %v5348_v5 = vld [vmem:[%s15804_s3 + $0x118] sm:$0xff] }
  0x55   :  { %v5387_v61 = vld [vmem:[%s15804_s3 + $0x250] sm:$0xff]  ;;  %v5388_v6 = vld [vmem:[%s15804_s3 + $0x258] sm:$0xff]  ;;  %v5349_v12 = vld [vmem:[%s15804_s3 + $0x120] sm:$0xff] }
  0x56   :  { %5481 = vperm.xlu1 %7245, %v5334_v20   ;;  %5641 = vperm.xlu0 %7244, %v5374_v21   ;;  %v5389_v13 = vld [vmem:[%s15804_s3 + $0x260] sm:$0xff]  ;;  %v5350_v20 = vld [vmem:[%s15804_s3 + $0x128] sm:$0xff] }
  0x57   :  { %v5390_v21 = vld [vmem:[%s15804_s3 + $0x268] sm:$0xff] }
  0x5a   :  { %5485 = vperm.xlu1 %7245, %v5335_v22   ;;  %5645 = vperm.xlu0 %7244, %v5375_v23  }
  0x5b   :  { %7188 = vmatmul.mubr.msk.bf16.gmra.mrb[40].mxu0 %vm354_vm1, %v7285_v24 }
  0x5c   :  { %7191 = vmatprep.mubr.msk.bf16.mxu0 %vm354_vm1, %v7286_v25 }
  0x5e   :  { %5489 = vperm.xlu1 %7245, %v5336_v26   ;;  %5649 = vperm.xlu0 %7244, %v5376_v27  }
  0x62   :  { %5493 = vperm.xlu1 %7245, %v5337_v28   ;;  %5653 = vperm.xlu0 %7244, %v5377_v29   ;;  %v5351_v28 = vld [vmem:[%s15804_s3 + $0x130] sm:$0xff] }
  0x63   :  { %7192 = vmatmul.mubr.msk.bf16.gmra.mrb[44].mxu0 %vm354_vm1, %v7287_v30  ;;  %v5391_v29 = vld [vmem:[%s15804_s3 + $0x270] sm:$0xff] }
  0x64   :  { %7195 = vmatprep.mubr.msk.bf16.mxu0 %vm354_vm1, %v7288_v31 }
  0x66   :  { %5497 = vperm.xlu1 %7245, %v5338_v32   ;;  %5657 = vperm.xlu0 %7244, %v5378_v33  }
  0x6a   :  { %5501 = vperm.xlu1 %7245, %v5339_v34   ;;  %5661 = vperm.xlu0 %7244, %v5379_v35  }
  0x6b   :  { %7196 = vmatmul.mubr.msk.bf16.gmra.mrb[48].mxu0 %vm354_vm1, %v7289_v36  ;;  %v5352_v36 = vld [vmem:[%s15804_s3 + $0x138] sm:$0xff] }
  0x6c   :  { %7199 = vmatprep.mubr.msk.bf16.mxu0 %vm354_vm1, %v7290_v37  ;;  %v5392_v37 = vld [vmem:[%s15804_s3 + $0x278] sm:$0xff] }
  0x6e   :  { %5505 = vperm.xlu1 %7245, %v5340_v38   ;;  %5665 = vperm.xlu0 %7244, %v5380_v39  }
  0x72   :  { %5509 = vperm.xlu1 %7245, %v5341_v40   ;;  %5669 = vperm.xlu0 %7244, %v5381_v41  }
  0x73   :  { %7200 = vmatmul.mubr.msk.bf16.gmra.mrb[52].mxu0 %vm354_vm1, %v7291_v42 }
  0x76   :  { %5513 = vperm.xlu1 %7245, %v5342_v43   ;;  %5673 = vperm.xlu0 %7244, %v5382_v44   ;;  %v5394_v44 = vld [vmem:[%s15804_s3 + $0x288] sm:$0xff] }
  0x7a   :  { %5517 = vperm.xlu1 %7245, %v5343_v45   ;;  %5677 = vperm.xlu0 %7244, %v5383_v46   ;;  %v5393_v45 = vld [vmem:[%s15804_s3 + $0x280] sm:$0xff] }
  0x7e   :  { %5521 = vperm.xlu1 %7245, %v5344_v47   ;;  %5681 = vperm.xlu0 %7244, %v5384_v48  }
  0x81   :  { %v5406_v51 = vpop.permute.xlu1 %5405  ;;  %v7740_v52 = vpop.permute.xlu0 %5397 }
  0x82   :  { %16374 = vst [vmem:[#allocation5_spill] sm:$0xff] %v7740_v52  ;;  %5525 = vperm.xlu1 %7245, %v5345_v49   ;;  %5685 = vperm.xlu0 %7244, %v5385_v50   ;;  %v5726_v55 = vrot.slane %v5406_v51, 3  ;;  %v15813_v56 = vrot.slane %v7740_v52, 3 }
  0x85   :  { %v7749_v57 = vpop.permute.xlu1 %5557  ;;  %v5402_v58 = vpop.permute.xlu0 %5401 }
  0x86   :  { %16375 = vst [vmem:[#allocation6_spill] sm:$0xff] %v7749_v57  ;;  %v5724_v59 = vrot.slane %v5402_v58, 3  ;;  %5529 = vperm.xlu1 %7245, %v5346_v53   ;;  %5689 = vperm.xlu0 %7244, %v5386_v54  }
  0x88   :  { %v7760_v62 = vsel %vm2806_vm2, %v15813_v56, %v5724_v59  ;;  %v7763_v63 = vsel %vm2806_vm2, %v5724_v59, %v5726_v55 }
  0x89   :  { %16376 = vst [vmem:[#allocation7_spill] sm:$0xff] %v7760_v62  ;;  %16377 = vst [vmem:[#allocation8_spill] sm:$0xff] %v7763_v63  ;;  %v5566_v0 = vpop.permute.xlu1 %5565  ;;  %v7765_v1 = vpop.permute.xlu0 %5561 }
  0x8a   :  { %v5806_v3 = vrot.slane %v5566_v0, 3  ;;  %v5804_v4 = vrot.slane %v7765_v1, 3  ;;  %5533 = vperm.xlu1 %7245, %v5347_v60   ;;  %5693 = vperm.xlu0 %7244, %v5387_v61  }
  0x8c   :  { %v7777_v7 = vsel %vm2806_vm2, %v5804_v4, %v5806_v3 }
  0x8d   :  { %16378 = vst [vmem:[#allocation9_spill] sm:$0xff] %v7777_v7  ;;  %v5410_v8 = vpop.permute.xlu1 %5409  ;;  %v5570_v9 = vpop.permute.xlu0 %5569 }
  0x8e   :  { %v5728_v10 = vrot.slane %v5410_v8, 3  ;;  %v5808_v11 = vrot.slane %v5570_v9, 3  ;;  %5537 = vperm.xlu1 %7245, %v5348_v5   ;;  %5697 = vperm.xlu0 %7244, %v5388_v6  }
  0x90   :  { %v7786_v14 = vsel %vm2806_vm2, %v5726_v55, %v5728_v10  ;;  %v7789_v15 = vsel %vm2806_vm2, %v5806_v3, %v5808_v11 }
  0x91   :  { %16379 = vst [vmem:[#allocation10_spill] sm:$0xff] %v7786_v14  ;;  %16380 = vst [vmem:[#allocation11_spill] sm:$0xff] %v7789_v15  ;;  %v5414_v16 = vpop.permute.xlu1 %5413  ;;  %v5574_v17 = vpop.permute.xlu0 %5573 }
  0x92   :  { %v5730_v18 = vrot.slane %v5414_v16, 3  ;;  %v5810_v19 = vrot.slane %v5574_v17, 3  ;;  %5541 = vperm.xlu1 %7245, %v5349_v12   ;;  %5701 = vperm.xlu0 %7244, %v5389_v13   ;;  %v119_v13 = vlaneseq }
  0x94   :  { %v7798_v22 = vsel %vm2806_vm2, %v5728_v10, %v5730_v18  ;;  %v7801_v23 = vsel %vm2806_vm2, %v5808_v11, %v5810_v19 }
  0x95   :  { %16381 = vst [vmem:[#allocation12_spill] sm:$0xff] %v7798_v22  ;;  %16382 = vst [vmem:[#allocation13_spill] sm:$0xff] %v7801_v23  ;;  %v5418_v24 = vpop.permute.xlu1 %5417  ;;  %v5578_v25 = vpop.permute.xlu0 %5577 }
  0x96   :  { %v5732_v26 = vrot.slane %v5418_v24, 3  ;;  %v5812_v27 = vrot.slane %v5578_v25, 3  ;;  %5545 = vperm.xlu1 %7245, %v5350_v20   ;;  %5705 = vperm.xlu0 %7244, %v5390_v21   ;;  %v7877_v21 = vld [vmem:[%s15803_s2] sm:$0xff] }
  0x98   :  { %v7810_v30 = vsel %vm2806_vm2, %v5730_v18, %v5732_v26  ;;  %v7813_v31 = vsel %vm2806_vm2, %v5810_v19, %v5812_v27  ;;  %v7866_v18 = vshrl.u32 %v119_v13, 7 }
  0x99   :  { %16383 = vst [vmem:[#allocation14_spill] sm:$0xff] %v7810_v30  ;;  %16384 = vst [vmem:[#allocation15_spill] sm:$0xff] %v7813_v31  ;;  %v5422_v32 = vpop.permute.xlu1 %5421  ;;  %v5582_v33 = vpop.permute.xlu0 %5581 }
  0x9a   :  { %v5734_v34 = vrot.slane %v5422_v32, 3  ;;  %v5814_v35 = vrot.slane %v5582_v33, 3  ;;  %5549 = vperm.xlu1 %7245, %v5351_v28   ;;  %5709 = vperm.xlu0 %7244, %v5391_v29   ;;  %16391 = vst [vmem:[#allocation22_spill] sm:$0xff] %v7866_v18  ;;  %v7869_v19 = vsub.s32 0, %v7866_v18  ;;  %v7872_v20 = vsub.s32 2, %v7866_v18 }
  0x9b   :  { %v15809_v24 = vsub.s32 3, %v7866_v18  ;;  %v15808_v25 = vsub.s32 4, %v7866_v18  ;;  %v15810_v28 = vsub.s32 5, %v7866_v18  ;;  %v15814_v29 = vsub.s32 6, %v7866_v18 }
  0x9c   :  { %v7822_v38 = vsel %vm2806_vm2, %v5732_v26, %v5734_v34  ;;  %v7825_v39 = vsel %vm2806_vm2, %v5812_v27, %v5814_v35  ;;  %16392 = vst [vmem:[#allocation23_spill] sm:$0xff] %v7869_v19  ;;  %16393 = vst [vmem:[#allocation24_spill] sm:$0xff] %v7872_v20  ;;  %v15815_v32 = vsub.s32 7, %v7866_v18  ;;  %v7890_v33 = vrot.slane %v7877_v21, %v7869_v19 }
  0x9d   :  { %16385 = vst [vmem:[#allocation16_spill] sm:$0xff] %v7822_v38  ;;  %16386 = vst [vmem:[#allocation17_spill] sm:$0xff] %v7825_v39  ;;  %v5426_v40 = vpop.permute.xlu1 %5425  ;;  %v5586_v41 = vpop.permute.xlu0 %5585 }
  0x9e   :  { %v5736_v42 = vrot.slane %v5426_v40, 3  ;;  %v5816_v43 = vrot.slane %v5586_v41, 3  ;;  %5553 = vperm.xlu1 %7245, %v5352_v36   ;;  %5713 = vperm.xlu0 %7244, %v5392_v37   ;;  %16394 = vst [vmem:[#allocation25_spill] sm:$0xff] %v7890_v33  ;;  %v7900_v36 = vsub.s32 1, %v7866_v18  ;;  %v15816_v37 = vrot.slane %v7749_v57, 3 }
  0x9f   :  { %v7906_v41 = vrot.slane %v7877_v21, %v15809_v24 }
  0xa0   :  { %v7834_v46 = vsel %vm2806_vm2, %v5734_v34, %v5736_v42  ;;  %v7837_v47 = vsel %vm2806_vm2, %v5814_v35, %v5816_v43  ;;  %v7894_v34 = vrot.slane %v7877_v21, %v7872_v20  ;;  %v26_v35 = vld [vmem:[%s15803_s2 + $0x8] sm:$0x7]  ;;  %16395 = vst [vmem:[#allocation26_spill] sm:$0xff] %v7900_v36 }
  0xa1   :  { %16387 = vst [vmem:[#allocation18_spill] sm:$0xff] %v7834_v46  ;;  %16388 = vst [vmem:[#allocation19_spill] sm:$0xff] %v7837_v47  ;;  %v5430_v48 = vpop.permute.xlu1 %5429  ;;  %v7839_v49 = vpop.permute.xlu0 %5589 }
  0xa2   :  { %v5738_v50 = vrot.slane %v5430_v48, 3  ;;  %v5818_v51 = vrot.slane %v7839_v49, 3  ;;  %5721 = vperm.xlu1 %7245, %v5394_v44   ;;  %5717 = vperm.xlu0 %7244, %v5393_v45   ;;  %16396 = vst [vmem:[#allocation27_spill] sm:$0xff] %v7906_v41  ;;  %v7916_v44 = vrot.slane %v7877_v21, %v15810_v28  ;;  %v7921_v45 = vrot.slane %v7877_v21, %v15814_v29 }
  0xa3   :  { %v7926_v48 = vrot.slane %v7877_v21, %v15815_v32  ;;  %v7933_v29 = vrot.slane %v26_v35, %v7900_v36 }
  0xa4   :  { %v7843_v53 = vsel %vm2806_vm2, %v5736_v42, %v5738_v50  ;;  %v7846_v54 = vsel %vm2806_vm2, %v5816_v43, %v5818_v51  ;;  %v7911_v42 = vrot.slane %v7877_v21, %v15808_v25  ;;  %16398 = vst [vmem:[#allocation29_spill] sm:$0xff] %v7921_v45 }
  0xa5   :  { %16389 = vst [vmem:[#allocation20_spill] sm:$0xff] %v7843_v53  ;;  %16390 = vst [vmem:[#allocation21_spill] sm:$0xff] %v7846_v54  ;;  %v5434_v55 = vpop.permute.xlu1 %5433  ;;  %v5594_v58 = vpop.permute.xlu0 %5593 }
  0xa6   :  { %v5740_v40 = vrot.slane %v5434_v55, 3  ;;  %16397 = vst [vmem:[#allocation28_spill] sm:$0xff] %v7911_v42  ;;  %v5820_v43 = vrot.slane %v5594_v58, 3  ;;  %16399 = vst [vmem:[#allocation30_spill] sm:$0xff] %v7926_v48  ;;  %v7929_v58 = vrot.slane %v26_v35, %v7869_v19 }
  0xa9   :  { %v5438_v59 = vpop.permute.xlu1 %5437  ;;  %v5598_v60 = vpop.permute.xlu0 %5597 }
  0xaa   :  { %v5742_v49 = vrot.slane %v5438_v59, 3  ;;  %v5822_v55 = vrot.slane %v5598_v60, 3  ;;  %v7940_v59 = vsel %vm2806_vm2, %v15816_v37, %v5804_v4  ;;  %v7943_v60 = vsel %vm2806_vm2, %v5738_v50, %v5740_v40 }
  0xab   :  { %16400 = vst [vmem:[#allocation31_spill] sm:$0xff] %v7940_v59  ;;  %16401 = vst [vmem:[#allocation32_spill] sm:$0xff] %v7943_v60 }
  0xac   :  { %v7956_v4 = vsel %vm2806_vm2, %v5740_v40, %v5742_v49  ;;  %v7959_v50 = vsel %vm2806_vm2, %v5820_v43, %v5822_v55 }
  0xad   :  { %v5442_v61 = vpop.permute.xlu1 %5441  ;;  %v5602_v0 = vpop.permute.xlu0 %5601  ;;  %16403 = vst [vmem:[#allocation34_spill] sm:$0xff] %v7956_v4  ;;  %16404 = vst [vmem:[#allocation35_spill] sm:$0xff] %v7959_v50 }
  0xae   :  { %v5744_v13 = vrot.slane %v5442_v61, 3  ;;  %v5824_v25 = vrot.slane %v5602_v0, 3  ;;  %v7947_v0 = vrot.slane %v26_v35, %v7872_v20 }
  0xb1   :  { %v5446_v3 = vpop.permute.xlu1 %5445  ;;  %v7848_v5 = vpop.permute.xlu0 %5605 }
  0xb2   :  { %v5746_v24 = vrot.slane %v5446_v3, 3  ;;  %v5826_v28 = vrot.slane %v7848_v5, 3  ;;  %v7950_v3 = vsel %vm2806_vm2, %v5818_v51, %v5820_v43  ;;  %v7966_v51 = vsel %vm2806_vm2, %v5822_v55, %v5824_v25 }
  0xb3   :  { %16402 = vst [vmem:[#allocation33_spill] sm:$0xff] %v7950_v3  ;;  %16406 = vst [vmem:[#allocation37_spill] sm:$0xff] %v7966_v51 }
  0xb5   :  { %v7850_v6 = vpop.permute.xlu1 %5449  ;;  %v7852_v8 = vpop.permute.xlu0 %5609 }
  0xb6   :  { %v5748_v61 = vrot.slane %v7850_v6, 3  ;;  %v5828_v5 = vrot.slane %v7852_v8, 3  ;;  %v7962_v6 = vsel %vm2806_vm2, %v5742_v49, %v5744_v13  ;;  %v7969_v8 = vsel %vm2806_vm2, %v5744_v13, %v5746_v24 }
  0xb7   :  { %16405 = vst [vmem:[#allocation36_spill] sm:$0xff] %v7962_v6  ;;  %16407 = vst [vmem:[#allocation38_spill] sm:$0xff] %v7969_v8 }
  0xb8   :  { %v7976_v40 = vsel %vm2806_vm2, %v5746_v24, %v5748_v61  ;;  %v7982_v55 = vsel %vm2806_vm2, %v5826_v28, %v5828_v5 }
  0xb9   :  { %v7854_v9 = vpop.permute.xlu1 %5453  ;;  %v7856_v10 = vpop.permute.xlu0 %5613  ;;  %16409 = vst [vmem:[#allocation40_spill] sm:$0xff] %v7976_v40  ;;  %16410 = vst [vmem:[#allocation41_spill] sm:$0xff] %v7982_v55 }
  0xba   :  { %v5750_v1 = vrot.slane %v7854_v9, 3  ;;  %v5830_v32 = vrot.slane %v7856_v10, 3  ;;  %v7972_v9 = vsel %vm2806_vm2, %v5824_v25, %v5826_v28 }
  0xbb   :  { %16408 = vst [vmem:[#allocation39_spill] sm:$0xff] %v7972_v9 }
  0xbc   :  { %v7985_v13 = vsel %vm2806_vm2, %v5748_v61, %v5750_v1  ;;  %v7988_v25 = vsel %vm2806_vm2, %v5828_v5, %v5830_v32  ;;  %v8016_v5 = vrot.slane %v7877_v21, %v7900_v36 }
  0xbd   :  { %v7858_v11 = vpop.permute.xlu1 %5457  ;;  %v7860_v12 = vpop.permute.xlu0 %5617  ;;  %16411 = vst [vmem:[#allocation42_spill] sm:$0xff] %v7985_v13  ;;  %16412 = vst [vmem:[#allocation43_spill] sm:$0xff] %v7988_v25 }
  0xbe   :  { %v5752_v35 = vrot.slane %v7858_v11, 3  ;;  %v5832_v10 = vrot.slane %v7860_v12, 3  ;;  %16418 = vst [vmem:[#allocation49_spill] sm:$0xff] %v8016_v5 }
  0xc0   :  { %v8000_v61 = vsel %vm2806_vm2, %v5830_v32, %v5832_v10 }
  0xc1   :  { %v7862_v16 = vpop.permute.xlu1 %5461  ;;  %v7864_v17 = vpop.permute.xlu0 %5621  ;;  %16414 = vst [vmem:[#allocation45_spill] sm:$0xff] %v8000_v61 }
  0xc2   :  { %v5754_v43 = vrot.slane %v7862_v16, 3  ;;  %v5834_v49 = vrot.slane %v7864_v17, 3  ;;  %v7996_v16 = vsel %vm2806_vm2, %v5750_v1, %v5752_v35 }
  0xc3   :  { %16413 = vst [vmem:[#allocation44_spill] sm:$0xff] %v7996_v16 }
  0xc4   :  { %v8006_v1 = vsel %vm2806_vm2, %v5752_v35, %v5754_v43 }
  0xc5   :  { %v7881_v26 = vpop.permute.xlu1 %5465  ;;  %v7883_v27 = vpop.permute.xlu0 %5625  ;;  %16415 = vst [vmem:[#allocation46_spill] sm:$0xff] %v8006_v1 }
  0xc6   :  { %v5756_v11 = vrot.slane %v7881_v26, 3  ;;  %v5836_v12 = vrot.slane %v7883_v27, 3 }
  0xc9   :  { %v5470_v2 = vpop.permute.xlu1 %5469  ;;  %v5630_v56 = vpop.permute.xlu0 %5629 }
  0xca   :  { %v5758_v17 = vrot.slane %v5470_v2, 3  ;;  %v5838_v26 = vrot.slane %v5630_v56, 3  ;;  %v8009_v2 = vsel %vm2806_vm2, %v5832_v10, %v5834_v49  ;;  %v8012_v56 = vsel %vm2806_vm2, %v5754_v43, %v5756_v11 }
  0xcb   :  { %16416 = vst [vmem:[#allocation47_spill] sm:$0xff] %v8009_v2  ;;  %16417 = vst [vmem:[#allocation48_spill] sm:$0xff] %v8012_v56 }
  0xcc   :  { %v8023_v7 = vsel %vm2806_vm2, %v5756_v11, %v5758_v17  ;;  %v8026_v10 = vsel %vm2806_vm2, %v5836_v12, %v5838_v26 }
  0xcd   :  { %v7991_v37 = vpop.permute.xlu1 %5473  ;;  %v7993_v24 = vpop.permute.xlu0 %5633  ;;  %16420 = vst [vmem:[#allocation51_spill] sm:$0xff] %v8023_v7  ;;  %16421 = vst [vmem:[#allocation52_spill] sm:$0xff] %v8026_v10 }
  0xce   :  { %v16422_v43 = vrot.slane %v7991_v37, 3 }
  0xd0   :  { %v8031_v59 = vsel %vm2806_vm2, %v5758_v17, %v16422_v43 }
  0xd1   :  { %16423 = vst [vmem:[#allocation53_spill] sm:$0xff] %v8031_v59  ;;  %v8043_v11 = vpop.permute.xlu1 %5477 }
  0xde   :  { %v7149_v18 = vpop.f32.mrb[0].mxu0  ;;  %v7205_v20 = vpop.f32.mrb[0].mxu1 }
  0xdf   :  { %v534_v27 = vadd.f32 %v7149_v18, %v7890_v33  ;;  %v758_v19 = vadd.f32 %v7205_v20, %v7890_v33  ;;  %v525_v39 = vpop.f32.mrb[1].mxu0  ;;  %v749_v23 = vpop.f32.mrb[1].mxu1  ;;  %v8019_v18 = vsel %vm2806_vm2, %v5834_v49, %v5836_v12 }
  0xe0   :  { %v7150_v28 = vpop.f32.mrb[2].mxu0  ;;  %v7206_v32 = vpop.f32.mrb[2].mxu1  ;;  %16419 = vst [vmem:[#allocation50_spill] sm:$0xff] %v8019_v18  ;;  %v526_v35 = vadd.f32 %v525_v39, %v7890_v33  ;;  %v750_v21 = vadd.f32 %v749_v23, %v7890_v33 }
  0xe1   :  { %v878_v20 = vmax.f32 %v534_v27, 0.0  ;;  %v934_v15 = vmax.f32 %v758_v19, 0.0  ;;  %v8034_v36 = vpop.f32.mrb[3].mxu0  ;;  %v8036_v49 = vpop.f32.mrb[3].mxu1  ;;  %v16424_v19 = vrot.slane %v7993_v24, 3  ;;  %v761_v51 = vadd.f32 %v7206_v32, %v7890_v33 }
  0xe2   :  { %v8045_v12 = vpop.permute.xlu0 %5637  ;;  %v876_v9 = vmax.f32 %v526_v35, 0.0  ;;  %v932_v61 = vmax.f32 %v750_v21, 0.0  ;;  %v529_v22 = vadd.f32 %v8034_v36, %v7890_v33  ;;  %v753_v2 = vadd.f32 %v8036_v49, %v7890_v33 }
  0xe3   :  { %v8041_v39 = vsel %vm2806_vm2, %v5838_v26, %v16424_v19  ;;  %v8048_v27 = vmul.f32 %v7906_v41, %v878_v20  ;;  %v8051_v17 = vmul.f32 %v7911_v42, %v878_v20  ;;  %v8054_v23 = vmul.f32 %v7916_v44, %v878_v20 }
  0xe4   :  { %16425 = vst [vmem:[#allocation54_spill] sm:$0xff] %v8041_v39  ;;  %v8059_v26 = vmul.f32 %v7906_v41, %v934_v15  ;;  %v537_v19 = vadd.f32 %v7150_v28, %v7890_v33  ;;  %v8063_v54 = vmul.f32 %v7911_v42, %v934_v15  ;;  %v8066_v55 = vmul.f32 %v7916_v44, %v934_v15 }
  0xe5   :  { %v8070_v50 = vmul.f32 %v7894_v34, %v878_v20  ;;  %v8073_v43 = vmul.f32 %v7921_v45, %v934_v15  ;;  %v8076_v3 = vmul.f32 %v7926_v48, %v934_v15  ;;  %v8086_v20 = vmul.f32 %v7894_v34, %v934_v15 }
  0xe6   :  { %v8078_v28 = vpop.f32.mrb[4].mxu0  ;;  %v8080_v25 = vpop.f32.mrb[4].mxu1  ;;  %v8094_v21 = vmul.f32 %v7929_v58, %v934_v15  ;;  %v8097_v7 = vmul.f32 %v7933_v29, %v934_v15  ;;  %v8100_v47 = vmul.f32 %v7947_v0, %v934_v15  ;;  %v8109_v16 = vmul.f32 %v7906_v41, %v876_v9 }
  0xe7   :  { %16426 = vst [vmem:[#allocation55_spill] sm:$0xff] %v8080_v25  ;;  %v8088_v31 = vpop.f32.mrb[5].mxu0  ;;  %v8090_v57 = vpop.f32.mrb[5].mxu1  ;;  %v8112_v59 = vmul.f32 %v7911_v42, %v876_v9  ;;  %v8117_v40 = vmul.f32 %v7906_v41, %v932_v61  ;;  %v8120_v8 = vmul.f32 %v7911_v42, %v932_v61  ;;  %v8127_v6 = vmul.f32 %v7894_v34, %v876_v9 }
  0xe8   :  { %16427 = vst [vmem:[#allocation56_spill] sm:$0xff] %v8088_v31  ;;  %16428 = vst [vmem:[#allocation57_spill] sm:$0xff] %v8090_v57  ;;  %v8102_v35 = vpop.f32.mrb[6].mxu0  ;;  %v8104_v32 = vpop.f32.mrb[6].mxu1  ;;  %v8130_v4 = vmul.f32 %v7916_v44, %v932_v61  ;;  %v8133_v13 = vmul.f32 %v7921_v45, %v932_v61  ;;  %v8136_v15 = vmul.f32 %v7926_v48, %v932_v61  ;;  %v8154_v53 = vmax.f32 %v537_v19, 0.0 }
  0xe9   :  { %16429 = vst [vmem:[#allocation58_spill] sm:$0xff] %v8102_v35  ;;  %16430 = vst [vmem:[#allocation59_spill] sm:$0xff] %v8104_v32  ;;  %v8122_v56 = vpop.f32.mrb[7].mxu0  ;;  %v8124_v1 = vpop.f32.mrb[7].mxu1  ;;  %v8142_v38 = vmul.f32 %v7894_v34, %v932_v61  ;;  %v8148_v39 = vmul.f32 %v7929_v58, %v932_v61  ;;  %v8152_v60 = vmul.f32 %v7933_v29, %v932_v61  ;;  %v8156_v46 = vmax.f32 %v761_v51, 0.0 }
  0xea   :  { %16431 = vst [vmem:[#allocation60_spill] sm:$0xff] %v8117_v40  ;;  %16432 = vst [vmem:[#allocation61_spill] sm:$0xff] %v8120_v8  ;;  %v8166_v14 = vmul.f32 %v7947_v0, %v932_v61  ;;  %v8174_v51 = vmul.f32 %v7906_v41, %v8154_v53  ;;  %v8188_v30 = vmul.f32 %v7916_v44, %v8154_v53  ;;  %v16457_v5 = vrot.slane %v8051_v17, 2 }
  0xeb   :  { %16433 = vst [vmem:[#allocation62_spill] sm:$0xff] %v8122_v56  ;;  %16434 = vst [vmem:[#allocation63_spill] sm:$0xff] %v8124_v1  ;;  %v8200_v36 = vmul.f32 %v7911_v42, %v8156_v46  ;;  %v8206_v63 = vmul.f32 %v7916_v44, %v8156_v46  ;;  %v8210_v62 = vmul.f32 %v7921_v45, %v8156_v46  ;;  %v16455_v56 = vrot.slane %v8048_v27, 1 }
  0xec   :  { %16435 = vst [vmem:[#allocation64_spill] sm:$0xff] %v8130_v4  ;;  %16436 = vst [vmem:[#allocation65_spill] sm:$0xff] %v8133_v13  ;;  %v16454_v1 = vrot.slane %v8174_v51, 1  ;;  %v16460_v25 = vrot.slane %v8059_v26, 1 }
  0xed   :  { %16437 = vst [vmem:[#allocation66_spill] sm:$0xff] %v8136_v15  ;;  %16438 = vst [vmem:[#allocation67_spill] sm:$0xff] %v8148_v39  ;;  %v15828_v57 = vrot.slane %v8206_v63, 2 }
  0xee   :  { %16439 = vst [vmem:[#allocation68_spill] sm:$0xff] %v8152_v60  ;;  %v8158_v18 = vpop.f32.mrb[8].mxu0  ;;  %v8160_v9 = vpop.f32.mrb[8].mxu1  ;;  %16442 = vst [vmem:[#allocation71_spill] sm:$0xff] %v8166_v14  ;;  %v1311_v32 = vsel %vm1304_vm3, %v16455_v56, %v16454_v1  ;;  %v16461_v56 = vrot.slane %v8200_v36, 2 }
  0xef   :  { %16440 = vst [vmem:[#allocation69_spill] sm:$0xff] %v8158_v18  ;;  %16441 = vst [vmem:[#allocation70_spill] sm:$0xff] %v8160_v9  ;;  %v8168_v10 = vpop.f32.mrb[9].mxu0  ;;  %v8170_v19 = vpop.f32.mrb[9].mxu1  ;;  %v8178_v9 = vmul.f32 %v7911_v42, %v8154_v53  ;;  %v8216_v18 = vmul.f32 %v7926_v48, %v8156_v46 }
  0xf0   :  { %16443 = vst [vmem:[#allocation72_spill] sm:$0xff] %v8168_v10  ;;  %16444 = vst [vmem:[#allocation73_spill] sm:$0xff] %v8170_v19  ;;  %v8184_v61 = vpop.f32.mrb[10].mxu0  ;;  %v8192_v19 = vmul.f32 %v7926_v48, %v8154_v53  ;;  %v8196_v10 = vmul.f32 %v7906_v41, %v8156_v46  ;;  %v8222_v49 = vpop.f32.mrb[10].mxu1 }
  0xf1   :  { %16445 = vst [vmem:[#allocation74_spill] sm:$0xff] %v8174_v51  ;;  %16446 = vst [vmem:[#allocation75_spill] sm:$0xff] %v8178_v9  ;;  %v16456_v52 = vrot.slane %v8178_v9, 2  ;;  %v8236_v14 = vpop.f32.mrb[11].mxu0  ;;  %v16462_v9 = vrot.slane %v8063_v54, 2 }
  0xf2   :  { %16447 = vst [vmem:[#allocation76_spill] sm:$0xff] %v8184_v61  ;;  %16448 = vst [vmem:[#allocation77_spill] sm:$0xff] %v8200_v36  ;;  %v8220_v61 = vmul.f32 %v7929_v58, %v8156_v46  ;;  %v16459_v51 = vrot.slane %v8196_v10, 1 }
  0xf3   :  { %16449 = vst [vmem:[#allocation78_spill] sm:$0xff] %v8206_v63  ;;  %16450 = vst [vmem:[#allocation79_spill] sm:$0xff] %v8210_v62  ;;  %v1812_v35 = vsel %vm487_vm0, %v16457_v5, %v16456_v52  ;;  %v1924_v52 = vsel %vm487_vm0, %v16462_v9, %v16461_v56  ;;  %v15829_v5 = vrot.slane %v8216_v18, 4 }
  0xf4   :  { %16451 = vst [vmem:[#allocation80_spill] sm:$0xff] %v8216_v18  ;;  %16452 = vst [vmem:[#allocation81_spill] sm:$0xff] %v8220_v61  ;;  %v1423_v1 = vsel %vm1304_vm3, %v16460_v25, %v16459_v51  ;;  %v16465_v25 = vrot.slane %v8073_v43, 3  ;;  %v15830_v9 = vrot.slane %v8220_v61, 4  ;;  %v933_v18 = vmax.f32 %v753_v2, 0.0 }
  0xf5   :  { %16453 = vst [vmem:[#allocation82_spill] sm:$0xff] %v8222_v49  ;;  %16458 = vst [vmem:[#allocation83_spill] sm:$0xff] %v8236_v14  ;;  %v1555_v49 = vadd.f32 %v1311_v32, %v8070_v50  ;;  %v1611_v31 = vadd.f32 %v1423_v1, %v8086_v20  ;;  %v16463_v50 = vrot.slane %v8066_v55, 2  ;;  %v16464_v14 = vrot.slane %v8210_v62, 3 }
  0xf6   :  { %v16468_v20 = vrot.slane %v8076_v3, 4  ;;  %v1025_v62 = vmul.f32 %v7894_v34, %v933_v18  ;;  %v16482_v2 = vrot.slane %v8048_v27, 1  ;;  %v16484_v61 = vrot.slane %v8051_v17, 2 }
  0xf7   :  { %v8256_v32 = vsel %vm487_vm0, %v16463_v50, %v15828_v57  ;;  %v8263_v51 = vsel %vm2806_vm2, %v16465_v25, %v16464_v14  ;;  %v8266_v56 = vadd.f32 %v1812_v35, %v1555_v49  ;;  %v8277_v50 = vmul.f32 %v7933_v29, %v8156_v46 }
  0xf8   :  { %16466 = vst [vmem:[#allocation84_spill] sm:$0xff] %v8263_v51  ;;  %v8273_v1 = vsel %vm3306_vm4, %v16468_v20, %v15829_v5  ;;  %v8281_v57 = vmul.f32 %v7947_v0, %v8156_v46  ;;  %v8283_v14 = vadd.f32 %v1924_v52, %v1611_v31  ;;  %v16473_v35 = vrot.slane %v8094_v21, 4 }
  0xf9   :  { %16467 = vst [vmem:[#allocation85_spill] sm:$0xff] %v8266_v56  ;;  %16469 = vst [vmem:[#allocation86_spill] sm:$0xff] %v8273_v1  ;;  %v877_v25 = vmax.f32 %v529_v22, 0.0  ;;  %v15833_v20 = vrot.slane %v8188_v30, 2  ;;  %v15836_v56 = vrot.slane %v8277_v50, 5  ;;  %v8298_v31 = vmul.f32 %v7921_v45, %v8154_v53 }
  0xfa   :  { %16470 = vst [vmem:[#allocation87_spill] sm:$0xff] %v8277_v50  ;;  %16471 = vst [vmem:[#allocation88_spill] sm:$0xff] %v8281_v57  ;;  %v8290_v49 = vsel %vm3306_vm4, %v16473_v35, %v15830_v9  ;;  %v16475_v22 = vrot.slane %v8054_v23, 2  ;;  %v16476_v5 = vrot.slane %v8097_v7, 5  ;;  %v16479_v52 = vrot.slane %v8100_v47, 6 }
  0xfb   :  { %16472 = vst [vmem:[#allocation89_spill] sm:$0xff] %v8283_v14  ;;  %16474 = vst [vmem:[#allocation90_spill] sm:$0xff] %v8290_v49  ;;  %v1139_v14 = vmul.f32 %v7906_v41, %v877_v25  ;;  %v1641_v35 = vmul.f32 %v7911_v42, %v877_v25  ;;  %v16478_v49 = vrot.slane %v8281_v57, 6  ;;  %v969_v23 = vmul.f32 %v7894_v34, %v877_v25 }
  0xfc   :  { %v2309_v9 = vsel %vm487_vm0, %v16475_v22, %v15833_v20  ;;  %v8313_v1 = vsel %vm4309_vm5, %v16476_v5, %v15836_v56  ;;  %v1195_v5 = vmul.f32 %v7906_v41, %v933_v18  ;;  %v1697_v56 = vmul.f32 %v7911_v42, %v933_v18 }
  0xfd   :  { %16477 = vst [vmem:[#allocation91_spill] sm:$0xff] %v8313_v1  ;;  %v8320_v51 = vsel %vm4811_vm6, %v16479_v52, %v16478_v49  ;;  %v1306_v22 = vrot.slane %v1139_v14, 1  ;;  %v1807_v20 = vrot.slane %v1641_v35, 2  ;;  %v2196_v1 = vmul.f32 %v7916_v44, %v933_v18 }
  0xfe   :  { %16480 = vst [vmem:[#allocation92_spill] sm:$0xff] %v8320_v51  ;;  %v16481_v49 = vrot.slane %v8109_v16, 1  ;;  %v16483_v14 = vrot.slane %v8112_v59, 2  ;;  %v1418_v63 = vrot.slane %v1195_v5, 1  ;;  %v1919_v36 = vrot.slane %v1697_v56, 2 }
  0xff   :  { %v1309_v25 = vsel %vm1304_vm3, %v1306_v22, %v16482_v2  ;;  %v1810_v50 = vsel %vm487_vm0, %v1807_v20, %v16484_v61  ;;  %v2416_v16 = vrot.slane %v2196_v1, 2  ;;  %v3194_v27 = vmul.f32 %v7926_v48, %v933_v18 }
 0x100   :  { %v1307_v52 = vsel %vm1304_vm3, %v16481_v49, %v1306_v22  ;;  %v1808_v35 = vsel %vm487_vm0, %v16483_v14, %v1807_v20  ;;  %v1554_v57 = vadd.f32 %v1309_v25, %v969_v23  ;;  %v2696_v49 = vmul.f32 %v7921_v45, %v933_v18 }
 0x101   :  { %v1553_v51 = vadd.f32 %v1307_v52, %v8127_v6  ;;  %v3694_v22 = vmul.f32 %v7929_v58, %v933_v18  ;;  %v16485_v14 = vrot.slane %v8117_v40, 1  ;;  %v16486_v61 = vrot.slane %v8059_v26, 1 }
 0x102   :  { %v8345_v59 = vadd.f32 %v1810_v50, %v1554_v57  ;;  %v16487_v20 = vrot.slane %v8120_v8, 2  ;;  %v16488_v5 = vrot.slane %v8063_v54, 2  ;;  %v16489_v50 = vrot.slane %v8130_v4, 2  ;;  %v16532_v8 = vld [vmem:[#allocation74_spill] sm:$0xff]  ;;  %v16538_v4 = vld [vmem:[#allocation75_spill] sm:$0xff] }
 0x103   :  { %v2054_v2 = vadd.f32 %v1808_v35, %v1553_v51  ;;  %v1419_v17 = vsel %vm1304_vm3, %v16485_v14, %v1418_v63  ;;  %v1421_v6 = vsel %vm1304_vm3, %v1418_v63, %v16486_v61  ;;  %v16491_v26 = vrot.slane %v8066_v55, 2 }
 0x104   :  { %v1609_v56 = vadd.f32 %v1419_v17, %v8142_v38  ;;  %v1610_v1 = vadd.f32 %v1421_v6, %v1025_v62  ;;  %v1920_v23 = vsel %vm487_vm0, %v16487_v20, %v1919_v36  ;;  %v1922_v57 = vsel %vm487_vm0, %v1919_v36, %v16488_v5 }
 0x105   :  { %v2555_v51 = vadd.f32 %v2309_v9, %v2054_v2  ;;  %v8363_v52 = vsel %vm487_vm0, %v16489_v50, %v2416_v16  ;;  %v8368_v63 = vsel %vm487_vm0, %v2416_v16, %v16491_v26  ;;  %v2914_v62 = vrot.slane %v2696_v49, 3 }
 0x106   :  { %16490 = vst [vmem:[#allocation93_spill] sm:$0xff] %v8363_v52  ;;  %16492 = vst [vmem:[#allocation94_spill] sm:$0xff] %v8368_v63  ;;  %v2110_v38 = vadd.f32 %v1920_v23, %v1609_v56  ;;  %v8370_v25 = vadd.f32 %v1922_v57, %v1610_v1  ;;  %v3414_v35 = vrot.slane %v3194_v27, 4  ;;  %v3911_v14 = vrot.slane %v3694_v22, 4 }
 0x107   :  { %v16493_v54 = vrot.slane %v8298_v31, 3  ;;  %v16494_v9 = vrot.slane %v8133_v13, 3  ;;  %v16496_v17 = vrot.slane %v8073_v43, 3  ;;  %v4195_v16 = vmul.f32 %v7933_v29, %v933_v18 }
 0x108   :  { %v8386_v49 = vadd.f32 %v8256_v32, %v2110_v38  ;;  %v16498_v27 = vrot.slane %v8136_v15, 4  ;;  %v16500_v61 = vrot.slane %v8076_v3, 4  ;;  %v16502_v43 = vrot.slane %v8148_v39, 4 }
 0x109   :  { %v3053_v36 = vadd.f32 %v16493_v54, %v2555_v51  ;;  %v8377_v2 = vsel %vm2806_vm2, %v16494_v9, %v2914_v62  ;;  %v8382_v55 = vsel %vm2806_vm2, %v2914_v62, %v16496_v17  ;;  %v16504_v1 = vrot.slane %v8192_v19, 4  ;;  %v8433_v54 = vpop.permute.xlu1 %5481 }
 0x10a   :  { %16495 = vst [vmem:[#allocation95_spill] sm:$0xff] %v8377_v2  ;;  %16497 = vst [vmem:[#allocation96_spill] sm:$0xff] %v8382_v55  ;;  %v8391_v22 = vsel %vm3306_vm4, %v16498_v27, %v3414_v35  ;;  %v8396_v6 = vsel %vm3306_vm4, %v3414_v35, %v16500_v61  ;;  %v8401_v56 = vsel %vm3306_vm4, %v16502_v43, %v3911_v14  ;;  %v16506_v32 = vrot.slane %v8094_v21, 4  ;;  %v16514_v35 = vld [vmem:[#allocation55_spill] sm:$0xff] }
 0x10b   :  { %16499 = vst [vmem:[#allocation97_spill] sm:$0xff] %v8391_v22  ;;  %16501 = vst [vmem:[#allocation98_spill] sm:$0xff] %v8396_v6  ;;  %v8405_v20 = vadd.f32 %v16504_v1, %v3053_v36  ;;  %v4413_v5 = vrot.slane %v4195_v16, 5  ;;  %v4697_v3 = vmul.f32 %v7947_v0, %v933_v18  ;;  %v16508_v57 = vrot.slane %v8043_v11, 3  ;;  %v16518_v36 = vld [vmem:[#allocation71_spill] sm:$0xff] }
 0x10c   :  { %16503 = vst [vmem:[#allocation99_spill] sm:$0xff] %v8401_v56  ;;  %v8410_v23 = vsel %vm3306_vm4, %v3911_v14, %v16506_v32  ;;  %v16509_v51 = vrot.slane %v7991_v37, 3  ;;  %v16511_v26 = vrot.slane %v8045_v12, 3  ;;  %v16512_v62 = vrot.slane %v7993_v24, 3  ;;  %v8431_v14 = vpop.f32.mrb[11].mxu1  ;;  %16516 = vst [vmem:[#allocation104_spill] sm:$0xff] %v8433_v54  ;;  %v8435_v37 = vpop.permute.xlu0 %5641 }
 0x10d   :  { %16505 = vst [vmem:[#allocation100_spill] sm:$0xff] %v8405_v20  ;;  %16507 = vst [vmem:[#allocation101_spill] sm:$0xff] %v8410_v23  ;;  %v550_v21 = vadd.f32 %v8078_v28, %v7890_v33  ;;  %v774_v18 = vadd.f32 %v16514_v35, %v7890_v33  ;;  %v15840_v9 = vrot.slane %v16518_v36, 6  ;;  %v16519_v17 = vrot.slane %v8152_v60, 5  ;;  %v16523_v32 = vld [vmem:[#allocation56_spill] sm:$0xff] }
 0x10e   :  { %v8418_v50 = vsel %vm2806_vm2, %v16509_v51, %v16508_v57  ;;  %v8425_v38 = vsel %vm2806_vm2, %v16512_v62, %v16511_v26  ;;  %16515 = vst [vmem:[#allocation55_spill] sm:$0xff] %v8431_v14  ;;  %16517 = vst [vmem:[#allocation105_spill] sm:$0xff] %v8435_v37  ;;  %v16521_v16 = vrot.slane %v8097_v7, 5  ;;  %v4915_v27 = vrot.slane %v4697_v3, 6 }
 0x10f   :  { %16510 = vst [vmem:[#allocation102_spill] sm:$0xff] %v8418_v50  ;;  %16513 = vst [vmem:[#allocation103_spill] sm:$0xff] %v8425_v38  ;;  %v8441_v24 = vsel %vm4309_vm5, %v16519_v17, %v4413_v5  ;;  %v882_v1 = vmax.f32 %v550_v21, 0.0  ;;  %v542_v57 = vadd.f32 %v16523_v32, %v7890_v33  ;;  %v971_v51 = vmul.f32 %v7894_v34, %v8154_v53 }
 0x110   :  { %16520 = vst [vmem:[#allocation106_spill] sm:$0xff] %v8441_v24  ;;  %v8446_v28 = vsel %vm4309_vm5, %v4413_v5, %v16521_v16  ;;  %v8456_v26 = vmul.f32 %v7894_v34, %v8156_v46  ;;  %v8461_v7 = vsel %vm4811_vm6, %v15840_v9, %v4915_v27  ;;  %v16525_v5 = vrot.slane %v8100_v47, 6  ;;  %v16527_v16 = vld [vmem:[#allocation57_spill] sm:$0xff] }
 0x111   :  { %16522 = vst [vmem:[#allocation107_spill] sm:$0xff] %v8446_v28  ;;  %16524 = vst [vmem:[#allocation56_spill] sm:$0xff] %v8461_v7  ;;  %v8469_v62 = vmul.f32 %v7906_v41, %v882_v1  ;;  %v8472_v21 = vmul.f32 %v7911_v42, %v882_v1  ;;  %v8475_v53 = vmul.f32 %v7916_v44, %v882_v1  ;;  %v938_v46 = vmax.f32 %v774_v18, 0.0  ;;  %v16528_v18 = vld [vmem:[#allocation58_spill] sm:$0xff] }
 0x112   :  { %v8466_v3 = vsel %vm4811_vm6, %v4915_v27, %v16525_v5  ;;  %v8478_v35 = vmul.f32 %v7921_v45, %v882_v1  ;;  %v8481_v17 = vmul.f32 %v7926_v48, %v882_v1  ;;  %v8484_v47 = vmul.f32 %v7929_v58, %v882_v1 }
 0x113   :  { %16526 = vst [vmem:[#allocation108_spill] sm:$0xff] %v8466_v3  ;;  %v766_v27 = vadd.f32 %v16527_v16, %v7890_v33  ;;  %v8489_v32 = vmul.f32 %v7933_v29, %v882_v1  ;;  %v8492_v5 = vmul.f32 %v7947_v0, %v882_v1  ;;  %v8494_v9 = vmax.f32 %v542_v57, 0.0  ;;  %v16529_v16 = vld [vmem:[#allocation59_spill] sm:$0xff] }
 0x114   :  { %v553_v43 = vadd.f32 %v16528_v18, %v7890_v33  ;;  %v8499_v61 = vmul.f32 %v7894_v34, %v882_v1  ;;  %v8505_v28 = vadd.f32 %v16529_v16, %v7890_v33  ;;  %v8510_v57 = vmul.f32 %v7906_v41, %v938_v46 }
 0x115   :  { %v8513_v18 = vmul.f32 %v7911_v42, %v938_v46  ;;  %v8518_v7 = vmul.f32 %v7916_v44, %v938_v46  ;;  %v8521_v16 = vmul.f32 %v7921_v45, %v938_v46  ;;  %v8526_v56 = vmul.f32 %v7926_v48, %v938_v46 }
 0x116   :  { %v8529_v36 = vmul.f32 %v7929_v58, %v938_v46  ;;  %v8532_v1 = vmul.f32 %v7894_v34, %v938_v46  ;;  %v8537_v6 = vmul.f32 %v7933_v29, %v938_v46  ;;  %v8542_v22 = vmul.f32 %v7947_v0, %v938_v46 }
 0x117   :  { %v8546_v39 = vmul.f32 %v7906_v41, %v8494_v9  ;;  %v8550_v55 = vmul.f32 %v7911_v42, %v8494_v9  ;;  %v8554_v60 = vmul.f32 %v7916_v44, %v8494_v9  ;;  %v8558_v24 = vmul.f32 %v7921_v45, %v8494_v9 }
 0x118   :  { %16530 = vst [vmem:[#allocation57_spill] sm:$0xff] %v8542_v22  ;;  %v8562_v46 = vmul.f32 %v7926_v48, %v8494_v9  ;;  %v8567_v63 = vmax.f32 %v766_v27, 0.0  ;;  %v16533_v40 = vrot.slane %v16532_v8, 1  ;;  %v8586_v52 = vmax.f32 %v553_v43, 0.0 }
 0x119   :  { %16531 = vst [vmem:[#allocation58_spill] sm:$0xff] %v8554_v60  ;;  %v15849_v2 = vrot.slane %v8546_v39, 1  ;;  %v16537_v13 = vrot.slane %v8550_v55, 2  ;;  %v16539_v50 = vrot.slane %v16538_v4, 2  ;;  %v16540_v8 = vrot.slane %v8554_v60, 2 }
 0x11a   :  { %v8580_v3 = vmul.f32 %v7906_v41, %v8567_v63  ;;  %v8584_v27 = vmul.f32 %v7911_v42, %v8567_v63  ;;  %16536 = vst [vmem:[#allocation109_spill] sm:$0xff] %v8586_v52  ;;  %v16542_v14 = vrot.slane %v8558_v24, 3  ;;  %v16543_v20 = vrot.slane %v8298_v31, 3 }
 0x11b   :  { %v1313_v23 = vsel %vm1304_vm3, %v16533_v40, %v15849_v2  ;;  %v1814_v38 = vsel %vm487_vm0, %v16539_v50, %v16537_v13  ;;  %v16541_v40 = vrot.slane %v8188_v30, 2  ;;  %v16545_v4 = vrot.slane %v8192_v19, 4 }
 0x11c   :  { %16534 = vst [vmem:[#allocation59_spill] sm:$0xff] %v8580_v3  ;;  %16535 = vst [vmem:[#allocation74_spill] sm:$0xff] %v8584_v27  ;;  %v1556_v15 = vadd.f32 %v1313_v23, %v971_v51  ;;  %v2809_v43 = vsel %vm2806_vm2, %v16543_v20, %v16542_v14  ;;  %v16544_v51 = vrot.slane %v8562_v46, 4  ;;  %v15852_v50 = vrot.slane %v8580_v3, 1  ;;  %v16548_v20 = vld [vmem:[#allocation77_spill] sm:$0xff]  ;;  %v16561_v3 = vld [vmem:[#allocation80_spill] sm:$0xff] }
 0x11d   :  { %v2311_v2 = vsel %vm487_vm0, %v16541_v40, %v16540_v8  ;;  %v15851_v30 = vrot.slane %v8584_v27, 2  ;;  %v8615_v8 = vmul.f32 %v7916_v44, %v8567_v63  ;;  %v8619_v31 = vmul.f32 %v7921_v45, %v8567_v63 }
 0x11e   :  { %v2556_v23 = vadd.f32 %v2311_v2, %v8345_v59  ;;  %v3309_v13 = vsel %vm3306_vm4, %v16545_v4, %v16544_v51  ;;  %v8611_v60 = vadd.f32 %v1814_v38, %v1556_v15  ;;  %v8623_v59 = vmul.f32 %v7926_v48, %v8567_v63 }
 0x11f   :  { %v16547_v2 = vrot.slane %v8196_v10, 1  ;;  %v16549_v38 = vrot.slane %v16548_v20, 2  ;;  %v8637_v40 = vmul.f32 %v7929_v58, %v8567_v63  ;;  %v8648_v20 = vmul.f32 %v7933_v29, %v8567_v63 }
 0x120   :  { %16546 = vst [vmem:[#allocation75_spill] sm:$0xff] %v8623_v59  ;;  %v3054_v19 = vadd.f32 %v2809_v43, %v2556_v23  ;;  %v15855_v43 = vrot.slane %v8615_v8, 2  ;;  %v15856_v23 = vrot.slane %v8619_v31, 3  ;;  %v16560_v27 = vrot.slane %v8623_v59, 4 }
 0x121   :  { %v1425_v15 = vsel %vm1304_vm3, %v16547_v2, %v15852_v50  ;;  %v1926_v14 = vsel %vm487_vm0, %v16549_v38, %v15851_v30  ;;  %16550 = vst [vmem:[#allocation77_spill] sm:$0xff] %v8637_v40  ;;  %16552 = vst [vmem:[#allocation111_spill] sm:$0xff] %v8648_v20  ;;  %v8652_v38 = vmul.f32 %v7947_v0, %v8567_v63  ;;  %v8654_v30 = vpop.f32.mrb[12].mxu0 }
 0x122   :  { %v1612_v51 = vadd.f32 %v1425_v15, %v8456_v26  ;;  %v8643_v4 = vadd.f32 %v3309_v13, %v3054_v19  ;;  %16554 = vst [vmem:[#allocation113_spill] sm:$0xff] %v8654_v30  ;;  %v16556_v15 = vld [vmem:[#allocation78_spill] sm:$0xff]  ;;  %v16558_v19 = vld [vmem:[#allocation79_spill] sm:$0xff] }
 0x123   :  { %16553 = vst [vmem:[#allocation112_spill] sm:$0xff] %v8652_v38  ;;  %v16557_v50 = vrot.slane %v16556_v15, 2  ;;  %v16559_v2 = vrot.slane %v16558_v19, 3  ;;  %v15858_v19 = vrot.slane %v8652_v38, 6 }
 0x124   :  { %16551 = vst [vmem:[#allocation110_spill] sm:$0xff] %v8643_v4  ;;  %v8656_v26 = vadd.f32 %v1926_v14, %v1612_v51  ;;  %v16562_v4 = vrot.slane %v16561_v3, 4  ;;  %v16563_v51 = vrot.slane %v8637_v40, 4  ;;  %v8689_v3 = vmul.f32 %v7911_v42, %v8586_v52 }
 0x125   :  { %v2423_v13 = vsel %vm487_vm0, %v16557_v50, %v15855_v43  ;;  %v2921_v10 = vsel %vm2806_vm2, %v16559_v2, %v15856_v23  ;;  %v15859_v43 = vrot.slane %v8648_v20, 5  ;;  %v8685_v2 = vmul.f32 %v7906_v41, %v8586_v52 }
 0x126   :  { %16555 = vst [vmem:[#allocation114_spill] sm:$0xff] %v8656_v26  ;;  %v3421_v30 = vsel %vm3306_vm4, %v16562_v4, %v16560_v27  ;;  %v2612_v14 = vadd.f32 %v2423_v13, %v8370_v25  ;;  %v16564_v26 = vld [vmem:[#allocation81_spill] sm:$0xff]  ;;  %16568 = vst [vmem:[#allocation80_spill] sm:$0xff] %v8689_v3  ;;  %v8693_v25 = vmul.f32 %v7916_v44, %v8586_v52  ;;  %v8696_v27 = vmax.f32 %v8505_v28, 0.0 }
 0x127   :  { %v16565_v15 = vrot.slane %v16564_v26, 4  ;;  %16567 = vst [vmem:[#allocation79_spill] sm:$0xff] %v8685_v2  ;;  %v16571_v26 = vld [vmem:[#allocation87_spill] sm:$0xff]  ;;  %v8714_v40 = vmul.f32 %v7921_v45, %v8586_v52  ;;  %v15862_v28 = vrot.slane %v8685_v2, 1 }
 0x128   :  { %16569 = vst [vmem:[#allocation81_spill] sm:$0xff] %v8693_v25  ;;  %16570 = vst [vmem:[#allocation115_spill] sm:$0xff] %v8696_v27  ;;  %v3110_v4 = vadd.f32 %v2921_v10, %v2612_v14  ;;  %v16572_v13 = vrot.slane %v16571_v26, 5  ;;  %v15863_v10 = vrot.slane %v8689_v3, 2  ;;  %v8721_v26 = vmul.f32 %v7926_v48, %v8586_v52 }
 0x129   :  { %v8679_v50 = vsel %vm3306_vm4, %v16565_v15, %v16563_v51  ;;  %v16574_v15 = vld [vmem:[#allocation88_spill] sm:$0xff]  ;;  %16577 = vst [vmem:[#allocation116_spill] sm:$0xff] %v8714_v40 }
 0x12a   :  { %16566 = vst [vmem:[#allocation78_spill] sm:$0xff] %v8679_v50  ;;  %v8703_v51 = vsel %vm4309_vm5, %v16572_v13, %v15859_v43  ;;  %v16575_v23 = vrot.slane %v16574_v15, 6  ;;  %16578 = vst [vmem:[#allocation117_spill] sm:$0xff] %v8721_v26  ;;  %v8723_v13 = vadd.f32 %v3421_v30, %v3110_v4  ;;  %v16582_v43 = vrot.slane %v8469_v62, 1 }
 0x12b   :  { %16573 = vst [vmem:[#allocation87_spill] sm:$0xff] %v8703_v51  ;;  %v16583_v30 = vrot.slane %v8472_v21, 2  ;;  %v16584_v15 = vrot.slane %v8693_v25, 2  ;;  %v15865_v38 = vrot.slane %v8721_v26, 4  ;;  %v16595_v25 = vrot.slane %v8484_v47, 4 }
 0x12c   :  { %v8710_v50 = vsel %vm4811_vm6, %v16575_v23, %v15858_v19  ;;  %16579 = vst [vmem:[#allocation118_spill] sm:$0xff] %v8723_v13  ;;  %v8728_v23 = vmul.f32 %v7929_v58, %v8586_v52  ;;  %v8732_v19 = vmul.f32 %v7933_v29, %v8586_v52  ;;  %v1319_v14 = vsel %vm1304_vm3, %v16582_v43, %v15862_v28 }
 0x12d   :  { %16576 = vst [vmem:[#allocation88_spill] sm:$0xff] %v8710_v50  ;;  %v1820_v4 = vsel %vm487_vm0, %v16583_v30, %v15863_v10  ;;  %v16585_v50 = vrot.slane %v8475_v53, 2  ;;  %v1559_v2 = vadd.f32 %v1319_v14, %v8499_v61  ;;  %v16586_v13 = vrot.slane %v8714_v40, 3 }
 0x12e   :  { %16580 = vst [vmem:[#allocation119_spill] sm:$0xff] %v8728_v23  ;;  %16581 = vst [vmem:[#allocation120_spill] sm:$0xff] %v8732_v19  ;;  %v16587_v43 = vrot.slane %v8478_v35, 3  ;;  %v15866_v30 = vrot.slane %v8728_v23, 4  ;;  %v8772_v61 = vmul.f32 %v7947_v0, %v8586_v52  ;;  %v8776_v14 = vmul.f32 %v7906_v41, %v8696_v27 }
 0x12f   :  { %v8749_v51 = vsel %vm487_vm0, %v16585_v50, %v16584_v15  ;;  %v16589_v50 = vrot.slane %v8481_v17, 4  ;;  %v16607_v23 = vrot.slane %v8510_v57, 1 }
 0x130   :  { %v8758_v28 = vsel %vm2806_vm2, %v16587_v43, %v16586_v13  ;;  %16591 = vst [vmem:[#allocation123_spill] sm:$0xff] %v8772_v61  ;;  %16592 = vst [vmem:[#allocation124_spill] sm:$0xff] %v8776_v14  ;;  %v8778_v13 = vpop.f32.mrb[12].mxu1  ;;  %v8780_v43 = vadd.f32 %v1820_v4, %v1559_v2  ;;  %v8787_v10 = vsel %vm3306_vm4, %v16595_v25, %v15866_v30  ;;  %v8800_v2 = vpop.f32.mrb[13].mxu0  ;;  %v15876_v4 = vrot.slane %v8772_v61, 6 }
 0x131   :  { %16588 = vst [vmem:[#allocation121_spill] sm:$0xff] %v8758_v28  ;;  %v8768_v15 = vsel %vm3306_vm4, %v16589_v50, %v15865_v38  ;;  %16593 = vst [vmem:[#allocation125_spill] sm:$0xff] %v8778_v13  ;;  %v16596_v50 = vrot.slane %v8732_v19, 5  ;;  %v16597_v38 = vrot.slane %v8489_v32, 5  ;;  %v8798_v28 = vmul.f32 %v7911_v42, %v8696_v27 }
 0x132   :  { %16590 = vst [vmem:[#allocation122_spill] sm:$0xff] %v8768_v15  ;;  %16594 = vst [vmem:[#allocation126_spill] sm:$0xff] %v8780_v43  ;;  %v8806_v25 = vmul.f32 %v7916_v44, %v8696_v27  ;;  %v8810_v30 = vmul.f32 %v7921_v45, %v8696_v27  ;;  %v8823_v13 = vmul.f32 %v7933_v29, %v8696_v27  ;;  %v16605_v43 = vrot.slane %v8492_v5, 6 }
 0x133   :  { %v8794_v15 = vsel %vm4309_vm5, %v16597_v38, %v16596_v50  ;;  %16598 = vst [vmem:[#allocation127_spill] sm:$0xff] %v8798_v28  ;;  %16599 = vst [vmem:[#allocation128_spill] sm:$0xff] %v8800_v2  ;;  %v8815_v50 = vmul.f32 %v7926_v48, %v8696_v27  ;;  %v8819_v2 = vmul.f32 %v7929_v58, %v8696_v27  ;;  %v16606_v38 = vrot.slane %v8776_v14, 1 }
 0x134   :  { %16600 = vst [vmem:[#allocation129_spill] sm:$0xff] %v8806_v25  ;;  %16601 = vst [vmem:[#allocation130_spill] sm:$0xff] %v8810_v30  ;;  %v8830_v19 = vsel %vm4811_vm6, %v16605_v43, %v15876_v4  ;;  %v15877_v40 = vrot.slane %v8806_v25, 2  ;;  %v15879_v3 = vrot.slane %v8810_v30, 3  ;;  %v16608_v20 = vrot.slane %v8798_v28, 2 }
 0x135   :  { %16602 = vst [vmem:[#allocation131_spill] sm:$0xff] %v8815_v50  ;;  %16603 = vst [vmem:[#allocation132_spill] sm:$0xff] %v8819_v2  ;;  %v1431_v26 = vsel %vm1304_vm3, %v16607_v23, %v16606_v38  ;;  %v16609_v61 = vrot.slane %v8513_v18, 2  ;;  %v16610_v23 = vrot.slane %v8518_v7, 2  ;;  %v16614_v4 = vrot.slane %v8433_v54, 3 }
 0x136   :  { %16604 = vst [vmem:[#allocation133_spill] sm:$0xff] %v8823_v13  ;;  %v1615_v52 = vadd.f32 %v1431_v26, %v8532_v1  ;;  %v16611_v1 = vrot.slane %v8521_v16, 3  ;;  %v16615_v43 = vrot.slane %v8043_v11, 3  ;;  %v16618_v30 = vrot.slane %v8815_v50, 4  ;;  %v8889_v11 = vpop.permute.xlu1 %5485 }
 0x137   :  { %v1932_v59 = vsel %vm487_vm0, %v16609_v61, %v16608_v20  ;;  %v8852_v38 = vsel %vm487_vm0, %v16610_v23, %v15877_v40  ;;  %v8864_v61 = vmul.f32 %v7947_v0, %v8696_v27  ;;  %v16621_v20 = vrot.slane %v8819_v2, 4  ;;  %16623 = vst [vmem:[#allocation139_spill] sm:$0xff] %v8889_v11  ;;  %v16638_v2 = vld [vmem:[#allocation69_spill] sm:$0xff] }
 0x138   :  { %v8859_v26 = vsel %vm2806_vm2, %v16611_v1, %v15879_v3  ;;  %v8871_v23 = vsel %vm2806_vm2, %v16615_v43, %v16614_v4  ;;  %v8873_v40 = vadd.f32 %v1932_v59, %v1615_v52  ;;  %v16619_v1 = vrot.slane %v8526_v56, 4 }
 0x139   :  { %16612 = vst [vmem:[#allocation134_spill] sm:$0xff] %v8859_v26  ;;  %16613 = vst [vmem:[#allocation135_spill] sm:$0xff] %v8864_v61  ;;  %v16622_v26 = vrot.slane %v8529_v36, 4  ;;  %v16624_v52 = vrot.slane %v8823_v13, 5  ;;  %v16625_v59 = vrot.slane %v8537_v6, 5  ;;  %v16632_v13 = vld [vmem:[#allocation63_spill] sm:$0xff] }
 0x13a   :  { %16616 = vst [vmem:[#allocation136_spill] sm:$0xff] %v8871_v23  ;;  %16617 = vst [vmem:[#allocation137_spill] sm:$0xff] %v8873_v40  ;;  %v8880_v3 = vsel %vm3306_vm4, %v16619_v1, %v16618_v30  ;;  %v16627_v1 = vld [vmem:[#allocation62_spill] sm:$0xff]  ;;  %v16628_v40 = vrot.slane %v8435_v37, 3  ;;  %v16642_v11 = vrot.slane %v8550_v55, 2 }
 0x13b   :  { %16620 = vst [vmem:[#allocation138_spill] sm:$0xff] %v8880_v3  ;;  %v8887_v25 = vsel %vm3306_vm4, %v16622_v26, %v16621_v20  ;;  %v8897_v43 = vsel %vm4309_vm5, %v16625_v59, %v16624_v52  ;;  %v545_v23 = vadd.f32 %v16627_v1, %v7890_v33  ;;  %v16629_v26 = vrot.slane %v8045_v12, 3  ;;  %v8910_v3 = vpop.permute.xlu0 %5645  ;;  %v16633_v59 = vld [vmem:[#allocation84_spill] sm:$0xff] }
 0x13c   :  { %16626 = vst [vmem:[#allocation140_spill] sm:$0xff] %v8897_v43  ;;  %16631 = vst [vmem:[#allocation141_spill] sm:$0xff] %v8910_v3  ;;  %v769_v52 = vadd.f32 %v16632_v13, %v7890_v33  ;;  %v3109_v30 = vadd.f32 %v16633_v59, %v8386_v49  ;;  %v972_v1 = vmul.f32 %v7894_v34, %v8494_v9  ;;  %v16634_v12 = vrot.slane %v8864_v61, 6  ;;  %v16637_v49 = vld [vmem:[#allocation86_spill] sm:$0xff] }
 0x13d   :  { %v8907_v20 = vsel %vm2806_vm2, %v16629_v26, %v16628_v40  ;;  %v16635_v40 = vrot.slane %v8542_v22, 6  ;;  %v881_v4 = vmax.f32 %v545_v23, 0.0  ;;  %v8937_v9 = vadd.f32 %v16638_v2, %v7890_v33 }
 0x13e   :  { %16630 = vst [vmem:[#allocation62_spill] sm:$0xff] %v8907_v20  ;;  %v8928_v20 = vmul.f32 %v7894_v34, %v8567_v63  ;;  %v8930_v13 = vmax.f32 %v769_v52, 0.0  ;;  %v8933_v59 = vadd.f32 %v16637_v49, %v3109_v30  ;;  %v16640_v22 = vrot.slane %v8546_v39, 1 }
 0x13f   :  { %v8924_v26 = vsel %vm4811_vm6, %v16635_v40, %v16634_v12  ;;  %v973_v61 = vmul.f32 %v7894_v34, %v881_v4  ;;  %v1143_v50 = vmul.f32 %v7906_v41, %v881_v4  ;;  %v1645_v12 = vmul.f32 %v7911_v42, %v881_v4  ;;  %v8943_v40 = vpop.f32.mrb[13].mxu1 }
 0x140   :  { %16636 = vst [vmem:[#allocation63_spill] sm:$0xff] %v8924_v26  ;;  %v2144_v23 = vmul.f32 %v7916_v44, %v881_v4  ;;  %16639 = vst [vmem:[#allocation84_spill] sm:$0xff] %v8943_v40  ;;  %v2644_v63 = vmul.f32 %v7921_v45, %v881_v4  ;;  %v3142_v52 = vmul.f32 %v7926_v48, %v881_v4  ;;  %v16641_v43 = vrot.slane %v8469_v62, 1 }
 0x141   :  { %v3642_v30 = vmul.f32 %v7929_v58, %v881_v4  ;;  %v4143_v49 = vmul.f32 %v7933_v29, %v881_v4  ;;  %v1314_v2 = vrot.slane %v1143_v50, 1  ;;  %v1815_v28 = vrot.slane %v1645_v12, 2 }
 0x142   :  { %v2312_v14 = vrot.slane %v2144_v23, 2  ;;  %v4645_v27 = vmul.f32 %v7947_v0, %v881_v4  ;;  %v2810_v33 = vrot.slane %v2644_v63, 3  ;;  %v3310_v26 = vrot.slane %v3142_v52, 4  ;;  %v16644_v52 = vld [vmem:[#allocation58_spill] sm:$0xff] }
 0x143   :  { %v3808_v37 = vrot.slane %v3642_v30, 4  ;;  %v4310_v3 = vrot.slane %v4143_v49, 5  ;;  %v1315_v40 = vsel %vm1304_vm3, %v16640_v22, %v1314_v2  ;;  %v1317_v54 = vsel %vm1304_vm3, %v1314_v2, %v16641_v43  ;;  %v16647_v49 = vld [vmem:[#allocation85_spill] sm:$0xff] }
 0x144   :  { %v1816_v50 = vsel %vm487_vm0, %v16642_v11, %v1815_v28  ;;  %v16643_v12 = vrot.slane %v8472_v21, 2  ;;  %v1557_v23 = vadd.f32 %v1315_v40, %v972_v1  ;;  %v1558_v63 = vadd.f32 %v1317_v54, %v973_v61 }
 0x145   :  { %v16645_v30 = vrot.slane %v16644_v52, 2  ;;  %v16646_v22 = vrot.slane %v8475_v53, 2  ;;  %v16648_v11 = vrot.slane %v8558_v24, 3  ;;  %v16650_v40 = vrot.slane %v8562_v46, 4  ;;  %v16655_v46 = vld [vmem:[#allocation110_spill] sm:$0xff] }
 0x146   :  { %v1818_v4 = vsel %vm487_vm0, %v1815_v28, %v16643_v12  ;;  %v16649_v28 = vrot.slane %v8478_v35, 3  ;;  %v2058_v61 = vadd.f32 %v1816_v50, %v1557_v23  ;;  %v16653_v52 = vrot.slane %v8484_v47, 4 }
 0x147   :  { %v2313_v39 = vsel %vm487_vm0, %v16645_v30, %v2312_v14  ;;  %v2315_v62 = vsel %vm487_vm0, %v2312_v14, %v16646_v22  ;;  %v2811_v21 = vsel %vm2806_vm2, %v16648_v11, %v2810_v33  ;;  %v8976_v1 = vadd.f32 %v1818_v4, %v1558_v63 }
 0x148   :  { %v2557_v43 = vadd.f32 %v2313_v39, %v16647_v49  ;;  %v2558_v55 = vadd.f32 %v2315_v62, %v8611_v60  ;;  %v2813_v54 = vsel %vm2806_vm2, %v2810_v33, %v16649_v28  ;;  %v3311_v53 = vsel %vm3306_vm4, %v16650_v40, %v3310_v26  ;;  %v8984_v60 = vpop.f32.mrb[14].mxu0  ;;  %v16654_v33 = vld [vmem:[#allocation100_spill] sm:$0xff] }
 0x149   :  { %v16651_v14 = vrot.slane %v8481_v17, 4  ;;  %16652 = vst [vmem:[#allocation86_spill] sm:$0xff] %v8984_v60  ;;  %v3810_v35 = vsel %vm3306_vm4, %v3808_v37, %v16653_v52  ;;  %v4056_v50 = vadd.f32 %v3808_v37, %v16654_v33  ;;  %v8991_v4 = vadd.f32 %v8749_v51, %v2058_v61  ;;  %v16658_v61 = vld [vmem:[#allocation49_spill] sm:$0xff]  ;;  %v16662_v33 = vld [vmem:[#allocation74_spill] sm:$0xff] }
 0x14a   :  { %v3055_v24 = vadd.f32 %v2811_v21, %v2557_v43  ;;  %v3056_v12 = vadd.f32 %v2813_v54, %v2558_v55  ;;  %v4057_v23 = vadd.f32 %v3810_v35, %v16655_v46  ;;  %v16656_v63 = vrot.slane %v8489_v32, 5  ;;  %v16734_v60 = vld [vmem:[#allocation81_spill] sm:$0xff] }
 0x14b   :  { %v3313_v2 = vsel %vm3306_vm4, %v3310_v26, %v16651_v14  ;;  %v4812_v26 = vrot.slane %v4645_v27, 6  ;;  %v4558_v22 = vadd.f32 %v4310_v3, %v4056_v50  ;;  %v1029_v47 = vmul.f32 %v7894_v34, %v8930_v13 }
 0x14c   :  { %v4312_v17 = vsel %vm4309_vm5, %v4310_v3, %v16656_v63  ;;  %v3557_v30 = vadd.f32 %v3311_v53, %v3055_v24  ;;  %v8997_v39 = vadd.f32 %v3313_v2, %v3056_v12  ;;  %v16657_v37 = vrot.slane %v8492_v5, 6  ;;  %v16659_v2 = vld [vmem:[#allocation59_spill] sm:$0xff] }
 0x14d   :  { %v4559_v62 = vadd.f32 %v4312_v17, %v4057_v23  ;;  %v1199_v49 = vmul.f32 %v7906_v41, %v8930_v13  ;;  %v1701_v32 = vmul.f32 %v7911_v42, %v8930_v13  ;;  %v5060_v43 = vadd.f32 %v4812_v26, %v4558_v22 }
 0x14e   :  { %v4814_v51 = vsel %vm4811_vm6, %v4812_v26, %v16657_v37  ;;  %v4058_v27 = vadd.f32 %v8787_v10, %v3557_v30  ;;  %v2200_v3 = vmul.f32 %v7916_v44, %v8930_v13  ;;  %v2700_v55 = vmul.f32 %v7921_v45, %v8930_v13 }
 0x14f   :  { %v5061_v11 = vadd.f32 %v4814_v51, %v4559_v62  ;;  %v1426_v21 = vrot.slane %v1199_v49, 1  ;;  %v1927_v5 = vrot.slane %v1701_v32, 2  ;;  %v3198_v28 = vmul.f32 %v7926_v48, %v8930_v13  ;;  %v9038_v49 = vpop.permute.xlu1 %5489  ;;  %v16667_v32 = vld [vmem:[#allocation5_spill] sm:$0xff] }
 0x150   :  { %v4560_v54 = vadd.f32 %v8794_v15, %v4058_v27  ;;  %v5147_v40 = vadd.f32 %v16658_v61, %v5060_v43  ;;  %v2424_v53 = vrot.slane %v2200_v3, 2  ;;  %v2922_v14 = vrot.slane %v2700_v55, 3  ;;  %v16670_v55 = vld [vmem:[#allocation89_spill] sm:$0xff] }
 0x151   :  { %v5148_v10 = vadd.f32 %v16658_v61, %v5061_v11  ;;  %v16660_v24 = vrot.slane %v16659_v2, 1  ;;  %v16661_v52 = vrot.slane %v8510_v57, 1  ;;  %v16663_v50 = vrot.slane %v16662_v33, 2  ;;  %v16671_v11 = vld [vmem:[#allocation114_spill] sm:$0xff] }
 0x152   :  { %v5062_v15 = vadd.f32 %v8830_v19, %v4560_v54  ;;  %v5230_v23 = vmax.f32 %v5147_v40, 0.0  ;;  %v16664_v30 = vrot.slane %v8513_v18, 2  ;;  %v16665_v62 = vrot.slane %v8615_v8, 2  ;;  %v16669_v18 = vld [vmem:[#allocation7_spill] sm:$0xff] }
 0x153   :  { %v1427_v12 = vsel %vm1304_vm3, %v16660_v24, %v1426_v21  ;;  %v1429_v35 = vsel %vm1304_vm3, %v1426_v21, %v16661_v52  ;;  %v1928_v46 = vsel %vm487_vm0, %v16663_v50, %v1927_v5  ;;  %v5231_v26 = vmax.f32 %v5148_v10, 0.0  ;;  %v9057_v24 = vpop.f32.mrb[14].mxu1  ;;  %v16676_v50 = vld [vmem:[#allocation8_spill] sm:$0xff] }
 0x154   :  { %v1613_v63 = vadd.f32 %v1427_v12, %v8928_v20  ;;  %v1614_v17 = vadd.f32 %v1429_v35, %v1029_v47  ;;  %v1930_v22 = vsel %vm487_vm0, %v1927_v5, %v16664_v30  ;;  %v2425_v57 = vsel %vm487_vm0, %v16665_v62, %v2424_v53  ;;  %16675 = vst [vmem:[#allocation58_spill] sm:$0xff] %v9057_v24  ;;  %v9079_v62 = vpop.permute.xlu1 %5493 }
 0x155   :  { %v16666_v37 = vrot.slane %v8518_v7, 2  ;;  %v5149_v19 = vadd.f32 %v16658_v61, %v5062_v15  ;;  %v16668_v20 = vrot.slane %v16667_v32, 3  ;;  %v5970_v3 = vmul.f32 %v16669_v18, %v5231_v26  ;;  %v9069_v15 = vpop.permute.xlu0 %5649  ;;  %16681 = vst [vmem:[#allocation100_spill] sm:$0xff] %v9079_v62 }
 0x156   :  { %v2114_v27 = vadd.f32 %v1928_v46, %v1613_v63  ;;  %v9043_v43 = vadd.f32 %v1930_v22, %v1614_v17  ;;  %v2613_v8 = vadd.f32 %v2425_v57, %v16670_v55  ;;  %v16672_v7 = vrot.slane %v8619_v31, 3  ;;  %16677 = vst [vmem:[#allocation85_spill] sm:$0xff] %v9069_v15  ;;  %v16678_v63 = vld [vmem:[#allocation75_spill] sm:$0xff] }
 0x157   :  { %v2427_v51 = vsel %vm487_vm0, %v2424_v53, %v16666_v37  ;;  %v5969_v47 = vmul.f32 %v16668_v20, %v5230_v23  ;;  %v5232_v54 = vmax.f32 %v5149_v19, 0.0  ;;  %v16674_v10 = vrot.slane %v8521_v16, 3 }
 0x158   :  { %v2614_v21 = vadd.f32 %v2427_v51, %v16671_v11  ;;  %v2923_v5 = vsel %vm2806_vm2, %v16672_v7, %v2922_v14  ;;  %v9052_v53 = vadd.f32 %v8852_v38, %v2114_v27  ;;  %v6136_v12 = vrot.slane %v5970_v3, 5  ;;  %v16682_v3 = vld [vmem:[#allocation77_spill] sm:$0xff]  ;;  %v16685_v7 = vld [vmem:[#allocation111_spill] sm:$0xff] }
 0x159   :  { %v6135_v40 = vrot.slane %v5969_v47, 5  ;;  %v2925_v2 = vsel %vm2806_vm2, %v2922_v14, %v16674_v10  ;;  %v3111_v52 = vadd.f32 %v2923_v5, %v2613_v8  ;;  %v3422_v33 = vrot.slane %v3198_v28, 4  ;;  %v16687_v10 = vld [vmem:[#allocation118_spill] sm:$0xff] }
 0x15a   :  { %16673 = vst [vmem:[#allocation69_spill] sm:$0xff] %v9052_v53  ;;  %v3112_v35 = vadd.f32 %v2925_v2, %v2614_v21  ;;  %v9060_v46 = vmul.f32 %v16676_v50, %v5232_v54  ;;  %v3698_v31 = vmul.f32 %v7929_v58, %v8930_v13  ;;  %v4199_v38 = vmul.f32 %v7933_v29, %v8930_v13 }
 0x15b   :  { %v4701_v16 = vmul.f32 %v7947_v0, %v8930_v13  ;;  %v5768_v14 = vrot.slane %v9038_v49, 3  ;;  %v6137_v23 = vsel %vm4309_vm5, %v6135_v40, %v6136_v12  ;;  %v16679_v28 = vrot.slane %v16678_v63, 4 }
 0x15c   :  { %v16680_v26 = vrot.slane %v8526_v56, 4  ;;  %v15898_v22 = vrot.slane %v9069_v15, 3  ;;  %v15901_v13 = vrot.slane %v9060_v46, 5  ;;  %v15897_v51 = vrot.slane %v9079_v62, 3 }
 0x15d   :  { %v3423_v17 = vsel %vm3306_vm4, %v16679_v28, %v3422_v33  ;;  %v3919_v49 = vrot.slane %v3698_v31, 4  ;;  %v4421_v19 = vrot.slane %v4199_v38, 5  ;;  %v4923_v32 = vrot.slane %v4701_v16, 6  ;;  %v16694_v31 = vld [vmem:[#allocation140_spill] sm:$0xff] }
 0x15e   :  { %v3425_v30 = vsel %vm3306_vm4, %v3422_v33, %v16680_v26  ;;  %v3613_v57 = vadd.f32 %v3423_v17, %v3111_v52  ;;  %v6139_v56 = vsel %vm4309_vm5, %v6136_v12, %v15901_v13  ;;  %v6383_v20 = vsel %vm6382_vm7, %v6137_v23, 0.0  ;;  %v16689_v52 = vld [vmem:[#allocation139_spill] sm:$0xff]  ;;  %v16691_v33 = vld [vmem:[#allocation104_spill] sm:$0xff] }
 0x15f   :  { %v9082_v37 = vadd.f32 %v3425_v30, %v3112_v35  ;;  %v886_v27 = vmax.f32 %v8937_v9, 0.0  ;;  %v6384_v18 = vsel %vm6382_vm7, %v6139_v56, 0.0  ;;  %v16683_v55 = vrot.slane %v16682_v3, 4  ;;  %v16695_v16 = vld [vmem:[#allocation112_spill] sm:$0xff]  ;;  %v16701_v30 = vld [vmem:[#allocation105_spill] sm:$0xff]  ;;  %v9136_v3 = vpop.f32.mrb[15].mxu0 }
 0x160   :  { %v4114_v47 = vadd.f32 %v8887_v25, %v3613_v57  ;;  %v16684_v11 = vrot.slane %v8529_v36, 4  ;;  %v16686_v5 = vrot.slane %v16685_v7, 5  ;;  %v9101_v40 = vadd.f32 %v6384_v18, %v6383_v20  ;;  %v9134_v20 = vpop.permute.xlu0 %5653  ;;  %16707 = vst [vmem:[#allocation7_spill] sm:$0xff] %v9136_v3  ;;  %v16711_v7 = vld [vmem:[#allocation25_spill] sm:$0xff]  ;;  %v16731_v13 = vld [vmem:[#allocation80_spill] sm:$0xff] }
 0x161   :  { %v3920_v8 = vsel %vm3306_vm4, %v16683_v55, %v3919_v49  ;;  %v16688_v2 = vrot.slane %v8537_v6, 5  ;;  %v16690_v35 = vrot.slane %v16689_v52, 3  ;;  %v16692_v36 = vrot.slane %v16691_v33, 3  ;;  %v16699_v6 = vld [vmem:[#allocation141_spill] sm:$0xff]  ;;  %16706 = vst [vmem:[#allocation5_spill] sm:$0xff] %v9134_v20 }
 0x162   :  { %v3922_v21 = vsel %vm3306_vm4, %v3919_v49, %v16684_v11  ;;  %v4422_v54 = vsel %vm4309_vm5, %v16686_v5, %v4421_v19  ;;  %v4112_v25 = vadd.f32 %v3920_v8, %v8933_v59  ;;  %v4616_v38 = vadd.f32 %v16694_v31, %v4114_v47  ;;  %v16697_v59 = vld [vmem:[#allocation57_spill] sm:$0xff]  ;;  %v16710_v11 = vld [vmem:[#allocation63_spill] sm:$0xff]  ;;  %v16712_v5 = vld [vmem:[#allocation70_spill] sm:$0xff] }
 0x163   :  { %v4113_v9 = vadd.f32 %v3922_v21, %v16687_v10  ;;  %v4424_v12 = vsel %vm4309_vm5, %v4421_v19, %v16688_v2  ;;  %v9113_v50 = vsel %vm2806_vm2, %v16692_v36, %v16690_v35  ;;  %v16696_v23 = vrot.slane %v16695_v16, 6 }
 0x164   :  { %16693 = vst [vmem:[#allocation110_spill] sm:$0xff] %v9113_v50  ;;  %v16698_v28 = vrot.slane %v16697_v59, 6  ;;  %v16700_v26 = vrot.slane %v16699_v6, 3  ;;  %v16702_v57 = vrot.slane %v16701_v30, 3  ;;  %v16704_v19 = vmov %v16690_v35  ;;  %v16715_v35 = vld [vmem:[#allocation115_spill] sm:$0xff] }
 0x165   :  { %v4924_v63 = vsel %vm4811_vm6, %v16696_v23, %v4923_v32  ;;  %v9132_v56 = vsel %vm2806_vm2, %v16704_v19, %v5768_v14  ;;  %v4614_v47 = vadd.f32 %v4422_v54, %v4112_v25  ;;  %v4615_v18 = vadd.f32 %v4424_v12, %v4113_v9  ;;  %v16714_v12 = vld [vmem:[#allocation109_spill] sm:$0xff]  ;;  %v16716_v23 = vld [vmem:[#allocation72_spill] sm:$0xff]  ;;  %v16729_v50 = vld [vmem:[#allocation79_spill] sm:$0xff] }
 0x166   :  { %v4926_v17 = vsel %vm4811_vm6, %v4923_v32, %v16698_v28  ;;  %v9127_v49 = vsel %vm2806_vm2, %v16702_v57, %v16700_v26  ;;  %16705 = vst [vmem:[#allocation74_spill] sm:$0xff] %v9132_v56  ;;  %v16708_v32 = vmov %v16700_v26  ;;  %v5118_v21 = vadd.f32 %v16710_v11, %v4616_v38 }
 0x167   :  { %16703 = vst [vmem:[#allocation59_spill] sm:$0xff] %v9127_v49  ;;  %v9143_v55 = vsel %vm2806_vm2, %v16708_v32, %v15898_v22  ;;  %v790_v10 = vadd.f32 %v16712_v5, %v16711_v7  ;;  %v9152_v54 = vsel %vm2806_vm2, %v5768_v14, %v15897_v51  ;;  %v5116_v25 = vadd.f32 %v4924_v63, %v4614_v47  ;;  %v16717_v47 = vld [vmem:[#allocation52_spill] sm:$0xff]  ;;  %v16718_v5 = vld [vmem:[#allocation47_spill] sm:$0xff] }
 0x168   :  { %16709 = vst [vmem:[#allocation89_spill] sm:$0xff] %v9143_v55  ;;  %16713 = vst [vmem:[#allocation114_spill] sm:$0xff] %v9152_v54  ;;  %v5117_v9 = vadd.f32 %v4926_v17, %v4615_v18  ;;  %v9155_v2 = vmul.f32 %v7906_v41, %v886_v27  ;;  %v9159_v52 = vmul.f32 %v7894_v34, %v16714_v12  ;;  %v16732_v55 = vrot.slane %v16731_v13, 2 }
 0x169   :  { %v9163_v33 = vmul.f32 %v7894_v34, %v16715_v35  ;;  %v5205_v36 = vadd.f32 %v16658_v61, %v5118_v21  ;;  %v9167_v31 = vmul.f32 %v7911_v42, %v886_v27  ;;  %v5203_v14 = vadd.f32 %v16658_v61, %v5116_v25  ;;  %v16720_v25 = vld [vmem:[#allocation50_spill] sm:$0xff] }
 0x16a   :  { %v5204_v38 = vadd.f32 %v16658_v61, %v5117_v9  ;;  %v9172_v16 = vmul.f32 %v7916_v44, %v886_v27  ;;  %v558_v63 = vadd.f32 %v16716_v23, %v16711_v7  ;;  %v9177_v28 = vmul.f32 %v7894_v34, %v886_v27 }
 0x16b   :  { %v5288_v59 = vmax.f32 %v5205_v36, 0.0  ;;  %v9180_v17 = vmul.f32 %v7921_v45, %v886_v27  ;;  %v9182_v6 = vmax.f32 %v790_v10, 0.0  ;;  %v5286_v26 = vmax.f32 %v5203_v14, 0.0 }
 0x16c   :  { %v5287_v30 = vmax.f32 %v5204_v38, 0.0  ;;  %v9186_v19 = vmul.f32 %v7926_v48, %v886_v27  ;;  %v9193_v11 = vmul.f32 %v7929_v58, %v886_v27  ;;  %v9196_v21 = vmul.f32 %v7933_v29, %v886_v27 }
 0x16d   :  { %v9189_v18 = vmul.f32 %v16717_v47, %v5288_v59  ;;  %v9199_v10 = vmul.f32 %v16718_v5, %v5286_v26  ;;  %v9204_v35 = vmul.f32 %v7947_v0, %v886_v27  ;;  %v9209_v14 = vmul.f32 %v7906_v41, %v9182_v6  ;;  %v9243_v5 = vpop.f32.mrb[15].mxu1 }
 0x16e   :  { %v6026_v9 = vmul.f32 %v16720_v25, %v5287_v30  ;;  %v9213_v38 = vmul.f32 %v7911_v42, %v9182_v6  ;;  %v9217_v23 = vmul.f32 %v7916_v44, %v9182_v6  ;;  %v9222_v27 = vmul.f32 %v7921_v45, %v9182_v6  ;;  %16723 = vst [vmem:[#allocation111_spill] sm:$0xff] %v9243_v5 }
 0x16f   :  { %16719 = vst [vmem:[#allocation8_spill] sm:$0xff] %v9199_v10  ;;  %v15900_v36 = vrot.slane %v9189_v18, 5  ;;  %v15899_v59 = vrot.slane %v9199_v10, 5  ;;  %v884_v30 = vmax.f32 %v558_v63, 0.0  ;;  %v9241_v8 = vmul.f32 %v7894_v34, %v9182_v6 }
 0x170   :  { %v6248_v26 = vrot.slane %v6026_v9, 5  ;;  %v9250_v47 = vmul.f32 %v7926_v48, %v9182_v6  ;;  %v16730_v5 = vrot.slane %v16729_v50, 1  ;;  %v16735_v10 = vrot.slane %v16734_v60, 2 }
 0x171   :  { %v9257_v63 = vmul.f32 %v7911_v42, %v884_v30  ;;  %v9260_v12 = vmul.f32 %v7916_v44, %v884_v30  ;;  %v9263_v51 = vmul.f32 %v7921_v45, %v884_v30  ;;  %v9269_v25 = vmul.f32 %v7929_v58, %v884_v30 }
 0x172   :  { %v9231_v22 = vsel %vm4309_vm5, %v15899_v59, %v6248_v26  ;;  %v9236_v9 = vsel %vm4309_vm5, %v6248_v26, %v15900_v36  ;;  %v9254_v36 = vmul.f32 %v7906_v41, %v884_v30  ;;  %v9266_v59 = vmul.f32 %v7926_v48, %v884_v30 }
 0x173   :  { %16721 = vst [vmem:[#allocation75_spill] sm:$0xff] %v9231_v22  ;;  %16722 = vst [vmem:[#allocation77_spill] sm:$0xff] %v9236_v9  ;;  %v9272_v26 = vmul.f32 %v7933_v29, %v884_v30  ;;  %v15905_v57 = vrot.slane %v9257_v63, 2  ;;  %v9278_v9 = vmul.f32 %v7947_v0, %v884_v30  ;;  %v16733_v22 = vrot.slane %v9260_v12, 2 }
 0x174   :  { %16724 = vst [vmem:[#allocation118_spill] sm:$0xff] %v9263_v51  ;;  %16725 = vst [vmem:[#allocation139_spill] sm:$0xff] %v9266_v59  ;;  %v15903_v32 = vrot.slane %v9254_v36, 1 }
 0x175   :  { %16726 = vst [vmem:[#allocation104_spill] sm:$0xff] %v9269_v25  ;;  %16727 = vst [vmem:[#allocation140_spill] sm:$0xff] %v9272_v26  ;;  %v1822_v24 = vsel %vm487_vm0, %v16732_v55, %v15905_v57  ;;  %v2319_v54 = vsel %vm487_vm0, %v16735_v10, %v16733_v22  ;;  %v16739_v55 = vrot.slane %v9266_v59, 4  ;;  %v16740_v57 = vld [vmem:[#allocation117_spill] sm:$0xff]  ;;  %v16742_v22 = vrot.slane %v9269_v25, 4  ;;  %v16743_v10 = vld [vmem:[#allocation119_spill] sm:$0xff] }
 0x176   :  { %16728 = vst [vmem:[#allocation112_spill] sm:$0xff] %v9278_v9  ;;  %v1321_v3 = vsel %vm1304_vm3, %v16730_v5, %v15903_v32  ;;  %v2560_v50 = vadd.f32 %v2319_v54, %v8976_v1  ;;  %v16736_v5 = vrot.slane %v9263_v51, 3  ;;  %v16737_v32 = vld [vmem:[#allocation116_spill] sm:$0xff]  ;;  %v16741_v15 = vrot.slane %v16740_v57, 4  ;;  %v16770_v51 = vld [vmem:[#allocation129_spill] sm:$0xff] }
 0x177   :  { %v1560_v49 = vadd.f32 %v1321_v3, %v9159_v52  ;;  %v16738_v62 = vrot.slane %v16737_v32, 3  ;;  %v16744_v56 = vrot.slane %v16743_v10, 4  ;;  %v16745_v1 = vrot.slane %v9272_v26, 5  ;;  %v16746_v54 = vld [vmem:[#allocation120_spill] sm:$0xff] }
 0x178   :  { %v3317_v60 = vsel %vm3306_vm4, %v16741_v15, %v16739_v55  ;;  %v16747_v52 = vrot.slane %v16746_v54, 5  ;;  %v16751_v15 = vld [vmem:[#allocation73_spill] sm:$0xff]  ;;  %v16764_v54 = vld [vmem:[#allocation124_spill] sm:$0xff] }
 0x179   :  { %v2817_v13 = vsel %vm2806_vm2, %v16738_v62, %v16736_v5  ;;  %v3814_v3 = vsel %vm3306_vm4, %v16744_v56, %v16742_v22  ;;  %v16748_v62 = vrot.slane %v9278_v9, 6  ;;  %v16749_v5 = vld [vmem:[#allocation123_spill] sm:$0xff]  ;;  %v782_v55 = vadd.f32 %v16751_v15, %v16711_v7  ;;  %v16753_v22 = vld [vmem:[#allocation76_spill] sm:$0xff] }
 0x17a   :  { %v4316_v32 = vsel %vm4309_vm5, %v16747_v52, %v16745_v1  ;;  %v16750_v20 = vrot.slane %v16749_v5, 6  ;;  %v9329_v25 = vadd.f32 %v1822_v24, %v1560_v49  ;;  %v3058_v10 = vadd.f32 %v2817_v13, %v2560_v50 }
 0x17b   :  { %v4059_v56 = vadd.f32 %v3814_v3, %v8997_v39  ;;  %v569_v26 = vadd.f32 %v16753_v22, %v16711_v7  ;;  %v9337_v1 = vmul.f32 %v7929_v58, %v9182_v6  ;;  %v9343_v52 = vmax.f32 %v782_v55, 0.0 }
 0x17c   :  { %v4818_v57 = vsel %vm4811_vm6, %v16750_v20, %v16748_v62  ;;  %16752 = vst [vmem:[#allocation57_spill] sm:$0xff] %v9329_v25  ;;  %v9341_v20 = vmul.f32 %v7933_v29, %v9182_v6  ;;  %v9347_v24 = vmul.f32 %v7947_v0, %v9182_v6  ;;  %v9350_v39 = vmul.f32 %v7894_v34, %v884_v30 }
 0x17d   :  { %16754 = vst [vmem:[#allocation141_spill] sm:$0xff] %v9337_v1  ;;  %v9352_v49 = vadd.f32 %v3317_v60, %v3058_v10  ;;  %v4561_v50 = vadd.f32 %v4316_v32, %v4059_v56  ;;  %v9356_v13 = vmul.f32 %v7906_v41, %v9343_v52  ;;  %v9360_v3 = vmul.f32 %v7911_v42, %v9343_v52 }
 0x17e   :  { %16755 = vst [vmem:[#allocation105_spill] sm:$0xff] %v9341_v20  ;;  %16756 = vst [vmem:[#allocation63_spill] sm:$0xff] %v9347_v24  ;;  %v9364_v62 = vmul.f32 %v7916_v44, %v9343_v52  ;;  %v9366_v6 = vmax.f32 %v569_v26, 0.0  ;;  %v9370_v30 = vmul.f32 %v7921_v45, %v9343_v52  ;;  %v9374_v60 = vmul.f32 %v7926_v48, %v9343_v52 }
 0x17f   :  { %16757 = vst [vmem:[#allocation70_spill] sm:$0xff] %v9352_v49  ;;  %16758 = vst [vmem:[#allocation109_spill] sm:$0xff] %v9356_v13  ;;  %v5063_v5 = vadd.f32 %v4818_v57, %v4561_v50  ;;  %v9378_v32 = vmul.f32 %v7929_v58, %v9343_v52  ;;  %v15915_v15 = vrot.slane %v9356_v13, 1  ;;  %v9385_v57 = vmul.f32 %v7933_v29, %v9343_v52  ;;  %v16767_v49 = vld [vmem:[#allocation127_spill] sm:$0xff] }
 0x180   :  { %16759 = vst [vmem:[#allocation115_spill] sm:$0xff] %v9360_v3  ;;  %16760 = vst [vmem:[#allocation72_spill] sm:$0xff] %v9364_v62  ;;  %v16765_v9 = vrot.slane %v16764_v54, 1  ;;  %v16766_v26 = vrot.slane %v9360_v3, 2  ;;  %v16768_v53 = vrot.slane %v16767_v49, 2  ;;  %v16771_v56 = vrot.slane %v16770_v51, 2 }
 0x181   :  { %16761 = vst [vmem:[#allocation52_spill] sm:$0xff] %v9366_v6  ;;  %16762 = vst [vmem:[#allocation47_spill] sm:$0xff] %v9378_v32  ;;  %v5150_v10 = vadd.f32 %v16658_v61, %v5063_v5  ;;  %v16769_v5 = vrot.slane %v9364_v62, 2  ;;  %v15918_v50 = vrot.slane %v9385_v57, 5 }
 0x182   :  { %16763 = vst [vmem:[#allocation50_spill] sm:$0xff] %v9385_v57  ;;  %v1433_v55 = vsel %vm1304_vm3, %v16765_v9, %v15915_v15  ;;  %v1934_v59 = vsel %vm487_vm0, %v16768_v53, %v16766_v26  ;;  %v16772_v9 = vrot.slane %v9370_v30, 3  ;;  %v16773_v15 = vld [vmem:[#allocation130_spill] sm:$0xff]  ;;  %v16775_v53 = vrot.slane %v9374_v60, 4  ;;  %v16776_v26 = vld [vmem:[#allocation131_spill] sm:$0xff] }
 0x183   :  { %v2431_v22 = vsel %vm487_vm0, %v16771_v56, %v16769_v5  ;;  %v5233_v25 = vmax.f32 %v5150_v10, 0.0  ;;  %v1616_v13 = vadd.f32 %v1433_v55, %v9163_v33  ;;  %v16774_v3 = vrot.slane %v16773_v15, 3  ;;  %v16779_v5 = vld [vmem:[#allocation132_spill] sm:$0xff] }
 0x184   :  { %v2616_v54 = vadd.f32 %v2431_v22, %v9043_v43  ;;  %v16777_v62 = vrot.slane %v16776_v26, 4  ;;  %v16778_v56 = vrot.slane %v9378_v32, 4  ;;  %v16780_v10 = vrot.slane %v16779_v5, 4  ;;  %v16781_v43 = vld [vmem:[#allocation133_spill] sm:$0xff]  ;;  %v16784_v22 = vld [vmem:[#allocation10_spill] sm:$0xff] }
 0x185   :  { %v2929_v49 = vsel %vm2806_vm2, %v16774_v3, %v16772_v9  ;;  %v16782_v55 = vrot.slane %v16781_v43, 5  ;;  %v9431_v3 = vmul.f32 %v7947_v0, %v9343_v52  ;;  %v9434_v9 = vmul.f32 %v16784_v22, %v5233_v25  ;;  %v16787_v43 = vld [vmem:[#allocation82_spill] sm:$0xff] }
 0x186   :  { %v3429_v51 = vsel %vm3306_vm4, %v16777_v62, %v16775_v53  ;;  %v3926_v33 = vsel %vm3306_vm4, %v16780_v10, %v16778_v56  ;;  %v9436_v62 = vadd.f32 %v1934_v59, %v1616_v13  ;;  %v3114_v53 = vadd.f32 %v2929_v49, %v2616_v54  ;;  %v16790_v54 = vld [vmem:[#allocation135_spill] sm:$0xff] }
 0x187   :  { %v4428_v15 = vsel %vm4309_vm5, %v16782_v55, %v15918_v50  ;;  %16783 = vst [vmem:[#allocation79_spill] sm:$0xff] %v9431_v3  ;;  %v4115_v26 = vadd.f32 %v3926_v33, %v9082_v37  ;;  %v15919_v56 = vrot.slane %v9431_v3, 6  ;;  %v9442_v5 = vmul.f32 %v7906_v41, %v9366_v6 }
 0x188   :  { %v9446_v10 = vmul.f32 %v7911_v42, %v9366_v6  ;;  %v793_v55 = vadd.f32 %v16787_v43, %v16711_v7  ;;  %v15921_v25 = vrot.slane %v9434_v9, 5  ;;  %v9451_v59 = vadd.f32 %v3429_v51, %v3114_v53  ;;  %v9468_v51 = vpop.f32.mrb[16].mxu0 }
 0x189   :  { %16785 = vst [vmem:[#allocation80_spill] sm:$0xff] %v9442_v5  ;;  %v4617_v13 = vadd.f32 %v4428_v15, %v4115_v26  ;;  %v9455_v37 = vmul.f32 %v7916_v44, %v9366_v6  ;;  %v16791_v49 = vrot.slane %v16790_v54, 6  ;;  %v15925_v22 = vrot.slane %v9442_v5, 1  ;;  %16793 = vst [vmem:[#allocation120_spill] sm:$0xff] %v9468_v51 }
 0x18a   :  { %16786 = vst [vmem:[#allocation81_spill] sm:$0xff] %v9446_v10  ;;  %16788 = vst [vmem:[#allocation116_spill] sm:$0xff] %v9451_v59  ;;  %v9466_v43 = vmul.f32 %v7921_v45, %v9366_v6  ;;  %v16794_v15 = vrot.slane %v9060_v46, 5  ;;  %v16796_v50 = vrot.slane %v9155_v2, 1  ;;  %v16797_v3 = vrot.slane %v9446_v10, 2 }
 0x18b   :  { %16789 = vst [vmem:[#allocation117_spill] sm:$0xff] %v9455_v37  ;;  %v4930_v33 = vsel %vm4811_vm6, %v16791_v49, %v15919_v56  ;;  %v15923_v54 = vrot.slane %v9455_v37, 2  ;;  %v9478_v49 = vmul.f32 %v7926_v48, %v9366_v6  ;;  %v16798_v46 = vrot.slane %v9167_v31, 2 }
 0x18c   :  { %16792 = vst [vmem:[#allocation119_spill] sm:$0xff] %v9466_v43  ;;  %v6141_v53 = vsel %vm4309_vm5, %v16794_v15, %v15921_v25  ;;  %v5119_v26 = vadd.f32 %v4930_v33, %v4617_v13  ;;  %v1327_v51 = vsel %vm1304_vm3, %v16796_v50, %v15925_v22  ;;  %v15924_v33 = vrot.slane %v9466_v43, 3  ;;  %v9548_v43 = vpop.f32.mrb[16].mxu1 }
 0x18d   :  { %16795 = vst [vmem:[#allocation123_spill] sm:$0xff] %v9478_v49  ;;  %v6386_v56 = vsel %vm6382_vm7, %v6141_v53, 0.0  ;;  %v1828_v13 = vsel %vm487_vm0, %v16798_v46, %v16797_v3  ;;  %v1563_v53 = vadd.f32 %v1327_v51, %v9177_v28  ;;  %v16799_v5 = vrot.slane %v9172_v16, 2  ;;  %16813 = vst [vmem:[#allocation10_spill] sm:$0xff] %v9548_v43  ;;  %v9572_v43 = vpop.f32.mrb[17].mxu0  ;;  %v9685_v32 = vpop.f32.mrb[17].mxu1 }
 0x18e   :  { %v9493_v15 = vadd.f32 %v6386_v56, %v9101_v40  ;;  %v5206_v25 = vadd.f32 %v16658_v61, %v5119_v26  ;;  %v16800_v3 = vrot.slane %v9180_v17, 3  ;;  %v15928_v40 = vrot.slane %v9478_v49, 4 }
 0x18f   :  { %v9502_v50 = vsel %vm487_vm0, %v16799_v5, %v15923_v54  ;;  %v9514_v56 = vmul.f32 %v7929_v58, %v9366_v6  ;;  %v9518_v28 = vmul.f32 %v7933_v29, %v9366_v6  ;;  %v9520_v5 = vadd.f32 %v1828_v13, %v1563_v53  ;;  %v16809_v13 = vld [vmem:[#allocation54_spill] sm:$0xff] }
 0x190   :  { %v9509_v46 = vsel %vm2806_vm2, %v16800_v3, %v15924_v33  ;;  %v5289_v51 = vmax.f32 %v5206_v25, 0.0  ;;  %v9524_v26 = vmul.f32 %v7947_v0, %v9366_v6  ;;  %v9526_v54 = vmax.f32 %v793_v55, 0.0  ;;  %v16812_v3 = vld [vmem:[#allocation83_spill] sm:$0xff]  ;;  %16818 = vst [vmem:[#allocation54_spill] sm:$0xff] %v9572_v43 }
 0x191   :  { %16801 = vst [vmem:[#allocation73_spill] sm:$0xff] %v9509_v46  ;;  %16802 = vst [vmem:[#allocation76_spill] sm:$0xff] %v9514_v56  ;;  %v16807_v33 = vrot.slane %v9186_v19, 4  ;;  %v15929_v46 = vrot.slane %v9514_v56, 4  ;;  %v15931_v25 = vrot.slane %v9518_v28, 5  ;;  %v561_v49 = vadd.f32 %v16812_v3, %v16711_v7 }
 0x192   :  { %16803 = vst [vmem:[#allocation124_spill] sm:$0xff] %v9518_v28  ;;  %16804 = vst [vmem:[#allocation127_spill] sm:$0xff] %v9520_v5  ;;  %v9539_v53 = vmul.f32 %v16809_v13, %v5289_v51  ;;  %v9544_v55 = vmul.f32 %v7906_v41, %v9526_v54  ;;  %v16815_v51 = vrot.slane %v9196_v21, 5  ;;  %v9566_v5 = vmul.f32 %v7911_v42, %v9526_v54 }
 0x193   :  { %16805 = vst [vmem:[#allocation129_spill] sm:$0xff] %v9524_v26  ;;  %16806 = vst [vmem:[#allocation130_spill] sm:$0xff] %v9526_v54  ;;  %v9534_v22 = vsel %vm3306_vm4, %v16807_v33, %v15928_v40  ;;  %v16814_v33 = vrot.slane %v9193_v11, 4  ;;  %v9570_v3 = vmul.f32 %v7916_v44, %v9526_v54  ;;  %v9595_v43 = vmul.f32 %v7929_v58, %v9526_v54 }
 0x194   :  { %16808 = vst [vmem:[#allocation131_spill] sm:$0xff] %v9534_v22  ;;  %16810 = vst [vmem:[#allocation132_spill] sm:$0xff] %v9539_v53  ;;  %v9562_v13 = vsel %vm4309_vm5, %v16815_v51, %v15931_v25  ;;  %v16820_v22 = vrot.slane %v9204_v35, 6  ;;  %v9585_v25 = vmul.f32 %v7921_v45, %v9526_v54  ;;  %v16828_v56 = vrot.slane %v9209_v14, 1 }
 0x195   :  { %16811 = vst [vmem:[#allocation133_spill] sm:$0xff] %v9544_v55  ;;  %v9555_v40 = vsel %vm3306_vm4, %v16814_v33, %v15929_v46  ;;  %16816 = vst [vmem:[#allocation82_spill] sm:$0xff] %v9566_v5  ;;  %v16819_v46 = vrot.slane %v9524_v26, 6  ;;  %v9591_v33 = vmul.f32 %v7926_v48, %v9526_v54  ;;  %v16827_v26 = vrot.slane %v9544_v55, 1 }
 0x196   :  { %16817 = vst [vmem:[#allocation135_spill] sm:$0xff] %v9570_v3  ;;  %16821 = vst [vmem:[#allocation83_spill] sm:$0xff] %v9585_v25  ;;  %v15940_v10 = vrot.slane %v9585_v25, 3  ;;  %v9612_v6 = vmul.f32 %v7933_v29, %v9526_v54  ;;  %v16834_v55 = vrot.slane %v9222_v27, 3 }
 0x197   :  { %v9580_v28 = vsel %vm4811_vm6, %v16820_v22, %v16819_v46  ;;  %16822 = vst [vmem:[#allocation142_spill] sm:$0xff] %v9591_v33  ;;  %16823 = vst [vmem:[#allocation143_spill] sm:$0xff] %v9595_v43  ;;  %v16824_v22 = vrot.slane %v9539_v53, 5  ;;  %v16825_v46 = vrot.slane %v9189_v18, 5  ;;  %v1439_v37 = vsel %vm1304_vm3, %v16828_v56, %v16827_v26 }
 0x198   :  { %16829 = vst [vmem:[#allocation145_spill] sm:$0xff] %v9612_v6  ;;  %v1619_v53 = vadd.f32 %v1439_v37, %v9241_v8  ;;  %v16830_v18 = vrot.slane %v9566_v5, 2  ;;  %v16833_v56 = vrot.slane %v9217_v23, 2  ;;  %v9633_v59 = vsel %vm2806_vm2, %v16834_v55, %v15940_v10 }
 0x199   :  { %v9602_v51 = vsel %vm4309_vm5, %v16825_v46, %v16824_v22  ;;  %v16831_v22 = vrot.slane %v9213_v38, 2  ;;  %16835 = vst [vmem:[#allocation146_spill] sm:$0xff] %v9633_v59  ;;  %v15941_v8 = vrot.slane %v9591_v33, 4  ;;  %v15943_v37 = vrot.slane %v9595_v43, 4  ;;  %v16844_v33 = vld [vmem:[#allocation122_spill] sm:$0xff] }
 0x19a   :  { %16826 = vst [vmem:[#allocation144_spill] sm:$0xff] %v9602_v51  ;;  %v16832_v51 = vrot.slane %v9570_v3, 2  ;;  %v16838_v55 = vrot.slane %v9250_v47, 4  ;;  %16847 = vst [vmem:[#allocation122_spill] sm:$0xff] %v9685_v32  ;;  %v16852_v32 = vrot.slane %v9260_v12, 2 }
 0x19b   :  { %v1940_v46 = vsel %vm487_vm0, %v16831_v22, %v16830_v18  ;;  %v16840_v18 = vrot.slane %v9337_v1, 4 }
 0x19c   :  { %v9626_v26 = vsel %vm487_vm0, %v16833_v56, %v16832_v51  ;;  %v9639_v3 = vadd.f32 %v1940_v46, %v1619_v53  ;;  %v9643_v51 = vmul.f32 %v7947_v0, %v9526_v54  ;;  %v885_v56 = vmax.f32 %v561_v49, 0.0 }
 0x19d   :  { %v9650_v10 = vsel %vm3306_vm4, %v16838_v55, %v15941_v8  ;;  %v9657_v22 = vsel %vm3306_vm4, %v16840_v18, %v15943_v37  ;;  %v16841_v53 = vrot.slane %v9612_v6, 5  ;;  %v16842_v46 = vrot.slane %v9341_v20, 5 }
 0x19e   :  { %16836 = vst [vmem:[#allocation147_spill] sm:$0xff] %v9639_v3  ;;  %16837 = vst [vmem:[#allocation148_spill] sm:$0xff] %v9643_v51  ;;  %v16843_v3 = vld [vmem:[#allocation121_spill] sm:$0xff]  ;;  %v15954_v55 = vrot.slane %v9643_v51, 6  ;;  %v977_v8 = vmul.f32 %v7894_v34, %v885_v56  ;;  %v1649_v43 = vmul.f32 %v7911_v42, %v885_v56  ;;  %v2148_v18 = vmul.f32 %v7916_v44, %v885_v56 }
 0x19f   :  { %16839 = vst [vmem:[#allocation149_spill] sm:$0xff] %v9650_v10  ;;  %v9664_v49 = vsel %vm4309_vm5, %v16842_v46, %v16841_v53  ;;  %v3057_v59 = vadd.f32 %v16843_v3, %v8991_v4  ;;  %v1147_v10 = vmul.f32 %v7906_v41, %v885_v56  ;;  %v2648_v37 = vmul.f32 %v7921_v45, %v885_v56 }
 0x1a0   :  { %v3146_v6 = vmul.f32 %v7926_v48, %v885_v56  ;;  %v16845_v4 = vrot.slane %v9347_v24, 6  ;;  %v1823_v25 = vrot.slane %v1649_v43, 2  ;;  %v3646_v5 = vmul.f32 %v7929_v58, %v885_v56 }
 0x1a1   :  { %v3559_v53 = vadd.f32 %v16844_v33, %v3057_v59  ;;  %v1322_v46 = vrot.slane %v1147_v10, 1  ;;  %v2320_v54 = vrot.slane %v2148_v18, 2  ;;  %v2818_v20 = vrot.slane %v2648_v37, 3 }
 0x1a2   :  { %v9681_v3 = vsel %vm4811_vm6, %v16845_v4, %v15954_v55  ;;  %v3318_v57 = vrot.slane %v3146_v6, 4  ;;  %v4147_v1 = vmul.f32 %v7933_v29, %v885_v56  ;;  %v16848_v59 = vrot.slane %v9254_v36, 1 }
 0x1a3   :  { %16846 = vst [vmem:[#allocation121_spill] sm:$0xff] %v9681_v3  ;;  %v16849_v51 = vrot.slane %v9155_v2, 1  ;;  %v16850_v10 = vrot.slane %v9257_v63, 2  ;;  %v16851_v18 = vrot.slane %v9167_v31, 2  ;;  %v2321_v36 = vsel %vm487_vm0, %v16852_v32, %v2320_v54  ;;  %v16855_v63 = vld [vmem:[#allocation57_spill] sm:$0xff]  ;;  %v16859_v32 = vld [vmem:[#allocation139_spill] sm:$0xff] }
 0x1a4   :  { %v1323_v33 = vsel %vm1304_vm3, %v16848_v59, %v1322_v46  ;;  %v16853_v59 = vrot.slane %v9172_v16, 2 }
 0x1a5   :  { %v1325_v4 = vsel %vm1304_vm3, %v1322_v46, %v16849_v51  ;;  %v1824_v43 = vsel %vm487_vm0, %v16850_v10, %v1823_v25  ;;  %v1826_v6 = vsel %vm487_vm0, %v1823_v25, %v16851_v18  ;;  %v1561_v37 = vadd.f32 %v1323_v33, %v9350_v39  ;;  %v16854_v51 = vld [vmem:[#allocation126_spill] sm:$0xff] }
 0x1a6   :  { %v1562_v55 = vadd.f32 %v1325_v4, %v977_v8  ;;  %v2323_v2 = vsel %vm487_vm0, %v2320_v54, %v16853_v59  ;;  %v2561_v46 = vadd.f32 %v2321_v36, %v16854_v51  ;;  %v16856_v10 = vld [vmem:[#allocation118_spill] sm:$0xff]  ;;  %v16858_v25 = vrot.slane %v9180_v17, 3 }
 0x1a7   :  { %v2562_v3 = vadd.f32 %v2323_v2, %v16855_v63  ;;  %v16857_v24 = vrot.slane %v16856_v10, 3  ;;  %v2062_v8 = vadd.f32 %v1824_v43, %v1561_v37  ;;  %v16860_v33 = vrot.slane %v16859_v32, 4  ;;  %v16863_v43 = vld [vmem:[#allocation69_spill] sm:$0xff]  ;;  %v16869_v10 = vld [vmem:[#allocation140_spill] sm:$0xff]  ;;  %v9745_v32 = vpop.permute.xlu1 %5497 }
 0x1a8   :  { %v2821_v39 = vsel %vm2806_vm2, %v2818_v20, %v16858_v25  ;;  %v9714_v12 = vadd.f32 %v1826_v6, %v1562_v55  ;;  %v16861_v54 = vrot.slane %v9186_v19, 4  ;;  %v3815_v59 = vrot.slane %v3646_v5, 4  ;;  %v16864_v6 = vld [vmem:[#allocation134_spill] sm:$0xff]  ;;  %v16865_v19 = vld [vmem:[#allocation104_spill] sm:$0xff] }
 0x1a9   :  { %v2819_v31 = vsel %vm2806_vm2, %v16857_v24, %v2818_v20  ;;  %v3319_v16 = vsel %vm3306_vm4, %v16860_v33, %v3318_v57  ;;  %v3060_v36 = vadd.f32 %v2821_v39, %v2562_v3  ;;  %v4317_v2 = vrot.slane %v4147_v1, 5  ;;  %v16862_v20 = vld [vmem:[#allocation55_spill] sm:$0xff] }
 0x1aa   :  { %v3321_v4 = vsel %vm3306_vm4, %v3318_v57, %v16861_v54  ;;  %v3059_v18 = vadd.f32 %v2819_v31, %v2561_v46  ;;  %v9723_v24 = vadd.f32 %v9502_v50, %v2062_v8  ;;  %v4649_v17 = vmul.f32 %v7947_v0, %v885_v56  ;;  %v16868_v46 = vld [vmem:[#allocation70_spill] sm:$0xff] }
 0x1ab   :  { %v785_v55 = vadd.f32 %v16862_v20, %v16711_v7  ;;  %v3113_v37 = vadd.f32 %v16864_v6, %v16863_v43  ;;  %v9730_v63 = vadd.f32 %v3321_v4, %v3060_v36  ;;  %v16866_v57 = vrot.slane %v16865_v19, 4  ;;  %v16874_v20 = vld [vmem:[#allocation112_spill] sm:$0xff] }
 0x1ac   :  { %v3561_v51 = vadd.f32 %v3319_v16, %v3059_v18  ;;  %v16867_v1 = vrot.slane %v9193_v11, 4  ;;  %v16870_v31 = vrot.slane %v16869_v10, 5  ;;  %v16871_v39 = vrot.slane %v9196_v21, 5  ;;  %v16872_v11 = vld [vmem:[#allocation138_spill] sm:$0xff] }
 0x1ad   :  { %v3816_v3 = vsel %vm3306_vm4, %v16866_v57, %v3815_v59  ;;  %v4819_v16 = vrot.slane %v4649_v17, 6  ;;  %v9748_v54 = vmax.f32 %v785_v55, 0.0  ;;  %v9751_v4 = vadd.f32 %v16872_v11, %v3113_v37 }
 0x1ae   :  { %v3818_v50 = vsel %vm3306_vm4, %v3815_v59, %v16867_v1  ;;  %v4060_v5 = vadd.f32 %v3816_v3, %v3559_v53  ;;  %v4318_v25 = vsel %vm4309_vm5, %v16870_v31, %v4317_v2  ;;  %v4320_v8 = vsel %vm4309_vm5, %v4317_v2, %v16871_v39  ;;  %v9753_v53 = vpop.f32.mrb[18].mxu0 }
 0x1af   :  { %v4061_v56 = vadd.f32 %v3818_v50, %v16868_v46  ;;  %v4062_v33 = vadd.f32 %v9555_v40, %v3561_v51  ;;  %16873 = vst [vmem:[#allocation126_spill] sm:$0xff] %v9753_v53  ;;  %v5772_v18 = vrot.slane %v9745_v32, 3  ;;  %v1032_v36 = vmul.f32 %v7894_v34, %v9343_v52  ;;  %v16952_v53 = vld [vmem:[#allocation81_spill] sm:$0xff] }
 0x1b0   :  { %v4562_v21 = vadd.f32 %v4318_v25, %v4060_v5  ;;  %v16875_v43 = vrot.slane %v16874_v20, 6  ;;  %v16876_v17 = vrot.slane %v9204_v35, 6  ;;  %v1033_v6 = vmul.f32 %v7894_v34, %v9748_v54 }
 0x1b1   :  { %v4563_v59 = vadd.f32 %v4320_v8, %v4061_v56  ;;  %v4564_v2 = vadd.f32 %v9562_v13, %v4062_v33  ;;  %v1203_v52 = vmul.f32 %v7906_v41, %v9748_v54  ;;  %v1705_v19 = vmul.f32 %v7911_v42, %v9748_v54  ;;  %v16877_v8 = vld [vmem:[#allocation109_spill] sm:$0xff] }
 0x1b2   :  { %v4820_v40 = vsel %vm4811_vm6, %v16875_v43, %v4819_v16  ;;  %v4822_v55 = vsel %vm4811_vm6, %v4819_v16, %v16876_v17  ;;  %v2204_v57 = vmul.f32 %v7916_v44, %v9748_v54  ;;  %v2704_v35 = vmul.f32 %v7921_v45, %v9748_v54  ;;  %v16880_v43 = vld [vmem:[#allocation115_spill] sm:$0xff] }
 0x1b3   :  { %v5064_v37 = vadd.f32 %v4820_v40, %v4562_v21  ;;  %v5065_v51 = vadd.f32 %v4822_v55, %v4563_v59  ;;  %v5066_v13 = vadd.f32 %v9580_v28, %v4564_v2  ;;  %v3202_v3 = vmul.f32 %v7926_v48, %v9748_v54  ;;  %v9790_v55 = vpop.permute.xlu0 %5657 }
 0x1b4   :  { %v1434_v5 = vrot.slane %v1203_v52, 1  ;;  %v1935_v46 = vrot.slane %v1705_v19, 2  ;;  %v2432_v10 = vrot.slane %v2204_v57, 2  ;;  %v2930_v31 = vrot.slane %v2704_v35, 3  ;;  %v16883_v52 = vld [vmem:[#allocation14_spill] sm:$0xff] }
 0x1b5   :  { %v5151_v1 = vadd.f32 %v16658_v61, %v5064_v37  ;;  %v5152_v50 = vadd.f32 %v16658_v61, %v5065_v51  ;;  %v5153_v56 = vadd.f32 %v16658_v61, %v5066_v13  ;;  %v3430_v28 = vrot.slane %v3202_v3, 4  ;;  %v16882_v37 = vld [vmem:[#allocation12_spill] sm:$0xff] }
 0x1b6   :  { %v16878_v33 = vrot.slane %v16877_v8, 1  ;;  %v16879_v11 = vrot.slane %v9209_v14, 1  ;;  %v16881_v40 = vrot.slane %v16880_v43, 2  ;;  %v16884_v13 = vrot.slane %v9213_v38, 2  ;;  %v16885_v14 = vld [vmem:[#allocation72_spill] sm:$0xff]  ;;  %v16889_v8 = vld [vmem:[#allocation137_spill] sm:$0xff] }
 0x1b7   :  { %v5234_v25 = vmax.f32 %v5151_v1, 0.0  ;;  %v5235_v39 = vmax.f32 %v5152_v50, 0.0  ;;  %v5236_v59 = vmax.f32 %v5153_v56, 0.0  ;;  %v16886_v35 = vrot.slane %v16885_v14, 2 }
 0x1b8   :  { %v1435_v16 = vsel %vm1304_vm3, %v16878_v33, %v1434_v5  ;;  %v1437_v21 = vsel %vm1304_vm3, %v1434_v5, %v16879_v11  ;;  %v1936_v17 = vsel %vm487_vm0, %v16881_v40, %v1935_v46  ;;  %v1938_v57 = vsel %vm487_vm0, %v1935_v46, %v16884_v13  ;;  %v5502_v33 = vpop.permute.xlu1 %5501 }
 0x1b9   :  { %v1617_v2 = vadd.f32 %v1435_v16, %v1032_v36  ;;  %v1618_v20 = vadd.f32 %v1437_v21, %v1033_v6  ;;  %v5973_v51 = vmul.f32 %v16882_v37, %v5234_v25  ;;  %v5974_v19 = vmul.f32 %v16883_v52, %v5235_v39  ;;  %v16887_v36 = vld [vmem:[#allocation16_spill] sm:$0xff]  ;;  %v9832_v37 = vpop.f32.mrb[18].mxu1 }
 0x1ba   :  { %v2433_v3 = vsel %vm487_vm0, %v16886_v35, %v2432_v10  ;;  %v9801_v6 = vmul.f32 %v16887_v36, %v5236_v59  ;;  %v16888_v5 = vrot.slane %v9217_v23, 2  ;;  %v16890_v21 = vrot.slane %v9370_v30, 3  ;;  %16894 = vst [vmem:[#allocation57_spill] sm:$0xff] %v9832_v37 }
 0x1bb   :  { %v2118_v1 = vadd.f32 %v1936_v17, %v1617_v2  ;;  %v9803_v50 = vadd.f32 %v1938_v57, %v1618_v20  ;;  %v6142_v25 = vrot.slane %v5973_v51, 5  ;;  %v6144_v39 = vrot.slane %v5974_v19, 5 }
 0x1bc   :  { %v2435_v56 = vsel %vm487_vm0, %v2432_v10, %v16888_v5  ;;  %v2617_v38 = vadd.f32 %v2433_v3, %v16889_v8  ;;  %v15959_v16 = vrot.slane %v9801_v6, 5  ;;  %v2931_v59 = vsel %vm2806_vm2, %v16890_v21, %v2930_v31 }
 0x1bd   :  { %v2618_v46 = vadd.f32 %v2435_v56, %v9436_v62  ;;  %v9812_v11 = vadd.f32 %v9626_v26, %v2118_v1  ;;  %v16891_v23 = vrot.slane %v9222_v27, 3  ;;  %v16892_v2 = vrot.slane %v9434_v9, 5  ;;  %v5662_v9 = vpop.permute.xlu0 %5661 }
 0x1be   :  { %v6145_v62 = vsel %vm4309_vm5, %v6142_v25, %v6144_v39  ;;  %v3115_v43 = vadd.f32 %v2931_v59, %v2617_v38  ;;  %v6147_v26 = vsel %vm4309_vm5, %v6144_v39, %v15959_v16  ;;  %v16893_v27 = vrot.slane %v9374_v60, 4 }
 0x1bf   :  { %v2933_v10 = vsel %vm2806_vm2, %v2930_v31, %v16891_v23  ;;  %v6143_v20 = vsel %vm4309_vm5, %v16892_v2, %v6142_v25  ;;  %v6390_v17 = vsel %vm6382_vm7, %v6145_v62, 0.0  ;;  %v6392_v52 = vsel %vm6382_vm7, %v6147_v26, 0.0  ;;  %v16902_v2 = vld [vmem:[#allocation50_spill] sm:$0xff] }
 0x1c0   :  { %v3116_v40 = vadd.f32 %v2933_v10, %v2618_v46  ;;  %v6388_v30 = vsel %vm6382_vm7, %v6143_v20, 0.0  ;;  %v3431_v31 = vsel %vm3306_vm4, %v16893_v27, %v3430_v28  ;;  %v16895_v19 = vrot.slane %v9250_v47, 4 }
 0x1c1   :  { %v6389_v51 = vadd.f32 %v6388_v30, %v9493_v15  ;;  %v3617_v57 = vadd.f32 %v3431_v31, %v3115_v43  ;;  %v3702_v35 = vmul.f32 %v7929_v58, %v9748_v54  ;;  %v4203_v60 = vmul.f32 %v7933_v29, %v9748_v54  ;;  %v16904_v43 = vld [vmem:[#allocation105_spill] sm:$0xff]  ;;  %v16908_v31 = vld [vmem:[#allocation79_spill] sm:$0xff] }
 0x1c2   :  { %v3433_v13 = vsel %vm3306_vm4, %v3430_v28, %v16895_v19  ;;  %v4705_v3 = vmul.f32 %v7947_v0, %v9748_v54  ;;  %v5852_v15 = vrot.slane %v9790_v55, 3  ;;  %v5774_v36 = vrot.slane %v5502_v33, 3  ;;  %v9849_v28 = vpop.permute.xlu1 %5505  ;;  %v16897_v54 = vld [vmem:[#allocation113_spill] sm:$0xff]  ;;  %v16898_v55 = vld [vmem:[#allocation47_spill] sm:$0xff] }
 0x1c3   :  { %v9839_v14 = vadd.f32 %v3433_v13, %v3116_v40  ;;  %v6391_v1 = vadd.f32 %v6390_v17, %v6389_v51  ;;  %v4118_v47 = vadd.f32 %v9657_v22, %v3617_v57  ;;  %v5854_v5 = vrot.slane %v5662_v9, 3  ;;  %16896 = vst [vmem:[#allocation118_spill] sm:$0xff] %v9849_v28  ;;  %v16900_v22 = vld [vmem:[#allocation141_spill] sm:$0xff]  ;;  %v16907_v17 = vld [vmem:[#allocation116_spill] sm:$0xff] }
 0x1c4   :  { %v3927_v56 = vrot.slane %v3702_v35, 4  ;;  %v4429_v25 = vrot.slane %v4203_v60, 5  ;;  %v4931_v39 = vrot.slane %v4705_v3, 6  ;;  %v15957_v8 = vrot.slane %v9849_v28, 3  ;;  %v16912_v57 = vld [vmem:[#allocation5_spill] sm:$0xff] }
 0x1c5   :  { %v9852_v38 = vadd.f32 %v6392_v52, %v6391_v1  ;;  %v4620_v46 = vadd.f32 %v9664_v49, %v4118_v47  ;;  %v582_v21 = vadd.f32 %v16897_v54, %v16711_v7  ;;  %v16899_v33 = vrot.slane %v16898_v55, 4  ;;  %v9869_v49 = vpop.permute.xlu0 %5665  ;;  %v16910_v52 = vld [vmem:[#allocation63_spill] sm:$0xff]  ;;  %v16914_v60 = vld [vmem:[#allocation85_spill] sm:$0xff] }
 0x1c6   :  { %v16901_v23 = vrot.slane %v16900_v22, 4  ;;  %v16903_v20 = vrot.slane %v16902_v2, 5  ;;  %v16905_v40 = vrot.slane %v16904_v43, 5  ;;  %16906 = vst [vmem:[#allocation139_spill] sm:$0xff] %v9869_v49  ;;  %v16909_v9 = vrot.slane %v16908_v31, 6  ;;  %v16920_v54 = vld [vmem:[#allocation121_spill] sm:$0xff] }
 0x1c7   :  { %v3928_v59 = vsel %vm3306_vm4, %v16899_v33, %v3927_v56  ;;  %v16911_v19 = vrot.slane %v16910_v52, 6  ;;  %v16913_v35 = vrot.slane %v16912_v57, 3  ;;  %v16915_v3 = vrot.slane %v16914_v60, 3  ;;  %v16931_v31 = vld [vmem:[#allocation130_spill] sm:$0xff]  ;;  %v16933_v60 = vld [vmem:[#allocation84_spill] sm:$0xff] }
 0x1c8   :  { %v3930_v10 = vsel %vm3306_vm4, %v3927_v56, %v16901_v23  ;;  %v4430_v62 = vsel %vm4309_vm5, %v16903_v20, %v4429_v25  ;;  %v4432_v26 = vsel %vm4309_vm5, %v4429_v25, %v16905_v40  ;;  %v4116_v30 = vadd.f32 %v3928_v59, %v9751_v4  ;;  %v16917_v4 = vld [vmem:[#allocation100_spill] sm:$0xff]  ;;  %v16921_v59 = vld [vmem:[#allocation125_spill] sm:$0xff]  ;;  %v9910_v40 = vpop.f32.mrb[19].mxu0 }
 0x1c9   :  { %v4117_v27 = vadd.f32 %v3930_v10, %v16907_v17  ;;  %v4932_v51 = vsel %vm4811_vm6, %v16909_v9, %v4931_v39  ;;  %v4934_v13 = vsel %vm4811_vm6, %v4931_v39, %v16911_v19  ;;  %v9884_v1 = vsel %vm2806_vm2, %v16915_v3, %v16913_v35  ;;  %v16922_v23 = vld [vmem:[#allocation128_spill] sm:$0xff]  ;;  %16926 = vst [vmem:[#allocation70_spill] sm:$0xff] %v9910_v40 }
 0x1ca   :  { %16916 = vst [vmem:[#allocation55_spill] sm:$0xff] %v9884_v1  ;;  %v16918_v47 = vrot.slane %v16917_v4, 3  ;;  %v15956_v25 = vrot.slane %v9869_v49, 3  ;;  %v5122_v55 = vadd.f32 %v16920_v54, %v4620_v46  ;;  %v4618_v33 = vadd.f32 %v4430_v62, %v4116_v30  ;;  %v16950_v40 = vld [vmem:[#allocation80_spill] sm:$0xff]  ;;  %v16959_v49 = vld [vmem:[#allocation119_spill] sm:$0xff] }
 0x1cb   :  { %v4619_v39 = vadd.f32 %v4432_v26, %v4117_v27  ;;  %v806_v22 = vadd.f32 %v16921_v59, %v16711_v7  ;;  %v574_v10 = vadd.f32 %v16922_v23, %v16711_v7  ;;  %v16923_v2 = vmov %v16913_v35 }
 0x1cc   :  { %v9891_v56 = vsel %vm2806_vm2, %v16918_v47, %v5772_v18  ;;  %v9902_v20 = vsel %vm2806_vm2, %v16923_v2, %v5852_v15  ;;  %v9907_v43 = vsel %vm2806_vm2, %v5772_v18, %v5774_v36  ;;  %v5209_v46 = vadd.f32 %v16658_v61, %v5122_v55  ;;  %v16930_v18 = vld [vmem:[#allocation52_spill] sm:$0xff]  ;;  %v16934_v55 = vld [vmem:[#allocation86_spill] sm:$0xff] }
 0x1cd   :  { %16919 = vst [vmem:[#allocation69_spill] sm:$0xff] %v9891_v56  ;;  %16924 = vst [vmem:[#allocation134_spill] sm:$0xff] %v9902_v20  ;;  %v890_v62 = vmax.f32 %v582_v21, 0.0  ;;  %v9913_v26 = vsel %vm2806_vm2, %v5852_v15, %v5854_v5  ;;  %v9918_v30 = vsel %vm2806_vm2, %v5774_v36, %v15957_v8  ;;  %v5120_v17 = vadd.f32 %v4932_v51, %v4618_v33 }
 0x1ce   :  { %16925 = vst [vmem:[#allocation104_spill] sm:$0xff] %v9907_v43  ;;  %16927 = vst [vmem:[#allocation140_spill] sm:$0xff] %v9913_v26  ;;  %v5121_v27 = vadd.f32 %v4934_v13, %v4619_v39  ;;  %v9923_v32 = vsel %vm2806_vm2, %v5854_v5, %v15956_v25  ;;  %v9927_v21 = vmul.f32 %v7894_v34, %v16930_v18  ;;  %v5292_v9 = vmax.f32 %v5209_v46, 0.0  ;;  %v16932_v13 = vld [vmem:[#allocation59_spill] sm:$0xff]  ;;  %v16936_v46 = vld [vmem:[#allocation62_spill] sm:$0xff] }
 0x1cf   :  { %16928 = vst [vmem:[#allocation138_spill] sm:$0xff] %v9918_v30  ;;  %16929 = vst [vmem:[#allocation112_spill] sm:$0xff] %v9923_v32  ;;  %v9931_v15 = vmul.f32 %v7894_v34, %v16931_v31  ;;  %v5207_v52 = vadd.f32 %v16658_v61, %v5120_v17  ;;  %v9935_v51 = vmax.f32 %v806_v22, 0.0  ;;  %v9937_v19 = vmax.f32 %v574_v10, 0.0  ;;  %v16935_v10 = vld [vmem:[#allocation103_spill] sm:$0xff]  ;;  %v16937_v25 = vld [vmem:[#allocation132_spill] sm:$0xff] }
 0x1d0   :  { %v5208_v36 = vadd.f32 %v16658_v61, %v5121_v27  ;;  %v9940_v5 = vmul.f32 %v16932_v13, %v5292_v9  ;;  %v9943_v57 = vmul.f32 %v7906_v41, %v890_v62  ;;  %v9946_v35 = vmul.f32 %v7911_v42, %v890_v62  ;;  %v16956_v26 = vld [vmem:[#allocation117_spill] sm:$0xff]  ;;  %v16962_v30 = vld [vmem:[#allocation123_spill] sm:$0xff] }
 0x1d1   :  { %v9950_v3 = vadd.f32 %v16933_v60, %v16711_v7  ;;  %v5290_v4 = vmax.f32 %v5207_v52, 0.0  ;;  %v9953_v54 = vmul.f32 %v7916_v44, %v890_v62  ;;  %v9957_v33 = vadd.f32 %v16934_v55, %v16711_v7 }
 0x1d2   :  { %v5291_v47 = vmax.f32 %v5208_v36, 0.0  ;;  %v9960_v39 = vmul.f32 %v7894_v34, %v890_v62  ;;  %v9963_v59 = vmul.f32 %v7921_v45, %v890_v62  ;;  %v9966_v22 = vmul.f32 %v7926_v48, %v890_v62 }
 0x1d3   :  { %v9969_v23 = vmul.f32 %v7929_v58, %v890_v62  ;;  %v6029_v2 = vmul.f32 %v16935_v10, %v5290_v4  ;;  %v15958_v27 = vrot.slane %v9940_v5, 5  ;;  %v9975_v18 = vmul.f32 %v7933_v29, %v890_v62 }
 0x1d4   :  { %v6030_v17 = vmul.f32 %v16936_v46, %v5291_v47  ;;  %v9980_v52 = vmul.f32 %v7947_v0, %v890_v62  ;;  %v9984_v36 = vmul.f32 %v7906_v41, %v9935_v51  ;;  %v9989_v47 = vmul.f32 %v7911_v42, %v9935_v51  ;;  %v10012_v46 = vpop.f32.mrb[19].mxu1 }
 0x1d5   :  { %v6254_v13 = vrot.slane %v6029_v2, 5  ;;  %v9996_v62 = vmul.f32 %v7894_v34, %v9935_v51  ;;  %v16938_v8 = vrot.slane %v16937_v25, 5  ;;  %16942 = vst [vmem:[#allocation14_spill] sm:$0xff] %v10012_v46  ;;  %v10022_v25 = vmul.f32 %v7921_v45, %v9935_v51 }
 0x1d6   :  { %v6256_v60 = vrot.slane %v6030_v17, 5  ;;  %v10035_v9 = vmul.f32 %v7911_v42, %v9937_v19  ;;  %v10039_v4 = vmul.f32 %v7916_v44, %v9937_v19  ;;  %v10043_v10 = vmul.f32 %v7921_v45, %v9937_v19 }
 0x1d7   :  { %v10001_v2 = vsel %vm4309_vm5, %v16938_v8, %v6254_v13  ;;  %v10018_v8 = vmul.f32 %v7916_v44, %v9935_v51  ;;  %v10051_v31 = vmul.f32 %v7929_v58, %v9937_v19  ;;  %v10055_v16 = vmul.f32 %v7929_v58, %v9935_v51 }
 0x1d8   :  { %16939 = vst [vmem:[#allocation109_spill] sm:$0xff] %v10001_v2  ;;  %v10004_v17 = vsel %vm4309_vm5, %v6254_v13, %v6256_v60  ;;  %v10009_v55 = vsel %vm4309_vm5, %v6256_v60, %v15958_v27  ;;  %v10027_v60 = vmul.f32 %v7926_v48, %v9935_v51  ;;  %v10031_v27 = vmul.f32 %v7906_v41, %v9937_v19 }
 0x1d9   :  { %16940 = vst [vmem:[#allocation115_spill] sm:$0xff] %v10004_v17  ;;  %16941 = vst [vmem:[#allocation12_spill] sm:$0xff] %v10009_v55  ;;  %v10047_v13 = vmul.f32 %v7926_v48, %v9937_v19  ;;  %v15962_v17 = vrot.slane %v10035_v9, 2  ;;  %v10061_v2 = vmul.f32 %v7933_v29, %v9937_v19  ;;  %v16951_v32 = vrot.slane %v16950_v40, 1 }
 0x1da   :  { %16943 = vst [vmem:[#allocation72_spill] sm:$0xff] %v10027_v60  ;;  %16944 = vst [vmem:[#allocation16_spill] sm:$0xff] %v10035_v9  ;;  %v15960_v55 = vrot.slane %v10031_v27, 1  ;;  %v16953_v20 = vrot.slane %v16952_v53, 2  ;;  %v10080_v43 = vmul.f32 %v7947_v0, %v9937_v19  ;;  %v16955_v56 = vrot.slane %v10039_v4, 2 }
 0x1db   :  { %16945 = vst [vmem:[#allocation137_spill] sm:$0xff] %v10039_v4  ;;  %16946 = vst [vmem:[#allocation113_spill] sm:$0xff] %v10043_v10  ;;  %v16957_v40 = vrot.slane %v16956_v26, 2  ;;  %v16960_v53 = vrot.slane %v16959_v49, 3  ;;  %v16963_v28 = vrot.slane %v16962_v30, 4  ;;  %v16965_v4 = vld [vmem:[#allocation76_spill] sm:$0xff] }
 0x1dc   :  { %16947 = vst [vmem:[#allocation47_spill] sm:$0xff] %v10047_v13  ;;  %16948 = vst [vmem:[#allocation141_spill] sm:$0xff] %v10055_v16  ;;  %v1329_v37 = vsel %vm1304_vm3, %v16951_v32, %v15960_v55  ;;  %v1830_v1 = vsel %vm487_vm0, %v16953_v20, %v15962_v17  ;;  %v16958_v55 = vrot.slane %v10043_v10, 3  ;;  %v16961_v17 = vrot.slane %v10047_v13, 4  ;;  %v16968_v10 = vld [vmem:[#allocation124_spill] sm:$0xff] }
 0x1dd   :  { %16949 = vst [vmem:[#allocation50_spill] sm:$0xff] %v10061_v2  ;;  %16954 = vst [vmem:[#allocation105_spill] sm:$0xff] %v10080_v43  ;;  %v1564_v46 = vadd.f32 %v1329_v37, %v9927_v21  ;;  %v2327_v32 = vsel %vm487_vm0, %v16957_v40, %v16955_v56  ;;  %v16964_v21 = vrot.slane %v10051_v31, 4  ;;  %v16966_v26 = vrot.slane %v16965_v4, 4  ;;  %v16982_v4 = vld [vmem:[#allocation82_spill] sm:$0xff] }
 0x1de   :  { %v2825_v20 = vsel %vm2806_vm2, %v16960_v53, %v16958_v55  ;;  %v3325_v9 = vsel %vm3306_vm4, %v16963_v28, %v16961_v17  ;;  %v2564_v37 = vadd.f32 %v2327_v32, %v9714_v12  ;;  %v16967_v40 = vrot.slane %v10061_v2, 5  ;;  %v16985_v2 = vld [vmem:[#allocation135_spill] sm:$0xff] }
 0x1df   :  { %v3822_v56 = vsel %vm3306_vm4, %v16966_v26, %v16964_v21  ;;  %v16969_v49 = vrot.slane %v16968_v10, 5  ;;  %v15968_v53 = vrot.slane %v10080_v43, 6  ;;  %v10111_v13 = vadd.f32 %v1830_v1, %v1564_v46  ;;  %v16970_v10 = vld [vmem:[#allocation129_spill] sm:$0xff] }
 0x1e0   :  { %v4063_v12 = vadd.f32 %v3822_v56, %v9730_v63  ;;  %v10115_v28 = vmax.f32 %v9950_v3, 0.0  ;;  %v3062_v32 = vadd.f32 %v2825_v20, %v2564_v37  ;;  %v16971_v21 = vrot.slane %v16970_v10, 6 }
 0x1e1   :  { %v4324_v55 = vsel %vm4309_vm5, %v16969_v49, %v16967_v40  ;;  %v10133_v3 = vmax.f32 %v9957_v33, 0.0  ;;  %v16983_v30 = vrot.slane %v16982_v4, 2 }
 0x1e2   :  { %v4826_v26 = vsel %vm4811_vm6, %v16971_v21, %v15968_v53  ;;  %v4565_v40 = vadd.f32 %v4324_v55, %v4063_v12  ;;  %v10126_v1 = vmul.f32 %v7906_v41, %v10115_v28  ;;  %v10130_v63 = vmul.f32 %v7911_v42, %v10115_v28 }
 0x1e3   :  { %16974 = vst [vmem:[#allocation63_spill] sm:$0xff] %v10133_v3  ;;  %v10135_v46 = vadd.f32 %v3325_v9, %v3062_v32  ;;  %v10139_v20 = vmul.f32 %v7916_v44, %v10115_v28  ;;  %v10143_v37 = vmul.f32 %v7921_v45, %v10115_v28  ;;  %v10147_v56 = vmul.f32 %v7926_v48, %v10115_v28 }
 0x1e4   :  { %16972 = vst [vmem:[#allocation116_spill] sm:$0xff] %v10126_v1  ;;  %16973 = vst [vmem:[#allocation79_spill] sm:$0xff] %v10130_v63  ;;  %v5067_v49 = vadd.f32 %v4826_v26, %v4565_v40  ;;  %v15972_v55 = vrot.slane %v10126_v1, 1  ;;  %v15974_v33 = vrot.slane %v10130_v63, 2  ;;  %v10153_v9 = vmul.f32 %v7929_v58, %v10115_v28  ;;  %v16980_v40 = vld [vmem:[#allocation133_spill] sm:$0xff]  ;;  %v16991_v63 = vld [vmem:[#allocation142_spill] sm:$0xff] }
 0x1e5   :  { %16975 = vst [vmem:[#allocation5_spill] sm:$0xff] %v10135_v46  ;;  %16976 = vst [vmem:[#allocation85_spill] sm:$0xff] %v10139_v20  ;;  %v10160_v21 = vmul.f32 %v7933_v29, %v10115_v28  ;;  %v16981_v53 = vrot.slane %v16980_v40, 1  ;;  %v16984_v43 = vrot.slane %v10139_v20, 2  ;;  %v16987_v40 = vrot.slane %v10143_v37, 3  ;;  %v16988_v46 = vld [vmem:[#allocation83_spill] sm:$0xff] }
 0x1e6   :  { %16977 = vst [vmem:[#allocation100_spill] sm:$0xff] %v10147_v56  ;;  %16978 = vst [vmem:[#allocation121_spill] sm:$0xff] %v10153_v9  ;;  %v5154_v26 = vadd.f32 %v16658_v61, %v5067_v49  ;;  %v1942_v32 = vsel %vm487_vm0, %v16983_v30, %v15974_v33  ;;  %v16986_v49 = vrot.slane %v16985_v2, 2  ;;  %v16990_v4 = vrot.slane %v10147_v56, 4  ;;  %v16994_v2 = vld [vmem:[#allocation143_spill] sm:$0xff] }
 0x1e7   :  { %16979 = vst [vmem:[#allocation125_spill] sm:$0xff] %v10160_v21  ;;  %v1441_v17 = vsel %vm1304_vm3, %v16981_v53, %v15972_v55  ;;  %v16989_v53 = vrot.slane %v16988_v46, 3  ;;  %v16992_v30 = vrot.slane %v16991_v63, 4  ;;  %v16995_v20 = vrot.slane %v16994_v2, 4 }
 0x1e8   :  { %v1620_v12 = vadd.f32 %v1441_v17, %v9931_v15  ;;  %v2439_v1 = vsel %vm487_vm0, %v16986_v49, %v16984_v43  ;;  %v5237_v10 = vmax.f32 %v5154_v26, 0.0  ;;  %v16993_v17 = vrot.slane %v10153_v9, 4  ;;  %v16997_v26 = vld [vmem:[#allocation58_spill] sm:$0xff] }
 0x1e9   :  { %v2937_v55 = vsel %vm2806_vm2, %v16989_v53, %v16987_v40  ;;  %v3437_v33 = vsel %vm3306_vm4, %v16992_v30, %v16990_v4  ;;  %v2620_v15 = vadd.f32 %v2439_v1, %v9803_v50  ;;  %v15976_v49 = vrot.slane %v10160_v21, 5  ;;  %v16998_v50 = vld [vmem:[#allocation18_spill] sm:$0xff] }
 0x1ea   :  { %v3934_v43 = vsel %vm3306_vm4, %v16995_v20, %v16993_v17  ;;  %v10197_v46 = vadd.f32 %v1942_v32, %v1620_v12  ;;  %v10202_v63 = vmul.f32 %v7947_v0, %v10115_v28  ;;  %v809_v53 = vadd.f32 %v16997_v26, %v16711_v7  ;;  %v16999_v20 = vld [vmem:[#allocation145_spill] sm:$0xff] }
 0x1eb   :  { %v4119_v40 = vadd.f32 %v3934_v43, %v9839_v14  ;;  %v10207_v1 = vmul.f32 %v16998_v50, %v5237_v10  ;;  %v3118_v4 = vadd.f32 %v2937_v55, %v2620_v15  ;;  %v17000_v30 = vrot.slane %v16999_v20, 5 }
 0x1ec   :  { %16996 = vst [vmem:[#allocation128_spill] sm:$0xff] %v10202_v63  ;;  %v10216_v14 = vmul.f32 %v7906_v41, %v10133_v3  ;;  %v15978_v17 = vrot.slane %v10202_v63, 6  ;;  %v10221_v2 = vmul.f32 %v7911_v42, %v10133_v3  ;;  %v10225_v55 = vmul.f32 %v7916_v44, %v10133_v3 }
 0x1ed   :  { %v4436_v12 = vsel %vm4309_vm5, %v17000_v30, %v15976_v49  ;;  %v15981_v10 = vrot.slane %v10207_v1, 5  ;;  %v10228_v15 = vadd.f32 %v3437_v33, %v3118_v4  ;;  %v10233_v26 = vmul.f32 %v7921_v45, %v10133_v3  ;;  %v10246_v4 = vpop.f32.mrb[20].mxu0 }
 0x1ee   :  { %17001 = vst [vmem:[#allocation52_spill] sm:$0xff] %v10216_v14  ;;  %v4621_v32 = vadd.f32 %v4436_v12, %v4119_v40  ;;  %17002 = vst [vmem:[#allocation130_spill] sm:$0xff] %v10221_v2  ;;  %v17006_v40 = vld [vmem:[#allocation148_spill] sm:$0xff]  ;;  %v10244_v33 = vmul.f32 %v7926_v48, %v10133_v3  ;;  %v17010_v49 = vrot.slane %v9801_v6, 5  ;;  %v17014_v21 = vrot.slane %v9946_v35, 2 }
 0x1ef   :  { %17003 = vst [vmem:[#allocation59_spill] sm:$0xff] %v10225_v55  ;;  %17004 = vst [vmem:[#allocation84_spill] sm:$0xff] %v10228_v15  ;;  %v17007_v50 = vrot.slane %v17006_v40, 6  ;;  %v17011_v40 = vrot.slane %v10216_v14, 1  ;;  %v15980_v12 = vrot.slane %v10233_v26, 3 }
 0x1f0   :  { %17005 = vst [vmem:[#allocation86_spill] sm:$0xff] %v10233_v26  ;;  %17008 = vst [vmem:[#allocation103_spill] sm:$0xff] %v10244_v33  ;;  %v6149_v43 = vsel %vm4309_vm5, %v17010_v49, %v15981_v10  ;;  %v17015_v49 = vrot.slane %v10225_v55, 2  ;;  %v17045_v55 = vrot.slane %v9984_v36, 1 }
 0x1f1   :  { %v4938_v20 = vsel %vm4811_vm6, %v17007_v50, %v15978_v17  ;;  %17009 = vst [vmem:[#allocation62_spill] sm:$0xff] %v10246_v4  ;;  %v17012_v50 = vrot.slane %v9943_v57, 1  ;;  %v6394_v30 = vsel %vm6382_vm7, %v6149_v43, 0.0  ;;  %v17013_v4 = vrot.slane %v10221_v2, 2 }
 0x1f2   :  { %v5123_v63 = vadd.f32 %v4938_v20, %v4621_v32  ;;  %v17016_v32 = vrot.slane %v9953_v54, 2 }
 0x1f3   :  { %v1335_v17 = vsel %vm1304_vm3, %v17012_v50, %v17011_v40  ;;  %v1836_v6 = vsel %vm487_vm0, %v17014_v21, %v17013_v4  ;;  %v10274_v40 = vadd.f32 %v6394_v30, %v9852_v38  ;;  %v15983_v21 = vrot.slane %v10244_v33, 4 }
 0x1f4   :  { %v1567_v15 = vadd.f32 %v1335_v17, %v9960_v39  ;;  %v10271_v20 = vsel %vm487_vm0, %v17016_v32, %v17015_v49  ;;  %v5210_v43 = vadd.f32 %v16658_v61, %v5123_v63  ;;  %v17017_v39 = vrot.slane %v9963_v59, 3 }
 0x1f5   :  { %v10289_v50 = vmul.f32 %v7929_v58, %v10133_v3  ;;  %v10293_v38 = vmul.f32 %v7933_v29, %v10133_v3  ;;  %v10297_v63 = vmul.f32 %v7947_v0, %v10133_v3  ;;  %v10301_v30 = vmul.f32 %v7933_v29, %v9935_v51 }
 0x1f6   :  { %v10282_v17 = vsel %vm2806_vm2, %v17017_v39, %v15980_v12  ;;  %v10285_v4 = vadd.f32 %v1836_v6, %v1567_v15  ;;  %v5293_v49 = vmax.f32 %v5210_v43, 0.0  ;;  %v17024_v15 = vrot.slane %v9966_v22, 4 }
 0x1f7   :  { %17018 = vst [vmem:[#allocation132_spill] sm:$0xff] %v10282_v17  ;;  %17020 = vst [vmem:[#allocation81_spill] sm:$0xff] %v10289_v50  ;;  %v10310_v32 = vmax.f32 %v809_v53, 0.0  ;;  %v15985_v12 = vrot.slane %v10289_v50, 4  ;;  %v15987_v10 = vrot.slane %v10293_v38, 5  ;;  %v10318_v43 = vmul.f32 %v7947_v0, %v9935_v51  ;;  %v17028_v17 = vld [vmem:[#allocation89_spill] sm:$0xff] }
 0x1f8   :  { %17019 = vst [vmem:[#allocation80_spill] sm:$0xff] %v10285_v4  ;;  %17021 = vst [vmem:[#allocation117_spill] sm:$0xff] %v10293_v38  ;;  %v10308_v6 = vsel %vm3306_vm4, %v17024_v15, %v15983_v21  ;;  %v15989_v4 = vrot.slane %v10297_v63, 6  ;;  %v10321_v33 = vmul.f32 %v17028_v17, %v5293_v49  ;;  %v17032_v21 = vrot.slane %v9969_v23, 4  ;;  %v10378_v38 = vpop.f32.mrb[21].mxu0 }
 0x1f9   :  { %17022 = vst [vmem:[#allocation119_spill] sm:$0xff] %v10297_v63  ;;  %17023 = vst [vmem:[#allocation123_spill] sm:$0xff] %v10301_v30  ;;  %v10325_v15 = vmul.f32 %v7906_v41, %v10310_v32  ;;  %v10329_v53 = vmul.f32 %v7911_v42, %v10310_v32  ;;  %v17033_v51 = vrot.slane %v9975_v18, 5  ;;  %v17034_v49 = vrot.slane %v9980_v52, 6 }
 0x1fa   :  { %17025 = vst [vmem:[#allocation76_spill] sm:$0xff] %v10308_v6  ;;  %17026 = vst [vmem:[#allocation124_spill] sm:$0xff] %v10310_v32  ;;  %v10336_v39 = vsel %vm3306_vm4, %v17032_v21, %v15985_v12  ;;  %v10354_v50 = vmul.f32 %v7916_v44, %v10310_v32  ;;  %v15997_v21 = vrot.slane %v10321_v33, 5  ;;  %v10376_v12 = vmul.f32 %v7933_v29, %v10310_v32 }
 0x1fb   :  { %17027 = vst [vmem:[#allocation129_spill] sm:$0xff] %v10318_v43  ;;  %17029 = vst [vmem:[#allocation133_spill] sm:$0xff] %v10321_v33  ;;  %v10343_v17 = vsel %vm4309_vm5, %v17033_v51, %v15987_v10  ;;  %v10350_v6 = vsel %vm4811_vm6, %v17034_v49, %v15989_v4  ;;  %v10361_v51 = vmul.f32 %v7921_v45, %v10310_v32  ;;  %v10363_v10 = vpop.f32.mrb[20].mxu1  ;;  %v17044_v26 = vrot.slane %v10325_v15, 1 }
 0x1fc   :  { %17030 = vst [vmem:[#allocation82_spill] sm:$0xff] %v10325_v15  ;;  %17031 = vst [vmem:[#allocation135_spill] sm:$0xff] %v10329_v53  ;;  %v10368_v49 = vmul.f32 %v7926_v48, %v10310_v32  ;;  %v10372_v4 = vmul.f32 %v7929_v58, %v10310_v32  ;;  %v17046_v14 = vrot.slane %v10329_v53, 2  ;;  %v17047_v3 = vrot.slane %v9989_v47, 2 }
 0x1fd   :  { %17035 = vst [vmem:[#allocation83_spill] sm:$0xff] %v10354_v50  ;;  %17036 = vst [vmem:[#allocation142_spill] sm:$0xff] %v10361_v51  ;;  %v1447_v2 = vsel %vm1304_vm3, %v17045_v55, %v17044_v26  ;;  %v17050_v26 = vrot.slane %v10022_v25, 3  ;;  %v17054_v33 = vrot.slane %v10027_v60, 4  ;;  %v17073_v60 = vld [vmem:[#allocation16_spill] sm:$0xff] }
 0x1fe   :  { %17037 = vst [vmem:[#allocation143_spill] sm:$0xff] %v10363_v10  ;;  %17038 = vst [vmem:[#allocation58_spill] sm:$0xff] %v10368_v49  ;;  %v17042_v10 = vrot.slane %v9940_v5, 5  ;;  %v1948_v9 = vsel %vm487_vm0, %v17047_v3, %v17046_v14  ;;  %v1623_v5 = vadd.f32 %v1447_v2, %v9996_v62  ;;  %v16000_v55 = vrot.slane %v10368_v49, 4  ;;  %v10433_v14 = vpop.permute.xlu1 %5509 }
 0x1ff   :  { %17039 = vst [vmem:[#allocation18_spill] sm:$0xff] %v10372_v4  ;;  %17040 = vst [vmem:[#allocation145_spill] sm:$0xff] %v10376_v12  ;;  %v10419_v2 = vmul.f32 %v7947_v0, %v10310_v32  ;;  %v17058_v62 = vrot.slane %v10372_v4, 4  ;;  %v980_v4 = vmul.f32 %v7894_v34, %v9937_v19  ;;  %v17074_v56 = vrot.slane %v17073_v60, 2 }
 0x200   :  { %17041 = vst [vmem:[#allocation148_spill] sm:$0xff] %v10378_v38  ;;  %v10385_v63 = vsel %vm4309_vm5, %v17042_v10, %v15997_v21  ;;  %v15999_v38 = vrot.slane %v10361_v51, 3  ;;  %v17048_v10 = vrot.slane %v10354_v50, 2  ;;  %v17049_v21 = vrot.slane %v10018_v8, 2 }
 0x201   :  { %17043 = vst [vmem:[#allocation89_spill] sm:$0xff] %v10385_v63  ;;  %17052 = vst [vmem:[#allocation151_spill] sm:$0xff] %v10419_v2  ;;  %v10429_v51 = vsel %vm3306_vm4, %v17054_v33, %v16000_v55  ;;  %v16006_v33 = vrot.slane %v10419_v2, 6 }
 0x202   :  { %v10405_v63 = vsel %vm487_vm0, %v17049_v21, %v17048_v10  ;;  %v10413_v3 = vsel %vm2806_vm2, %v17050_v26, %v15999_v38  ;;  %v10422_v10 = vadd.f32 %v1948_v9, %v1623_v5  ;;  %17055 = vst [vmem:[#allocation153_spill] sm:$0xff] %v10429_v51  ;;  %v17056_v26 = vld [vmem:[#allocation7_spill] sm:$0xff]  ;;  %v17061_v9 = vrot.slane %v10376_v12, 5 }
 0x203   :  { %17051 = vst [vmem:[#allocation150_spill] sm:$0xff] %v10413_v3  ;;  %v577_v38 = vadd.f32 %v17056_v26, %v16711_v7  ;;  %17057 = vst [vmem:[#allocation7_spill] sm:$0xff] %v10433_v14  ;;  %v17059_v3 = vrot.slane %v10055_v16, 4  ;;  %v17062_v5 = vrot.slane %v10301_v30, 5  ;;  %v17064_v26 = vld [vmem:[#allocation73_spill] sm:$0xff]  ;;  %v10459_v12 = vmul.f32 %v7894_v34, %v10115_v28  ;;  %v17069_v51 = vld [vmem:[#allocation111_spill] sm:$0xff] }
 0x204   :  { %17053 = vst [vmem:[#allocation152_spill] sm:$0xff] %v10422_v10  ;;  %v3061_v55 = vadd.f32 %v17064_v26, %v9723_v24  ;;  %v17068_v24 = vld [vmem:[#allocation131_spill] sm:$0xff]  ;;  %v801_v19 = vadd.f32 %v17069_v51, %v16711_v7  ;;  %v17072_v16 = vrot.slane %v9943_v57, 1  ;;  %v17079_v57 = vrot.slane %v9953_v54, 2 }
 0x205   :  { %v10440_v21 = vsel %vm3306_vm4, %v17059_v3, %v17058_v62  ;;  %v10447_v10 = vsel %vm4309_vm5, %v17062_v5, %v17061_v9  ;;  %v889_v49 = vmax.f32 %v577_v38, 0.0  ;;  %v17065_v3 = vld [vmem:[#allocation146_spill] sm:$0xff]  ;;  %v17066_v9 = vrot.slane %v10318_v43, 6 }
 0x206   :  { %17060 = vst [vmem:[#allocation154_spill] sm:$0xff] %v10440_v21  ;;  %17063 = vst [vmem:[#allocation155_spill] sm:$0xff] %v10447_v10  ;;  %v3117_v62 = vadd.f32 %v17065_v3, %v9812_v11  ;;  %v3563_v26 = vadd.f32 %v17068_v24, %v3061_v55  ;;  %v10479_v55 = vpop.f32.mrb[21].mxu1  ;;  %v17071_v10 = vrot.slane %v10031_v27, 1 }
 0x207   :  { %v10466_v5 = vsel %vm4811_vm6, %v17066_v9, %v16006_v33  ;;  %v981_v38 = vmul.f32 %v7894_v34, %v889_v49  ;;  %v1151_v11 = vmul.f32 %v7906_v41, %v889_v49  ;;  %v1653_v3 = vmul.f32 %v7911_v42, %v889_v49  ;;  %17070 = vst [vmem:[#allocation146_spill] sm:$0xff] %v10479_v55 }
 0x208   :  { %17067 = vst [vmem:[#allocation73_spill] sm:$0xff] %v10466_v5  ;;  %v2152_v28 = vmul.f32 %v7916_v44, %v889_v49  ;;  %v2652_v2 = vmul.f32 %v7921_v45, %v889_v49  ;;  %v3150_v50 = vmul.f32 %v7926_v48, %v889_v49  ;;  %v3650_v9 = vmul.f32 %v7929_v58, %v889_v49 }
 0x209   :  { %v4151_v33 = vmul.f32 %v7933_v29, %v889_v49  ;;  %v1330_v24 = vrot.slane %v1151_v11, 1  ;;  %v1831_v51 = vrot.slane %v1653_v3, 2  ;;  %v4653_v15 = vmul.f32 %v7947_v0, %v889_v49 }
 0x20a   :  { %v2328_v53 = vrot.slane %v2152_v28, 2  ;;  %v2826_v32 = vrot.slane %v2652_v2, 3  ;;  %v3326_v5 = vrot.slane %v3150_v50, 4  ;;  %v3823_v43 = vrot.slane %v3650_v9, 4  ;;  %v10494_v2 = vpop.f32.mrb[22].mxu0  ;;  %v17077_v28 = vld [vmem:[#allocation137_spill] sm:$0xff] }
 0x20b   :  { %v4325_v14 = vrot.slane %v4151_v33, 5  ;;  %v1331_v30 = vsel %vm1304_vm3, %v17071_v10, %v1330_v24  ;;  %v1333_v21 = vsel %vm1304_vm3, %v1330_v24, %v17072_v16  ;;  %v1832_v11 = vsel %vm487_vm0, %v17074_v56, %v1831_v51  ;;  %17076 = vst [vmem:[#allocation131_spill] sm:$0xff] %v10494_v2  ;;  %v17080_v9 = vld [vmem:[#allocation127_spill] sm:$0xff]  ;;  %v17081_v24 = vld [vmem:[#allocation113_spill] sm:$0xff] }
 0x20c   :  { %v17075_v3 = vrot.slane %v9946_v35, 2  ;;  %v1565_v50 = vadd.f32 %v1331_v30, %v980_v4  ;;  %v1566_v33 = vadd.f32 %v1333_v21, %v981_v38  ;;  %v17078_v27 = vrot.slane %v17077_v28, 2  ;;  %v17084_v38 = vld [vmem:[#allocation47_spill] sm:$0xff] }
 0x20d   :  { %v2331_v16 = vsel %vm487_vm0, %v2328_v53, %v17079_v57  ;;  %v17082_v35 = vrot.slane %v17081_v24, 3  ;;  %v17085_v28 = vrot.slane %v17084_v38, 4  ;;  %v17087_v57 = vrot.slane %v10051_v31, 4  ;;  %v17176_v2 = vld [vmem:[#allocation59_spill] sm:$0xff] }
 0x20e   :  { %v1834_v49 = vsel %vm487_vm0, %v1831_v51, %v17075_v3  ;;  %v2329_v10 = vsel %vm487_vm0, %v17078_v27, %v2328_v53  ;;  %v2566_v56 = vadd.f32 %v2331_v16, %v10111_v13  ;;  %v17083_v3 = vrot.slane %v9963_v59, 3 }
 0x20f   :  { %v2565_v60 = vadd.f32 %v2329_v10, %v17080_v9  ;;  %v2827_v51 = vsel %vm2806_vm2, %v17082_v35, %v2826_v32  ;;  %v2066_v30 = vadd.f32 %v1832_v11, %v1565_v50  ;;  %v10510_v21 = vadd.f32 %v1834_v49, %v1566_v33  ;;  %v17089_v50 = vld [vmem:[#allocation5_spill] sm:$0xff]  ;;  %v17090_v9 = vld [vmem:[#allocation50_spill] sm:$0xff] }
 0x210   :  { %v2829_v4 = vsel %vm2806_vm2, %v2826_v32, %v17083_v3  ;;  %v3327_v54 = vsel %vm3306_vm4, %v17085_v28, %v3326_v5  ;;  %v17086_v53 = vrot.slane %v9966_v22, 4  ;;  %v3824_v16 = vsel %vm3306_vm4, %v17087_v57, %v3823_v43 }
 0x211   :  { %v3063_v13 = vadd.f32 %v2827_v51, %v2565_v60  ;;  %v3064_v10 = vadd.f32 %v2829_v4, %v2566_v56  ;;  %v17088_v59 = vrot.slane %v9969_v23, 4  ;;  %v10525_v11 = vadd.f32 %v10271_v20, %v2066_v30  ;;  %v17093_v20 = vld [vmem:[#allocation149_spill] sm:$0xff] }
 0x212   :  { %v3329_v27 = vsel %vm3306_vm4, %v3326_v5, %v17086_v53  ;;  %v4064_v49 = vadd.f32 %v3824_v16, %v3563_v26  ;;  %v17091_v22 = vrot.slane %v17090_v9, 5  ;;  %v17092_v31 = vrot.slane %v9975_v18, 5  ;;  %v17094_v4 = vld [vmem:[#allocation105_spill] sm:$0xff]  ;;  %v17097_v18 = vld [vmem:[#allocation120_spill] sm:$0xff]  ;;  %v10560_v9 = vpop.f32.mrb[22].mxu1 }
 0x213   :  { %v3826_v32 = vsel %vm3306_vm4, %v3823_v43, %v17088_v59  ;;  %v3565_v60 = vadd.f32 %v3327_v54, %v3063_v13  ;;  %v10531_v56 = vadd.f32 %v3329_v27, %v3064_v10  ;;  %v4827_v23 = vrot.slane %v4653_v15, 6  ;;  %17098 = vst [vmem:[#allocation111_spill] sm:$0xff] %v10560_v9  ;;  %v17171_v9 = vld [vmem:[#allocation52_spill] sm:$0xff] }
 0x214   :  { %v4065_v33 = vadd.f32 %v3826_v32, %v17089_v50  ;;  %v4326_v5 = vsel %vm4309_vm5, %v17091_v22, %v4325_v14  ;;  %v4328_v24 = vsel %vm4309_vm5, %v4325_v14, %v17092_v31  ;;  %v945_v51 = vmax.f32 %v801_v19, 0.0 }
 0x215   :  { %v4566_v35 = vadd.f32 %v4326_v5, %v4064_v49  ;;  %v10537_v3 = vadd.f32 %v17093_v20, %v3117_v62  ;;  %v4066_v26 = vadd.f32 %v10336_v39, %v3565_v60  ;;  %v17095_v30 = vrot.slane %v17094_v4, 6  ;;  %v17099_v5 = vld [vmem:[#allocation116_spill] sm:$0xff]  ;;  %v17102_v20 = vld [vmem:[#allocation79_spill] sm:$0xff] }
 0x216   :  { %v4567_v43 = vadd.f32 %v4328_v24, %v4065_v33  ;;  %v17096_v28 = vrot.slane %v9980_v52, 6  ;;  %v10548_v14 = vadd.f32 %v17097_v18, %v16711_v7  ;;  %v1037_v19 = vmul.f32 %v7894_v34, %v945_v51 }
 0x217   :  { %v4828_v38 = vsel %vm4811_vm6, %v17095_v30, %v4827_v23  ;;  %v1207_v62 = vmul.f32 %v7906_v41, %v945_v51  ;;  %v4568_v39 = vadd.f32 %v10343_v17, %v4066_v26  ;;  %v1709_v27 = vmul.f32 %v7911_v42, %v945_v51  ;;  %v17104_v30 = vld [vmem:[#allocation20_spill] sm:$0xff] }
 0x218   :  { %v4830_v54 = vsel %vm4811_vm6, %v4827_v23, %v17096_v28  ;;  %v5068_v15 = vadd.f32 %v4828_v38, %v4566_v35  ;;  %v2208_v13 = vmul.f32 %v7916_v44, %v945_v51  ;;  %v2708_v52 = vmul.f32 %v7921_v45, %v945_v51  ;;  %v17105_v28 = vld [vmem:[#allocation32_spill] sm:$0xff] }
 0x219   :  { %v5069_v53 = vadd.f32 %v4830_v54, %v4567_v43  ;;  %v1442_v16 = vrot.slane %v1207_v62, 1  ;;  %v3206_v59 = vmul.f32 %v7926_v48, %v945_v51  ;;  %v5070_v32 = vadd.f32 %v10350_v6, %v4568_v39 }
 0x21a   :  { %v5155_v10 = vadd.f32 %v16658_v61, %v5068_v15  ;;  %v1943_v49 = vrot.slane %v1709_v27, 2  ;;  %v2440_v50 = vrot.slane %v2208_v13, 2  ;;  %v2938_v33 = vrot.slane %v2708_v52, 3  ;;  %v5670_v52 = vpop.permute.xlu0 %5669 }
 0x21b   :  { %v5156_v57 = vadd.f32 %v16658_v61, %v5069_v53  ;;  %v17100_v60 = vrot.slane %v17099_v5, 1  ;;  %v17101_v24 = vrot.slane %v9984_v36, 1  ;;  %v5157_v35 = vadd.f32 %v16658_v61, %v5070_v32  ;;  %v17107_v36 = vld [vmem:[#allocation85_spill] sm:$0xff] }
 0x21c   :  { %v5238_v17 = vmax.f32 %v5155_v10, 0.0  ;;  %v17103_v26 = vrot.slane %v17102_v20, 2  ;;  %v17106_v18 = vrot.slane %v9989_v47, 2  ;;  %v17108_v53 = vrot.slane %v17107_v36, 2 }
 0x21d   :  { %v5239_v22 = vmax.f32 %v5156_v57, 0.0  ;;  %v1443_v31 = vsel %vm1304_vm3, %v17100_v60, %v1442_v16  ;;  %v1445_v23 = vsel %vm1304_vm3, %v1442_v16, %v17101_v24  ;;  %v5240_v39 = vmax.f32 %v5157_v35, 0.0  ;;  %v17110_v16 = vld [vmem:[#allocation147_spill] sm:$0xff] }
 0x21e   :  { %v1621_v43 = vadd.f32 %v1443_v31, %v10459_v12  ;;  %v1622_v6 = vadd.f32 %v1445_v23, %v1037_v19  ;;  %v1944_v4 = vsel %vm487_vm0, %v17103_v26, %v1943_v49  ;;  %v5977_v38 = vmul.f32 %v17104_v30, %v5238_v17 }
 0x21f   :  { %v5978_v54 = vmul.f32 %v17105_v28, %v5239_v22  ;;  %v1946_v15 = vsel %vm487_vm0, %v1943_v49, %v17106_v18  ;;  %v2441_v62 = vsel %vm487_vm0, %v17108_v53, %v2440_v50  ;;  %v17109_v19 = vrot.slane %v10018_v8, 2  ;;  %v17111_v49 = vld [vmem:[#allocation34_spill] sm:$0xff]  ;;  %v17117_v28 = vld [vmem:[#allocation100_spill] sm:$0xff] }
 0x220   :  { %v2122_v27 = vadd.f32 %v1944_v4, %v1621_v43  ;;  %v10581_v12 = vadd.f32 %v1946_v15, %v1622_v6  ;;  %v6150_v10 = vrot.slane %v5977_v38, 5  ;;  %v2621_v32 = vadd.f32 %v2441_v62, %v17110_v16  ;;  %v10604_v43 = vpop.f32.mrb[23].mxu0  ;;  %v17119_v15 = vld [vmem:[#allocation72_spill] sm:$0xff]  ;;  %v17122_v16 = vld [vmem:[#allocation154_spill] sm:$0xff] }
 0x221   :  { %v2443_v13 = vsel %vm487_vm0, %v2440_v50, %v17109_v19  ;;  %v6152_v57 = vrot.slane %v5978_v54, 5  ;;  %v10589_v17 = vmul.f32 %v17111_v49, %v5240_v39  ;;  %v17113_v5 = vrot.slane %v10143_v37, 3  ;;  %17116 = vst [vmem:[#allocation137_spill] sm:$0xff] %v10604_v43  ;;  %v17123_v49 = vld [vmem:[#allocation121_spill] sm:$0xff] }
 0x222   :  { %v2622_v47 = vadd.f32 %v2443_v13, %v10197_v46  ;;  %v10592_v22 = vadd.f32 %v10405_v63, %v2122_v27  ;;  %v17114_v8 = vrot.slane %v10022_v25, 3  ;;  %v17115_v31 = vrot.slane %v10207_v1, 5  ;;  %v5514_v25 = vpop.permute.xlu1 %5513 }
 0x223   :  { %v2939_v60 = vsel %vm2806_vm2, %v17113_v5, %v2938_v33  ;;  %v6153_v46 = vsel %vm4309_vm5, %v6150_v10, %v6152_v57  ;;  %v16020_v63 = vrot.slane %v10589_v17, 5  ;;  %v3438_v20 = vrot.slane %v3206_v59, 4 }
 0x224   :  { %17112 = vst [vmem:[#allocation16_spill] sm:$0xff] %v10592_v22  ;;  %v2941_v50 = vsel %vm2806_vm2, %v2938_v33, %v17114_v8  ;;  %v6151_v24 = vsel %vm4309_vm5, %v17115_v31, %v6150_v10  ;;  %v3119_v23 = vadd.f32 %v2939_v60, %v2621_v32  ;;  %v6398_v6 = vsel %vm6382_vm7, %v6153_v46, 0.0  ;;  %v17125_v8 = vld [vmem:[#allocation141_spill] sm:$0xff] }
 0x225   :  { %v3120_v35 = vadd.f32 %v2941_v50, %v2622_v47  ;;  %v6396_v37 = vsel %vm6382_vm7, %v6151_v24, 0.0  ;;  %v3706_v1 = vmul.f32 %v7929_v58, %v945_v51  ;;  %v4207_v26 = vmul.f32 %v7933_v29, %v945_v51  ;;  %v17127_v24 = vld [vmem:[#allocation125_spill] sm:$0xff] }
 0x226   :  { %v6397_v33 = vadd.f32 %v6396_v37, %v10274_v40  ;;  %v4709_v4 = vmul.f32 %v7947_v0, %v945_v51  ;;  %v5858_v30 = vrot.slane %v5670_v52, 3  ;;  %v6155_v38 = vsel %vm4309_vm5, %v6152_v57, %v16020_v63  ;;  %v10622_v40 = vpop.permute.xlu0 %5673 }
 0x227   :  { %v17118_v54 = vrot.slane %v17117_v28, 4  ;;  %v17120_v59 = vrot.slane %v17119_v15, 4  ;;  %17121 = vst [vmem:[#allocation127_spill] sm:$0xff] %v10622_v40  ;;  %v6400_v62 = vsel %vm6382_vm7, %v6155_v38, 0.0  ;;  %v5780_v27 = vrot.slane %v5514_v25, 3  ;;  %v17132_v25 = vld [vmem:[#allocation84_spill] sm:$0xff] }
 0x228   :  { %v6399_v53 = vadd.f32 %v6398_v6, %v6397_v33  ;;  %v3935_v19 = vrot.slane %v3706_v1, 4  ;;  %v4437_v13 = vrot.slane %v4207_v26, 5  ;;  %v4939_v52 = vrot.slane %v4709_v4, 6  ;;  %v17133_v1 = vld [vmem:[#allocation155_spill] sm:$0xff]  ;;  %v17134_v4 = vld [vmem:[#allocation128_spill] sm:$0xff]  ;;  %v17138_v15 = vld [vmem:[#allocation118_spill] sm:$0xff] }
 0x229   :  { %v3439_v18 = vsel %vm3306_vm4, %v17118_v54, %v3438_v20  ;;  %v3441_v36 = vsel %vm3306_vm4, %v3438_v20, %v17120_v59  ;;  %v16018_v10 = vrot.slane %v10622_v40, 3  ;;  %v894_v47 = vmax.f32 %v10548_v14, 0.0  ;;  %v10644_v20 = vpop.permute.xlu1 %5517  ;;  %v17136_v54 = vld [vmem:[#allocation7_spill] sm:$0xff] }
 0x22a   :  { %v3621_v39 = vadd.f32 %v3439_v18, %v3119_v23  ;;  %v10625_v51 = vadd.f32 %v3441_v36, %v3120_v35  ;;  %v10628_v57 = vadd.f32 %v6400_v62, %v6399_v53  ;;  %v17124_v5 = vrot.slane %v17123_v49, 4  ;;  %v17129_v35 = vld [vmem:[#allocation123_spill] sm:$0xff]  ;;  %17131 = vst [vmem:[#allocation113_spill] sm:$0xff] %v10644_v20 }
 0x22b   :  { %v17126_v50 = vrot.slane %v17125_v8, 4  ;;  %v17128_v46 = vrot.slane %v17127_v24, 5  ;;  %v17130_v37 = vrot.slane %v17129_v35, 5  ;;  %v17135_v38 = vrot.slane %v17134_v4, 6  ;;  %v17141_v53 = vld [vmem:[#allocation139_spill] sm:$0xff] }
 0x22c   :  { %v4122_v32 = vadd.f32 %v17122_v16, %v3621_v39  ;;  %v3936_v60 = vsel %vm3306_vm4, %v17124_v5, %v3935_v19  ;;  %v17137_v18 = vrot.slane %v17136_v54, 3  ;;  %v17139_v59 = vrot.slane %v17138_v15, 3  ;;  %v17152_v35 = vld [vmem:[#allocation63_spill] sm:$0xff]  ;;  %v17156_v54 = vld [vmem:[#allocation54_spill] sm:$0xff] }
 0x22d   :  { %v3938_v31 = vsel %vm3306_vm4, %v3935_v19, %v17126_v50  ;;  %v4438_v23 = vsel %vm4309_vm5, %v17128_v46, %v4437_v13  ;;  %v4440_v6 = vsel %vm4309_vm5, %v4437_v13, %v17130_v37  ;;  %v4120_v14 = vadd.f32 %v3936_v60, %v10537_v3  ;;  %v17144_v19 = vld [vmem:[#allocation129_spill] sm:$0xff]  ;;  %v10675_v60 = vpop.permute.xlu0 %5677 }
 0x22e   :  { %v4121_v33 = vadd.f32 %v3938_v31, %v17132_v25  ;;  %v4624_v26 = vadd.f32 %v17133_v1, %v4122_v32  ;;  %v4940_v28 = vsel %vm4811_vm6, %v17135_v38, %v4939_v52  ;;  %v10657_v36 = vsel %vm2806_vm2, %v17139_v59, %v17137_v18  ;;  %v10668_v32 = vpop.f32.mrb[23].mxu1  ;;  %17149 = vst [vmem:[#allocation105_spill] sm:$0xff] %v10675_v60  ;;  %v17150_v31 = vld [vmem:[#allocation73_spill] sm:$0xff]  ;;  %v17153_v25 = vld [vmem:[#allocation10_spill] sm:$0xff]  ;;  %v10797_v38 = vpop.f32.mrb[24].mxu0 }
 0x22f   :  { %17140 = vst [vmem:[#allocation47_spill] sm:$0xff] %v10657_v36  ;;  %v17142_v62 = vrot.slane %v17141_v53, 3  ;;  %v16017_v3 = vrot.slane %v10644_v20, 3  ;;  %v17145_v13 = vrot.slane %v17144_v19, 6  ;;  %17146 = vst [vmem:[#allocation50_spill] sm:$0xff] %v10668_v32  ;;  %v17147_v49 = vmov %v17137_v18 }
 0x230   :  { %v10673_v5 = vsel %vm2806_vm2, %v17147_v49, %v5780_v27  ;;  %v4622_v8 = vadd.f32 %v4438_v23, %v4120_v14  ;;  %v4623_v50 = vadd.f32 %v4440_v6, %v4121_v33  ;;  %v5126_v24 = vadd.f32 %v17150_v31, %v4624_v26  ;;  %v17154_v33 = vld [vmem:[#allocation124_spill] sm:$0xff]  ;;  %17165 = vst [vmem:[#allocation85_spill] sm:$0xff] %v10797_v38 }
 0x231   :  { %v10662_v39 = vsel %vm2806_vm2, %v17142_v62, %v5858_v30  ;;  %v4942_v16 = vsel %vm4811_vm6, %v4939_v52, %v17145_v13  ;;  %17148 = vst [vmem:[#allocation149_spill] sm:$0xff] %v10673_v5  ;;  %v10681_v46 = vsel %vm2806_vm2, %v5858_v30, %v16018_v10  ;;  %v10685_v52 = vmul.f32 %v7894_v34, %v17152_v35 }
 0x232   :  { %17143 = vst [vmem:[#allocation5_spill] sm:$0xff] %v10662_v39  ;;  %17151 = vst [vmem:[#allocation120_spill] sm:$0xff] %v10681_v46  ;;  %v10688_v37 = vmul.f32 %v7906_v41, %v894_v47  ;;  %v822_v1 = vadd.f32 %v17153_v25, %v16711_v7  ;;  %v5124_v4 = vadd.f32 %v4940_v28, %v4622_v8  ;;  %v17157_v8 = vld [vmem:[#allocation140_spill] sm:$0xff]  ;;  %v17172_v32 = vrot.slane %v17171_v9, 1 }
 0x233   :  { %v5125_v23 = vadd.f32 %v4942_v16, %v4623_v50  ;;  %v5213_v6 = vadd.f32 %v16658_v61, %v5126_v24  ;;  %v10694_v14 = vmul.f32 %v7911_v42, %v894_v47  ;;  %v10698_v30 = vmul.f32 %v7894_v34, %v17154_v33 }
 0x234   :  { %v10703_v26 = vsel %vm2806_vm2, %v5780_v27, %v16017_v3  ;;  %v590_v28 = vadd.f32 %v17156_v54, %v16711_v7  ;;  %v5211_v18 = vadd.f32 %v16658_v61, %v5124_v4  ;;  %v10711_v53 = vmul.f32 %v7916_v44, %v894_v47 }
 0x235   :  { %17155 = vst [vmem:[#allocation116_spill] sm:$0xff] %v10703_v26  ;;  %v5212_v15 = vadd.f32 %v16658_v61, %v5125_v23  ;;  %v5296_v59 = vmax.f32 %v5213_v6, 0.0  ;;  %v10714_v62 = vmul.f32 %v7894_v34, %v894_v47  ;;  %v10718_v27 = vmul.f32 %v7921_v45, %v894_v47  ;;  %v17159_v6 = vld [vmem:[#allocation134_spill] sm:$0xff] }
 0x236   :  { %v10720_v13 = vmax.f32 %v822_v1, 0.0  ;;  %v5294_v16 = vmax.f32 %v5211_v18, 0.0  ;;  %v10727_v24 = vmul.f32 %v7926_v48, %v894_v47  ;;  %v10730_v35 = vmul.f32 %v7929_v58, %v894_v47  ;;  %v17158_v1 = vld [vmem:[#allocation55_spill] sm:$0xff]  ;;  %v17160_v18 = vld [vmem:[#allocation133_spill] sm:$0xff] }
 0x237   :  { %v5295_v49 = vmax.f32 %v5212_v15, 0.0  ;;  %v10723_v50 = vmul.f32 %v17157_v8, %v5296_v59  ;;  %v10733_v25 = vmul.f32 %v7933_v29, %v894_v47  ;;  %v10736_v4 = vmul.f32 %v7947_v0, %v894_v47 }
 0x238   :  { %v6033_v23 = vmul.f32 %v17158_v1, %v5294_v16  ;;  %v10745_v59 = vmul.f32 %v7906_v41, %v10720_v13  ;;  %v10749_v8 = vmul.f32 %v7911_v42, %v10720_v13  ;;  %v10753_v47 = vmul.f32 %v7916_v44, %v10720_v13 }
 0x239   :  { %v6034_v33 = vmul.f32 %v17159_v6, %v5295_v49  ;;  %v16019_v54 = vrot.slane %v10723_v50, 5  ;;  %v10757_v1 = vmul.f32 %v7921_v45, %v10720_v13  ;;  %v892_v6 = vmax.f32 %v590_v28, 0.0 }
 0x23a   :  { %v6262_v16 = vrot.slane %v6033_v23, 5  ;;  %v17161_v31 = vrot.slane %v17160_v18, 5  ;;  %v17177_v5 = vrot.slane %v17176_v2, 2 }
 0x23b   :  { %v6264_v49 = vrot.slane %v6034_v33, 5  ;;  %v10778_v33 = vmul.f32 %v7894_v34, %v10720_v13  ;;  %v10789_v10 = vmul.f32 %v7906_v41, %v892_v6  ;;  %v10800_v15 = vmul.f32 %v7921_v45, %v892_v6 }
 0x23c   :  { %v10766_v19 = vsel %vm4309_vm5, %v17161_v31, %v6262_v16  ;;  %v10785_v31 = vmul.f32 %v7926_v48, %v10720_v13  ;;  %v10803_v18 = vmul.f32 %v7926_v48, %v892_v6  ;;  %v10806_v3 = vmul.f32 %v7929_v58, %v892_v6 }
 0x23d   :  { %17162 = vst [vmem:[#allocation79_spill] sm:$0xff] %v10766_v19  ;;  %v10769_v23 = vsel %vm4309_vm5, %v6262_v16, %v6264_v49  ;;  %v10774_v28 = vsel %vm4309_vm5, %v6264_v49, %v16019_v54  ;;  %v10792_v49 = vmul.f32 %v7911_v42, %v892_v6  ;;  %v10795_v54 = vmul.f32 %v7916_v44, %v892_v6 }
 0x23e   :  { %17163 = vst [vmem:[#allocation20_spill] sm:$0xff] %v10769_v23  ;;  %17164 = vst [vmem:[#allocation32_spill] sm:$0xff] %v10774_v28  ;;  %v10809_v16 = vmul.f32 %v7933_v29, %v892_v6  ;;  %v16021_v63 = vrot.slane %v10789_v10, 1  ;;  %v10815_v19 = vmul.f32 %v7947_v0, %v892_v6  ;;  %v17173_v23 = vld [vmem:[#allocation130_spill] sm:$0xff] }
 0x23f   :  { %17166 = vst [vmem:[#allocation147_spill] sm:$0xff] %v10800_v15  ;;  %17167 = vst [vmem:[#allocation34_spill] sm:$0xff] %v10803_v18  ;;  %v16023_v28 = vrot.slane %v10792_v49, 2  ;;  %v17174_v46 = vrot.slane %v17173_v23, 2  ;;  %v17175_v26 = vrot.slane %v10795_v54, 2 }
 0x240   :  { %17168 = vst [vmem:[#allocation100_spill] sm:$0xff] %v10806_v3  ;;  %17169 = vst [vmem:[#allocation72_spill] sm:$0xff] %v10809_v16  ;;  %v1337_v43 = vsel %vm1304_vm3, %v17172_v32, %v16021_v63  ;;  %v17178_v32 = vrot.slane %v10800_v15, 3  ;;  %v17179_v63 = vld [vmem:[#allocation86_spill] sm:$0xff]  ;;  %v17215_v15 = vld [vmem:[#allocation83_spill] sm:$0xff] }
 0x241   :  { %17170 = vst [vmem:[#allocation154_spill] sm:$0xff] %v10815_v19  ;;  %v1838_v39 = vsel %vm487_vm0, %v17174_v46, %v16023_v28  ;;  %v2335_v36 = vsel %vm487_vm0, %v17177_v5, %v17175_v26  ;;  %v1568_v55 = vadd.f32 %v1337_v43, %v10685_v52  ;;  %v17180_v20 = vrot.slane %v17179_v63, 3  ;;  %v17182_v28 = vld [vmem:[#allocation103_spill] sm:$0xff]  ;;  %v17185_v26 = vld [vmem:[#allocation81_spill] sm:$0xff] }
 0x242   :  { %v2568_v9 = vadd.f32 %v2335_v36, %v10510_v21  ;;  %v17181_v46 = vrot.slane %v10803_v18, 4  ;;  %v17183_v40 = vrot.slane %v17182_v28, 4  ;;  %v17184_v5 = vrot.slane %v10806_v3, 4  ;;  %v17188_v36 = vld [vmem:[#allocation117_spill] sm:$0xff]  ;;  %v10866_v3 = vpop.f32.mrb[24].mxu1 }
 0x243   :  { %v2833_v23 = vsel %vm2806_vm2, %v17180_v20, %v17178_v32  ;;  %v17186_v38 = vrot.slane %v17185_v26, 4  ;;  %v17187_v21 = vrot.slane %v10809_v16, 5  ;;  %v17189_v52 = vrot.slane %v17188_v36, 5  ;;  %v17191_v32 = vld [vmem:[#allocation119_spill] sm:$0xff]  ;;  %17194 = vst [vmem:[#allocation121_spill] sm:$0xff] %v10866_v3  ;;  %v17196_v36 = vld [vmem:[#allocation126_spill] sm:$0xff] }
 0x244   :  { %v3333_v2 = vsel %vm3306_vm4, %v17183_v40, %v17181_v46  ;;  %v17190_v20 = vrot.slane %v10815_v19, 6  ;;  %v17192_v60 = vrot.slane %v17191_v32, 6  ;;  %v17193_v40 = vld [vmem:[#allocation122_spill] sm:$0xff]  ;;  %v10868_v26 = vadd.f32 %v1838_v39, %v1568_v55 }
 0x245   :  { %v3830_v43 = vsel %vm3306_vm4, %v17186_v38, %v17184_v5  ;;  %v4332_v63 = vsel %vm4309_vm5, %v17189_v52, %v17187_v21  ;;  %v814_v46 = vadd.f32 %v17193_v40, %v16711_v7  ;;  %v3066_v38 = vadd.f32 %v2833_v23, %v2568_v9  ;;  %v10873_v21 = vpop.f32.mrb[25].mxu0 }
 0x246   :  { %v4834_v28 = vsel %vm4811_vm6, %v17192_v60, %v17190_v20  ;;  %17195 = vst [vmem:[#allocation141_spill] sm:$0xff] %v10868_v26  ;;  %v4067_v5 = vadd.f32 %v3830_v43, %v10531_v56  ;;  %v601_v16 = vadd.f32 %v17196_v36, %v16711_v7  ;;  %17197 = vst [vmem:[#allocation125_spill] sm:$0xff] %v10873_v21  ;;  %v17209_v21 = vld [vmem:[#allocation82_spill] sm:$0xff]  ;;  %v17216_v52 = vrot.slane %v17215_v15, 2 }
 0x247   :  { %v10878_v60 = vmul.f32 %v7929_v58, %v10720_v13  ;;  %v10882_v20 = vmul.f32 %v7933_v29, %v10720_v13  ;;  %v10884_v55 = vmax.f32 %v814_v46, 0.0  ;;  %v10888_v56 = vmul.f32 %v7947_v0, %v10720_v13  ;;  %v10909_v46 = vpop.f32.mrb[25].mxu1 }
 0x248   :  { %v10891_v39 = vmul.f32 %v7894_v34, %v892_v6  ;;  %v10893_v9 = vadd.f32 %v3333_v2, %v3066_v38  ;;  %v4569_v23 = vadd.f32 %v4332_v63, %v4067_v5  ;;  %v10907_v13 = vmax.f32 %v601_v16, 0.0  ;;  %17206 = vst [vmem:[#allocation73_spill] sm:$0xff] %v10909_v46 }
 0x249   :  { %17198 = vst [vmem:[#allocation123_spill] sm:$0xff] %v10878_v60  ;;  %17199 = vst [vmem:[#allocation84_spill] sm:$0xff] %v10882_v20  ;;  %v10897_v43 = vmul.f32 %v7906_v41, %v10884_v55  ;;  %v10901_v32 = vmul.f32 %v7911_v42, %v10884_v55  ;;  %v10905_v40 = vmul.f32 %v7916_v44, %v10884_v55  ;;  %v17210_v19 = vrot.slane %v17209_v21, 1 }
 0x24a   :  { %17200 = vst [vmem:[#allocation155_spill] sm:$0xff] %v10888_v56  ;;  %17201 = vst [vmem:[#allocation128_spill] sm:$0xff] %v10893_v9  ;;  %v5071_v6 = vadd.f32 %v4834_v28, %v4569_v23  ;;  %v10913_v2 = vmul.f32 %v7921_v45, %v10884_v55  ;;  %v10917_v63 = vmul.f32 %v7926_v48, %v10884_v55  ;;  %v17212_v9 = vld [vmem:[#allocation135_spill] sm:$0xff] }
 0x24b   :  { %17202 = vst [vmem:[#allocation7_spill] sm:$0xff] %v10897_v43  ;;  %17203 = vst [vmem:[#allocation118_spill] sm:$0xff] %v10901_v32  ;;  %v10921_v38 = vmul.f32 %v7929_v58, %v10884_v55  ;;  %v16033_v5 = vrot.slane %v10897_v43, 1  ;;  %v10928_v28 = vmul.f32 %v7933_v29, %v10884_v55  ;;  %v17211_v36 = vrot.slane %v10901_v32, 2 }
 0x24c   :  { %17204 = vst [vmem:[#allocation139_spill] sm:$0xff] %v10905_v40  ;;  %17205 = vst [vmem:[#allocation129_spill] sm:$0xff] %v10907_v13  ;;  %v5158_v23 = vadd.f32 %v16658_v61, %v5071_v6  ;;  %v17213_v22 = vrot.slane %v17212_v9, 2  ;;  %v17214_v6 = vrot.slane %v10905_v40, 2 }
 0x24d   :  { %17207 = vst [vmem:[#allocation63_spill] sm:$0xff] %v10921_v38  ;;  %17208 = vst [vmem:[#allocation10_spill] sm:$0xff] %v10928_v28  ;;  %v1449_v16 = vsel %vm1304_vm3, %v17210_v19, %v16033_v5  ;;  %v16036_v3 = vrot.slane %v10928_v28, 5  ;;  %v17217_v19 = vrot.slane %v10913_v2, 3  ;;  %v17218_v5 = vld [vmem:[#allocation142_spill] sm:$0xff] }
 0x24e   :  { %v1950_v18 = vsel %vm487_vm0, %v17213_v22, %v17211_v36  ;;  %v2447_v46 = vsel %vm487_vm0, %v17216_v52, %v17214_v6  ;;  %v5241_v26 = vmax.f32 %v5158_v23, 0.0  ;;  %v1624_v43 = vadd.f32 %v1449_v16, %v10698_v30  ;;  %v17221_v36 = vld [vmem:[#allocation58_spill] sm:$0xff]  ;;  %v17229_v16 = vld [vmem:[#allocation36_spill] sm:$0xff] }
 0x24f   :  { %v2624_v21 = vadd.f32 %v2447_v46, %v10581_v12  ;;  %v17219_v32 = vrot.slane %v17218_v5, 3  ;;  %v17220_v22 = vrot.slane %v10917_v63, 4  ;;  %v17222_v40 = vrot.slane %v17221_v36, 4  ;;  %v17224_v6 = vld [vmem:[#allocation18_spill] sm:$0xff]  ;;  %v17226_v12 = vld [vmem:[#allocation145_spill] sm:$0xff] }
 0x250   :  { %v17223_v52 = vrot.slane %v10921_v38, 4  ;;  %v17225_v23 = vrot.slane %v17224_v6, 4  ;;  %v17227_v46 = vrot.slane %v17226_v12, 5  ;;  %v10985_v6 = vmul.f32 %v7906_v41, %v10907_v13  ;;  %v17232_v12 = vld [vmem:[#allocation57_spill] sm:$0xff] }
 0x251   :  { %v2945_v9 = vsel %vm2806_vm2, %v17219_v32, %v17217_v19  ;;  %v3445_v15 = vsel %vm3306_vm4, %v17222_v40, %v17220_v22  ;;  %v10974_v32 = vmul.f32 %v7947_v0, %v10884_v55  ;;  %v10977_v19 = vmul.f32 %v17229_v16, %v5241_v26  ;;  %v10993_v26 = vpop.f32.mrb[26].mxu0 }
 0x252   :  { %v3942_v30 = vsel %vm3306_vm4, %v17225_v23, %v17223_v52  ;;  %v4444_v5 = vsel %vm4309_vm5, %v17227_v46, %v16036_v3  ;;  %v10979_v40 = vadd.f32 %v1950_v18, %v1624_v43  ;;  %v3122_v22 = vadd.f32 %v2945_v9, %v2624_v21  ;;  %17230 = vst [vmem:[#allocation54_spill] sm:$0xff] %v10985_v6  ;;  %v17236_v9 = vld [vmem:[#allocation151_spill] sm:$0xff] }
 0x253   :  { %17228 = vst [vmem:[#allocation124_spill] sm:$0xff] %v10974_v32  ;;  %v4123_v36 = vadd.f32 %v3942_v30, %v10625_v51  ;;  %v16037_v52 = vrot.slane %v10974_v32, 6  ;;  %v10989_v23 = vmul.f32 %v7911_v42, %v10907_v13  ;;  %v825_v46 = vadd.f32 %v17232_v12, %v16711_v7  ;;  %17233 = vst [vmem:[#allocation55_spill] sm:$0xff] %v10993_v26 }
 0x254   :  { %v10996_v43 = vadd.f32 %v3445_v15, %v3122_v22  ;;  %v11000_v21 = vmul.f32 %v7916_v44, %v10907_v13  ;;  %v17237_v30 = vrot.slane %v17236_v9, 6  ;;  %v16040_v3 = vrot.slane %v10985_v6, 1 }
 0x255   :  { %17231 = vst [vmem:[#allocation140_spill] sm:$0xff] %v10989_v23  ;;  %v4625_v51 = vadd.f32 %v4444_v5, %v4123_v36  ;;  %v11011_v18 = vmul.f32 %v7921_v45, %v10907_v13  ;;  %v17239_v15 = vrot.slane %v10977_v19, 5  ;;  %v17240_v5 = vrot.slane %v10589_v17, 5 }
 0x256   :  { %17234 = vst [vmem:[#allocation134_spill] sm:$0xff] %v10996_v43  ;;  %17235 = vst [vmem:[#allocation133_spill] sm:$0xff] %v11000_v21  ;;  %v4946_v16 = vsel %vm4811_vm6, %v17237_v30, %v16037_v52  ;;  %v16041_v26 = vrot.slane %v11000_v21, 2  ;;  %v11021_v9 = vmul.f32 %v7926_v48, %v10907_v13  ;;  %v17242_v52 = vrot.slane %v10688_v37, 1 }
 0x257   :  { %17238 = vst [vmem:[#allocation52_spill] sm:$0xff] %v11011_v18  ;;  %v6157_v22 = vsel %vm4309_vm5, %v17240_v5, %v17239_v15  ;;  %v5127_v36 = vadd.f32 %v4946_v16, %v4625_v51  ;;  %v17243_v32 = vrot.slane %v10989_v23, 2  ;;  %v17244_v17 = vrot.slane %v10694_v14, 2 }
 0x258   :  { %17241 = vst [vmem:[#allocation130_spill] sm:$0xff] %v11021_v9  ;;  %v6402_v30 = vsel %vm6382_vm7, %v6157_v22, 0.0  ;;  %v1343_v12 = vsel %vm1304_vm3, %v17242_v52, %v16040_v3  ;;  %v16042_v16 = vrot.slane %v11011_v18, 3  ;;  %v17245_v6 = vrot.slane %v10711_v53, 2  ;;  %v11047_v3 = vpop.f32.mrb[26].mxu1 }
 0x259   :  { %v1844_v51 = vsel %vm487_vm0, %v17244_v17, %v17243_v32  ;;  %v11036_v15 = vadd.f32 %v6402_v30, %v10628_v57  ;;  %v5214_v5 = vadd.f32 %v16658_v61, %v5127_v36  ;;  %v1571_v22 = vadd.f32 %v1343_v12, %v10714_v62  ;;  %17246 = vst [vmem:[#allocation59_spill] sm:$0xff] %v11047_v3 }
 0x25a   :  { %v11045_v52 = vsel %vm487_vm0, %v17245_v6, %v16041_v26  ;;  %v17247_v32 = vrot.slane %v10718_v27, 3  ;;  %v16044_v36 = vrot.slane %v11021_v9, 4  ;;  %v11059_v62 = vmul.f32 %v7929_v58, %v10907_v13 }
 0x25b   :  { %v11063_v12 = vmul.f32 %v7933_v29, %v10907_v13  ;;  %v5297_v6 = vmax.f32 %v5214_v5, 0.0  ;;  %v11065_v30 = vadd.f32 %v1844_v51, %v1571_v22  ;;  %v11069_v17 = vmul.f32 %v7947_v0, %v10907_v13  ;;  %v17257_v22 = vld [vmem:[#allocation112_spill] sm:$0xff] }
 0x25c   :  { %v11054_v57 = vsel %vm2806_vm2, %v17247_v32, %v16042_v16  ;;  %17249 = vst [vmem:[#allocation103_spill] sm:$0xff] %v11059_v62  ;;  %v11071_v26 = vmax.f32 %v825_v46, 0.0  ;;  %v11073_v32 = vpop.f32.mrb[27].mxu0  ;;  %v17255_v3 = vrot.slane %v10727_v24, 4  ;;  %v16045_v51 = vrot.slane %v11059_v62, 4  ;;  %v17260_v16 = vld [vmem:[#allocation70_spill] sm:$0xff] }
 0x25d   :  { %17248 = vst [vmem:[#allocation86_spill] sm:$0xff] %v11054_v57  ;;  %17250 = vst [vmem:[#allocation81_spill] sm:$0xff] %v11063_v12  ;;  %v16047_v5 = vrot.slane %v11063_v12, 5  ;;  %v593_v9 = vadd.f32 %v17260_v16, %v16711_v7  ;;  %v17274_v62 = vrot.slane %v10745_v59, 1 }
 0x25e   :  { %17251 = vst [vmem:[#allocation117_spill] sm:$0xff] %v11065_v30  ;;  %17252 = vst [vmem:[#allocation119_spill] sm:$0xff] %v11069_v17  ;;  %v11081_v57 = vsel %vm3306_vm4, %v17255_v3, %v16044_v36  ;;  %v11086_v30 = vmul.f32 %v17257_v22, %v5297_v6  ;;  %v17261_v3 = vrot.slane %v10730_v35, 4  ;;  %v17262_v6 = vrot.slane %v10733_v25, 5 }
 0x25f   :  { %17253 = vst [vmem:[#allocation122_spill] sm:$0xff] %v11071_v26  ;;  %17254 = vst [vmem:[#allocation126_spill] sm:$0xff] %v11073_v32  ;;  %v11091_v32 = vmul.f32 %v7906_v41, %v11071_v26  ;;  %v11111_v46 = vmul.f32 %v7911_v42, %v11071_v26  ;;  %v11115_v16 = vmul.f32 %v7916_v44, %v11071_v26 }
 0x260   :  { %17256 = vst [vmem:[#allocation82_spill] sm:$0xff] %v11081_v57  ;;  %17258 = vst [vmem:[#allocation135_spill] sm:$0xff] %v11086_v30  ;;  %v11100_v36 = vsel %vm3306_vm4, %v17261_v3, %v16045_v51  ;;  %v11107_v22 = vsel %vm4309_vm5, %v17262_v6, %v16047_v5  ;;  %v17265_v3 = vrot.slane %v11069_v17, 6  ;;  %v17266_v51 = vrot.slane %v10736_v4, 6 }
 0x261   :  { %17259 = vst [vmem:[#allocation83_spill] sm:$0xff] %v11091_v32  ;;  %17263 = vst [vmem:[#allocation142_spill] sm:$0xff] %v11111_v46  ;;  %v11128_v5 = vmul.f32 %v7921_v45, %v11071_v26  ;;  %v11134_v57 = vmul.f32 %v7926_v48, %v11071_v26  ;;  %v11138_v17 = vmul.f32 %v7929_v58, %v11071_v26  ;;  %v17273_v21 = vrot.slane %v11091_v32, 1 }
 0x262   :  { %17264 = vst [vmem:[#allocation58_spill] sm:$0xff] %v11115_v16  ;;  %v11123_v12 = vsel %vm4811_vm6, %v17266_v51, %v17265_v3  ;;  %v17270_v51 = vrot.slane %v11086_v30, 5  ;;  %v17271_v3 = vrot.slane %v10723_v50, 5  ;;  %v11155_v13 = vmul.f32 %v7933_v29, %v11071_v26 }
 0x263   :  { %17267 = vst [vmem:[#allocation18_spill] sm:$0xff] %v11128_v5  ;;  %17268 = vst [vmem:[#allocation145_spill] sm:$0xff] %v11134_v57  ;;  %v1455_v18 = vsel %vm1304_vm3, %v17274_v62, %v17273_v21  ;;  %v16057_v23 = vrot.slane %v11128_v5, 3  ;;  %v17276_v50 = vrot.slane %v11111_v46, 2  ;;  %v17279_v21 = vrot.slane %v10753_v47, 2 }
 0x264   :  { %17269 = vst [vmem:[#allocation36_spill] sm:$0xff] %v11138_v17  ;;  %v11145_v6 = vsel %vm4309_vm5, %v17271_v3, %v17270_v51  ;;  %17275 = vst [vmem:[#allocation151_spill] sm:$0xff] %v11155_v13  ;;  %v1627_v30 = vadd.f32 %v1455_v18, %v10778_v33  ;;  %v17277_v51 = vrot.slane %v10749_v8, 2  ;;  %v17280_v32 = vrot.slane %v10757_v1, 3 }
 0x265   :  { %17272 = vst [vmem:[#allocation57_spill] sm:$0xff] %v11145_v6  ;;  %v17278_v6 = vrot.slane %v11115_v16, 2  ;;  %v16058_v33 = vrot.slane %v11134_v57, 4  ;;  %v16060_v18 = vrot.slane %v11138_v17, 4  ;;  %v17290_v57 = vld [vmem:[#allocation76_spill] sm:$0xff] }
 0x266   :  { %v1956_v3 = vsel %vm487_vm0, %v17277_v51, %v17276_v50  ;;  %v11176_v43 = vsel %vm2806_vm2, %v17280_v32, %v16057_v23  ;;  %v17284_v32 = vrot.slane %v10785_v31, 4  ;;  %v17286_v50 = vrot.slane %v10878_v60, 4 }
 0x267   :  { %v11169_v62 = vsel %vm487_vm0, %v17279_v21, %v17278_v6  ;;  %17281 = vst [vmem:[#allocation112_spill] sm:$0xff] %v11176_v43  ;;  %v11182_v46 = vadd.f32 %v1956_v3, %v1627_v30  ;;  %v11186_v6 = vmul.f32 %v7947_v0, %v11071_v26  ;;  %v893_v21 = vmax.f32 %v593_v9, 0.0  ;;  %v11227_v26 = vpop.f32.mrb[27].mxu1 }
 0x268   :  { %v11193_v23 = vsel %vm3306_vm4, %v17284_v32, %v16058_v33  ;;  %v11200_v51 = vsel %vm3306_vm4, %v17286_v50, %v16060_v18  ;;  %v17287_v30 = vrot.slane %v11155_v13, 5  ;;  %v17288_v3 = vrot.slane %v10882_v20, 5  ;;  %17293 = vst [vmem:[#allocation76_spill] sm:$0xff] %v11227_v26 }
 0x269   :  { %17282 = vst [vmem:[#allocation70_spill] sm:$0xff] %v11182_v46  ;;  %17283 = vst [vmem:[#allocation156_spill] sm:$0xff] %v11186_v6  ;;  %v17289_v46 = vld [vmem:[#allocation132_spill] sm:$0xff]  ;;  %v16071_v32 = vrot.slane %v11186_v6, 6  ;;  %v985_v33 = vmul.f32 %v7894_v34, %v893_v21  ;;  %v1657_v17 = vmul.f32 %v7911_v42, %v893_v21  ;;  %v2156_v50 = vmul.f32 %v7916_v44, %v893_v21 }
 0x26a   :  { %17285 = vst [vmem:[#allocation157_spill] sm:$0xff] %v11193_v23  ;;  %v11207_v9 = vsel %vm4309_vm5, %v17288_v3, %v17287_v30  ;;  %v3065_v43 = vadd.f32 %v17289_v46, %v10525_v11  ;;  %v1155_v23 = vmul.f32 %v7906_v41, %v893_v21  ;;  %v2656_v18 = vmul.f32 %v7921_v45, %v893_v21 }
 0x26b   :  { %v3154_v13 = vmul.f32 %v7926_v48, %v893_v21  ;;  %v17291_v11 = vrot.slane %v10888_v56, 6  ;;  %v1839_v5 = vrot.slane %v1657_v17, 2  ;;  %v3654_v16 = vmul.f32 %v7929_v58, %v893_v21 }
 0x26c   :  { %v3567_v30 = vadd.f32 %v17290_v57, %v3065_v43  ;;  %v1338_v3 = vrot.slane %v1155_v23, 1  ;;  %v2336_v20 = vrot.slane %v2156_v50, 2  ;;  %v2834_v28 = vrot.slane %v2656_v18, 3 }
 0x26d   :  { %v11224_v46 = vsel %vm4811_vm6, %v17291_v11, %v16071_v32  ;;  %v3334_v60 = vrot.slane %v3154_v13, 4  ;;  %v4155_v38 = vmul.f32 %v7933_v29, %v893_v21  ;;  %v17294_v43 = vrot.slane %v10789_v10, 1 }
 0x26e   :  { %17292 = vst [vmem:[#allocation132_spill] sm:$0xff] %v11224_v46  ;;  %v17295_v6 = vrot.slane %v10688_v37, 1  ;;  %v17296_v23 = vrot.slane %v10792_v49, 2  ;;  %v17297_v32 = vrot.slane %v10694_v14, 2  ;;  %v17298_v26 = vrot.slane %v10795_v54, 2  ;;  %v17301_v49 = vld [vmem:[#allocation141_spill] sm:$0xff] }
 0x26f   :  { %v1339_v57 = vsel %vm1304_vm3, %v17294_v43, %v1338_v3  ;;  %v17299_v43 = vrot.slane %v10711_v53, 2 }
 0x270   :  { %v1341_v11 = vsel %vm1304_vm3, %v1338_v3, %v17295_v6  ;;  %v1840_v17 = vsel %vm487_vm0, %v17296_v23, %v1839_v5  ;;  %v1842_v50 = vsel %vm487_vm0, %v1839_v5, %v17297_v32  ;;  %v1569_v13 = vadd.f32 %v1339_v57, %v10891_v39  ;;  %v17300_v6 = vld [vmem:[#allocation80_spill] sm:$0xff]  ;;  %v17302_v23 = vld [vmem:[#allocation147_spill] sm:$0xff] }
 0x271   :  { %v1570_v18 = vadd.f32 %v1341_v11, %v985_v33  ;;  %v2337_v10 = vsel %vm487_vm0, %v17298_v26, %v2336_v20  ;;  %v2339_v37 = vsel %vm487_vm0, %v2336_v20, %v17299_v43  ;;  %v17303_v56 = vrot.slane %v17302_v23, 3  ;;  %v17305_v26 = vld [vmem:[#allocation34_spill] sm:$0xff]  ;;  %v17315_v23 = vld [vmem:[#allocation72_spill] sm:$0xff] }
 0x272   :  { %v2569_v3 = vadd.f32 %v2337_v10, %v17300_v6  ;;  %v2570_v46 = vadd.f32 %v2339_v37, %v17301_v49  ;;  %v17304_v5 = vrot.slane %v10718_v27, 3  ;;  %v2070_v33 = vadd.f32 %v1840_v17, %v1569_v13  ;;  %v17310_v13 = vld [vmem:[#allocation150_spill] sm:$0xff] }
 0x273   :  { %v2835_v14 = vsel %vm2806_vm2, %v17303_v56, %v2834_v28  ;;  %v11257_v54 = vadd.f32 %v1842_v50, %v1570_v18  ;;  %v17306_v32 = vrot.slane %v17305_v26, 4  ;;  %v17307_v20 = vrot.slane %v10727_v24, 4  ;;  %v17309_v50 = vld [vmem:[#allocation16_spill] sm:$0xff] }
 0x274   :  { %v2837_v39 = vsel %vm2806_vm2, %v2834_v28, %v17304_v5  ;;  %v3067_v11 = vadd.f32 %v2835_v14, %v2569_v3  ;;  %v3831_v43 = vrot.slane %v3654_v16, 4  ;;  %v4333_v37 = vrot.slane %v4155_v38, 5  ;;  %v17308_v28 = vld [vmem:[#allocation14_spill] sm:$0xff]  ;;  %v17311_v24 = vld [vmem:[#allocation100_spill] sm:$0xff] }
 0x275   :  { %v3335_v53 = vsel %vm3306_vm4, %v17306_v32, %v3334_v60  ;;  %v3337_v57 = vsel %vm3306_vm4, %v3334_v60, %v17307_v20  ;;  %v3068_v10 = vadd.f32 %v2837_v39, %v2570_v46  ;;  %v11266_v56 = vadd.f32 %v11045_v52, %v2070_v33  ;;  %v17314_v3 = vld [vmem:[#allocation128_spill] sm:$0xff]  ;;  %v17318_v20 = vld [vmem:[#allocation153_spill] sm:$0xff] }
 0x276   :  { %v4657_v27 = vmul.f32 %v7947_v0, %v893_v21  ;;  %v817_v17 = vadd.f32 %v17308_v28, %v16711_v7  ;;  %v3121_v18 = vadd.f32 %v17310_v13, %v17309_v50  ;;  %v3569_v6 = vadd.f32 %v3335_v53, %v3067_v11  ;;  %v17321_v11 = vld [vmem:[#allocation127_spill] sm:$0xff] }
 0x277   :  { %v11273_v49 = vadd.f32 %v3337_v57, %v3068_v10  ;;  %v17312_v60 = vrot.slane %v17311_v24, 4  ;;  %v17313_v38 = vrot.slane %v10730_v35, 4  ;;  %v17316_v14 = vrot.slane %v17315_v23, 5  ;;  %v17319_v57 = vld [vmem:[#allocation105_spill] sm:$0xff] }
 0x278   :  { %v17317_v39 = vrot.slane %v10733_v25, 5  ;;  %v4070_v26 = vadd.f32 %v11100_v36, %v3569_v6  ;;  %v4835_v32 = vrot.slane %v4657_v27, 6  ;;  %v11289_v53 = vmax.f32 %v817_v17, 0.0  ;;  %v17324_v27 = vld [vmem:[#allocation154_spill] sm:$0xff] }
 0x279   :  { %v3832_v46 = vsel %vm3306_vm4, %v17312_v60, %v3831_v43  ;;  %v3834_v52 = vsel %vm3306_vm4, %v3831_v43, %v17313_v38  ;;  %v4334_v5 = vsel %vm4309_vm5, %v17316_v14, %v4333_v37  ;;  %v11292_v35 = vadd.f32 %v17318_v20, %v3121_v18 }
 0x27a   :  { %v4068_v16 = vadd.f32 %v3832_v46, %v3567_v30  ;;  %v4069_v21 = vadd.f32 %v3834_v52, %v17314_v3  ;;  %v4336_v33 = vsel %vm4309_vm5, %v4333_v37, %v17317_v39  ;;  %v17320_v30 = vrot.slane %v17319_v57, 3 }
 0x27b   :  { %v17322_v10 = vrot.slane %v17321_v11, 3  ;;  %v1040_v25 = vmul.f32 %v7894_v34, %v10884_v55  ;;  %v4572_v36 = vadd.f32 %v11107_v22, %v4070_v26  ;;  %v17325_v17 = vrot.slane %v17324_v27, 6 }
 0x27c   :  { %v4570_v28 = vadd.f32 %v4334_v5, %v4068_v16  ;;  %v4571_v37 = vadd.f32 %v4336_v33, %v4069_v21  ;;  %v17326_v13 = vrot.slane %v10736_v4, 6  ;;  %v1041_v6 = vmul.f32 %v7894_v34, %v11289_v53 }
 0x27d   :  { %v11299_v43 = vsel %vm2806_vm2, %v17322_v10, %v17320_v30  ;;  %v4836_v50 = vsel %vm4811_vm6, %v17325_v17, %v4835_v32  ;;  %v1211_v55 = vmul.f32 %v7906_v41, %v11289_v53  ;;  %v1713_v46 = vmul.f32 %v7911_v42, %v11289_v53  ;;  %v17330_v17 = vld [vmem:[#allocation118_spill] sm:$0xff] }
 0x27e   :  { %17323 = vst [vmem:[#allocation80_spill] sm:$0xff] %v11299_v43  ;;  %v4838_v18 = vsel %vm4811_vm6, %v4835_v32, %v17326_v13  ;;  %v5072_v24 = vadd.f32 %v4836_v50, %v4570_v28  ;;  %v5074_v22 = vadd.f32 %v11123_v12, %v4572_v36  ;;  %v2212_v38 = vmul.f32 %v7916_v44, %v11289_v53  ;;  %v17327_v32 = vld [vmem:[#allocation7_spill] sm:$0xff]  ;;  %v11332_v28 = vpop.permute.xlu1 %5521 }
 0x27f   :  { %v5073_v60 = vadd.f32 %v4838_v18, %v4571_v37  ;;  %v2712_v4 = vmul.f32 %v7921_v45, %v11289_v53  ;;  %v3210_v52 = vmul.f32 %v7926_v48, %v11289_v53  ;;  %v1450_v21 = vrot.slane %v1211_v55, 1  ;;  %v17332_v18 = vld [vmem:[#allocation38_spill] sm:$0xff] }
 0x280   :  { %v5159_v16 = vadd.f32 %v16658_v61, %v5072_v24  ;;  %v1951_v23 = vrot.slane %v1713_v46, 2  ;;  %v5161_v14 = vadd.f32 %v16658_v61, %v5074_v22  ;;  %v2448_v5 = vrot.slane %v2212_v38, 2 }
 0x281   :  { %v5160_v3 = vadd.f32 %v16658_v61, %v5073_v60  ;;  %v2946_v39 = vrot.slane %v2712_v4, 3  ;;  %v3446_v12 = vrot.slane %v3210_v52, 4  ;;  %v17328_v20 = vrot.slane %v17327_v32, 1  ;;  %v17333_v60 = vld [vmem:[#allocation40_spill] sm:$0xff]  ;;  %v11345_v52 = vpop.permute.xlu0 %5681 }
 0x282   :  { %v5242_v33 = vmax.f32 %v5159_v16, 0.0  ;;  %v17329_v11 = vrot.slane %v10745_v59, 1  ;;  %v5244_v37 = vmax.f32 %v5161_v14, 0.0  ;;  %v17331_v50 = vrot.slane %v17330_v17, 2  ;;  %v17335_v59 = vld [vmem:[#allocation139_spill] sm:$0xff] }
 0x283   :  { %v5243_v26 = vmax.f32 %v5160_v3, 0.0  ;;  %v1451_v30 = vsel %vm1304_vm3, %v17328_v20, %v1450_v21  ;;  %v17334_v46 = vrot.slane %v10749_v8, 2  ;;  %v17336_v38 = vrot.slane %v17335_v59, 2 }
 0x284   :  { %v1453_v10 = vsel %vm1304_vm3, %v1450_v21, %v17329_v11  ;;  %v1625_v36 = vadd.f32 %v1451_v30, %v1040_v25  ;;  %v1952_v13 = vsel %vm487_vm0, %v17331_v50, %v1951_v23  ;;  %v5981_v24 = vmul.f32 %v17332_v18, %v5242_v33  ;;  %v17337_v25 = vld [vmem:[#allocation42_spill] sm:$0xff]  ;;  %v5526_v50 = vpop.permute.xlu1 %5525 }
 0x285   :  { %v1626_v27 = vadd.f32 %v1453_v10, %v1041_v6  ;;  %v5982_v55 = vmul.f32 %v17333_v60, %v5243_v26  ;;  %v1954_v22 = vsel %vm487_vm0, %v1951_v23, %v17334_v46  ;;  %v2449_v4 = vsel %vm487_vm0, %v17336_v38, %v2448_v5  ;;  %v17339_v26 = vld [vmem:[#allocation152_spill] sm:$0xff]  ;;  %v11384_v46 = vpop.permute.xlu0 %5685 }
 0x286   :  { %v11348_v6 = vmul.f32 %v17337_v25, %v5244_v37  ;;  %v2126_v16 = vadd.f32 %v1952_v13, %v1625_v36  ;;  %v17338_v21 = vrot.slane %v10753_v47, 2  ;;  %v6158_v33 = vrot.slane %v5981_v24, 5 }
 0x287   :  { %v11350_v3 = vadd.f32 %v1954_v22, %v1626_v27  ;;  %v6160_v8 = vrot.slane %v5982_v55, 5  ;;  %v2625_v23 = vadd.f32 %v2449_v4, %v17339_v26  ;;  %v17340_v11 = vrot.slane %v10913_v2, 3 }
 0x288   :  { %v2451_v14 = vsel %vm487_vm0, %v2448_v5, %v17338_v21  ;;  %v16075_v20 = vrot.slane %v11348_v6, 5  ;;  %v11359_v30 = vadd.f32 %v11169_v62, %v2126_v16  ;;  %v17341_v37 = vrot.slane %v10757_v1, 3 }
 0x289   :  { %v2626_v32 = vadd.f32 %v2451_v14, %v10979_v40  ;;  %v2947_v10 = vsel %vm2806_vm2, %v17340_v11, %v2946_v39  ;;  %v17342_v5 = vrot.slane %v10977_v19, 5  ;;  %v6161_v27 = vsel %vm4309_vm5, %v6158_v33, %v6160_v8  ;;  %v17345_v14 = vld [vmem:[#allocation62_spill] sm:$0xff]  ;;  %v17348_v11 = vld [vmem:[#allocation123_spill] sm:$0xff] }
 0x28a   :  { %v2949_v47 = vsel %vm2806_vm2, %v2946_v39, %v17341_v37  ;;  %v3123_v40 = vadd.f32 %v2947_v10, %v2625_v23  ;;  %v6163_v62 = vsel %vm4309_vm5, %v6160_v8, %v16075_v20  ;;  %v6406_v13 = vsel %vm6382_vm7, %v6161_v27, 0.0  ;;  %v17350_v37 = vld [vmem:[#allocation10_spill] sm:$0xff] }
 0x28b   :  { %v6159_v36 = vsel %vm4309_vm5, %v17342_v5, %v6158_v33  ;;  %v3124_v17 = vadd.f32 %v2949_v47, %v2626_v32  ;;  %v17343_v1 = vrot.slane %v10917_v63, 4  ;;  %v6408_v18 = vsel %vm6382_vm7, %v6163_v62, 0.0  ;;  %v17346_v32 = vld [vmem:[#allocation63_spill] sm:$0xff] }
 0x28c   :  { %v6404_v2 = vsel %vm6382_vm7, %v6159_v36, 0.0  ;;  %v17344_v24 = vrot.slane %v10785_v31, 4  ;;  %v3710_v59 = vmul.f32 %v7929_v58, %v11289_v53  ;;  %v4211_v63 = vmul.f32 %v7933_v29, %v11289_v53  ;;  %v17352_v36 = vld [vmem:[#allocation84_spill] sm:$0xff] }
 0x28d   :  { %v3447_v39 = vsel %vm3306_vm4, %v17343_v1, %v3446_v12  ;;  %v6405_v19 = vadd.f32 %v6404_v2, %v11036_v15  ;;  %v4713_v15 = vmul.f32 %v7947_v0, %v11289_v53  ;;  %v5784_v38 = vrot.slane %v11332_v28, 3  ;;  %v17356_v2 = vld [vmem:[#allocation124_spill] sm:$0xff] }
 0x28e   :  { %v3449_v60 = vsel %vm3306_vm4, %v3446_v12, %v17344_v24  ;;  %v3625_v55 = vadd.f32 %v3447_v39, %v3123_v40  ;;  %v5864_v31 = vrot.slane %v11345_v52, 3  ;;  %v3943_v25 = vrot.slane %v3710_v59, 4  ;;  %v17358_v39 = vld [vmem:[#allocation155_spill] sm:$0xff]  ;;  %v17360_v24 = vld [vmem:[#allocation113_spill] sm:$0xff] }
 0x28f   :  { %v11386_v22 = vadd.f32 %v3449_v60, %v3124_v17  ;;  %v6407_v4 = vadd.f32 %v6406_v13, %v6405_v19  ;;  %v4445_v16 = vrot.slane %v4211_v63, 5  ;;  %v4947_v21 = vrot.slane %v4713_v15, 6  ;;  %v11415_v17 = vpop.permute.xlu1 %5529 }
 0x290   :  { %v4126_v12 = vadd.f32 %v11200_v51, %v3625_v55  ;;  %v614_v33 = vadd.f32 %v17345_v14, %v16711_v7  ;;  %v5786_v8 = vrot.slane %v5526_v50, 3  ;;  %v16074_v26 = vrot.slane %v11384_v46, 3  ;;  %17354 = vst [vmem:[#allocation141_spill] sm:$0xff] %v11415_v17  ;;  %v17355_v50 = vld [vmem:[#allocation134_spill] sm:$0xff] }
 0x291   :  { %v11400_v23 = vadd.f32 %v6408_v18, %v6407_v4  ;;  %v17347_v28 = vrot.slane %v17346_v32, 4  ;;  %v17349_v10 = vrot.slane %v17348_v11, 4  ;;  %v17351_v47 = vrot.slane %v17350_v37, 5  ;;  %v11436_v4 = vpop.permute.xlu0 %5689  ;;  %v17370_v11 = vld [vmem:[#allocation143_spill] sm:$0xff] }
 0x292   :  { %v4628_v53 = vadd.f32 %v11207_v9, %v4126_v12  ;;  %v17353_v27 = vrot.slane %v17352_v36, 5  ;;  %v17357_v13 = vrot.slane %v17356_v2, 6  ;;  %v17359_v19 = vrot.slane %v17358_v39, 6  ;;  %17365 = vst [vmem:[#allocation34_spill] sm:$0xff] %v11436_v4 }
 0x293   :  { %v3944_v52 = vsel %vm3306_vm4, %v17347_v28, %v3943_v25  ;;  %v3946_v51 = vsel %vm3306_vm4, %v3943_v25, %v17349_v10  ;;  %v4446_v5 = vsel %vm4309_vm5, %v17351_v47, %v4445_v16  ;;  %v17361_v60 = vrot.slane %v17360_v24, 3  ;;  %v17366_v25 = vld [vmem:[#allocation129_spill] sm:$0xff]  ;;  %v17367_v28 = vld [vmem:[#allocation122_spill] sm:$0xff]  ;;  %v17371_v10 = vld [vmem:[#allocation148_spill] sm:$0xff] }
 0x294   :  { %v4448_v40 = vsel %vm4309_vm5, %v4445_v16, %v17353_v27  ;;  %v4124_v9 = vadd.f32 %v3944_v52, %v11292_v35  ;;  %v4125_v62 = vadd.f32 %v3946_v51, %v17355_v50  ;;  %v4948_v1 = vsel %vm4811_vm6, %v17357_v13, %v4947_v21  ;;  %v17364_v35 = vld [vmem:[#allocation132_spill] sm:$0xff] }
 0x295   :  { %v4950_v18 = vsel %vm4811_vm6, %v4947_v21, %v17359_v19  ;;  %v11428_v55 = vsel %vm2806_vm2, %v17361_v60, %v5784_v38  ;;  %v17363_v59 = vrot.slane %v17319_v57, 3  ;;  %v5130_v15 = vadd.f32 %v17364_v35, %v4628_v53  ;;  %v17376_v19 = vld [vmem:[#allocation131_spill] sm:$0xff]  ;;  %v17386_v35 = vld [vmem:[#allocation54_spill] sm:$0xff] }
 0x296   :  { %17362 = vst [vmem:[#allocation147_spill] sm:$0xff] %v11428_v55  ;;  %v898_v12 = vmax.f32 %v614_v33, 0.0  ;;  %v987_v16 = vmul.f32 %v7894_v34, %v17366_v25  ;;  %v4626_v14 = vadd.f32 %v4446_v5, %v4124_v9  ;;  %v4627_v21 = vadd.f32 %v4448_v40, %v4125_v62  ;;  %v17390_v25 = vld [vmem:[#allocation133_spill] sm:$0xff] }
 0x297   :  { %v11433_v63 = vsel %vm2806_vm2, %v17363_v59, %v5864_v31  ;;  %v16073_v32 = vrot.slane %v11415_v17, 3  ;;  %v11443_v52 = vmul.f32 %v7894_v34, %v17367_v28  ;;  %v11446_v57 = vsel %vm2806_vm2, %v5784_v38, %v5786_v8  ;;  %v17377_v28 = vld [vmem:[#allocation5_spill] sm:$0xff] }
 0x298   :  { %17369 = vst [vmem:[#allocation16_spill] sm:$0xff] %v11446_v57  ;;  %v838_v53 = vadd.f32 %v17370_v11, %v16711_v7  ;;  %v606_v33 = vadd.f32 %v17371_v10, %v16711_v7  ;;  %v11455_v51 = vsel %vm2806_vm2, %v5864_v31, %v16074_v26  ;;  %v5128_v37 = vadd.f32 %v4948_v1, %v4626_v14  ;;  %v17375_v1 = vld [vmem:[#allocation146_spill] sm:$0xff]  ;;  %v17382_v26 = vld [vmem:[#allocation135_spill] sm:$0xff] }
 0x299   :  { %17368 = vst [vmem:[#allocation14_spill] sm:$0xff] %v11443_v52  ;;  %17372 = vst [vmem:[#allocation150_spill] sm:$0xff] %v11455_v51  ;;  %v5129_v47 = vadd.f32 %v4950_v18, %v4627_v21  ;;  %v11459_v36 = vmul.f32 %v7906_v41, %v898_v12  ;;  %v11462_v38 = vmul.f32 %v7911_v42, %v898_v12  ;;  %v17383_v5 = vrot.slane %v17382_v26, 5  ;;  %v17413_v52 = vld [vmem:[#allocation18_spill] sm:$0xff] }
 0x29a   :  { %v11465_v27 = vmul.f32 %v7916_v44, %v898_v12  ;;  %v11468_v40 = vmul.f32 %v7921_v45, %v898_v12  ;;  %v5215_v9 = vadd.f32 %v16658_v61, %v5128_v37  ;;  %v11475_v50 = vsel %vm2806_vm2, %v5786_v8, %v16073_v32  ;;  %v11542_v32 = vpop.f32.mrb[28].mxu0 }
 0x29b   :  { %v5216_v31 = vadd.f32 %v16658_v61, %v5129_v47  ;;  %17373 = vst [vmem:[#allocation100_spill] sm:$0xff] %v11475_v50  ;;  %v11478_v62 = vmul.f32 %v7926_v48, %v898_v12  ;;  %v11480_v2 = vmax.f32 %v838_v53, 0.0  ;;  %v11482_v13 = vmax.f32 %v606_v33, 0.0  ;;  %v17378_v53 = vld [vmem:[#allocation120_spill] sm:$0xff]  ;;  %17381 = vst [vmem:[#allocation105_spill] sm:$0xff] %v11542_v32  ;;  %v17406_v32 = vld [vmem:[#allocation119_spill] sm:$0xff] }
 0x29c   :  { %v830_v39 = vadd.f32 %v17375_v1, %v16711_v7  ;;  %v617_v18 = vadd.f32 %v17376_v19, %v16711_v7  ;;  %v11489_v24 = vadd.f32 %v16658_v61, %v5130_v15  ;;  %v5298_v60 = vmax.f32 %v5215_v9, 0.0 }
 0x29d   :  { %17374 = vst [vmem:[#allocation128_spill] sm:$0xff] %v11480_v2  ;;  %v5299_v59 = vmax.f32 %v5216_v31, 0.0  ;;  %v11492_v8 = vmul.f32 %v7894_v34, %v898_v12  ;;  %v11504_v33 = vmul.f32 %v7929_v58, %v898_v12  ;;  %v11507_v37 = vmul.f32 %v7933_v29, %v898_v12 }
 0x29e   :  { %v6037_v11 = vmul.f32 %v17377_v28, %v5298_v60  ;;  %v11510_v47 = vmul.f32 %v7947_v0, %v898_v12  ;;  %v11514_v9 = vmul.f32 %v7929_v58, %v11480_v2  ;;  %v11518_v31 = vmul.f32 %v7906_v41, %v11482_v13 }
 0x29f   :  { %v11500_v10 = vmul.f32 %v17378_v53, %v5299_v59  ;;  %v11523_v60 = vmul.f32 %v7911_v42, %v11482_v13  ;;  %v11527_v59 = vmul.f32 %v7916_v44, %v11482_v13  ;;  %v11532_v28 = vmul.f32 %v7921_v45, %v11482_v13 }
 0x2a0   :  { %17380 = vst [vmem:[#allocation153_spill] sm:$0xff] %v11514_v9  ;;  %v6270_v1 = vrot.slane %v6037_v11, 5  ;;  %v16078_v12 = vrot.slane %v11518_v31, 1  ;;  %v11536_v53 = vmul.f32 %v7926_v48, %v11482_v13  ;;  %v11540_v11 = vmul.f32 %v7929_v58, %v11482_v13 }
 0x2a1   :  { %17379 = vst [vmem:[#allocation72_spill] sm:$0xff] %v11500_v10  ;;  %v16077_v19 = vrot.slane %v11500_v10, 5  ;;  %v16079_v21 = vrot.slane %v11523_v60, 2  ;;  %v16082_v14 = vrot.slane %v11527_v59, 2  ;;  %v17387_v50 = vrot.slane %v17386_v35, 1 }
 0x2a2   :  { %v11547_v15 = vsel %vm4309_vm5, %v17383_v5, %v6270_v1  ;;  %v16080_v5 = vrot.slane %v11532_v28, 3  ;;  %v17391_v57 = vrot.slane %v17390_v25, 2  ;;  %v16083_v35 = vrot.slane %v11540_v11, 4 }
 0x2a3   :  { %17384 = vst [vmem:[#allocation127_spill] sm:$0xff] %v11547_v15  ;;  %v11552_v20 = vsel %vm4309_vm5, %v6270_v1, %v16077_v19  ;;  %v1345_v26 = vsel %vm1304_vm3, %v17387_v50, %v16078_v12  ;;  %v16081_v15 = vrot.slane %v11536_v53, 4  ;;  %v17388_v1 = vld [vmem:[#allocation140_spill] sm:$0xff]  ;;  %v11588_v25 = vmul.f32 %v7933_v29, %v11482_v13 }
 0x2a4   :  { %17385 = vst [vmem:[#allocation154_spill] sm:$0xff] %v11552_v20  ;;  %v1572_v10 = vadd.f32 %v1345_v26, %v987_v16  ;;  %v17389_v19 = vrot.slane %v17388_v1, 2  ;;  %v2343_v55 = vsel %vm487_vm0, %v17391_v57, %v16082_v14  ;;  %v17392_v12 = vld [vmem:[#allocation52_spill] sm:$0xff]  ;;  %v17394_v1 = vld [vmem:[#allocation130_spill] sm:$0xff]  ;;  %v11605_v14 = vmax.f32 %v617_v18, 0.0 }
 0x2a5   :  { %v2572_v50 = vadd.f32 %v2343_v55, %v11257_v54  ;;  %v17393_v16 = vrot.slane %v17392_v12, 3  ;;  %17396 = vst [vmem:[#allocation7_spill] sm:$0xff] %v11588_v25  ;;  %v17397_v54 = vld [vmem:[#allocation103_spill] sm:$0xff]  ;;  %v17414_v43 = vrot.slane %v17413_v52, 3 }
 0x2a6   :  { %v1846_v20 = vsel %vm487_vm0, %v17389_v19, %v16079_v21  ;;  %v17395_v19 = vrot.slane %v17394_v1, 4  ;;  %v17398_v55 = vrot.slane %v17397_v54, 4 }
 0x2a7   :  { %v2841_v26 = vsel %vm2806_vm2, %v17393_v16, %v16080_v5  ;;  %v11590_v57 = vadd.f32 %v1846_v20, %v1572_v10  ;;  %v11599_v16 = vmul.f32 %v7947_v0, %v11482_v13  ;;  %v11601_v5 = vmax.f32 %v830_v39, 0.0 }
 0x2a8   :  { %v3341_v21 = vsel %vm3306_vm4, %v17395_v19, %v16081_v15  ;;  %v3838_v12 = vsel %vm3306_vm4, %v17398_v55, %v16083_v35  ;;  %v3070_v1 = vadd.f32 %v2841_v26, %v2572_v50  ;;  %v16084_v15 = vrot.slane %v11588_v25, 5 }
 0x2a9   :  { %17399 = vst [vmem:[#allocation118_spill] sm:$0xff] %v11599_v16  ;;  %17400 = vst [vmem:[#allocation38_spill] sm:$0xff] %v11601_v5  ;;  %v4071_v19 = vadd.f32 %v3838_v12, %v11273_v49  ;;  %v16086_v20 = vrot.slane %v11599_v16, 6  ;;  %v11610_v10 = vmul.f32 %v7916_v44, %v11601_v5  ;;  %v11614_v54 = vmul.f32 %v7921_v45, %v11601_v5  ;;  %v17403_v49 = vld [vmem:[#allocation81_spill] sm:$0xff] }
 0x2aa   :  { %v11618_v39 = vmul.f32 %v7926_v48, %v11601_v5  ;;  %v11620_v50 = vadd.f32 %v3341_v21, %v3070_v1  ;;  %v17404_v18 = vrot.slane %v17403_v49, 5  ;;  %v11629_v55 = vmul.f32 %v7929_v58, %v11601_v5 }
 0x2ab   :  { %17401 = vst [vmem:[#allocation40_spill] sm:$0xff] %v11614_v54  ;;  %v11633_v12 = vmul.f32 %v7933_v29, %v11601_v5  ;;  %v17407_v21 = vrot.slane %v17406_v32, 6  ;;  %v16091_v51 = vrot.slane %v11610_v10, 2  ;;  %v17419_v32 = vld [vmem:[#allocation36_spill] sm:$0xff] }
 0x2ac   :  { %17402 = vst [vmem:[#allocation139_spill] sm:$0xff] %v11618_v39  ;;  %v4340_v26 = vsel %vm4309_vm5, %v17404_v18, %v16084_v15  ;;  %v11642_v18 = vpop.f32.mrb[28].mxu1  ;;  %v17412_v15 = vrot.slane %v11614_v54, 3  ;;  %v17415_v16 = vrot.slane %v11618_v39, 4  ;;  %v17422_v54 = vld [vmem:[#allocation151_spill] sm:$0xff] }
 0x2ad   :  { %17405 = vst [vmem:[#allocation42_spill] sm:$0xff] %v11633_v12  ;;  %v4573_v35 = vadd.f32 %v4340_v26, %v4071_v19  ;;  %v4842_v1 = vsel %vm4811_vm6, %v17407_v21, %v16086_v20  ;;  %17408 = vst [vmem:[#allocation152_spill] sm:$0xff] %v11642_v18  ;;  %v11649_v19 = vmul.f32 %v7947_v0, %v11601_v5  ;;  %v11651_v26 = vpop.f32.mrb[29].mxu0  ;;  %v17410_v20 = vld [vmem:[#allocation58_spill] sm:$0xff]  ;;  %v17423_v52 = vrot.slane %v17422_v54, 5 }
 0x2ae   :  { %17409 = vst [vmem:[#allocation62_spill] sm:$0xff] %v11651_v26  ;;  %v17411_v49 = vrot.slane %v17410_v20, 2  ;;  %v2953_v17 = vsel %vm2806_vm2, %v17414_v43, %v17412_v15  ;;  %v17416_v26 = vld [vmem:[#allocation145_spill] sm:$0xff]  ;;  %v17420_v20 = vrot.slane %v17419_v32, 4  ;;  %v11693_v54 = vmul.f32 %v7916_v44, %v11605_v14 }
 0x2af   :  { %v5075_v21 = vadd.f32 %v4842_v1, %v4573_v35  ;;  %v17417_v25 = vrot.slane %v17416_v26, 4  ;;  %v17418_v1 = vrot.slane %v11629_v55, 4  ;;  %v11689_v26 = vmul.f32 %v7911_v42, %v11605_v14 }
 0x2b0   :  { %v2455_v18 = vsel %vm487_vm0, %v17411_v49, %v16091_v51  ;;  %v17421_v51 = vrot.slane %v11633_v12, 5  ;;  %17426 = vst [vmem:[#allocation10_spill] sm:$0xff] %v11693_v54  ;;  %v11710_v12 = vpop.f32.mrb[29].mxu1 }
 0x2b1   :  { %v2628_v5 = vadd.f32 %v2455_v18, %v11350_v3  ;;  %v3453_v35 = vsel %vm3306_vm4, %v17417_v25, %v17415_v16  ;;  %v3950_v49 = vsel %vm3306_vm4, %v17420_v20, %v17418_v1  ;;  %v5162_v3 = vadd.f32 %v16658_v61, %v5075_v21  ;;  %17425 = vst [vmem:[#allocation123_spill] sm:$0xff] %v11689_v26  ;;  %v17428_v21 = vld [vmem:[#allocation156_spill] sm:$0xff] }
 0x2b2   :  { %v4452_v43 = vsel %vm4309_vm5, %v17423_v52, %v17421_v51  ;;  %v4127_v15 = vadd.f32 %v3950_v49, %v11386_v22  ;;  %v16095_v18 = vrot.slane %v11649_v19, 6  ;;  %v11685_v25 = vmul.f32 %v7906_v41, %v11605_v14  ;;  %17430 = vst [vmem:[#allocation134_spill] sm:$0xff] %v11710_v12 }
 0x2b3   :  { %v3126_v16 = vadd.f32 %v2953_v17, %v2628_v5  ;;  %v11697_v51 = vmul.f32 %v7921_v45, %v11605_v14  ;;  %v5245_v22 = vmax.f32 %v5162_v3, 0.0  ;;  %v17429_v1 = vrot.slane %v17428_v21, 6  ;;  %v17431_v3 = vld [vmem:[#allocation44_spill] sm:$0xff] }
 0x2b4   :  { %17424 = vst [vmem:[#allocation63_spill] sm:$0xff] %v11685_v25  ;;  %v4629_v32 = vadd.f32 %v4452_v43, %v4127_v15  ;;  %v16099_v5 = vrot.slane %v11685_v25, 1  ;;  %v16096_v49 = vrot.slane %v11689_v26, 2  ;;  %v16097_v52 = vrot.slane %v11693_v54, 2  ;;  %v17463_v54 = vld [vmem:[#allocation111_spill] sm:$0xff] }
 0x2b5   :  { %17427 = vst [vmem:[#allocation84_spill] sm:$0xff] %v11697_v51  ;;  %v4954_v17 = vsel %vm4811_vm6, %v17429_v1, %v16095_v18  ;;  %v11705_v20 = vadd.f32 %v3453_v35, %v3126_v16  ;;  %v16098_v39 = vrot.slane %v11697_v51, 3  ;;  %v11713_v43 = vmul.f32 %v17431_v3, %v5245_v22 }
 0x2b6   :  { %v5131_v15 = vadd.f32 %v4954_v17, %v4629_v32  ;;  %v17433_v21 = vrot.slane %v11459_v36, 1  ;;  %v11722_v35 = vmul.f32 %v7926_v48, %v11605_v14  ;;  %v17435_v18 = vrot.slane %v11462_v38, 2 }
 0x2b7   :  { %17432 = vst [vmem:[#allocation124_spill] sm:$0xff] %v11713_v43  ;;  %v17436_v32 = vrot.slane %v11465_v27, 2  ;;  %v17437_v3 = vrot.slane %v11468_v40, 3 }
 0x2b8   :  { %v1351_v1 = vsel %vm1304_vm3, %v17433_v21, %v16099_v5  ;;  %17434 = vst [vmem:[#allocation155_spill] sm:$0xff] %v11722_v35  ;;  %v1852_v22 = vsel %vm487_vm0, %v17435_v18, %v16096_v49  ;;  %v11749_v49 = vmul.f32 %v7929_v58, %v11605_v14  ;;  %v17445_v5 = vrot.slane %v11348_v6, 5  ;;  %v11786_v6 = vpop.f32.mrb[30].mxu0 }
 0x2b9   :  { %v1575_v16 = vadd.f32 %v1351_v1, %v11492_v8  ;;  %v11735_v17 = vsel %vm487_vm0, %v17436_v32, %v16097_v52  ;;  %v11742_v21 = vsel %vm2806_vm2, %v17437_v3, %v16098_v39  ;;  %v16104_v8 = vrot.slane %v11713_v43, 5  ;;  %17449 = vst [vmem:[#allocation5_spill] sm:$0xff] %v11786_v6  ;;  %v17459_v6 = vld [vmem:[#allocation86_spill] sm:$0xff] }
 0x2ba   :  { %17438 = vst [vmem:[#allocation113_spill] sm:$0xff] %v11742_v21  ;;  %v5218_v1 = vadd.f32 %v16658_v61, %v5131_v15  ;;  %17439 = vst [vmem:[#allocation132_spill] sm:$0xff] %v11749_v49  ;;  %v11753_v32 = vmul.f32 %v7933_v29, %v11480_v2  ;;  %v11759_v3 = vmul.f32 %v7933_v29, %v11605_v14  ;;  %v17467_v43 = vrot.slane %v11523_v60, 2 }
 0x2bb   :  { %v11755_v52 = vadd.f32 %v1852_v22, %v1575_v16  ;;  %v11763_v39 = vmul.f32 %v7947_v0, %v11605_v14  ;;  %v11767_v15 = vmul.f32 %v7947_v0, %v11480_v2  ;;  %v6165_v18 = vsel %vm4309_vm5, %v17445_v5, %v16104_v8 }
 0x2bc   :  { %17440 = vst [vmem:[#allocation129_spill] sm:$0xff] %v11753_v32  ;;  %17442 = vst [vmem:[#allocation143_spill] sm:$0xff] %v11759_v3  ;;  %v17446_v16 = vrot.slane %v11722_v35, 4  ;;  %v17447_v22 = vrot.slane %v11478_v62, 4  ;;  %v6410_v2 = vsel %vm6382_vm7, %v6165_v18, 0.0  ;;  %v16107_v51 = vrot.slane %v11759_v3, 5 }
 0x2bd   :  { %17441 = vst [vmem:[#allocation122_spill] sm:$0xff] %v11755_v52  ;;  %17443 = vst [vmem:[#allocation148_spill] sm:$0xff] %v11763_v39  ;;  %v16106_v52 = vrot.slane %v11749_v49, 4  ;;  %v17450_v5 = vrot.slane %v11436_v4, 3  ;;  %v17451_v8 = vrot.slane %v11384_v46, 3  ;;  %v17454_v18 = vrot.slane %v11504_v33, 4 }
 0x2be   :  { %17444 = vst [vmem:[#allocation146_spill] sm:$0xff] %v11767_v15  ;;  %v11779_v12 = vsel %vm3306_vm4, %v17447_v22, %v17446_v16  ;;  %v11796_v16 = vadd.f32 %v6410_v2, %v11400_v23  ;;  %v5301_v22 = vmax.f32 %v5218_v1, 0.0  ;;  %v17455_v46 = vrot.slane %v11507_v37, 5 }
 0x2bf   :  { %17448 = vst [vmem:[#allocation131_spill] sm:$0xff] %v11779_v12  ;;  %v11793_v35 = vsel %vm2806_vm2, %v17451_v8, %v17450_v5  ;;  %v11803_v21 = vsel %vm3306_vm4, %v17454_v18, %v16106_v52  ;;  %v17456_v23 = vrot.slane %v11763_v39, 6  ;;  %v17457_v2 = vrot.slane %v11510_v47, 6  ;;  %v17458_v5 = vld [vmem:[#allocation137_spill] sm:$0xff] }
 0x2c0   :  { %17452 = vst [vmem:[#allocation120_spill] sm:$0xff] %v11793_v35  ;;  %17453 = vst [vmem:[#allocation135_spill] sm:$0xff] %v11796_v16  ;;  %v11811_v8 = vsel %vm4309_vm5, %v17455_v46, %v16107_v51  ;;  %v609_v18 = vadd.f32 %v17458_v5, %v16711_v7  ;;  %v3069_v35 = vadd.f32 %v17459_v6, %v11266_v56  ;;  %v17460_v46 = vld [vmem:[#allocation50_spill] sm:$0xff] }
 0x2c1   :  { %v11818_v1 = vsel %vm4811_vm6, %v17457_v2, %v17456_v23  ;;  %v833_v51 = vadd.f32 %v17460_v46, %v16711_v7  ;;  %v988_v39 = vmul.f32 %v7894_v34, %v11482_v13  ;;  %v17461_v2 = vld [vmem:[#allocation112_spill] sm:$0xff]  ;;  %v11834_v5 = vmul.f32 %v11433_v63, %v5301_v22  ;;  %v17464_v56 = vld [vmem:[#allocation82_spill] sm:$0xff] }
 0x2c2   :  { %v897_v23 = vmax.f32 %v609_v18, 0.0  ;;  %v3125_v3 = vadd.f32 %v17461_v2, %v11359_v30  ;;  %v11838_v52 = vadd.f32 %v17463_v54, %v16711_v7  ;;  %v3571_v6 = vadd.f32 %v17464_v56, %v3069_v35 }
 0x2c3   :  { %17462 = vst [vmem:[#allocation54_spill] sm:$0xff] %v11834_v5  ;;  %v11841_v49 = vmax.f32 %v833_v51, 0.0  ;;  %v17533_v5 = vld [vmem:[#allocation10_spill] sm:$0xff] }
 0x2c4   :  { %v989_v46 = vmul.f32 %v7894_v34, %v897_v23  ;;  %v1159_v12 = vmul.f32 %v7906_v41, %v897_v23  ;;  %v1661_v13 = vmul.f32 %v7911_v42, %v897_v23  ;;  %v2160_v18 = vmul.f32 %v7916_v44, %v897_v23 }
 0x2c5   :  { %v2660_v30 = vmul.f32 %v7921_v45, %v897_v23  ;;  %v3158_v63 = vmul.f32 %v7926_v48, %v897_v23  ;;  %v3658_v22 = vmul.f32 %v7929_v58, %v897_v23  ;;  %v4159_v54 = vmul.f32 %v7933_v29, %v897_v23 }
 0x2c6   :  { %v1346_v2 = vrot.slane %v1159_v12, 1  ;;  %v1847_v35 = vrot.slane %v1661_v13, 2  ;;  %v2344_v51 = vrot.slane %v2160_v18, 2  ;;  %v4661_v56 = vmul.f32 %v7947_v0, %v897_v23 }
 0x2c7   :  { %v2842_v26 = vrot.slane %v2660_v30, 3  ;;  %v3342_v25 = vrot.slane %v3158_v63, 4  ;;  %v3839_v41 = vrot.slane %v3658_v22, 4  ;;  %v4341_v16 = vrot.slane %v4159_v54, 5  ;;  %v17471_v22 = vld [vmem:[#allocation117_spill] sm:$0xff] }
 0x2c8   :  { %v17465_v42 = vrot.slane %v11518_v31, 1  ;;  %v17466_v45 = vrot.slane %v11459_v36, 1  ;;  %v1848_v12 = vsel %vm487_vm0, %v17467_v43, %v1847_v35  ;;  %v17468_v13 = vrot.slane %v11462_v38, 2 }
 0x2c9   :  { %v17469_v63 = vrot.slane %v11527_v59, 2  ;;  %v17472_v43 = vrot.slane %v11532_v28, 3  ;;  %v17473_v54 = vrot.slane %v11468_v40, 3 }
 0x2ca   :  { %v1347_v4 = vsel %vm1304_vm3, %v17465_v42, %v1346_v2  ;;  %v1349_v48 = vsel %vm1304_vm3, %v1346_v2, %v17466_v45  ;;  %v1850_v23 = vsel %vm487_vm0, %v1847_v35, %v17468_v13  ;;  %v17470_v42 = vrot.slane %v11465_v27, 2 }
 0x2cb   :  { %v1573_v18 = vadd.f32 %v1347_v4, %v988_v39  ;;  %v1574_v30 = vadd.f32 %v1349_v48, %v989_v46  ;;  %v2345_v31 = vsel %vm487_vm0, %v17469_v63, %v2344_v51  ;;  %v2843_v38 = vsel %vm2806_vm2, %v17472_v43, %v2842_v26  ;;  %v11919_v43 = vpop.f32.mrb[31].mxu0 }
 0x2cc   :  { %v2347_v36 = vsel %vm487_vm0, %v2344_v51, %v17470_v42  ;;  %v2573_v45 = vadd.f32 %v2345_v31, %v17471_v22  ;;  %v2845_v48 = vsel %vm2806_vm2, %v2842_v26, %v17473_v54  ;;  %v17474_v39 = vrot.slane %v11536_v53, 4  ;;  %17485 = vst [vmem:[#allocation140_spill] sm:$0xff] %v11919_v43 }
 0x2cd   :  { %v2574_v60 = vadd.f32 %v2347_v36, %v11590_v57  ;;  %v2074_v4 = vadd.f32 %v1848_v12, %v1573_v18  ;;  %v11878_v59 = vadd.f32 %v1850_v23, %v1574_v30  ;;  %v17475_v46 = vrot.slane %v11478_v62, 4  ;;  %v11886_v57 = vpop.permute.xlu1 %5533  ;;  %v17478_v23 = vld [vmem:[#allocation7_spill] sm:$0xff]  ;;  %v17481_v36 = vld [vmem:[#allocation118_spill] sm:$0xff] }
 0x2ce   :  { %v3343_v27 = vsel %vm3306_vm4, %v17474_v39, %v3342_v25  ;;  %v3071_v28 = vadd.f32 %v2843_v38, %v2573_v45  ;;  %v17476_v51 = vrot.slane %v11540_v11, 4  ;;  %v17477_v26 = vrot.slane %v11504_v33, 4 }
 0x2cf   :  { %v3345_v2 = vsel %vm3306_vm4, %v3342_v25, %v17475_v46  ;;  %v3072_v35 = vadd.f32 %v2845_v48, %v2574_v60  ;;  %v11895_v53 = vadd.f32 %v11735_v17, %v2074_v4  ;;  %v17479_v25 = vrot.slane %v17478_v23, 5 }
 0x2d0   :  { %v3840_v40 = vsel %vm3306_vm4, %v17476_v51, %v3839_v41  ;;  %v3842_v12 = vsel %vm3306_vm4, %v3839_v41, %v17477_v26  ;;  %v3573_v30 = vadd.f32 %v3343_v27, %v3071_v28  ;;  %v17480_v11 = vrot.slane %v11507_v37, 5  ;;  %v17486_v27 = vld [vmem:[#allocation85_spill] sm:$0xff] }
 0x2d1   :  { %v4072_v13 = vadd.f32 %v3840_v40, %v3571_v6  ;;  %v4073_v62 = vadd.f32 %v3842_v12, %v11620_v50  ;;  %v4342_v18 = vsel %vm4309_vm5, %v17479_v25, %v4341_v16  ;;  %v11901_v63 = vadd.f32 %v3345_v2, %v3072_v35  ;;  %v17488_v40 = vld [vmem:[#allocation70_spill] sm:$0xff] }
 0x2d2   :  { %v4344_v31 = vsel %vm4309_vm5, %v4341_v16, %v17480_v11  ;;  %v4843_v33 = vrot.slane %v4661_v56, 6  ;;  %v16126_v41 = vrot.slane %v11886_v57, 3  ;;  %v11909_v6 = vmul.f32 %v7916_v44, %v11841_v49  ;;  %v17484_v16 = vld [vmem:[#allocation157_spill] sm:$0xff]  ;;  %v11948_v11 = vpop.permute.xlu0 %5693 }
 0x2d3   :  { %v4574_v42 = vadd.f32 %v4342_v18, %v4072_v13  ;;  %v4575_v17 = vadd.f32 %v4344_v31, %v4073_v62  ;;  %v4074_v50 = vadd.f32 %v11803_v21, %v3573_v30  ;;  %v17482_v22 = vrot.slane %v17481_v36, 6  ;;  %v17494_v36 = vld [vmem:[#allocation46_spill] sm:$0xff] }
 0x2d4   :  { %v17483_v60 = vrot.slane %v11510_v47, 6  ;;  %v3627_v56 = vadd.f32 %v17484_v16, %v3125_v3  ;;  %v16123_v48 = vrot.slane %v11909_v6, 2  ;;  %v3714_v4 = vmul.f32 %v7929_v58, %v11841_v49 }
 0x2d5   :  { %v4844_v45 = vsel %vm4811_vm6, %v17482_v22, %v4843_v33  ;;  %v4576_v21 = vadd.f32 %v11811_v8, %v4074_v50  ;;  %v4215_v39 = vmul.f32 %v7933_v29, %v11841_v49  ;;  %v4717_v47 = vmul.f32 %v7947_v0, %v11841_v49 }
 0x2d6   :  { %v4846_v37 = vsel %vm4811_vm6, %v4843_v33, %v17483_v60  ;;  %v5076_v38 = vadd.f32 %v4844_v45, %v4574_v42  ;;  %v630_v3 = vadd.f32 %v17486_v27, %v16711_v7  ;;  %v17487_v28 = vrot.slane %v11610_v10, 2  ;;  %v17492_v42 = vld [vmem:[#allocation42_spill] sm:$0xff] }
 0x2d7   :  { %v5077_v54 = vadd.f32 %v4846_v37, %v4575_v17  ;;  %v3951_v8 = vrot.slane %v3714_v4, 4  ;;  %v5078_v51 = vadd.f32 %v11818_v1, %v4576_v21  ;;  %v4453_v12 = vrot.slane %v4215_v39, 5 }
 0x2d8   :  { %v5163_v46 = vadd.f32 %v16658_v61, %v5076_v38  ;;  %v2457_v35 = vsel %vm487_vm0, %v17487_v28, %v16123_v48  ;;  %v4955_v13 = vrot.slane %v4717_v47, 6  ;;  %v17490_v25 = vrot.slane %v11629_v55, 4  ;;  %v17495_v55 = vld [vmem:[#allocation48_spill] sm:$0xff] }
 0x2d9   :  { %v5164_v2 = vadd.f32 %v16658_v61, %v5077_v54  ;;  %v11940_v26 = vadd.f32 %v2457_v35, %v17488_v40  ;;  %v17491_v30 = vrot.slane %v11514_v9, 4  ;;  %v5165_v31 = vadd.f32 %v16658_v61, %v5078_v51  ;;  %v17545_v9 = vld [vmem:[#allocation143_spill] sm:$0xff] }
 0x2da   :  { %v5246_v62 = vmax.f32 %v5163_v46, 0.0  ;;  %v3952_v18 = vsel %vm3306_vm4, %v17490_v25, %v3951_v8  ;;  %v17493_v17 = vrot.slane %v17492_v42, 5  ;;  %v17496_v60 = vrot.slane %v11753_v32, 5  ;;  %v11991_v25 = vpop.permute.xlu1 %5537  ;;  %v17513_v42 = vld [vmem:[#allocation34_spill] sm:$0xff] }
 0x2db   :  { %17489 = vst [vmem:[#allocation133_spill] sm:$0xff] %v11940_v26  ;;  %v5247_v23 = vmax.f32 %v5164_v2, 0.0  ;;  %v3954_v10 = vsel %vm3306_vm4, %v3951_v8, %v17491_v30  ;;  %v4128_v1 = vadd.f32 %v3952_v18, %v3627_v56  ;;  %v17497_v16 = vrot.slane %v11649_v19, 6  ;;  %v17502_v19 = vld [vmem:[#allocation80_spill] sm:$0xff]  ;;  %v17504_v8 = vld [vmem:[#allocation51_spill] sm:$0xff] }
 0x2dc   :  { %v4129_v33 = vadd.f32 %v3954_v10, %v11705_v20  ;;  %v4454_v50 = vsel %vm4309_vm5, %v17493_v17, %v4453_v12  ;;  %v5985_v22 = vmul.f32 %v17494_v36, %v5246_v62  ;;  %v4456_v37 = vsel %vm4309_vm5, %v4453_v12, %v17496_v60  ;;  %v17506_v62 = vld [vmem:[#allocation124_spill] sm:$0xff]  ;;  %v17516_v36 = vld [vmem:[#allocation135_spill] sm:$0xff]  ;;  %v17518_v60 = vld [vmem:[#allocation125_spill] sm:$0xff] }
 0x2dd   :  { %v5986_v45 = vmul.f32 %v17495_v55, %v5247_v23  ;;  %v4956_v38 = vsel %vm4811_vm6, %v17497_v16, %v4955_v13  ;;  %v5248_v54 = vmax.f32 %v5165_v31, 0.0  ;;  %v4630_v56 = vadd.f32 %v4454_v50, %v4128_v1  ;;  %v12003_v1 = vpop.permute.xlu0 %5697  ;;  %v17517_v55 = vld [vmem:[#allocation27_spill] sm:$0xff]  ;;  %v17548_v26 = vld [vmem:[#allocation148_spill] sm:$0xff] }
 0x2de   :  { %v11963_v4 = vadd.f32 %v4456_v37, %v4129_v33  ;;  %v17499_v20 = vrot.slane %v11767_v15, 6  ;;  %v16125_v39 = vrot.slane %v11948_v11, 3  ;;  %v6166_v47 = vrot.slane %v5985_v22, 5  ;;  %17511 = vst [vmem:[#allocation58_spill] sm:$0xff] %v12003_v1  ;;  %v12005_v33 = vpop.f32.mrb[30].mxu1 }
 0x2df   :  { %v6168_v27 = vrot.slane %v5986_v45, 5  ;;  %v11971_v46 = vmax.f32 %v630_v3, 0.0  ;;  %v17501_v2 = vmax.f32 %v11489_v24, 0.0  ;;  %v991_v35 = vmul.f32 %v7894_v34, %v11605_v14  ;;  %v17508_v14 = vld [vmem:[#allocation141_spill] sm:$0xff]  ;;  %17512 = vst [vmem:[#allocation18_spill] sm:$0xff] %v12005_v33  ;;  %v12021_v16 = vpop.f32.mrb[31].mxu1 }
 0x2e0   :  { %17498 = vst [vmem:[#allocation52_spill] sm:$0xff] %v11963_v4  ;;  %v11968_v21 = vsel %vm4811_vm6, %v4955_v13, %v17499_v20  ;;  %v11981_v51 = vmul.f32 %v17504_v8, %v5248_v54  ;;  %v5132_v40 = vadd.f32 %v4956_v38, %v4630_v56  ;;  %v11985_v13 = vmax.f32 %v11838_v52, 0.0  ;;  %17519 = vst [vmem:[#allocation36_spill] sm:$0xff] %v12021_v16  ;;  %v17520_v54 = vld [vmem:[#allocation28_spill] sm:$0xff]  ;;  %v17530_v33 = vld [vmem:[#allocation123_spill] sm:$0xff] }
 0x2e1   :  { %17500 = vst [vmem:[#allocation130_spill] sm:$0xff] %v11968_v21  ;;  %v11976_v28 = vmul.f32 %v17502_v19, %v17501_v2  ;;  %v17507_v3 = vrot.slane %v17506_v62, 5  ;;  %v6169_v24 = vsel %vm4309_vm5, %v6166_v47, %v6168_v27  ;;  %v17509_v18 = vrot.slane %v17508_v14, 3  ;;  %v17524_v14 = vld [vmem:[#allocation121_spill] sm:$0xff] }
 0x2e2   :  { %17505 = vst [vmem:[#allocation81_spill] sm:$0xff] %v11985_v13  ;;  %v16124_v10 = vrot.slane %v11981_v51, 5  ;;  %v6414_v31 = vsel %vm6382_vm7, %v6169_v24, 0.0  ;;  %v17514_v17 = vrot.slane %v17513_v42, 3  ;;  %v12017_v45 = vmul.f32 %v17517_v55, %v11971_v46  ;;  %v17525_v42 = vld [vmem:[#allocation30_spill] sm:$0xff] }
 0x2e3   :  { %17503 = vst [vmem:[#allocation103_spill] sm:$0xff] %v11976_v28  ;;  %v6167_v23 = vsel %vm4309_vm5, %v17507_v3, %v6166_v47  ;;  %v11998_v30 = vsel %vm2806_vm2, %v17509_v18, %v16126_v41  ;;  %v622_v37 = vadd.f32 %v17518_v60, %v16711_v7  ;;  %v12028_v56 = vmul.f32 %v17520_v54, %v11971_v46  ;;  %v17521_v47 = vld [vmem:[#allocation29_spill] sm:$0xff]  ;;  %v17527_v28 = vld [vmem:[#allocation63_spill] sm:$0xff] }
 0x2e4   :  { %17510 = vst [vmem:[#allocation119_spill] sm:$0xff] %v11998_v30  ;;  %v6412_v52 = vsel %vm6382_vm7, %v6167_v23, 0.0  ;;  %v12012_v50 = vsel %vm2806_vm2, %v17514_v17, %v16125_v39  ;;  %v6171_v38 = vsel %vm4309_vm5, %v6168_v27, %v16124_v10  ;;  %v12032_v20 = vmul.f32 %v7916_v44, %v11971_v46 }
 0x2e5   :  { %17515 = vst [vmem:[#allocation145_spill] sm:$0xff] %v12012_v50  ;;  %v6413_v22 = vadd.f32 %v6412_v52, %v17516_v36  ;;  %v12036_v2 = vmul.f32 %v17521_v47, %v11971_v46  ;;  %v6416_v8 = vsel %vm6382_vm7, %v6171_v38, 0.0  ;;  %v12043_v27 = vmul.f32 %v17521_v47, %v11841_v49 }
 0x2e6   :  { %v12046_v23 = vadd.f32 %v16658_v61, %v5132_v40  ;;  %v12050_v24 = vmul.f32 %v7894_v34, %v11971_v46  ;;  %v12054_v18 = vadd.f32 %v17524_v14, %v16711_v7  ;;  %v12061_v17 = vmul.f32 %v17525_v42, %v11971_v46  ;;  %v17526_v14 = vld [vmem:[#allocation55_spill] sm:$0xff]  ;;  %v17542_v40 = vld [vmem:[#allocation132_spill] sm:$0xff] }
 0x2e7   :  { %v6415_v19 = vadd.f32 %v6414_v31, %v6413_v22  ;;  %17522 = vst [vmem:[#allocation151_spill] sm:$0xff] %v12043_v27  ;;  %v12063_v36 = vmax.f32 %v622_v37, 0.0  ;;  %v12070_v38 = vmul.f32 %v7929_v58, %v11971_v46  ;;  %v633_v12 = vadd.f32 %v17526_v14, %v16711_v7 }
 0x2e8   :  { %17523 = vst [vmem:[#allocation156_spill] sm:$0xff] %v12046_v23  ;;  %v17528_v14 = vrot.slane %v17527_v28, 1  ;;  %v17531_v43 = vrot.slane %v17530_v33, 2  ;;  %v17534_v4 = vrot.slane %v17533_v5, 2  ;;  %v17543_v5 = vrot.slane %v17542_v40, 4 }
 0x2e9   :  { %v12056_v52 = vadd.f32 %v6416_v8, %v6415_v19  ;;  %v12074_v19 = vmul.f32 %v7933_v29, %v11971_v46  ;;  %v12078_v8 = vmul.f32 %v17517_v55, %v12063_v36  ;;  %v12082_v37 = vmul.f32 %v17520_v54, %v12063_v36 }
 0x2ea   :  { %v12088_v48 = vmul.f32 %v7916_v44, %v12063_v36  ;;  %v12092_v10 = vmul.f32 %v17521_v47, %v12063_v36  ;;  %v12096_v39 = vmul.f32 %v17525_v42, %v12063_v36  ;;  %v12100_v3 = vmul.f32 %v7929_v58, %v12063_v36 }
 0x2eb   :  { %v16130_v41 = vrot.slane %v12078_v8, 1  ;;  %v12106_v62 = vmul.f32 %v7933_v29, %v12063_v36  ;;  %v12110_v60 = vmul.f32 %v7947_v0, %v12063_v36  ;;  %v17529_v16 = vrot.slane %v12082_v37, 2 }
 0x2ec   :  { %v17532_v31 = vrot.slane %v12088_v48, 2  ;;  %v17535_v28 = vrot.slane %v12092_v10, 3  ;;  %v17538_v33 = vrot.slane %v12096_v39, 4 }
 0x2ed   :  { %v1353_v30 = vsel %vm1304_vm3, %v17528_v14, %v16130_v41  ;;  %v1854_v50 = vsel %vm487_vm0, %v17531_v43, %v17529_v16  ;;  %v17536_v14 = vld [vmem:[#allocation84_spill] sm:$0xff]  ;;  %v17539_v43 = vld [vmem:[#allocation155_spill] sm:$0xff] }
 0x2ee   :  { %v1576_v21 = vadd.f32 %v1353_v30, %v991_v35  ;;  %v2351_v15 = vsel %vm487_vm0, %v17534_v4, %v17532_v31  ;;  %v17537_v41 = vrot.slane %v17536_v14, 3  ;;  %v17540_v16 = vrot.slane %v17539_v43, 4 }
 0x2ef   :  { %v2576_v35 = vadd.f32 %v2351_v15, %v11878_v59  ;;  %v17541_v30 = vrot.slane %v12100_v3, 4  ;;  %v17544_v31 = vrot.slane %v12106_v62, 5  ;;  %v17546_v14 = vrot.slane %v17545_v9, 5 }
 0x2f0   :  { %v2849_v32 = vsel %vm2806_vm2, %v17537_v41, %v17535_v28  ;;  %v3349_v22 = vsel %vm3306_vm4, %v17540_v16, %v17538_v33  ;;  %v17547_v28 = vrot.slane %v12110_v60, 6  ;;  %v17549_v43 = vrot.slane %v17548_v26, 6  ;;  %v17550_v26 = vld [vmem:[#allocation73_spill] sm:$0xff] }
 0x2f1   :  { %v3846_v4 = vsel %vm3306_vm4, %v17543_v5, %v17541_v30  ;;  %v4348_v41 = vsel %vm4309_vm5, %v17546_v14, %v17544_v31  ;;  %v12160_v59 = vadd.f32 %v1854_v50, %v1576_v21  ;;  %v903_v16 = vmax.f32 %v633_v12, 0.0 }
 0x2f2   :  { %v4850_v33 = vsel %vm4811_vm6, %v17549_v43, %v17547_v28  ;;  %v4075_v40 = vadd.f32 %v3846_v4, %v11901_v63  ;;  %v12167_v9 = vmul.f32 %v7947_v0, %v11971_v46  ;;  %v3074_v31 = vadd.f32 %v2849_v32, %v2576_v35 }
 0x2f3   :  { %v846_v28 = vadd.f32 %v17550_v26, %v16711_v7  ;;  %v12172_v43 = vmul.f32 %v17517_v55, %v903_v16  ;;  %v12175_v21 = vmul.f32 %v17520_v54, %v903_v16  ;;  %v12180_v12 = vmul.f32 %v7916_v44, %v903_v16 }
 0x2f4   :  { %v4577_v14 = vadd.f32 %v4348_v41, %v4075_v40  ;;  %v12177_v63 = vadd.f32 %v3349_v22, %v3074_v31  ;;  %v12183_v50 = vmul.f32 %v17521_v47, %v903_v16  ;;  %v12186_v32 = vmul.f32 %v17525_v42, %v903_v16 }
 0x2f5   :  { %17551 = vst [vmem:[#allocation44_spill] sm:$0xff] %v12172_v43  ;;  %17552 = vst [vmem:[#allocation137_spill] sm:$0xff] %v12175_v21  ;;  %v16134_v35 = vrot.slane %v12172_v43, 1  ;;  %v16135_v4 = vrot.slane %v12175_v21, 2  ;;  %v12191_v41 = vmul.f32 %v7929_v58, %v903_v16  ;;  %v16136_v22 = vrot.slane %v12180_v12, 2 }
 0x2f6   :  { %17553 = vst [vmem:[#allocation86_spill] sm:$0xff] %v12180_v12  ;;  %17554 = vst [vmem:[#allocation50_spill] sm:$0xff] %v12183_v50  ;;  %v5079_v46 = vadd.f32 %v4850_v33, %v4577_v14  ;;  %v12197_v26 = vmul.f32 %v7933_v29, %v903_v16  ;;  %v17558_v33 = vrot.slane %v12017_v45, 1  ;;  %v17559_v30 = vrot.slane %v12028_v56, 2 }
 0x2f7   :  { %17555 = vst [vmem:[#allocation112_spill] sm:$0xff] %v12186_v32  ;;  %17556 = vst [vmem:[#allocation111_spill] sm:$0xff] %v12191_v41  ;;  %v16138_v40 = vrot.slane %v12191_v41, 4  ;;  %v17561_v27 = vrot.slane %v12183_v50, 3  ;;  %v17576_v50 = vld [vmem:[#allocation53_spill] sm:$0xff] }
 0x2f8   :  { %17557 = vst [vmem:[#allocation82_spill] sm:$0xff] %v12197_v26  ;;  %v5166_v5 = vadd.f32 %v16658_v61, %v5079_v46  ;;  %v1359_v14 = vsel %vm1304_vm3, %v17558_v33, %v16134_v35  ;;  %v1860_v15 = vsel %vm487_vm0, %v17559_v30, %v16135_v4  ;;  %v17560_v46 = vrot.slane %v12032_v20, 2 }
 0x2f9   :  { %v1579_v31 = vadd.f32 %v1359_v14, %v12050_v24  ;;  %v17562_v33 = vrot.slane %v12036_v2, 3  ;;  %v17564_v30 = vrot.slane %v12186_v32, 4  ;;  %v17565_v4 = vrot.slane %v12061_v17, 4 }
 0x2fa   :  { %v12217_v43 = vsel %vm487_vm0, %v17560_v46, %v16136_v22  ;;  %v5249_v14 = vmax.f32 %v5166_v5, 0.0  ;;  %v17567_v46 = vrot.slane %v12070_v38, 4  ;;  %v17572_v5 = vrot.slane %v12003_v1, 3 }
 0x2fb   :  { %v12224_v35 = vsel %vm2806_vm2, %v17562_v33, %v17561_v27  ;;  %v12231_v24 = vsel %vm3306_vm4, %v17565_v4, %v17564_v30  ;;  %v12242_v27 = vmul.f32 %v7947_v0, %v903_v16  ;;  %v17569_v33 = vrot.slane %v11991_v25, 3 }
 0x2fc   :  { %17563 = vst [vmem:[#allocation117_spill] sm:$0xff] %v12224_v35  ;;  %17566 = vst [vmem:[#allocation7_spill] sm:$0xff] %v12231_v24  ;;  %v12238_v22 = vsel %vm3306_vm4, %v17567_v46, %v16138_v40  ;;  %v17570_v35 = vrot.slane %v11886_v57, 3  ;;  %v17573_v30 = vrot.slane %v11948_v11, 3  ;;  %v12259_v40 = vadd.f32 %v1860_v15, %v1579_v31  ;;  %v12272_v11 = vpop.permute.xlu1 %5541  ;;  %v17584_v31 = vld [vmem:[#allocation113_spill] sm:$0xff] }
 0x2fd   :  { %17568 = vst [vmem:[#allocation118_spill] sm:$0xff] %v12242_v27  ;;  %v12262_v41 = vmul.f32 %v17576_v50, %v5249_v14  ;;  %v17577_v32 = vrot.slane %v12197_v26, 5  ;;  %v17578_v57 = vrot.slane %v12074_v19, 5  ;;  %v12280_v50 = vmax.f32 %v12054_v18, 0.0 }
 0x2fe   :  { %v12249_v4 = vsel %vm2806_vm2, %v17570_v35, %v17569_v33  ;;  %v12256_v24 = vsel %vm2806_vm2, %v17573_v30, %v17572_v5  ;;  %17575 = vst [vmem:[#allocation70_spill] sm:$0xff] %v12259_v40  ;;  %v16144_v33 = vrot.slane %v12242_v27, 6  ;;  %v12274_v5 = vpop.permute.xlu0 %5701  ;;  %v17580_v30 = vld [vmem:[#allocation126_spill] sm:$0xff]  ;;  %v992_v14 = vmul.f32 %v7894_v34, %v12063_v36  ;;  %v17586_v36 = vld [vmem:[#allocation59_spill] sm:$0xff]  ;;  %v12303_v27 = vpop.f32.mrb[32].mxu0 }
 0x2ff   :  { %17571 = vst [vmem:[#allocation157_spill] sm:$0xff] %v12249_v4  ;;  %17574 = vst [vmem:[#allocation85_spill] sm:$0xff] %v12256_v24  ;;  %v12269_v35 = vsel %vm4309_vm5, %v17578_v57, %v17577_v32  ;;  %v625_v15 = vadd.f32 %v17580_v30, %v16711_v7  ;;  %v12284_v46 = vmax.f32 %v846_v28, 0.0  ;;  %v17583_v57 = vrot.slane %v12167_v9, 6 }
 0x300   :  { %17579 = vst [vmem:[#allocation42_spill] sm:$0xff] %v12274_v5  ;;  %17581 = vst [vmem:[#allocation46_spill] sm:$0xff] %v12280_v50  ;;  %v3073_v40 = vadd.f32 %v17584_v31, %v11895_v53  ;;  %v12297_v18 = vmul.f32 %v7894_v34, %v903_v16  ;;  %v857_v28 = vadd.f32 %v17586_v36, %v16711_v7  ;;  %v17588_v12 = vrot.slane %v12262_v41, 5 }
 0x301   :  { %17582 = vst [vmem:[#allocation48_spill] sm:$0xff] %v12284_v46  ;;  %v12292_v4 = vsel %vm4811_vm6, %v17583_v57, %v16144_v33  ;;  %v901_v30 = vmax.f32 %v625_v15, 0.0  ;;  %17587 = vst [vmem:[#allocation51_spill] sm:$0xff] %v12303_v27  ;;  %v17589_v57 = vrot.slane %v11981_v51, 5  ;;  %v12317_v27 = vpop.f32.mrb[33].mxu0  ;;  %v17592_v5 = vrot.slane %v12078_v8, 1 }
 0x302   :  { %17585 = vst [vmem:[#allocation80_spill] sm:$0xff] %v12297_v18  ;;  %17590 = vst [vmem:[#allocation124_spill] sm:$0xff] %v12317_v27  ;;  %v17591_v18 = vld [vmem:[#allocation131_spill] sm:$0xff] }
 0x303   :  { %v6173_v15 = vsel %vm4309_vm5, %v17589_v57, %v17588_v12  ;;  %v993_v53 = vmul.f32 %v7894_v34, %v901_v30  ;;  %v1163_v16 = vmul.f32 %v17517_v55, %v901_v30  ;;  %v1665_v31 = vmul.f32 %v17520_v54, %v901_v30 }
 0x304   :  { %v6418_v36 = vsel %vm6382_vm7, %v6173_v15, 0.0  ;;  %v2164_v33 = vmul.f32 %v7916_v44, %v901_v30  ;;  %v2664_v32 = vmul.f32 %v17521_v47, %v901_v30  ;;  %v3162_v26 = vmul.f32 %v17525_v42, %v901_v30 }
 0x305   :  { %v12320_v51 = vadd.f32 %v6418_v36, %v12056_v52  ;;  %v1354_v12 = vrot.slane %v1163_v16, 1  ;;  %v1855_v57 = vrot.slane %v1665_v31, 2  ;;  %v3575_v21 = vadd.f32 %v17591_v18, %v3073_v40  ;;  %v17598_v18 = vld [vmem:[#allocation122_spill] sm:$0xff] }
 0x306   :  { %v2352_v24 = vrot.slane %v2164_v33, 2  ;;  %v2850_v23 = vrot.slane %v2664_v32, 3  ;;  %v3350_v1 = vrot.slane %v3162_v26, 4  ;;  %v3662_v15 = vmul.f32 %v7929_v58, %v901_v30 }
 0x307   :  { %v1355_v50 = vsel %vm1304_vm3, %v17592_v5, %v1354_v12  ;;  %v17593_v42 = vrot.slane %v12017_v45, 1  ;;  %v17594_v52 = vrot.slane %v12082_v37, 2  ;;  %v17595_v31 = vrot.slane %v12028_v56, 2 }
 0x308   :  { %v1577_v33 = vadd.f32 %v1355_v50, %v992_v14  ;;  %v17596_v32 = vrot.slane %v12088_v48, 2  ;;  %v17597_v5 = vrot.slane %v12032_v20, 2  ;;  %v17599_v36 = vrot.slane %v12092_v10, 3 }
 0x309   :  { %v1357_v27 = vsel %vm1304_vm3, %v1354_v12, %v17593_v42  ;;  %v1856_v16 = vsel %vm487_vm0, %v17594_v52, %v1855_v57  ;;  %v1858_v40 = vsel %vm487_vm0, %v1855_v57, %v17595_v31  ;;  %v17600_v12 = vrot.slane %v12036_v2, 3 }
 0x30a   :  { %v1578_v26 = vadd.f32 %v1357_v27, %v993_v53  ;;  %v2353_v8 = vsel %vm487_vm0, %v17596_v32, %v2352_v24  ;;  %v2355_v45 = vsel %vm487_vm0, %v2352_v24, %v17597_v5  ;;  %v2851_v56 = vsel %vm2806_vm2, %v17599_v36, %v2850_v23 }
 0x30b   :  { %v2577_v42 = vadd.f32 %v2353_v8, %v17598_v18  ;;  %v2578_v37 = vadd.f32 %v2355_v45, %v12160_v59  ;;  %v2853_v27 = vsel %vm2806_vm2, %v2850_v23, %v17600_v12  ;;  %v2078_v50 = vadd.f32 %v1856_v16, %v1577_v33 }
 0x30c   :  { %v12350_v48 = vadd.f32 %v1858_v40, %v1578_v26  ;;  %v17601_v14 = vrot.slane %v12096_v39, 4  ;;  %v17602_v24 = vrot.slane %v12061_v17, 4  ;;  %v3847_v10 = vrot.slane %v3662_v15, 4  ;;  %v17603_v39 = vld [vmem:[#allocation76_spill] sm:$0xff]  ;;  %v12367_v40 = vpop.f32.mrb[34].mxu0 }
 0x30d   :  { %v3075_v59 = vadd.f32 %v2851_v56, %v2577_v42  ;;  %v3076_v57 = vadd.f32 %v2853_v27, %v2578_v37  ;;  %v4163_v52 = vmul.f32 %v7933_v29, %v901_v30  ;;  %v12359_v31 = vmax.f32 %v857_v28, 0.0  ;;  %17604 = vst [vmem:[#allocation141_spill] sm:$0xff] %v12367_v40  ;;  %v17611_v37 = vld [vmem:[#allocation38_spill] sm:$0xff] }
 0x30e   :  { %v3351_v20 = vsel %vm3306_vm4, %v17601_v14, %v3350_v1  ;;  %v3353_v53 = vsel %vm3306_vm4, %v3350_v1, %v17602_v24  ;;  %v12362_v2 = vadd.f32 %v12217_v43, %v2078_v50  ;;  %v4665_v23 = vmul.f32 %v7947_v0, %v901_v30 }
 0x30f   :  { %v849_v16 = vadd.f32 %v17603_v39, %v16711_v7  ;;  %v3577_v17 = vadd.f32 %v3351_v20, %v3075_v59  ;;  %v12369_v33 = vadd.f32 %v3353_v53, %v3076_v57  ;;  %v17605_v1 = vrot.slane %v12100_v3, 4 }
 0x310   :  { %v17606_v28 = vrot.slane %v12070_v38, 4  ;;  %v4349_v30 = vrot.slane %v4163_v52, 5  ;;  %v4851_v8 = vrot.slane %v4665_v23, 6  ;;  %v17607_v5 = vrot.slane %v12272_v11, 3 }
 0x311   :  { %v3848_v15 = vsel %vm3306_vm4, %v17605_v1, %v3847_v10  ;;  %v17608_v45 = vrot.slane %v11991_v25, 3  ;;  %v4078_v3 = vadd.f32 %v12238_v22, %v3577_v17  ;;  %v12386_v42 = vmax.f32 %v849_v16, 0.0 }
 0x312   :  { %v3850_v26 = vsel %vm3306_vm4, %v3847_v10, %v17606_v28  ;;  %v4076_v43 = vadd.f32 %v3848_v15, %v3575_v21  ;;  %v1044_v38 = vmul.f32 %v7894_v34, %v17611_v37  ;;  %v17612_v21 = vrot.slane %v12106_v62, 5 }
 0x313   :  { %v4077_v32 = vadd.f32 %v3850_v26, %v12177_v63  ;;  %v12383_v18 = vsel %vm2806_vm2, %v17608_v45, %v17607_v5  ;;  %17610 = vst [vmem:[#allocation135_spill] sm:$0xff] %v12386_v42  ;;  %v17613_v36 = vrot.slane %v12074_v19, 5  ;;  %v17614_v25 = vrot.slane %v12110_v60, 6  ;;  %v17616_v60 = vld [vmem:[#allocation128_spill] sm:$0xff]  ;;  %v17617_v26 = vld [vmem:[#allocation83_spill] sm:$0xff] }
 0x314   :  { %17609 = vst [vmem:[#allocation34_spill] sm:$0xff] %v12383_v18  ;;  %v4350_v63 = vsel %vm4309_vm5, %v17612_v21, %v4349_v30  ;;  %v17615_v27 = vrot.slane %v12167_v9, 6  ;;  %v4580_v20 = vadd.f32 %v12269_v35, %v4078_v3  ;;  %v1045_v62 = vmul.f32 %v7894_v34, %v11841_v49  ;;  %v17665_v18 = vld [vmem:[#allocation152_spill] sm:$0xff] }
 0x315   :  { %v4352_v56 = vsel %vm4309_vm5, %v4349_v30, %v17613_v36  ;;  %v4852_v12 = vsel %vm4811_vm6, %v17614_v25, %v4851_v8  ;;  %v4578_v50 = vadd.f32 %v4350_v63, %v4076_v43  ;;  %v1214_v19 = vmul.f32 %v17517_v55, %v17611_v37 }
 0x316   :  { %v4854_v22 = vsel %vm4811_vm6, %v4851_v8, %v17615_v27  ;;  %v4579_v14 = vadd.f32 %v4352_v56, %v4077_v32  ;;  %v1215_v24 = vmul.f32 %v17517_v55, %v11841_v49  ;;  %v12411_v53 = vmul.f32 %v17517_v55, %v17616_v60  ;;  %v17620_v56 = vld [vmem:[#allocation142_spill] sm:$0xff] }
 0x317   :  { %v1716_v9 = vmul.f32 %v17520_v54, %v17611_v37  ;;  %v5080_v59 = vadd.f32 %v4852_v12, %v4578_v50  ;;  %v5082_v35 = vadd.f32 %v12292_v4, %v4580_v20  ;;  %v1717_v10 = vmul.f32 %v17520_v54, %v11841_v49  ;;  %v17619_v37 = vld [vmem:[#allocation14_spill] sm:$0xff] }
 0x318   :  { %v5081_v57 = vadd.f32 %v4854_v22, %v4579_v14  ;;  %v1456_v52 = vrot.slane %v1214_v19, 1  ;;  %v1458_v23 = vrot.slane %v1215_v24, 1  ;;  %v16160_v39 = vrot.slane %v12411_v53, 1  ;;  %v17622_v22 = vld [vmem:[#allocation102_spill] sm:$0xff]  ;;  %v17623_v14 = vld [vmem:[#allocation136_spill] sm:$0xff] }
 0x319   :  { %v12421_v16 = vmul.f32 %v17520_v54, %v17616_v60  ;;  %v5167_v17 = vadd.f32 %v16658_v61, %v5080_v59  ;;  %v5169_v15 = vadd.f32 %v16658_v61, %v5082_v35  ;;  %v1957_v28 = vrot.slane %v1716_v9, 2  ;;  %v17624_v19 = vld [vmem:[#allocation110_spill] sm:$0xff] }
 0x31a   :  { %v5168_v1 = vadd.f32 %v16658_v61, %v5081_v57  ;;  %v17618_v4 = vrot.slane %v17617_v26, 1  ;;  %v1459_v32 = vsel %vm1304_vm3, %v1456_v52, %v1458_v23  ;;  %v1461_v30 = vsel %vm1304_vm3, %v1458_v23, %v16160_v39 }
 0x31b   :  { %v1959_v8 = vrot.slane %v1717_v10, 2  ;;  %v5250_v5 = vmax.f32 %v5167_v17, 0.0  ;;  %v5252_v3 = vmax.f32 %v5169_v15, 0.0  ;;  %v1629_v63 = vadd.f32 %v1459_v32, %v1044_v38 }
 0x31c   :  { %v1457_v43 = vsel %vm1304_vm3, %v17618_v4, %v1456_v52  ;;  %v5251_v45 = vmax.f32 %v5168_v1, 0.0  ;;  %v1630_v36 = vadd.f32 %v1461_v30, %v1045_v62  ;;  %v17621_v25 = vrot.slane %v17620_v56, 2 }
 0x31d   :  { %v1628_v21 = vadd.f32 %v1457_v43, %v17619_v37  ;;  %v1960_v27 = vsel %vm487_vm0, %v1957_v28, %v1959_v8  ;;  %v5989_v50 = vmul.f32 %v17622_v22, %v5250_v5  ;;  %v12441_v24 = vmul.f32 %v17624_v19, %v5252_v3 }
 0x31e   :  { %v1958_v12 = vsel %vm487_vm0, %v17621_v25, %v1957_v28  ;;  %v5990_v20 = vmul.f32 %v17623_v14, %v5251_v45  ;;  %v16159_v9 = vrot.slane %v12421_v16, 2  ;;  %v2130_v57 = vadd.f32 %v1960_v27, %v1629_v63  ;;  %v17627_v27 = vld [vmem:[#allocation151_spill] sm:$0xff]  ;;  %v17628_v14 = vld [vmem:[#allocation30_spill] sm:$0xff] }
 0x31f   :  { %v2129_v59 = vadd.f32 %v1958_v12, %v1628_v21  ;;  %v2217_v38 = vmul.f32 %v7916_v44, %v17616_v60  ;;  %v2218_v62 = vmul.f32 %v7916_v44, %v11985_v13  ;;  %v6174_v35 = vrot.slane %v5989_v50, 5 }
 0x320   :  { %v6176_v10 = vrot.slane %v5990_v20, 5  ;;  %v16154_v52 = vrot.slane %v12441_v24, 5  ;;  %v1962_v23 = vsel %vm487_vm0, %v1959_v8, %v16159_v9  ;;  %v12454_v1 = vmul.f32 %v7916_v44, %v12284_v46 }
 0x321   :  { %v2131_v17 = vadd.f32 %v1962_v23, %v1630_v36  ;;  %v2458_v15 = vrot.slane %v2217_v38, 2  ;;  %v2460_v28 = vrot.slane %v2218_v62, 2  ;;  %v17625_v26 = vrot.slane %v12262_v41, 5 }
 0x322   :  { %v6177_v43 = vsel %vm4309_vm5, %v6174_v35, %v6176_v10  ;;  %v6179_v32 = vsel %vm4309_vm5, %v6176_v10, %v16154_v52  ;;  %v2717_v30 = vmul.f32 %v17521_v47, %v17616_v60  ;;  %v17626_v3 = vrot.slane %v11909_v6, 2 }
 0x323   :  { %v6175_v4 = vsel %vm4309_vm5, %v17625_v26, %v6174_v35  ;;  %v6422_v5 = vsel %vm6382_vm7, %v6177_v43, 0.0  ;;  %v6424_v45 = vsel %vm6382_vm7, %v6179_v32, 0.0  ;;  %v2461_v21 = vsel %vm487_vm0, %v2458_v15, %v2460_v28 }
 0x324   :  { %v6420_v8 = vsel %vm6382_vm7, %v6175_v4, 0.0  ;;  %v2459_v41 = vsel %vm487_vm0, %v17626_v3, %v2458_v15  ;;  %v16155_v63 = vrot.slane %v12454_v1, 2  ;;  %v2631_v56 = vadd.f32 %v2461_v21, %v2130_v57  ;;  %v17631_v15 = vld [vmem:[#allocation133_spill] sm:$0xff]  ;;  %v17632_v21 = vld [vmem:[#allocation139_spill] sm:$0xff] }
 0x325   :  { %v6421_v37 = vadd.f32 %v6420_v8, %v12320_v51  ;;  %v2630_v36 = vadd.f32 %v2459_v41, %v2129_v59  ;;  %v2718_v25 = vmul.f32 %v17521_v47, %v11985_v13  ;;  %v12478_v12 = vmul.f32 %v17521_v47, %v12284_v46  ;;  %v17629_v59 = vld [vmem:[#allocation40_spill] sm:$0xff] }
 0x326   :  { %v2954_v22 = vrot.slane %v17627_v27, 3  ;;  %v2463_v51 = vsel %vm487_vm0, %v2460_v28, %v16155_v63  ;;  %v2956_v50 = vrot.slane %v2717_v30, 3  ;;  %v3214_v20 = vmul.f32 %v17628_v14, %v11841_v49 }
 0x327   :  { %v6423_v6 = vadd.f32 %v6422_v5, %v6421_v37  ;;  %v2632_v19 = vadd.f32 %v2463_v51, %v2131_v17  ;;  %v17630_v57 = vrot.slane %v17629_v59, 3  ;;  %v2958_v62 = vrot.slane %v2718_v25, 3 }
 0x328   :  { %v16153_v35 = vrot.slane %v12478_v12, 3  ;;  %v2957_v23 = vsel %vm2806_vm2, %v2954_v22, %v2956_v50  ;;  %v3215_v28 = vmul.f32 %v17628_v14, %v17616_v60  ;;  %v3216_v43 = vmul.f32 %v17628_v14, %v11985_v13 }
 0x329   :  { %v2955_v38 = vsel %vm2806_vm2, %v17630_v57, %v2954_v22  ;;  %v12490_v10 = vadd.f32 %v6424_v45, %v6423_v6  ;;  %v2959_v4 = vsel %vm2806_vm2, %v2956_v50, %v2958_v62  ;;  %v3128_v17 = vadd.f32 %v2957_v23, %v2630_v36  ;;  %v17634_v22 = vld [vmem:[#allocation46_spill] sm:$0xff]  ;;  %v12525_v23 = vpop.f32.mrb[35].mxu0 }
 0x32a   :  { %v3127_v26 = vadd.f32 %v2955_v38, %v17631_v15  ;;  %v2961_v49 = vsel %vm2806_vm2, %v2958_v62, %v16153_v35  ;;  %v3129_v32 = vadd.f32 %v2959_v4, %v2631_v56  ;;  %v12504_v8 = vmul.f32 %v17628_v14, %v12284_v46  ;;  %17635 = vst [vmem:[#allocation27_spill] sm:$0xff] %v12525_v23  ;;  %v17684_v23 = vld [vmem:[#allocation44_spill] sm:$0xff] }
 0x32b   :  { %v3130_v30 = vadd.f32 %v2961_v49, %v2632_v19  ;;  %v3454_v5 = vrot.slane %v3214_v20, 4  ;;  %v3456_v45 = vrot.slane %v3215_v28, 4  ;;  %v3458_v3 = vrot.slane %v3216_v43, 4  ;;  %v17636_v28 = vld [vmem:[#allocation153_spill] sm:$0xff] }
 0x32c   :  { %v3716_v41 = vmul.f32 %v7929_v58, %v11985_v13  ;;  %v3717_v37 = vmul.f32 %v7929_v58, %v12284_v46  ;;  %v17633_v36 = vrot.slane %v17632_v21, 4  ;;  %v16152_v56 = vrot.slane %v12504_v8, 4 }
 0x32d   :  { %v3718_v27 = vmul.f32 %v7929_v58, %v12386_v42  ;;  %v12518_v6 = vmul.f32 %v7929_v58, %v17634_v22  ;;  %v3457_v51 = vsel %vm3306_vm4, %v3454_v5, %v3456_v45  ;;  %v3459_v50 = vsel %vm3306_vm4, %v3456_v45, %v3458_v3 }
 0x32e   :  { %v3455_v25 = vsel %vm3306_vm4, %v17633_v36, %v3454_v5  ;;  %v3955_v19 = vrot.slane %v3716_v41, 4  ;;  %v3461_v59 = vsel %vm3306_vm4, %v3458_v3, %v16152_v56  ;;  %v3630_v57 = vadd.f32 %v3457_v51, %v3128_v17 }
 0x32f   :  { %v3629_v20 = vadd.f32 %v3455_v25, %v3127_v26  ;;  %v3631_v38 = vadd.f32 %v3459_v50, %v3129_v32  ;;  %v3957_v62 = vrot.slane %v3717_v37, 4  ;;  %v3632_v15 = vadd.f32 %v3461_v59, %v3130_v30  ;;  %v17638_v59 = vld [vmem:[#allocation129_spill] sm:$0xff] }
 0x330   :  { %v17637_v4 = vrot.slane %v17636_v28, 4  ;;  %v3959_v43 = vrot.slane %v3718_v27, 4  ;;  %v16158_v5 = vrot.slane %v12518_v6, 4  ;;  %v4217_v41 = vmul.f32 %v7933_v29, %v11985_v13 }
 0x331   :  { %v3958_v26 = vsel %vm3306_vm4, %v3955_v19, %v3957_v62  ;;  %v4218_v17 = vmul.f32 %v7933_v29, %v12284_v46  ;;  %v4219_v37 = vmul.f32 %v7933_v29, %v12386_v42  ;;  %v12544_v25 = vmul.f32 %v7933_v29, %v17634_v22 }
 0x332   :  { %v3956_v49 = vsel %vm3306_vm4, %v17637_v4, %v3955_v19  ;;  %v3960_v32 = vsel %vm3306_vm4, %v3957_v62, %v3959_v43  ;;  %v3962_v30 = vsel %vm3306_vm4, %v3959_v43, %v16158_v5  ;;  %v4131_v3 = vadd.f32 %v3958_v26, %v3630_v57 }
 0x333   :  { %v4130_v45 = vadd.f32 %v3956_v49, %v3629_v20  ;;  %v4132_v21 = vadd.f32 %v3960_v32, %v3631_v38  ;;  %v4133_v36 = vadd.f32 %v3962_v30, %v3632_v15  ;;  %v4457_v27 = vrot.slane %v4217_v41, 5 }
 0x334   :  { %v4459_v51 = vrot.slane %v4218_v17, 5  ;;  %v4461_v50 = vrot.slane %v4219_v37, 5  ;;  %v4719_v20 = vmul.f32 %v7947_v0, %v11985_v13  ;;  %v4720_v19 = vmul.f32 %v7947_v0, %v12284_v46  ;;  %v17690_v46 = vld [vmem:[#allocation80_spill] sm:$0xff] }
 0x335   :  { %v17639_v57 = vrot.slane %v17638_v59, 5  ;;  %v16156_v38 = vrot.slane %v12544_v25, 5  ;;  %v4721_v15 = vmul.f32 %v7947_v0, %v12386_v42  ;;  %v12558_v28 = vmul.f32 %v7947_v0, %v17634_v22  ;;  %v17640_v59 = vld [vmem:[#allocation146_spill] sm:$0xff] }
 0x336   :  { %v4460_v4 = vsel %vm4309_vm5, %v4457_v27, %v4459_v51  ;;  %v4462_v49 = vsel %vm4309_vm5, %v4459_v51, %v4461_v50  ;;  %v4959_v26 = vrot.slane %v4719_v20, 6  ;;  %v4961_v30 = vrot.slane %v4720_v19, 6  ;;  %v17644_v51 = vld [vmem:[#allocation58_spill] sm:$0xff] }
 0x337   :  { %v4458_v62 = vsel %vm4309_vm5, %v17639_v57, %v4457_v27  ;;  %v4464_v41 = vsel %vm4309_vm5, %v4461_v50, %v16156_v38  ;;  %v4633_v17 = vadd.f32 %v4460_v4, %v4131_v3  ;;  %v4634_v32 = vadd.f32 %v4462_v49, %v4132_v21  ;;  %v17642_v27 = vld [vmem:[#allocation42_spill] sm:$0xff]  ;;  %v17647_v21 = vld [vmem:[#allocation52_spill] sm:$0xff] }
 0x338   :  { %v4632_v43 = vadd.f32 %v4458_v62, %v4130_v45  ;;  %v4635_v37 = vadd.f32 %v4464_v41, %v4133_v36  ;;  %v17641_v57 = vrot.slane %v17640_v59, 6  ;;  %v4963_v35 = vrot.slane %v4721_v15, 6  ;;  %v12574_v62 = vpop.permute.xlu0 %5705  ;;  %v17648_v50 = vld [vmem:[#allocation130_spill] sm:$0xff] }
 0x339   :  { %v16157_v52 = vrot.slane %v12558_v28, 6  ;;  %v17643_v63 = vrot.slane %v17642_v27, 3  ;;  %v17645_v45 = vrot.slane %v17644_v51, 3  ;;  %17646 = vst [vmem:[#allocation125_spill] sm:$0xff] %v12574_v62  ;;  %v4962_v3 = vsel %vm4811_vm6, %v4959_v26, %v4961_v30 }
 0x33a   :  { %v4960_v56 = vsel %vm4811_vm6, %v17641_v57, %v4959_v26  ;;  %v5133_v36 = vadd.f32 %v17648_v50, %v17647_v21  ;;  %v12581_v4 = vmul.f32 %v7916_v44, %v12359_v31  ;;  %v4964_v15 = vsel %vm4811_vm6, %v4961_v30, %v4963_v35  ;;  %v17652_v21 = vld [vmem:[#allocation150_spill] sm:$0xff]  ;;  %v17654_v30 = vld [vmem:[#allocation105_spill] sm:$0xff] }
 0x33b   :  { %v5875_v20 = vsel %vm2806_vm2, %v17645_v45, %v17643_v63  ;;  %v5134_v19 = vadd.f32 %v4960_v56, %v4632_v43  ;;  %v4966_v49 = vsel %vm4811_vm6, %v4963_v35, %v16157_v52  ;;  %v5135_v41 = vadd.f32 %v4962_v3, %v4633_v17  ;;  %v17650_v43 = vld [vmem:[#allocation156_spill] sm:$0xff]  ;;  %v17663_v52 = vld [vmem:[#allocation85_spill] sm:$0xff] }
 0x33c   :  { %17649 = vst [vmem:[#allocation28_spill] sm:$0xff] %v12581_v4  ;;  %v5136_v63 = vadd.f32 %v4964_v15, %v4634_v32  ;;  %v5137_v59 = vadd.f32 %v4966_v49, %v4635_v37  ;;  %v5220_v57 = vadd.f32 %v16658_v61, %v5133_v36  ;;  %v16163_v56 = vrot.slane %v12574_v62, 3  ;;  %v12612_v49 = vpop.permute.xlu1 %5545  ;;  %v17687_v4 = vld [vmem:[#allocation137_spill] sm:$0xff]  ;;  %v17697_v62 = vld [vmem:[#allocation112_spill] sm:$0xff] }
 0x33d   :  { %v5221_v26 = vadd.f32 %v16658_v61, %v5134_v19  ;;  %v5222_v51 = vadd.f32 %v16658_v61, %v5135_v41  ;;  %v17651_v45 = vmax.f32 %v17650_v43, 0.0  ;;  %v646_v38 = vadd.f32 %v17654_v30, %v16711_v7  ;;  %17658 = vst [vmem:[#allocation123_spill] sm:$0xff] %v12612_v49 }
 0x33e   :  { %v5223_v35 = vadd.f32 %v16658_v61, %v5136_v63  ;;  %v5224_v17 = vadd.f32 %v16658_v61, %v5137_v59  ;;  %v5303_v32 = vmax.f32 %v5220_v57, 0.0  ;;  %v12602_v3 = vmul.f32 %v17521_v47, %v12359_v31  ;;  %v17659_v59 = vld [vmem:[#allocation120_spill] sm:$0xff] }
 0x33f   :  { %v12594_v50 = vmul.f32 %v17652_v21, %v17651_v45  ;;  %v5304_v37 = vmax.f32 %v5221_v26, 0.0  ;;  %v12606_v36 = vmul.f32 %v17628_v14, %v12359_v31  ;;  %v12610_v19 = vmul.f32 %v7929_v58, %v12359_v31  ;;  %v17660_v26 = vld [vmem:[#allocation145_spill] sm:$0xff]  ;;  %v12616_v45 = vpop.f32.mrb[36].mxu0 }
 0x340   :  { %17655 = vst [vmem:[#allocation121_spill] sm:$0xff] %v12602_v3  ;;  %v5305_v15 = vmax.f32 %v5222_v51, 0.0  ;;  %v5306_v41 = vmax.f32 %v5223_v35, 0.0  ;;  %v5307_v63 = vmax.f32 %v5224_v17, 0.0  ;;  %v6042_v57 = vmul.f32 %v17659_v59, %v5303_v32  ;;  %17661 = vst [vmem:[#allocation10_spill] sm:$0xff] %v12616_v45 }
 0x341   :  { %17653 = vst [vmem:[#allocation29_spill] sm:$0xff] %v12594_v50  ;;  %17656 = vst [vmem:[#allocation55_spill] sm:$0xff] %v12606_v36  ;;  %v6043_v43 = vmul.f32 %v17660_v26, %v5304_v37  ;;  %v17662_v21 = vrot.slane %v17642_v27, 3  ;;  %v16161_v51 = vrot.slane %v12594_v50, 5  ;;  %v906_v9 = vmax.f32 %v646_v38, 0.0 }
 0x342   :  { %17657 = vst [vmem:[#allocation63_spill] sm:$0xff] %v12610_v19  ;;  %v6044_v5 = vmul.f32 %v17663_v52, %v5305_v15  ;;  %v6045_v39 = vmul.f32 %v5875_v20, %v5306_v41  ;;  %v6280_v17 = vrot.slane %v6042_v57, 5  ;;  %v16164_v59 = vrot.slane %v12612_v49, 3 }
 0x343   :  { %v5877_v30 = vsel %vm2806_vm2, %v17662_v21, %v16163_v56  ;;  %v6282_v32 = vrot.slane %v6043_v43, 5  ;;  %v870_v27 = vadd.f32 %v17665_v18, %v16711_v7  ;;  %v17669_v18 = vld [vmem:[#allocation62_spill] sm:$0xff]  ;;  %v12651_v43 = vpop.f32.mrb[37].mxu0  ;;  %v12684_v56 = vmul.f32 %v7933_v29, %v906_v9 }
 0x344   :  { %v12625_v35 = vmul.f32 %v5877_v30, %v5307_v63  ;;  %v6284_v26 = vrot.slane %v6044_v5, 5  ;;  %v12634_v52 = vsel %vm4309_vm5, %v16161_v51, %v6280_v17  ;;  %v6286_v20 = vrot.slane %v6045_v39, 5  ;;  %17670 = vst [vmem:[#allocation148_spill] sm:$0xff] %v12651_v43  ;;  %v12732_v45 = vpop.f32.mrb[38].mxu0 }
 0x345   :  { %17666 = vst [vmem:[#allocation155_spill] sm:$0xff] %v12634_v52  ;;  %v12637_v38 = vsel %vm4309_vm5, %v6280_v17, %v6282_v32  ;;  %v12644_v63 = vmul.f32 %v17517_v55, %v906_v9  ;;  %v12647_v5 = vmul.f32 %v17520_v54, %v906_v9  ;;  %v638_v57 = vadd.f32 %v17669_v18, %v16711_v7 }
 0x346   :  { %17664 = vst [vmem:[#allocation84_spill] sm:$0xff] %v12625_v35  ;;  %17667 = vst [vmem:[#allocation132_spill] sm:$0xff] %v12637_v38  ;;  %v16162_v15 = vrot.slane %v12625_v35, 5  ;;  %v12641_v41 = vsel %vm4309_vm5, %v6282_v32, %v6284_v26  ;;  %v12654_v21 = vsel %vm4309_vm5, %v6284_v26, %v6286_v20  ;;  %v12662_v30 = vmul.f32 %v7916_v44, %v906_v9  ;;  %v17692_v35 = vld [vmem:[#allocation86_spill] sm:$0xff] }
 0x347   :  { %17668 = vst [vmem:[#allocation143_spill] sm:$0xff] %v12641_v41  ;;  %17671 = vst [vmem:[#allocation73_spill] sm:$0xff] %v12654_v21  ;;  %v12665_v17 = vmul.f32 %v17521_v47, %v906_v9  ;;  %v12670_v51 = vmul.f32 %v17628_v14, %v906_v9  ;;  %v12673_v26 = vmul.f32 %v7929_v58, %v906_v9  ;;  %v962_v21 = vmax.f32 %v870_v27, 0.0 }
 0x348   :  { %v12659_v39 = vsel %vm4309_vm5, %v6286_v20, %v16162_v15  ;;  %v17673_v20 = vrot.slane %v12272_v11, 3  ;;  %v12687_v18 = vmul.f32 %v7947_v0, %v906_v9  ;;  %v12690_v32 = vmul.f32 %v7894_v34, %v906_v9  ;;  %17683 = vst [vmem:[#allocation83_spill] sm:$0xff] %v12732_v45 }
 0x349   :  { %17672 = vst [vmem:[#allocation53_spill] sm:$0xff] %v12659_v39  ;;  %v904_v37 = vmax.f32 %v638_v57, 0.0  ;;  %v17677_v39 = vld [vmem:[#allocation134_spill] sm:$0xff]  ;;  %v12717_v38 = vmul.f32 %v7929_v58, %v962_v21  ;;  %v17685_v36 = vrot.slane %v17684_v23, 1  ;;  %v17688_v57 = vrot.slane %v17687_v4, 2 }
 0x34a   :  { %v12681_v15 = vsel %vm2806_vm2, %v17673_v20, %v16164_v59  ;;  %v12706_v27 = vadd.f32 %v17677_v39, %v16711_v7 }
 0x34b   :  { %17674 = vst [vmem:[#allocation126_spill] sm:$0xff] %v12681_v15  ;;  %v12699_v52 = vmul.f32 %v17517_v55, %v904_v37  ;;  %v12702_v9 = vmul.f32 %v17520_v54, %v904_v37  ;;  %v12711_v20 = vmul.f32 %v7916_v44, %v904_v37  ;;  %v12714_v59 = vmul.f32 %v17521_v47, %v904_v37 }
 0x34c   :  { %17679 = vst [vmem:[#allocation122_spill] sm:$0xff] %v12717_v38  ;;  %v12722_v39 = vmul.f32 %v17628_v14, %v904_v37  ;;  %v12727_v15 = vmul.f32 %v7929_v58, %v904_v37  ;;  %v12730_v43 = vmul.f32 %v7933_v29, %v904_v37  ;;  %v12746_v22 = vmul.f32 %v7947_v0, %v904_v37 }
 0x34d   :  { %17675 = vst [vmem:[#allocation113_spill] sm:$0xff] %v12699_v52  ;;  %17676 = vst [vmem:[#allocation59_spill] sm:$0xff] %v12702_v9  ;;  %v16178_v41 = vrot.slane %v12699_v52, 1  ;;  %v17686_v3 = vrot.slane %v12702_v9, 2  ;;  %v17691_v45 = vrot.slane %v12711_v20, 2  ;;  %v17693_v52 = vrot.slane %v17692_v35, 2 }
 0x34e   :  { %17678 = vst [vmem:[#allocation131_spill] sm:$0xff] %v12714_v59  ;;  %17680 = vst [vmem:[#allocation76_spill] sm:$0xff] %v12722_v39  ;;  %v16182_v40 = vrot.slane %v12722_v39, 4  ;;  %v16186_v35 = vrot.slane %v12730_v43, 5 }
 0x34f   :  { %17681 = vst [vmem:[#allocation38_spill] sm:$0xff] %v12727_v15  ;;  %17682 = vst [vmem:[#allocation128_spill] sm:$0xff] %v12730_v43  ;;  %v1361_v50 = vsel %vm1304_vm3, %v17685_v36, %v16178_v41  ;;  %v1862_v11 = vsel %vm487_vm0, %v17688_v57, %v17686_v3  ;;  %v2359_v23 = vsel %vm487_vm0, %v17693_v52, %v17691_v45  ;;  %v17694_v36 = vrot.slane %v12714_v59, 3  ;;  %v17695_v41 = vld [vmem:[#allocation50_spill] sm:$0xff] }
 0x350   :  { %17689 = vst [vmem:[#allocation14_spill] sm:$0xff] %v12746_v22  ;;  %v1580_v49 = vadd.f32 %v1361_v50, %v17690_v46  ;;  %v17696_v9 = vrot.slane %v17695_v41, 3  ;;  %v16185_v3 = vrot.slane %v12727_v15, 4  ;;  %v2580_v57 = vadd.f32 %v2359_v23, %v12350_v48  ;;  %v17702_v23 = vld [vmem:[#allocation5_spill] sm:$0xff] }
 0x351   :  { %v17698_v46 = vrot.slane %v17697_v62, 4  ;;  %v12769_v52 = vmul.f32 %v7933_v29, %v962_v21  ;;  %v649_v62 = vadd.f32 %v17702_v23, %v16711_v7 }
 0x352   :  { %v2857_v4 = vsel %vm2806_vm2, %v17696_v9, %v17694_v36  ;;  %v12771_v41 = vadd.f32 %v1862_v11, %v1580_v49  ;;  %v17700_v9 = vld [vmem:[#allocation111_spill] sm:$0xff]  ;;  %v17705_v49 = vrot.slane %v12746_v22, 6  ;;  %v17706_v11 = vld [vmem:[#allocation118_spill] sm:$0xff]  ;;  %v17720_v22 = vrot.slane %v12647_v5, 2 }
 0x353   :  { %v3357_v50 = vsel %vm3306_vm4, %v17698_v46, %v16182_v40  ;;  %17699 = vst [vmem:[#allocation142_spill] sm:$0xff] %v12769_v52  ;;  %v17701_v36 = vrot.slane %v17700_v9, 4  ;;  %v3078_v39 = vadd.f32 %v2857_v4, %v2580_v57  ;;  %v17703_v40 = vld [vmem:[#allocation82_spill] sm:$0xff]  ;;  %v17707_v15 = vrot.slane %v17706_v11, 6  ;;  %v17760_v52 = vld [vmem:[#allocation125_spill] sm:$0xff] }
 0x354   :  { %v17704_v45 = vrot.slane %v17703_v40, 5  ;;  %v12796_v4 = vmul.f32 %v7894_v34, %v904_v37 }
 0x355   :  { %v3854_v48 = vsel %vm3306_vm4, %v17701_v36, %v16185_v3  ;;  %v4858_v9 = vsel %vm4811_vm6, %v17707_v15, %v17705_v49  ;;  %v12793_v3 = vmul.f32 %v7947_v0, %v962_v21  ;;  %v12800_v57 = vadd.f32 %v3357_v50, %v3078_v39 }
 0x356   :  { %v4079_v46 = vadd.f32 %v3854_v48, %v12369_v33  ;;  %v4356_v59 = vsel %vm4309_vm5, %v17704_v45, %v16186_v35  ;;  %v12798_v33 = vmax.f32 %v649_v62, 0.0  ;;  %v12804_v45 = vmul.f32 %v17517_v55, %v11985_v13 }
 0x357   :  { %17708 = vst [vmem:[#allocation102_spill] sm:$0xff] %v12793_v3  ;;  %17709 = vst [vmem:[#allocation136_spill] sm:$0xff] %v12800_v57  ;;  %v12808_v15 = vmul.f32 %v17520_v54, %v11985_v13  ;;  %v17722_v35 = vrot.slane %v12662_v30, 2  ;;  %v17758_v3 = vld [vmem:[#allocation7_spill] sm:$0xff] }
 0x358   :  { %v4581_v40 = vadd.f32 %v4356_v59, %v4079_v46  ;;  %v12812_v21 = vmul.f32 %v17517_v55, %v12798_v33  ;;  %v12816_v37 = vmul.f32 %v17520_v54, %v12798_v33  ;;  %v12820_v39 = vmul.f32 %v7916_v44, %v12798_v33  ;;  %v12838_v46 = vpop.f32.mrb[39].mxu0 }
 0x359   :  { %v12824_v59 = vmul.f32 %v7916_v44, %v12386_v42  ;;  %v12828_v48 = vmul.f32 %v17521_v47, %v12798_v33  ;;  %v12832_v23 = vmul.f32 %v17628_v14, %v12798_v33  ;;  %v12836_v62 = vmul.f32 %v7929_v58, %v12798_v33  ;;  %17716 = vst [vmem:[#allocation153_spill] sm:$0xff] %v12838_v46 }
 0x35a   :  { %17710 = vst [vmem:[#allocation110_spill] sm:$0xff] %v12812_v21  ;;  %17711 = vst [vmem:[#allocation151_spill] sm:$0xff] %v12816_v37  ;;  %v5083_v50 = vadd.f32 %v4858_v9, %v4581_v40  ;;  %v16193_v49 = vrot.slane %v12812_v21, 1  ;;  %v12845_v40 = vmul.f32 %v7933_v29, %v12798_v33  ;;  %v17718_v46 = vrot.slane %v12644_v63, 1 }
 0x35b   :  { %17712 = vst [vmem:[#allocation30_spill] sm:$0xff] %v12820_v39  ;;  %17713 = vst [vmem:[#allocation40_spill] sm:$0xff] %v12828_v48  ;;  %v17719_v9 = vrot.slane %v12816_v37, 2 }
 0x35c   :  { %17714 = vst [vmem:[#allocation133_spill] sm:$0xff] %v12832_v23  ;;  %17715 = vst [vmem:[#allocation139_spill] sm:$0xff] %v12836_v62  ;;  %v5170_v36 = vadd.f32 %v16658_v61, %v5083_v50  ;;  %v1367_v11 = vsel %vm1304_vm3, %v17718_v46, %v16193_v49  ;;  %v17721_v50 = vrot.slane %v12820_v39, 2  ;;  %v16196_v38 = vrot.slane %v12845_v40, 5 }
 0x35d   :  { %17717 = vst [vmem:[#allocation129_spill] sm:$0xff] %v12845_v40  ;;  %v1868_v43 = vsel %vm487_vm0, %v17720_v22, %v17719_v9  ;;  %v1583_v57 = vadd.f32 %v1367_v11, %v12690_v32  ;;  %v17723_v46 = vrot.slane %v12828_v48, 3  ;;  %v17724_v49 = vrot.slane %v12665_v17, 3 }
 0x35e   :  { %v12866_v13 = vsel %vm487_vm0, %v17722_v35, %v17721_v50  ;;  %v5253_v21 = vmax.f32 %v5170_v36, 0.0  ;;  %v17726_v22 = vrot.slane %v12832_v23, 4  ;;  %v17727_v9 = vrot.slane %v12670_v51, 4 }
 0x35f   :  { %v12875_v37 = vsel %vm2806_vm2, %v17724_v49, %v17723_v46  ;;  %v17729_v35 = vrot.slane %v12836_v62, 4  ;;  %v17730_v36 = vrot.slane %v12673_v26, 4  ;;  %v17731_v11 = vrot.slane %v12684_v56, 5 }
 0x360   :  { %17725 = vst [vmem:[#allocation146_spill] sm:$0xff] %v12875_v37  ;;  %v12882_v39 = vsel %vm3306_vm4, %v17727_v9, %v17726_v22  ;;  %v12900_v50 = vmul.f32 %v7947_v0, %v12798_v33  ;;  %v1046_v46 = vmul.f32 %v7894_v34, %v17616_v60  ;;  %v17733_v22 = vld [vmem:[#allocation74_spill] sm:$0xff]  ;;  %v12919_v60 = vmul.f32 %v17628_v14, %v12386_v42 }
 0x361   :  { %17728 = vst [vmem:[#allocation42_spill] sm:$0xff] %v12882_v39  ;;  %v12889_v32 = vsel %vm3306_vm4, %v17730_v36, %v17729_v35  ;;  %v12896_v49 = vsel %vm4309_vm5, %v17731_v11, %v16196_v38  ;;  %v12905_v9 = vmul.f32 %v17733_v22, %v5253_v21  ;;  %v12907_v39 = vadd.f32 %v1868_v43, %v1583_v57  ;;  %v12922_v43 = vpop.permute.xlu0 %5709 }
 0x362   :  { %17732 = vst [vmem:[#allocation58_spill] sm:$0xff] %v12900_v50  ;;  %v16201_v35 = vrot.slane %v12804_v45, 1  ;;  %v16202_v36 = vrot.slane %v12808_v15, 2  ;;  %v12915_v38 = vmul.f32 %v17521_v47, %v12386_v42  ;;  %17736 = vst [vmem:[#allocation156_spill] sm:$0xff] %v12919_v60  ;;  %v17738_v57 = vrot.slane %v12411_v53, 1 }
 0x363   :  { %17734 = vst [vmem:[#allocation52_spill] sm:$0xff] %v12907_v39  ;;  %17737 = vst [vmem:[#allocation150_spill] sm:$0xff] %v12922_v43  ;;  %v17739_v11 = vrot.slane %v12421_v16, 2  ;;  %v17740_v39 = vrot.slane %v12610_v19, 4  ;;  %v17741_v42 = vrot.slane %v12518_v6, 4  ;;  %v17742_v40 = vrot.slane %v12900_v50, 6 }
 0x364   :  { %17735 = vst [vmem:[#allocation130_spill] sm:$0xff] %v12915_v38  ;;  %v1463_v22 = vsel %vm1304_vm3, %v17738_v57, %v16201_v35  ;;  %v17743_v62 = vrot.slane %v12687_v18, 6  ;;  %v17744_v35 = vrot.slane %v12824_v59, 2  ;;  %v17745_v16 = vrot.slane %v12454_v1, 2 }
 0x365   :  { %v1964_v37 = vsel %vm487_vm0, %v17739_v11, %v16202_v36  ;;  %v3964_v21 = vsel %vm3306_vm4, %v17741_v42, %v17740_v39  ;;  %v1631_v57 = vadd.f32 %v1463_v22, %v1046_v46  ;;  %v16204_v36 = vrot.slane %v12915_v38, 3 }
 0x366   :  { %v12944_v53 = vsel %vm4811_vm6, %v17743_v62, %v17742_v40  ;;  %v2465_v11 = vsel %vm487_vm0, %v17745_v16, %v17744_v35  ;;  %v17746_v6 = vrot.slane %v12905_v9, 5  ;;  %v17747_v42 = vrot.slane %v12441_v24, 5 }
 0x367   :  { %v16205_v50 = vrot.slane %v12919_v60, 4  ;;  %v12960_v62 = vmul.f32 %v7933_v29, %v12359_v31  ;;  %v12964_v40 = vmul.f32 %v7947_v0, %v12359_v31  ;;  %v2132_v46 = vadd.f32 %v1964_v37, %v1631_v57 }
 0x368   :  { %v6181_v39 = vsel %vm4309_vm5, %v17747_v42, %v17746_v6  ;;  %v17750_v35 = vrot.slane %v12478_v12, 3  ;;  %v17751_v6 = vrot.slane %v12504_v8, 4  ;;  %v12984_v12 = vpop.permute.xlu1 %5549  ;;  %v17754_v8 = vrot.slane %v12544_v25, 5 }
 0x369   :  { %17748 = vst [vmem:[#allocation105_spill] sm:$0xff] %v12960_v62  ;;  %17749 = vst [vmem:[#allocation120_spill] sm:$0xff] %v12964_v40  ;;  %v6426_v1 = vsel %vm6382_vm7, %v6181_v39, 0.0  ;;  %v16208_v42 = vrot.slane %v12960_v62, 5  ;;  %v16211_v37 = vrot.slane %v12964_v40, 6  ;;  %v2633_v39 = vadd.f32 %v2465_v11, %v2132_v46  ;;  %v17756_v46 = vld [vmem:[#allocation18_spill] sm:$0xff] }
 0x36a   :  { %v2963_v24 = vsel %vm2806_vm2, %v17750_v35, %v16204_v36  ;;  %v12974_v16 = vadd.f32 %v6426_v1, %v12490_v10  ;;  %v3463_v31 = vsel %vm3306_vm4, %v17751_v6, %v16205_v50  ;;  %v17752_v35 = vld [vmem:[#allocation140_spill] sm:$0xff]  ;;  %v17753_v10 = vld [vmem:[#allocation117_spill] sm:$0xff]  ;;  %v17755_v57 = vrot.slane %v12558_v28, 6  ;;  %v13003_v50 = vpop.f32.mrb[40].mxu0 }
 0x36b   :  { %v641_v36 = vadd.f32 %v17752_v35, %v16711_v7  ;;  %v3077_v1 = vadd.f32 %v17753_v10, %v12362_v2  ;;  %v4466_v6 = vsel %vm4309_vm5, %v17754_v8, %v16208_v42  ;;  %v873_v35 = vadd.f32 %v17756_v46, %v16711_v7  ;;  %17757 = vst [vmem:[#allocation145_spill] sm:$0xff] %v13003_v50  ;;  %v17762_v46 = vld [vmem:[#allocation36_spill] sm:$0xff]  ;;  %v17764_v62 = vld [vmem:[#allocation113_spill] sm:$0xff] }
 0x36c   :  { %v4968_v11 = vsel %vm4811_vm6, %v17755_v57, %v16211_v37  ;;  %v13006_v2 = vmax.f32 %v12706_v27, 0.0  ;;  %v3131_v10 = vadd.f32 %v2963_v24, %v2633_v39  ;;  %v17759_v42 = vrot.slane %v12922_v43, 3  ;;  %v13027_v43 = vpop.f32.mrb[41].mxu0 }
 0x36d   :  { %v905_v22 = vmax.f32 %v641_v36, 0.0  ;;  %v3579_v25 = vadd.f32 %v17758_v3, %v3077_v1  ;;  %v17761_v28 = vrot.slane %v17760_v52, 3  ;;  %v13015_v37 = vmax.f32 %v873_v35, 0.0  ;;  %17763 = vst [vmem:[#allocation85_spill] sm:$0xff] %v13027_v43 }
 0x36e   :  { %v865_v50 = vadd.f32 %v17762_v46, %v16711_v7  ;;  %v3633_v23 = vadd.f32 %v3463_v31, %v3131_v10  ;;  %v17765_v7 = vrot.slane %v17764_v62, 1  ;;  %v17766_v60 = vrot.slane %v12644_v63, 1 }
 0x36f   :  { %v5879_v57 = vsel %vm2806_vm2, %v17761_v28, %v17759_v42  ;;  %v997_v27 = vmul.f32 %v7894_v34, %v905_v22  ;;  %v1167_v36 = vmul.f32 %v17517_v55, %v905_v22  ;;  %v1669_v3 = vmul.f32 %v17520_v54, %v905_v22 }
 0x370   :  { %v2168_v24 = vmul.f32 %v7916_v44, %v905_v22  ;;  %v2668_v39 = vmul.f32 %v17521_v47, %v905_v22  ;;  %v3166_v52 = vmul.f32 %v17628_v14, %v905_v22  ;;  %v3666_v42 = vmul.f32 %v7929_v58, %v905_v22 }
 0x371   :  { %v4134_v1 = vadd.f32 %v3964_v21, %v3633_v23  ;;  %v1362_v35 = vrot.slane %v1167_v36, 1  ;;  %v1863_v28 = vrot.slane %v1669_v3, 2  ;;  %v4167_v46 = vmul.f32 %v7933_v29, %v905_v22  ;;  %v17767_v23 = vld [vmem:[#allocation59_spill] sm:$0xff] }
 0x372   :  { %v2360_v31 = vrot.slane %v2168_v24, 2  ;;  %v2858_v10 = vrot.slane %v2668_v39, 3  ;;  %v3358_v8 = vrot.slane %v3166_v52, 4  ;;  %v3855_v48 = vrot.slane %v3666_v42, 4  ;;  %v17772_v42 = vld [vmem:[#allocation70_spill] sm:$0xff] }
 0x373   :  { %v4636_v40 = vadd.f32 %v4466_v6, %v4134_v1  ;;  %v1363_v19 = vsel %vm1304_vm3, %v17765_v7, %v1362_v35  ;;  %v1365_v38 = vsel %vm1304_vm3, %v1362_v35, %v17766_v60  ;;  %v17768_v21 = vrot.slane %v17767_v23, 2  ;;  %v17773_v35 = vld [vmem:[#allocation131_spill] sm:$0xff] }
 0x374   :  { %v1581_v3 = vadd.f32 %v1363_v19, %v12796_v4  ;;  %v1582_v24 = vadd.f32 %v1365_v38, %v997_v27  ;;  %v17769_v39 = vrot.slane %v12647_v5, 2  ;;  %v17770_v6 = vrot.slane %v12711_v20, 2 }
 0x375   :  { %v1864_v36 = vsel %vm487_vm0, %v17768_v21, %v1863_v28  ;;  %v5138_v7 = vadd.f32 %v4968_v11, %v4636_v40  ;;  %v17771_v63 = vrot.slane %v12662_v30, 2  ;;  %v17774_v23 = vrot.slane %v17773_v35, 3  ;;  %v17776_v11 = vld [vmem:[#allocation76_spill] sm:$0xff] }
 0x376   :  { %v1866_v52 = vsel %vm487_vm0, %v1863_v28, %v17769_v39  ;;  %v2361_v62 = vsel %vm487_vm0, %v17770_v6, %v2360_v31  ;;  %v2082_v38 = vadd.f32 %v1864_v36, %v1581_v3  ;;  %v17775_v20 = vrot.slane %v12665_v17, 3  ;;  %v13065_v36 = vpop.f32.mrb[42].mxu0  ;;  %v17781_v17 = vld [vmem:[#allocation38_spill] sm:$0xff] }
 0x377   :  { %v2363_v60 = vsel %vm487_vm0, %v2360_v31, %v17771_v63  ;;  %v2581_v1 = vadd.f32 %v2361_v62, %v17772_v42  ;;  %v2859_v19 = vsel %vm2806_vm2, %v17774_v23, %v2858_v10  ;;  %v13052_v4 = vadd.f32 %v1866_v52, %v1582_v24  ;;  %17779 = vst [vmem:[#allocation152_spill] sm:$0xff] %v13065_v36 }
 0x378   :  { %v2582_v5 = vadd.f32 %v2363_v60, %v12771_v41  ;;  %v2861_v27 = vsel %vm2806_vm2, %v2858_v10, %v17775_v20  ;;  %v5225_v40 = vadd.f32 %v16658_v61, %v5138_v7  ;;  %v17777_v28 = vrot.slane %v17776_v11, 4 }
 0x379   :  { %v3079_v30 = vadd.f32 %v2859_v19, %v2581_v1  ;;  %v17778_v21 = vrot.slane %v12670_v51, 4  ;;  %v13068_v3 = vadd.f32 %v12866_v13, %v2082_v38  ;;  %v17782_v24 = vrot.slane %v17781_v17, 4  ;;  %v17784_v51 = vld [vmem:[#allocation136_spill] sm:$0xff] }
 0x37a   :  { %v3359_v31 = vsel %vm3306_vm4, %v17777_v28, %v3358_v8  ;;  %v3080_v41 = vadd.f32 %v2861_v27, %v2582_v5  ;;  %v17783_v52 = vrot.slane %v12673_v26, 4  ;;  %v5308_v62 = vmax.f32 %v5225_v40, 0.0  ;;  %v17788_v40 = vld [vmem:[#allocation14_spill] sm:$0xff] }
 0x37b   :  { %v3361_v39 = vsel %vm3306_vm4, %v3358_v8, %v17778_v21  ;;  %17780 = vst [vmem:[#allocation62_spill] sm:$0xff] %v13068_v3  ;;  %v3856_v10 = vsel %vm3306_vm4, %v17782_v24, %v3855_v48  ;;  %v3581_v7 = vadd.f32 %v3359_v31, %v3079_v30  ;;  %v4357_v42 = vrot.slane %v4167_v46, 5  ;;  %v17791_v21 = vld [vmem:[#allocation122_spill] sm:$0xff] }
 0x37c   :  { %v3858_v6 = vsel %vm3306_vm4, %v3855_v48, %v17783_v52  ;;  %v4080_v63 = vadd.f32 %v3856_v10, %v3579_v25  ;;  %v13077_v8 = vadd.f32 %v3361_v39, %v3080_v41  ;;  %v4669_v13 = vmul.f32 %v7947_v0, %v905_v22  ;;  %v17785_v25 = vld [vmem:[#allocation128_spill] sm:$0xff] }
 0x37d   :  { %v4081_v60 = vadd.f32 %v3858_v6, %v17784_v51  ;;  %v3724_v1 = vmul.f32 %v7929_v58, %v13015_v37  ;;  %v13082_v35 = vmul.f32 %v5879_v57, %v5308_v62  ;;  %v4082_v23 = vadd.f32 %v12889_v32, %v3581_v7  ;;  %v13122_v6 = vpop.permute.xlu1 %5553 }
 0x37e   :  { %v13085_v26 = vmax.f32 %v865_v50, 0.0  ;;  %v13089_v48 = vmul.f32 %v7929_v58, %v13006_v2  ;;  %v17786_v19 = vrot.slane %v17785_v25, 5  ;;  %v17787_v46 = vrot.slane %v12684_v56, 5  ;;  %17797 = vst [vmem:[#allocation137_spill] sm:$0xff] %v13122_v6 }
 0x37f   :  { %v4859_v5 = vrot.slane %v4669_v13, 6  ;;  %v3971_v20 = vrot.slane %v3724_v1, 4  ;;  %v16221_v57 = vrot.slane %v13082_v35, 5  ;;  %v4584_v50 = vadd.f32 %v12896_v49, %v4082_v23  ;;  %v17794_v49 = vld [vmem:[#allocation84_spill] sm:$0xff] }
 0x380   :  { %v4358_v38 = vsel %vm4309_vm5, %v17786_v19, %v4357_v42  ;;  %v4360_v22 = vsel %vm4309_vm5, %v4357_v42, %v17787_v46  ;;  %v17789_v30 = vrot.slane %v17788_v40, 6  ;;  %v17790_v28 = vrot.slane %v12687_v18, 6 }
 0x381   :  { %v4582_v27 = vadd.f32 %v4358_v38, %v4080_v63  ;;  %v4583_v32 = vadd.f32 %v4360_v22, %v4081_v60  ;;  %v17792_v56 = vrot.slane %v17791_v21, 4  ;;  %v13112_v41 = vmul.f32 %v7933_v29, %v13015_v37  ;;  %v17802_v38 = vld [vmem:[#allocation81_spill] sm:$0xff]  ;;  %v13152_v22 = vpop.f32.mrb[43].mxu0 }
 0x382   :  { %v4860_v11 = vsel %vm4811_vm6, %v17789_v30, %v4859_v5  ;;  %v4862_v31 = vsel %vm4811_vm6, %v4859_v5, %v17790_v28  ;;  %v17795_v17 = vrot.slane %v17794_v49, 5  ;;  %v5086_v52 = vadd.f32 %v12944_v53, %v4584_v50  ;;  %v17799_v53 = vld [vmem:[#allocation123_spill] sm:$0xff]  ;;  %17803 = vst [vmem:[#allocation86_spill] sm:$0xff] %v13152_v22  ;;  %v17807_v28 = vld [vmem:[#allocation114_spill] sm:$0xff] }
 0x383   :  { %v13108_v39 = vsel %vm3306_vm4, %v17792_v56, %v3971_v20  ;;  %v5084_v10 = vadd.f32 %v4860_v11, %v4582_v27  ;;  %v5085_v18 = vadd.f32 %v4862_v31, %v4583_v32  ;;  %v13126_v62 = vmul.f32 %v7894_v34, %v12798_v33  ;;  %v13210_v32 = vpop.permute.xlu0 %5713  ;;  %v17844_v22 = vld [vmem:[#allocation110_spill] sm:$0xff] }
 0x384   :  { %17793 = vst [vmem:[#allocation134_spill] sm:$0xff] %v13108_v39  ;;  %v13119_v24 = vsel %vm4309_vm5, %v17795_v17, %v16221_v57  ;;  %v13130_v7 = vmul.f32 %v7947_v0, %v13015_v37  ;;  %v13134_v63 = vmul.f32 %v17628_v14, %v13085_v26  ;;  %v3722_v51 = vmul.f32 %v7929_v58, %v13085_v26  ;;  %v17809_v17 = vld [vmem:[#allocation104_spill] sm:$0xff] }
 0x385   :  { %17796 = vst [vmem:[#allocation44_spill] sm:$0xff] %v13119_v24  ;;  %v17798_v60 = vrot.slane %v12984_v12, 3  ;;  %v17800_v42 = vrot.slane %v17799_v53, 3  ;;  %v5171_v33 = vadd.f32 %v16658_v61, %v5084_v10  ;;  %v5172_v1 = vadd.f32 %v16658_v61, %v5085_v18  ;;  %17813 = vst [vmem:[#allocation111_spill] sm:$0xff] %v13210_v32 }
 0x386   :  { %v5173_v37 = vadd.f32 %v16658_v61, %v5086_v52  ;;  %v3965_v23 = vrot.slane %v13089_v48, 4  ;;  %v3967_v25 = vrot.slane %v3722_v51, 4  ;;  %v16228_v19 = vrot.slane %v13122_v6, 3  ;;  %v17810_v52 = vld [vmem:[#allocation48_spill] sm:$0xff]  ;;  %v17850_v6 = vld [vmem:[#allocation30_spill] sm:$0xff] }
 0x387   :  { %v13143_v13 = vsel %vm2806_vm2, %v17800_v42, %v17798_v60  ;;  %v1047_v46 = vmul.f32 %v7894_v34, %v17802_v38  ;;  %v5254_v5 = vmax.f32 %v5171_v33, 0.0  ;;  %v5255_v20 = vmax.f32 %v5172_v1, 0.0  ;;  %v17811_v60 = vld [vmem:[#allocation46_spill] sm:$0xff] }
 0x388   :  { %17801 = vst [vmem:[#allocation80_spill] sm:$0xff] %v13143_v13  ;;  %v5256_v27 = vmax.f32 %v5173_v37, 0.0  ;;  %v13158_v30 = vsel %vm3306_vm4, %v3965_v23, %v3967_v25  ;;  %v17805_v48 = vmov %v17792_v56  ;;  %v17808_v56 = vld [vmem:[#allocation69_spill] sm:$0xff]  ;;  %v13172_v18 = vmul.f32 %v7933_v29, %v13085_v26 }
 0x389   :  { %17804 = vst [vmem:[#allocation50_spill] sm:$0xff] %v13158_v30  ;;  %v13163_v11 = vsel %vm3306_vm4, %v3967_v25, %v17805_v48  ;;  %v5993_v31 = vmul.f32 %v17807_v28, %v5254_v5  ;;  %v5994_v49 = vmul.f32 %v17808_v56, %v5255_v20  ;;  %v13176_v51 = vmul.f32 %v17517_v55, %v17810_v52 }
 0x38a   :  { %17806 = vst [vmem:[#allocation112_spill] sm:$0xff] %v13163_v11  ;;  %v13168_v10 = vmul.f32 %v17809_v17, %v5256_v27  ;;  %v13180_v21 = vmul.f32 %v17520_v54, %v17810_v52  ;;  %v13184_v53 = vmul.f32 %v7916_v44, %v17811_v60  ;;  %v13188_v42 = vmul.f32 %v17521_v47, %v17811_v60 }
 0x38b   :  { %v6182_v33 = vrot.slane %v5993_v31, 5  ;;  %v6184_v1 = vrot.slane %v5994_v49, 5  ;;  %v13193_v25 = vmul.f32 %v17628_v14, %v17811_v60  ;;  %v16224_v38 = vrot.slane %v13176_v51, 1 }
 0x38c   :  { %v16222_v37 = vrot.slane %v13168_v10, 5  ;;  %v16223_v5 = vrot.slane %v13180_v21, 2  ;;  %v16227_v20 = vrot.slane %v13184_v53, 2  ;;  %v16226_v27 = vrot.slane %v13188_v42, 3 }
 0x38d   :  { %v17812_v48 = vrot.slane %v12905_v9, 5  ;;  %v6185_v31 = vsel %vm4309_vm5, %v6182_v33, %v6184_v1  ;;  %v16225_v49 = vrot.slane %v13193_v25, 4  ;;  %v17814_v9 = vrot.slane %v12804_v45, 1  ;;  %v17817_v45 = vld [vmem:[#allocation130_spill] sm:$0xff] }
 0x38e   :  { %v6187_v56 = vsel %vm4309_vm5, %v6184_v1, %v16222_v37  ;;  %v6430_v40 = vsel %vm6382_vm7, %v6185_v31, 0.0  ;;  %v17815_v1 = vrot.slane %v12808_v15, 2  ;;  %v17816_v31 = vrot.slane %v12824_v59, 2 }
 0x38f   :  { %v6183_v28 = vsel %vm4309_vm5, %v17812_v48, %v6182_v33  ;;  %v6432_v50 = vsel %vm6382_vm7, %v6187_v56, 0.0  ;;  %v1465_v33 = vsel %vm1304_vm3, %v17814_v9, %v16224_v38  ;;  %v17818_v37 = vrot.slane %v17817_v45, 3  ;;  %v17824_v38 = vld [vmem:[#allocation25_spill] sm:$0xff] }
 0x390   :  { %v6428_v17 = vsel %vm6382_vm7, %v6183_v28, 0.0  ;;  %v1632_v57 = vadd.f32 %v1465_v33, %v1047_v46  ;;  %v1966_v28 = vsel %vm487_vm0, %v17815_v1, %v16223_v5  ;;  %v2467_v56 = vsel %vm487_vm0, %v17816_v31, %v16227_v20 }
 0x391   :  { %v6429_v48 = vadd.f32 %v6428_v17, %v12974_v16  ;;  %v2965_v9 = vsel %vm2806_vm2, %v17818_v37, %v16226_v27  ;;  %v17819_v16 = vld [vmem:[#allocation156_spill] sm:$0xff]  ;;  %v17821_v17 = vld [vmem:[#allocation63_spill] sm:$0xff]  ;;  %v13243_v59 = vmul.f32 %v7933_v29, %v13006_v2  ;;  %v13247_v45 = vmul.f32 %v7947_v0, %v13006_v2 }
 0x392   :  { %v17820_v46 = vrot.slane %v17819_v16, 4  ;;  %v17822_v33 = vrot.slane %v17821_v17, 4  ;;  %v2133_v5 = vadd.f32 %v1966_v28, %v1632_v57  ;;  %v17826_v17 = vld [vmem:[#allocation124_spill] sm:$0xff]  ;;  %v13261_v57 = vmul.f32 %v7947_v0, %v13085_v26 }
 0x393   :  { %v6431_v31 = vadd.f32 %v6430_v40, %v6429_v48  ;;  %17823 = vst [vmem:[#allocation5_spill] sm:$0xff] %v13247_v45  ;;  %v16230_v16 = vrot.slane %v13243_v59, 5  ;;  %v16229_v48 = vrot.slane %v13247_v45, 6  ;;  %v17835_v24 = vrot.slane %v13210_v32, 3  ;;  %v17853_v45 = vld [vmem:[#allocation40_spill] sm:$0xff] }
 0x394   :  { %v3465_v15 = vsel %vm3306_vm4, %v17820_v46, %v16225_v49  ;;  %v3966_v1 = vsel %vm3306_vm4, %v17822_v33, %v3965_v23  ;;  %v17825_v46 = vld [vmem:[#allocation51_spill] sm:$0xff]  ;;  %v654_v23 = vadd.f32 %v17826_v17, %v17824_v38  ;;  %v17827_v33 = vld [vmem:[#allocation141_spill] sm:$0xff]  ;;  %v2634_v40 = vadd.f32 %v2467_v56, %v2133_v5  ;;  %v17833_v5 = vld [vmem:[#allocation120_spill] sm:$0xff] }
 0x395   :  { %v662_v49 = vadd.f32 %v17825_v46, %v17824_v38  ;;  %v665_v27 = vadd.f32 %v17827_v33, %v17824_v38  ;;  %v13257_v20 = vadd.f32 %v6432_v50, %v6431_v31  ;;  %v17829_v46 = vrot.slane %v12984_v12, 3  ;;  %v17831_v50 = vld [vmem:[#allocation105_spill] sm:$0xff]  ;;  %v17836_v12 = vld [vmem:[#allocation150_spill] sm:$0xff] }
 0x396   :  { %v17832_v31 = vrot.slane %v17831_v50, 5  ;;  %v3132_v37 = vadd.f32 %v2965_v9, %v2634_v40  ;;  %v17834_v56 = vrot.slane %v17833_v5, 6  ;;  %v17845_v30 = vrot.slane %v17844_v22, 1 }
 0x397   :  { %17828 = vst [vmem:[#allocation82_spill] sm:$0xff] %v13257_v20  ;;  %v13270_v17 = vsel %vm2806_vm2, %v17829_v46, %v16228_v19  ;;  %v910_v26 = vmax.f32 %v662_v49, 0.0  ;;  %v17837_v20 = vrot.slane %v17836_v12, 3  ;;  %v13287_v19 = vmax.f32 %v654_v23, 0.0 }
 0x398   :  { %17830 = vst [vmem:[#allocation118_spill] sm:$0xff] %v13270_v17  ;;  %v4468_v33 = vsel %vm4309_vm5, %v17832_v31, %v16230_v16  ;;  %v4970_v28 = vsel %vm4811_vm6, %v17834_v56, %v16229_v48  ;;  %v13298_v40 = vmax.f32 %v665_v27, 0.0  ;;  %v13300_v31 = vpop.f32.mrb[44].mxu0  ;;  %v3634_v5 = vadd.f32 %v3465_v15, %v3132_v37  ;;  %v17847_v48 = vld [vmem:[#allocation151_spill] sm:$0xff] }
 0x399   :  { %v5881_v46 = vsel %vm2806_vm2, %v17837_v20, %v17835_v24  ;;  %v13290_v50 = vmul.f32 %v17517_v55, %v910_v26  ;;  %v13293_v49 = vmul.f32 %v17520_v54, %v910_v26  ;;  %v13296_v9 = vmul.f32 %v7916_v44, %v910_v26  ;;  %17838 = vst [vmem:[#allocation74_spill] sm:$0xff] %v13300_v31  ;;  %v13328_v13 = vpop.f32.mrb[45].mxu0 }
 0x39a   :  { %v13303_v56 = vmul.f32 %v17521_v47, %v910_v26  ;;  %v13306_v24 = vmul.f32 %v17628_v14, %v910_v26  ;;  %v13309_v20 = vmul.f32 %v7929_v58, %v910_v26  ;;  %v13312_v23 = vmul.f32 %v7894_v34, %v910_v26  ;;  %17840 = vst [vmem:[#allocation117_spill] sm:$0xff] %v13328_v13 }
 0x39b   :  { %v13315_v12 = vmul.f32 %v7933_v29, %v910_v26  ;;  %v13319_v27 = vmul.f32 %v7894_v34, %v17811_v60  ;;  %v13323_v15 = vmul.f32 %v17517_v55, %v17811_v60  ;;  %v4135_v37 = vadd.f32 %v3966_v1, %v3634_v5 }
 0x39c   :  { %v13335_v43 = vmul.f32 %v17517_v55, %v13287_v19  ;;  %v13339_v1 = vmul.f32 %v17520_v54, %v13287_v19  ;;  %v13343_v5 = vmul.f32 %v7916_v44, %v13287_v19  ;;  %v13347_v31 = vmul.f32 %v17521_v47, %v13287_v19 }
 0x39d   :  { %17839 = vst [vmem:[#allocation140_spill] sm:$0xff] %v13315_v12  ;;  %v4637_v11 = vadd.f32 %v4468_v33, %v4135_v37  ;;  %v13353_v17 = vmul.f32 %v17628_v14, %v13287_v19  ;;  %v13357_v33 = vmul.f32 %v7929_v58, %v13287_v19  ;;  %v13371_v38 = vmul.f32 %v7933_v29, %v13287_v19 }
 0x39e   :  { %17841 = vst [vmem:[#allocation18_spill] sm:$0xff] %v13335_v43  ;;  %17842 = vst [vmem:[#allocation7_spill] sm:$0xff] %v13339_v1  ;;  %v16234_v36 = vrot.slane %v13335_v43, 1  ;;  %v16238_v16 = vrot.slane %v13339_v1, 2  ;;  %v17848_v22 = vrot.slane %v17847_v48, 2  ;;  %v17851_v3 = vrot.slane %v17850_v6, 2 }
 0x39f   :  { %17843 = vst [vmem:[#allocation125_spill] sm:$0xff] %v13343_v5  ;;  %v5139_v37 = vadd.f32 %v4970_v28, %v4637_v11  ;;  %v13373_v11 = vpop.f32.mrb[46].mxu0  ;;  %v17856_v1 = vld [vmem:[#allocation133_spill] sm:$0xff] }
 0x3a0   :  { %v1369_v32 = vsel %vm1304_vm3, %v17845_v30, %v16234_v36  ;;  %17846 = vst [vmem:[#allocation36_spill] sm:$0xff] %v13373_v11  ;;  %v1870_v30 = vsel %vm487_vm0, %v17848_v22, %v16238_v16  ;;  %v17849_v36 = vrot.slane %v13343_v5, 2  ;;  %v17852_v11 = vrot.slane %v13347_v31, 3  ;;  %v17859_v5 = vld [vmem:[#allocation139_spill] sm:$0xff] }
 0x3a1   :  { %v5226_v28 = vadd.f32 %v16658_v61, %v5139_v37  ;;  %v1584_v13 = vadd.f32 %v1369_v32, %v13126_v62  ;;  %v17854_v37 = vrot.slane %v17853_v45, 3  ;;  %v17855_v32 = vrot.slane %v13353_v17, 4 }
 0x3a2   :  { %v2367_v43 = vsel %vm487_vm0, %v17851_v3, %v17849_v36  ;;  %v17857_v48 = vrot.slane %v17856_v1, 4  ;;  %v17858_v16 = vrot.slane %v13357_v33, 4  ;;  %v17860_v6 = vrot.slane %v17859_v5, 4 }
 0x3a3   :  { %v2584_v39 = vadd.f32 %v2367_v43, %v13052_v4  ;;  %v2865_v62 = vsel %vm2806_vm2, %v17854_v37, %v17852_v11  ;;  %v5309_v3 = vmax.f32 %v5226_v28, 0.0  ;;  %v13403_v43 = vadd.f32 %v1870_v30, %v1584_v13  ;;  %v17865_v13 = vld [vmem:[#allocation129_spill] sm:$0xff]  ;;  %v13433_v30 = vpop.f32.mrb[47].mxu0 }
 0x3a4   :  { %v3365_v22 = vsel %vm3306_vm4, %v17857_v48, %v17855_v32  ;;  %v3862_v36 = vsel %vm3306_vm4, %v17860_v6, %v17858_v16  ;;  %v16240_v45 = vrot.slane %v13371_v38, 5  ;;  %v13408_v11 = vmul.f32 %v7947_v0, %v910_v26  ;;  %17869 = vst [vmem:[#allocation136_spill] sm:$0xff] %v13433_v30 }
 0x3a5   :  { %v4083_v4 = vadd.f32 %v3862_v36, %v13077_v8  ;;  %v3082_v37 = vadd.f32 %v2865_v62, %v2584_v39  ;;  %v13412_v1 = vmul.f32 %v7947_v0, %v13287_v19  ;;  %v13416_v5 = vmul.f32 %v17517_v55, %v13298_v40 }
 0x3a6   :  { %17861 = vst [vmem:[#allocation113_spill] sm:$0xff] %v13408_v11  ;;  %v13418_v16 = vmul.f32 %v5881_v46, %v5309_v3  ;;  %v17866_v8 = vrot.slane %v17865_v13, 5  ;;  %v13427_v26 = vmul.f32 %v17520_v54, %v13298_v40  ;;  %v13431_v39 = vmul.f32 %v7916_v44, %v13298_v40 }
 0x3a7   :  { %17862 = vst [vmem:[#allocation59_spill] sm:$0xff] %v13412_v1  ;;  %17863 = vst [vmem:[#allocation70_spill] sm:$0xff] %v13416_v5  ;;  %v13435_v62 = vadd.f32 %v3365_v22, %v3082_v37  ;;  %v16241_v32 = vrot.slane %v13412_v1, 6  ;;  %v16242_v48 = vrot.slane %v13416_v5, 1  ;;  %v13444_v13 = vmul.f32 %v17521_v47, %v13298_v40 }
 0x3a8   :  { %17864 = vst [vmem:[#allocation131_spill] sm:$0xff] %v13418_v16  ;;  %v4364_v28 = vsel %vm4309_vm5, %v17866_v8, %v16240_v45  ;;  %17867 = vst [vmem:[#allocation76_spill] sm:$0xff] %v13427_v26  ;;  %v16246_v6 = vrot.slane %v13418_v16, 5  ;;  %v17871_v8 = vld [vmem:[#allocation58_spill] sm:$0xff]  ;;  %v17873_v37 = vrot.slane %v13290_v50, 1  ;;  %v13458_v45 = vmul.f32 %v17628_v14, %v13298_v40 }
 0x3a9   :  { %17868 = vst [vmem:[#allocation38_spill] sm:$0xff] %v13431_v39  ;;  %v4585_v46 = vadd.f32 %v4364_v28, %v4083_v4  ;;  %17870 = vst [vmem:[#allocation128_spill] sm:$0xff] %v13444_v13  ;;  %v17872_v22 = vrot.slane %v17871_v8, 6  ;;  %v13462_v3 = vmul.f32 %v7929_v58, %v13298_v40  ;;  %v17876_v8 = vrot.slane %v13082_v35, 5 }
 0x3aa   :  { %v1375_v28 = vsel %vm1304_vm3, %v17873_v37, %v16242_v48  ;;  %17874 = vst [vmem:[#allocation14_spill] sm:$0xff] %v13458_v45  ;;  %v17878_v37 = vrot.slane %v13427_v26, 2  ;;  %v17879_v48 = vrot.slane %v13293_v49, 2  ;;  %v17880_v1 = vrot.slane %v13431_v39, 2 }
 0x3ab   :  { %v4866_v4 = vsel %vm4811_vm6, %v17872_v22, %v16241_v32  ;;  %17875 = vst [vmem:[#allocation122_spill] sm:$0xff] %v13462_v3  ;;  %v13469_v22 = vsel %vm4309_vm5, %v17876_v8, %v16246_v6  ;;  %v1587_v36 = vadd.f32 %v1375_v28, %v13312_v23  ;;  %v17881_v16 = vrot.slane %v13296_v9, 2 }
 0x3ac   :  { %17877 = vst [vmem:[#allocation84_spill] sm:$0xff] %v13469_v22  ;;  %v5087_v32 = vadd.f32 %v4866_v4, %v4585_v46  ;;  %v1876_v30 = vsel %vm487_vm0, %v17879_v48, %v17878_v37  ;;  %v16247_v8 = vrot.slane %v13444_v13, 3  ;;  %v16248_v46 = vrot.slane %v13458_v45, 4  ;;  %v17897_v13 = vld [vmem:[#allocation142_spill] sm:$0xff] }
 0x3ad   :  { %v13483_v35 = vsel %vm487_vm0, %v17881_v16, %v17880_v1  ;;  %v13488_v4 = vadd.f32 %v1876_v30, %v1587_v36  ;;  %v16249_v28 = vrot.slane %v13462_v3, 4  ;;  %v13493_v48 = vmul.f32 %v7933_v29, %v13298_v40 }
 0x3ae   :  { %v5174_v23 = vadd.f32 %v16658_v61, %v5087_v32  ;;  %v17884_v37 = vrot.slane %v13303_v56, 3  ;;  %v17886_v16 = vrot.slane %v13306_v24, 4  ;;  %v13511_v32 = vmul.f32 %v7947_v0, %v13298_v40 }
 0x3af   :  { %17882 = vst [vmem:[#allocation123_spill] sm:$0xff] %v13488_v4  ;;  %17883 = vst [vmem:[#allocation81_spill] sm:$0xff] %v13493_v48  ;;  %v1468_v36 = vrot.slane %v13323_v15, 1  ;;  %v17889_v5 = vrot.slane %v13309_v20, 4  ;;  %v2223_v15 = vmul.f32 %v7916_v44, %v13006_v2  ;;  %v17890_v4 = vld [vmem:[#allocation138_spill] sm:$0xff]  ;;  %v17894_v3 = vrot.slane %v13408_v11, 6 }
 0x3b0   :  { %v13500_v1 = vsel %vm2806_vm2, %v17884_v37, %v16247_v8  ;;  %v13507_v30 = vsel %vm3306_vm4, %v17886_v16, %v16248_v46  ;;  %17888 = vst [vmem:[#allocation104_spill] sm:$0xff] %v13511_v32  ;;  %v5257_v6 = vmax.f32 %v5174_v23, 0.0  ;;  %v16255_v8 = vrot.slane %v13493_v48, 5 }
 0x3b1   :  { %17885 = vst [vmem:[#allocation114_spill] sm:$0xff] %v13500_v1  ;;  %17887 = vst [vmem:[#allocation69_spill] sm:$0xff] %v13507_v30  ;;  %v13519_v37 = vsel %vm3306_vm4, %v17889_v5, %v16249_v28  ;;  %v1722_v16 = vmul.f32 %v17520_v54, %v17811_v60  ;;  %v16259_v46 = vrot.slane %v13511_v32, 6  ;;  %v1635_v22 = vadd.f32 %v1468_v36, %v13319_v27  ;;  %v17900_v1 = vld [vmem:[#allocation102_spill] sm:$0xff] }
 0x3b2   :  { %v2723_v23 = vmul.f32 %v17521_v47, %v13006_v2  ;;  %v13531_v30 = vmul.f32 %v17890_v4, %v5257_v6  ;;  %v17892_v5 = vrot.slane %v13315_v12, 5  ;;  %v3221_v27 = vmul.f32 %v17628_v14, %v13006_v2 }
 0x3b3   :  { %v1969_v60 = vrot.slane %v1722_v16, 2  ;;  %v13547_v45 = vsel %vm4811_vm6, %v17894_v3, %v16259_v46  ;;  %v2470_v6 = vrot.slane %v2223_v15, 2  ;;  %v17896_v48 = vrot.slane %v13112_v41, 5 }
 0x3b4   :  { %17891 = vst [vmem:[#allocation48_spill] sm:$0xff] %v13531_v30  ;;  %v13538_v28 = vsel %vm4309_vm5, %v17892_v5, %v16255_v8  ;;  %17895 = vst [vmem:[#allocation130_spill] sm:$0xff] %v13547_v45  ;;  %v2968_v4 = vrot.slane %v2723_v23, 3  ;;  %v17898_v39 = vrot.slane %v17897_v13, 5  ;;  %v16261_v16 = vrot.slane %v13531_v30, 5  ;;  %v13555_v8 = vpop.permute.xlu1 %5721  ;;  %v17902_v23 = vld [vmem:[#allocation135_spill] sm:$0xff] }
 0x3b5   :  { %17893 = vst [vmem:[#allocation46_spill] sm:$0xff] %v13538_v28  ;;  %v2136_v2 = vadd.f32 %v1969_v60, %v1635_v22  ;;  %v3468_v26 = vrot.slane %v3221_v27, 4  ;;  %v17899_v32 = vrot.slane %v13130_v7, 6  ;;  %v17901_v11 = vrot.slane %v17900_v1, 6  ;;  %v17906_v45 = vld [vmem:[#allocation28_spill] sm:$0xff] }
 0x3b6   :  { %v4474_v5 = vsel %vm4309_vm5, %v17898_v39, %v17896_v48  ;;  %v4971_v15 = vrot.slane %v13261_v57, 6  ;;  %v1048_v41 = vmul.f32 %v7894_v34, %v17810_v52  ;;  %v1049_v39 = vmul.f32 %v7894_v34, %v17902_v23 }
 0x3b7   :  { %v4976_v3 = vsel %vm4811_vm6, %v17901_v11, %v17899_v32  ;;  %v1219_v48 = vmul.f32 %v17517_v55, %v17902_v23  ;;  %v17903_v22 = vrot.slane %v13168_v10, 5  ;;  %v2637_v27 = vadd.f32 %v2470_v6, %v2136_v2 }
 0x3b8   :  { %v17905_v11 = vrot.slane %v13134_v63, 4  ;;  %v1721_v52 = vmul.f32 %v17520_v54, %v17902_v23  ;;  %v17907_v28 = vrot.slane %v17906_v45, 2  ;;  %v17908_v30 = vrot.slane %v13184_v53, 2 }
 0x3b9   :  { %v13574_v7 = vsel %vm4309_vm5, %v17903_v22, %v16261_v16  ;;  %v1466_v46 = vrot.slane %v1219_v48, 1  ;;  %v3135_v16 = vadd.f32 %v2968_v4, %v2637_v27  ;;  %v17912_v12 = vrot.slane %v13188_v42, 3 }
 0x3ba   :  { %17904 = vst [vmem:[#allocation156_spill] sm:$0xff] %v13574_v7  ;;  %v3471_v57 = vsel %vm3306_vm4, %v3468_v26, %v17905_v11  ;;  %v2469_v10 = vsel %vm487_vm0, %v17908_v30, %v17907_v28  ;;  %v17909_v22 = vmov %v17907_v28  ;;  %v1967_v63 = vrot.slane %v1721_v52, 2  ;;  %v17910_v7 = vld [vmem:[#allocation121_spill] sm:$0xff]  ;;  %v17915_v30 = vld [vmem:[#allocation55_spill] sm:$0xff] }
 0x3bb   :  { %v2471_v2 = vsel %vm487_vm0, %v17909_v22, %v2470_v6  ;;  %v17911_v11 = vrot.slane %v17910_v7, 3  ;;  %v17914_v53 = vrot.slane %v13176_v51, 1  ;;  %v1469_v45 = vsel %vm1304_vm3, %v1466_v46, %v1468_v36  ;;  %v5718_v7 = vpop.permute.xlu0 %5717 }
 0x3bc   :  { %v17916_v6 = vrot.slane %v17915_v30, 4  ;;  %v17917_v27 = vrot.slane %v13193_v25, 4  ;;  %v3637_v22 = vadd.f32 %v3471_v57, %v3135_v16  ;;  %v17919_v51 = vrot.slane %v13180_v21, 2 }
 0x3bd   :  { %v2967_v23 = vsel %vm2806_vm2, %v17912_v12, %v17911_v11  ;;  %v17913_v48 = vmov %v17911_v11  ;;  %v1467_v28 = vsel %vm1304_vm3, %v17914_v53, %v1466_v46  ;;  %v13613_v53 = vpop.f32.mrb[48].mxu0  ;;  %v1970_v46 = vsel %vm487_vm0, %v1967_v63, %v1969_v60 }
 0x3be   :  { %v2969_v32 = vsel %vm2806_vm2, %v17913_v48, %v2968_v4  ;;  %v3467_v52 = vsel %vm3306_vm4, %v17917_v27, %v17916_v6  ;;  %v17918_v42 = vmov %v17916_v6  ;;  %v1633_v11 = vadd.f32 %v1467_v28, %v1048_v41  ;;  %17920 = vst [vmem:[#allocation63_spill] sm:$0xff] %v13613_v53  ;;  %v17927_v28 = vld [vmem:[#allocation134_spill] sm:$0xff] }
 0x3bf   :  { %v3469_v12 = vsel %vm3306_vm4, %v17918_v42, %v3468_v26  ;;  %v1634_v4 = vadd.f32 %v1469_v45, %v1049_v39  ;;  %v1968_v48 = vsel %vm487_vm0, %v17919_v51, %v1967_v63  ;;  %v17921_v25 = vrot.slane %v13172_v18, 5  ;;  %v17925_v39 = vld [vmem:[#allocation5_spill] sm:$0xff]  ;;  %v17930_v51 = vld [vmem:[#allocation27_spill] sm:$0xff]  ;;  %v17932_v18 = vld [vmem:[#allocation146_spill] sm:$0xff] }
 0x3c0   :  { %v17922_v36 = vrot.slane %v13243_v59, 5  ;;  %v17923_v26 = vrot.slane %v17897_v13, 5  ;;  %v17926_v21 = vrot.slane %v17925_v39, 6  ;;  %v4138_v45 = vadd.f32 %v17927_v28, %v3637_v22  ;;  %v17929_v42 = vld [vmem:[#allocation25_spill] sm:$0xff]  ;;  %v13639_v39 = vpop.f32.mrb[49].mxu0  ;;  %v17940_v28 = vld [vmem:[#allocation111_spill] sm:$0xff] }
 0x3c1   :  { %v17924_v16 = vmov %v17921_v25  ;;  %v2134_v6 = vadd.f32 %v1968_v48, %v1633_v11  ;;  %v2135_v60 = vadd.f32 %v1970_v46, %v1634_v4  ;;  %v17928_v63 = vrot.slane %v17900_v1, 6  ;;  %17934 = vst [vmem:[#allocation51_spill] sm:$0xff] %v13639_v39  ;;  %v17937_v11 = vld [vmem:[#allocation137_spill] sm:$0xff] }
 0x3c2   :  { %v4470_v30 = vsel %vm4309_vm5, %v17922_v36, %v17921_v25  ;;  %v4472_v41 = vsel %vm4309_vm5, %v17924_v16, %v17923_v26  ;;  %v4972_v57 = vsel %vm4811_vm6, %v17926_v21, %v4971_v15  ;;  %v5882_v27 = vrot.slane %v5718_v7, 3  ;;  %v17931_v25 = vld [vmem:[#allocation62_spill] sm:$0xff] }
 0x3c3   :  { %v4974_v59 = vsel %vm4811_vm6, %v4971_v15, %v17928_v63  ;;  %v657_v13 = vadd.f32 %v17930_v51, %v17929_v42  ;;  %v3081_v36 = vadd.f32 %v17932_v18, %v17931_v25  ;;  %v17933_v26 = vld [vmem:[#allocation10_spill] sm:$0xff]  ;;  %v17938_v4 = vrot.slane %v17937_v11, 3 }
 0x3c4   :  { %v678_v16 = vadd.f32 %v17933_v26, %v17929_v42  ;;  %v17935_v21 = vld [vmem:[#allocation6_spill] sm:$0xff]  ;;  %v4640_v15 = vadd.f32 %v4474_v5, %v4138_v45  ;;  %v2635_v7 = vadd.f32 %v2469_v10, %v2134_v6  ;;  %v2636_v48 = vadd.f32 %v2471_v2, %v2135_v60  ;;  %v13672_v60 = vpop.f32.mrb[50].mxu0 }
 0x3c5   :  { %v17936_v22 = vrot.slane %v17935_v21, 3  ;;  %v1000_v46 = vmul.f32 %v7894_v34, %v13287_v19  ;;  %v17941_v63 = vrot.slane %v17940_v28, 3  ;;  %v13653_v25 = vmax.f32 %v657_v13, 0.0  ;;  %v17942_v18 = vld [vmem:[#allocation42_spill] sm:$0xff]  ;;  %17944 = vst [vmem:[#allocation141_spill] sm:$0xff] %v13672_v60 }
 0x3c6   :  { %v13656_v26 = vadd.f32 %v17942_v18, %v3081_v36  ;;  %v5142_v21 = vadd.f32 %v4976_v3, %v4640_v15  ;;  %v3133_v11 = vadd.f32 %v2967_v23, %v2635_v7  ;;  %v3134_v39 = vadd.f32 %v2969_v32, %v2636_v48  ;;  %v17945_v7 = vld [vmem:[#allocation50_spill] sm:$0xff] }
 0x3c7   :  { %v13646_v1 = vsel %vm2806_vm2, %v17938_v4, %v17936_v22  ;;  %v5883_v51 = vsel %vm2806_vm2, %v17941_v63, %v5882_v27  ;;  %v17943_v22 = vrot.slane %v13555_v8, 3  ;;  %v1171_v10 = vmul.f32 %v17517_v55, %v13653_v25  ;;  %v17947_v18 = vld [vmem:[#allocation18_spill] sm:$0xff] }
 0x3c8   :  { %17939 = vst [vmem:[#allocation124_spill] sm:$0xff] %v13646_v1  ;;  %v1673_v19 = vmul.f32 %v17520_v54, %v13653_v25  ;;  %v2172_v2 = vmul.f32 %v7916_v44, %v13653_v25  ;;  %v13667_v45 = vmax.f32 %v678_v16, 0.0  ;;  %v5229_v6 = vadd.f32 %v16658_v61, %v5142_v21  ;;  %v17946_v16 = vld [vmem:[#allocation112_spill] sm:$0xff]  ;;  %v18022_v1 = vld [vmem:[#allocation147_spill] sm:$0xff] }
 0x3c9   :  { %v5885_v5 = vsel %vm2806_vm2, %v5882_v27, %v17943_v22  ;;  %v3635_v3 = vadd.f32 %v3467_v52, %v3133_v11  ;;  %v3636_v23 = vadd.f32 %v3469_v12, %v3134_v39  ;;  %v2672_v32 = vmul.f32 %v17521_v47, %v13653_v25  ;;  %v17950_v11 = vld [vmem:[#allocation7_spill] sm:$0xff] }
 0x3ca   :  { %v1001_v27 = vmul.f32 %v7894_v34, %v13653_v25  ;;  %v1370_v13 = vrot.slane %v1171_v10, 1  ;;  %v1871_v36 = vrot.slane %v1673_v19, 2  ;;  %v2368_v4 = vrot.slane %v2172_v2, 2 }
 0x3cb   :  { %v5312_v15 = vmax.f32 %v5229_v6, 0.0  ;;  %v4136_v48 = vadd.f32 %v17945_v7, %v3635_v3  ;;  %v4137_v28 = vadd.f32 %v17946_v16, %v3636_v23  ;;  %v2866_v63 = vrot.slane %v2672_v32, 3  ;;  %v17953_v16 = vld [vmem:[#allocation125_spill] sm:$0xff] }
 0x3cc   :  { %v17948_v52 = vrot.slane %v17947_v18, 1  ;;  %v17949_v39 = vrot.slane %v13290_v50, 1  ;;  %v17951_v22 = vrot.slane %v17950_v11, 2  ;;  %v17952_v19 = vrot.slane %v13293_v49, 2 }
 0x3cd   :  { %v4638_v6 = vadd.f32 %v4470_v30, %v4136_v48  ;;  %v4639_v3 = vadd.f32 %v4472_v41, %v4137_v28  ;;  %v3170_v32 = vmul.f32 %v17628_v14, %v13653_v25  ;;  %v17954_v18 = vrot.slane %v17953_v16, 2 }
 0x3ce   :  { %v1371_v12 = vsel %vm1304_vm3, %v17948_v52, %v1370_v13  ;;  %v1373_v21 = vsel %vm1304_vm3, %v1370_v13, %v17949_v39  ;;  %v1872_v10 = vsel %vm487_vm0, %v17951_v22, %v1871_v36  ;;  %v1874_v2 = vsel %vm487_vm0, %v1871_v36, %v17952_v19 }
 0x3cf   :  { %v1585_v23 = vadd.f32 %v1371_v12, %v1000_v46  ;;  %v1586_v7 = vadd.f32 %v1373_v21, %v1001_v27  ;;  %v2369_v50 = vsel %vm487_vm0, %v17954_v18, %v2368_v4  ;;  %v17955_v13 = vrot.slane %v13296_v9, 2  ;;  %v17958_v27 = vld [vmem:[#allocation52_spill] sm:$0xff] }
 0x3d0   :  { %v17956_v39 = vrot.slane %v13347_v31, 3  ;;  %v17957_v30 = vrot.slane %v13555_v8, 3  ;;  %v5140_v46 = vadd.f32 %v4972_v57, %v4638_v6  ;;  %v5141_v36 = vadd.f32 %v4974_v59, %v4639_v3  ;;  %v13725_v6 = vpop.f32.mrb[51].mxu0 }
 0x3d1   :  { %v2371_v52 = vsel %vm487_vm0, %v2368_v4, %v17955_v13  ;;  %v2086_v48 = vadd.f32 %v1872_v10, %v1585_v23  ;;  %v13703_v28 = vadd.f32 %v1874_v2, %v1586_v7  ;;  %v2585_v12 = vadd.f32 %v2369_v50, %v17958_v27  ;;  %17962 = vst [vmem:[#allocation105_spill] sm:$0xff] %v13725_v6  ;;  %v17968_v27 = vld [vmem:[#allocation46_spill] sm:$0xff] }
 0x3d2   :  { %v2867_v49 = vsel %vm2806_vm2, %v17956_v39, %v2866_v63  ;;  %v6051_v41 = vmul.f32 %v17957_v30, %v5312_v15  ;;  %v2586_v21 = vadd.f32 %v2371_v52, %v13403_v43  ;;  %v17959_v9 = vrot.slane %v13303_v56, 3 }
 0x3d3   :  { %v5227_v31 = vadd.f32 %v16658_v61, %v5140_v46  ;;  %v5228_v11 = vadd.f32 %v16658_v61, %v5141_v36  ;;  %v13713_v8 = vadd.f32 %v13483_v35, %v2086_v48  ;;  %v3366_v57 = vrot.slane %v3170_v32, 4  ;;  %v17966_v36 = vld [vmem:[#allocation140_spill] sm:$0xff] }
 0x3d4   :  { %v2869_v4 = vsel %vm2806_vm2, %v2866_v63, %v17959_v9  ;;  %v3083_v59 = vadd.f32 %v2867_v49, %v2585_v12  ;;  %v3670_v22 = vmul.f32 %v7929_v58, %v13653_v25  ;;  %v4171_v43 = vmul.f32 %v7933_v29, %v13653_v25 }
 0x3d5   :  { %v3084_v15 = vadd.f32 %v2869_v4, %v2586_v21  ;;  %v5310_v10 = vmax.f32 %v5227_v31, 0.0  ;;  %v5311_v56 = vmax.f32 %v5228_v11, 0.0  ;;  %v17960_v63 = vrot.slane %v13353_v17, 4  ;;  %v17974_v4 = vld [vmem:[#allocation156_spill] sm:$0xff] }
 0x3d6   :  { %v17961_v2 = vrot.slane %v13306_v24, 4  ;;  %v3863_v32 = vrot.slane %v3670_v22, 4  ;;  %v4365_v7 = vrot.slane %v4171_v43, 5  ;;  %v6298_v16 = vrot.slane %v6051_v41, 5  ;;  %v17977_v22 = vld [vmem:[#allocation59_spill] sm:$0xff] }
 0x3d7   :  { %v3367_v19 = vsel %vm3306_vm4, %v17960_v63, %v3366_v57  ;;  %v6049_v18 = vmul.f32 %v5883_v51, %v5310_v10  ;;  %v6050_v50 = vmul.f32 %v5885_v5, %v5311_v56  ;;  %v4673_v13 = vmul.f32 %v7947_v0, %v13653_v25  ;;  %v17979_v56 = vld [vmem:[#allocation113_spill] sm:$0xff] }
 0x3d8   :  { %v3369_v35 = vsel %vm3306_vm4, %v3366_v57, %v17961_v2  ;;  %v3585_v3 = vadd.f32 %v3367_v19, %v3083_v59  ;;  %v17963_v17 = vrot.slane %v13357_v33, 4  ;;  %v17964_v24 = vrot.slane %v13309_v20, 4  ;;  %v17976_v59 = vld [vmem:[#allocation148_spill] sm:$0xff]  ;;  %v17981_v2 = vld [vmem:[#allocation130_spill] sm:$0xff] }
 0x3d9   :  { %v13727_v23 = vadd.f32 %v3369_v35, %v3084_v15  ;;  %v17965_v30 = vrot.slane %v13371_v38, 5  ;;  %v6294_v41 = vrot.slane %v6049_v18, 5  ;;  %v6296_v51 = vrot.slane %v6050_v50, 5  ;;  %v17969_v38 = vld [vmem:[#allocation131_spill] sm:$0xff] }
 0x3da   :  { %v3864_v52 = vsel %vm3306_vm4, %v17963_v17, %v3863_v32  ;;  %v3866_v39 = vsel %vm3306_vm4, %v3863_v32, %v17964_v24  ;;  %v4086_v49 = vadd.f32 %v13519_v37, %v3585_v3  ;;  %v13745_v33 = vmul.f32 %v7894_v34, %v13298_v40 }
 0x3db   :  { %v4366_v46 = vsel %vm4309_vm5, %v17965_v30, %v4365_v7  ;;  %v4084_v5 = vadd.f32 %v3864_v52, %v13656_v26  ;;  %v4085_v25 = vadd.f32 %v3866_v39, %v13435_v62  ;;  %v17967_v20 = vrot.slane %v17966_v36, 5 }
 0x3dc   :  { %v4588_v37 = vadd.f32 %v17968_v27, %v4086_v49  ;;  %v4867_v12 = vrot.slane %v4673_v13, 6  ;;  %v17970_v21 = vrot.slane %v17969_v38, 5  ;;  %v13757_v26 = vsel %vm4309_vm5, %v6294_v41, %v6296_v51 }
 0x3dd   :  { %v4368_v48 = vsel %vm4309_vm5, %v4365_v7, %v17967_v20  ;;  %17972 = vst [vmem:[#allocation150_spill] sm:$0xff] %v13757_v26  ;;  %v13760_v62 = vsel %vm4309_vm5, %v6296_v51, %v6298_v16  ;;  %v4586_v40 = vadd.f32 %v4366_v46, %v4084_v5  ;;  %v13764_v31 = vsel %vm6382_vm7, %v17974_v4, 0.0  ;;  %v13829_v4 = vpop.f32.mrb[52].mxu0  ;;  %v17996_v5 = vld [vmem:[#allocation76_spill] sm:$0xff] }
 0x3de   :  { %v13754_v9 = vsel %vm4309_vm5, %v17970_v21, %v6294_v41  ;;  %17973 = vst [vmem:[#allocation110_spill] sm:$0xff] %v13760_v62  ;;  %17975 = vst [vmem:[#allocation151_spill] sm:$0xff] %v13764_v31  ;;  %v4587_v11 = vadd.f32 %v4368_v48, %v4085_v25  ;;  %v13768_v57 = vmul.f32 %v17517_v55, %v13667_v45  ;;  %v17978_v43 = vrot.slane %v17977_v22, 6  ;;  %v17984_v21 = vld [vmem:[#allocation114_spill] sm:$0xff]  ;;  %v17988_v22 = vld [vmem:[#allocation149_spill] sm:$0xff]  ;;  %v13894_v49 = vpop.f32.mrb[53].mxu0 }
 0x3df   :  { %17971 = vst [vmem:[#allocation120_spill] sm:$0xff] %v13754_v9  ;;  %v670_v15 = vadd.f32 %v17976_v59, %v17929_v42  ;;  %v17980_v63 = vrot.slane %v17979_v56, 6  ;;  %v5090_v35 = vadd.f32 %v17981_v2, %v4588_v37  ;;  %v13781_v3 = vmul.f32 %v7894_v34, %v13667_v45  ;;  %17985 = vst [vmem:[#allocation40_spill] sm:$0xff] %v13829_v4  ;;  %v17994_v56 = vld [vmem:[#allocation70_spill] sm:$0xff] }
 0x3e0   :  { %v4868_v10 = vsel %vm4811_vm6, %v17978_v43, %v4867_v12  ;;  %v13785_v16 = vmul.f32 %v17520_v54, %v13667_v45  ;;  %v13789_v18 = vmul.f32 %v7916_v44, %v13667_v45  ;;  %v13796_v13 = vmul.f32 %v17521_v47, %v13667_v45  ;;  %18000 = vst [vmem:[#allocation58_spill] sm:$0xff] %v13894_v49 }
 0x3e1   :  { %v4870_v19 = vsel %vm4811_vm6, %v4867_v12, %v17980_v63  ;;  %v5088_v32 = vadd.f32 %v4868_v10, %v4586_v40  ;;  %v13792_v50 = vadd.f32 %v16658_v61, %v5090_v35  ;;  %v13800_v17 = vmul.f32 %v17628_v14, %v13667_v45  ;;  %v17983_v12 = vld [vmem:[#allocation83_spill] sm:$0xff]  ;;  %v17990_v10 = vld [vmem:[#allocation153_spill] sm:$0xff] }
 0x3e2   :  { %v5089_v7 = vadd.f32 %v4870_v19, %v4587_v11  ;;  %v13804_v52 = vmul.f32 %v7929_v58, %v13667_v45  ;;  %v13816_v20 = vmul.f32 %v7933_v29, %v13667_v45  ;;  %v13820_v48 = vmul.f32 %v7947_v0, %v13667_v45  ;;  %v17986_v11 = vld [vmem:[#allocation47_spill] sm:$0xff] }
 0x3e3   :  { %17982 = vst [vmem:[#allocation30_spill] sm:$0xff] %v13792_v50  ;;  %v5175_v24 = vadd.f32 %v16658_v61, %v5088_v32  ;;  %v912_v37 = vmax.f32 %v670_v15, 0.0  ;;  %v681_v38 = vadd.f32 %v17983_v12, %v17929_v42  ;;  %v13827_v40 = vadd.f32 %v17984_v21, %v13713_v8  ;;  %v17991_v12 = vld [vmem:[#allocation48_spill] sm:$0xff] }
 0x3e4   :  { %v5176_v39 = vadd.f32 %v16658_v61, %v5089_v7  ;;  %v673_v15 = vadd.f32 %v17990_v10, %v17929_v42  ;;  %v17992_v21 = vrot.slane %v17991_v12, 5  ;;  %v17995_v45 = vrot.slane %v17994_v56, 1 }
 0x3e5   :  { %v5258_v25 = vmax.f32 %v5175_v24, 0.0  ;;  %v13842_v63 = vmul.f32 %v17517_v55, %v912_v37  ;;  %v13845_v8 = vmul.f32 %v17520_v54, %v912_v37  ;;  %v13848_v19 = vmul.f32 %v7916_v44, %v912_v37 }
 0x3e6   :  { %v5259_v36 = vmax.f32 %v5176_v39, 0.0  ;;  %v13852_v35 = vmul.f32 %v7894_v34, %v912_v37  ;;  %v13855_v32 = vmul.f32 %v17521_v47, %v912_v37  ;;  %v13858_v7 = vmul.f32 %v17628_v14, %v912_v37 }
 0x3e7   :  { %v13832_v59 = vmul.f32 %v17986_v11, %v5258_v25  ;;  %v16264_v24 = vrot.slane %v13842_v63, 1  ;;  %v16265_v39 = vrot.slane %v13845_v8, 2  ;;  %v16266_v25 = vrot.slane %v13848_v19, 2 }
 0x3e8   :  { %v13835_v43 = vmul.f32 %v17988_v22, %v5259_v36  ;;  %v13864_v36 = vmul.f32 %v7929_v58, %v912_v37  ;;  %v16267_v22 = vrot.slane %v13855_v32, 3  ;;  %v16268_v10 = vrot.slane %v13858_v7, 4 }
 0x3e9   :  { %17987 = vst [vmem:[#allocation133_spill] sm:$0xff] %v13832_v59  ;;  %v16263_v2 = vrot.slane %v13832_v59, 5  ;;  %v13876_v46 = vmul.f32 %v7933_v29, %v912_v37  ;;  %v1377_v27 = vsel %vm1304_vm3, %v17995_v45, %v16264_v24  ;;  %v17997_v12 = vrot.slane %v17996_v5, 2  ;;  %v18001_v24 = vld [vmem:[#allocation128_spill] sm:$0xff] }
 0x3ea   :  { %17989 = vst [vmem:[#allocation139_spill] sm:$0xff] %v13835_v43  ;;  %v16269_v30 = vrot.slane %v13864_v36, 4  ;;  %v1588_v56 = vadd.f32 %v1377_v27, %v13745_v33  ;;  %v18002_v5 = vrot.slane %v18001_v24, 3  ;;  %v915_v27 = vmax.f32 %v681_v38, 0.0 }
 0x3eb   :  { %v13871_v11 = vsel %vm4309_vm5, %v17992_v21, %v16263_v2  ;;  %v1878_v21 = vsel %vm487_vm0, %v17997_v12, %v16265_v39  ;;  %v17998_v2 = vld [vmem:[#allocation38_spill] sm:$0xff]  ;;  %v18013_v26 = vrot.slane %v13785_v16, 2  ;;  %v18025_v4 = vrot.slane %v13820_v48, 6 }
 0x3ec   :  { %17993 = vst [vmem:[#allocation129_spill] sm:$0xff] %v13871_v11  ;;  %v17999_v51 = vrot.slane %v17998_v2, 2  ;;  %v2873_v12 = vsel %vm2806_vm2, %v18002_v5, %v16267_v22  ;;  %v18003_v39 = vld [vmem:[#allocation14_spill] sm:$0xff]  ;;  %v2089_v5 = vadd.f32 %v1878_v21, %v1588_v56  ;;  %v13933_v21 = vmul.f32 %v17520_v54, %v915_v27  ;;  %v18009_v56 = vld [vmem:[#allocation104_spill] sm:$0xff] }
 0x3ed   :  { %v18004_v2 = vrot.slane %v18003_v39, 4 }
 0x3ee   :  { %v2375_v41 = vsel %vm487_vm0, %v17999_v51, %v16266_v25  ;;  %v18005_v25 = vld [vmem:[#allocation122_spill] sm:$0xff] }
 0x3ef   :  { %v2588_v45 = vadd.f32 %v2375_v41, %v13703_v28  ;;  %v3373_v51 = vsel %vm3306_vm4, %v18004_v2, %v16268_v10  ;;  %v18006_v62 = vrot.slane %v18005_v25, 4  ;;  %v16271_v28 = vrot.slane %v13876_v46, 5  ;;  %v18007_v2 = vld [vmem:[#allocation81_spill] sm:$0xff] }
 0x3f0   :  { %v13915_v41 = vmul.f32 %v7947_v0, %v912_v37  ;;  %v18008_v10 = vrot.slane %v18007_v2, 5  ;;  %v13928_v37 = vmax.f32 %v673_v15, 0.0  ;;  %v13945_v15 = vmul.f32 %v17521_v47, %v915_v27 }
 0x3f1   :  { %v3870_v33 = vsel %vm3306_vm4, %v18006_v62, %v16269_v30  ;;  %v3086_v22 = vadd.f32 %v2873_v12, %v2588_v45  ;;  %v13926_v30 = vmul.f32 %v17517_v55, %v915_v27  ;;  %v13953_v2 = vmul.f32 %v7929_v58, %v915_v27 }
 0x3f2   :  { %v4087_v39 = vadd.f32 %v3870_v33, %v13727_v23  ;;  %v4372_v25 = vsel %vm4309_vm5, %v18008_v10, %v16271_v28  ;;  %v16270_v62 = vrot.slane %v13915_v41, 6  ;;  %v13936_v23 = vmul.f32 %v7916_v44, %v915_v27 }
 0x3f3   :  { %v13930_v38 = vadd.f32 %v3373_v51, %v3086_v22  ;;  %v18010_v10 = vrot.slane %v18009_v56, 6  ;;  %v16272_v12 = vrot.slane %v13926_v30, 1  ;;  %v13948_v22 = vmul.f32 %v17628_v14, %v915_v27 }
 0x3f4   :  { %v4589_v24 = vadd.f32 %v4372_v25, %v4087_v39  ;;  %v16273_v33 = vrot.slane %v13933_v21, 2  ;;  %v13955_v25 = vpop.f32.mrb[54].mxu0  ;;  %v18012_v56 = vrot.slane %v13768_v57, 1  ;;  %v18014_v11 = vrot.slane %v13936_v23, 2 }
 0x3f5   :  { %v4874_v45 = vsel %vm4811_vm6, %v18010_v10, %v16270_v62  ;;  %18011 = vst [vmem:[#allocation138_spill] sm:$0xff] %v13955_v25  ;;  %v16275_v62 = vrot.slane %v13945_v15, 3  ;;  %v18016_v28 = vrot.slane %v13796_v13, 3  ;;  %v1175_v43 = vmul.f32 %v17517_v55, %v13928_v37  ;;  %v18024_v25 = vld [vmem:[#allocation69_spill] sm:$0xff] }
 0x3f6   :  { %v5091_v51 = vadd.f32 %v4874_v45, %v4589_v24  ;;  %v1383_v10 = vsel %vm1304_vm3, %v18012_v56, %v16272_v12  ;;  %v13965_v24 = vmul.f32 %v7933_v29, %v915_v27  ;;  %v1884_v9 = vsel %vm487_vm0, %v18013_v26, %v16273_v33 }
 0x3f7   :  { %v1591_v39 = vadd.f32 %v1383_v10, %v13781_v3  ;;  %v18015_v56 = vrot.slane %v13789_v18, 2  ;;  %v18017_v3 = vrot.slane %v13948_v22, 4  ;;  %v18018_v10 = vrot.slane %v13800_v17, 4 }
 0x3f8   :  { %v5178_v45 = vadd.f32 %v16658_v61, %v5091_v51  ;;  %v13984_v51 = vsel %vm2806_vm2, %v18016_v28, %v16275_v62  ;;  %v16278_v26 = vrot.slane %v13953_v2, 4  ;;  %v16280_v33 = vrot.slane %v13965_v24, 5 }
 0x3f9   :  { %v2381_v12 = vsel %vm487_vm0, %v18015_v56, %v18014_v11  ;;  %v13991_v31 = vsel %vm3306_vm4, %v18018_v10, %v18017_v3  ;;  %v13996_v11 = vmul.f32 %v7894_v34, %v915_v27  ;;  %v13998_v56 = vadd.f32 %v1884_v9, %v1591_v39 }
 0x3fa   :  { %v5261_v59 = vmax.f32 %v5178_v45, 0.0  ;;  %v14001_v28 = vmul.f32 %v7947_v0, %v915_v27  ;;  %v18020_v62 = vrot.slane %v13804_v52, 4  ;;  %v18021_v10 = vrot.slane %v13816_v20, 5 }
 0x3fb   :  { %18019 = vst [vmem:[#allocation142_spill] sm:$0xff] %v13998_v56  ;;  %v1677_v9 = vmul.f32 %v17520_v54, %v13928_v37  ;;  %v1005_v39 = vmul.f32 %v7894_v34, %v13928_v37  ;;  %v3587_v49 = vadd.f32 %v18024_v25, %v13827_v40  ;;  %v3174_v56 = vmul.f32 %v17628_v14, %v13928_v37 }
 0x3fc   :  { %v3876_v3 = vsel %vm3306_vm4, %v18020_v62, %v16278_v26  ;;  %v4378_v45 = vsel %vm4309_vm5, %v18021_v10, %v16280_v33  ;;  %v16281_v27 = vrot.slane %v14001_v28, 6  ;;  %v2176_v62 = vmul.f32 %v7916_v44, %v13928_v37 }
 0x3fd   :  { %v2676_v26 = vmul.f32 %v17521_v47, %v13928_v37  ;;  %v14025_v50 = vmul.f32 %v18022_v1, %v5261_v59  ;;  %v1378_v10 = vrot.slane %v1175_v43, 1  ;;  %v1879_v33 = vrot.slane %v1677_v9, 2 }
 0x3fe   :  { %v14034_v6 = vsel %vm4811_vm6, %v18025_v4, %v16281_v27  ;;  %v2376_v60 = vrot.slane %v2176_v62, 2  ;;  %v18027_v1 = vrot.slane %v13842_v63, 1  ;;  %v18028_v43 = vrot.slane %v13768_v57, 1 }
 0x3ff   :  { %18023 = vst [vmem:[#allocation102_spill] sm:$0xff] %v14025_v50  ;;  %18026 = vst [vmem:[#allocation135_spill] sm:$0xff] %v14034_v6  ;;  %v2874_v53 = vrot.slane %v2676_v26, 3  ;;  %v18029_v25 = vrot.slane %v13845_v8, 2  ;;  %v18030_v4 = vrot.slane %v13785_v16, 2  ;;  %v18031_v6 = vrot.slane %v13848_v19, 2 }
 0x400   :  { %v1379_v59 = vsel %vm1304_vm3, %v18027_v1, %v1378_v10  ;;  %v1381_v40 = vsel %vm1304_vm3, %v1378_v10, %v18028_v43  ;;  %v18032_v1 = vrot.slane %v13789_v18, 2  ;;  %v18033_v10 = vld [vmem:[#allocation123_spill] sm:$0xff]  ;;  %v3374_v19 = vrot.slane %v3174_v56, 4  ;;  %v14068_v18 = vpop.f32.mrb[55].mxu0 }
 0x401   :  { %v1880_v9 = vsel %vm487_vm0, %v18029_v25, %v1879_v33  ;;  %v1882_v62 = vsel %vm487_vm0, %v1879_v33, %v18030_v4  ;;  %v1589_v26 = vadd.f32 %v1379_v59, %v13852_v35  ;;  %v1590_v27 = vadd.f32 %v1381_v40, %v1005_v39  ;;  %18036 = vst [vmem:[#allocation28_spill] sm:$0xff] %v14068_v18 }
 0x402   :  { %v2377_v63 = vsel %vm487_vm0, %v18031_v6, %v2376_v60  ;;  %v2379_v57 = vsel %vm487_vm0, %v2376_v60, %v18032_v1  ;;  %v18034_v25 = vrot.slane %v13855_v32, 3  ;;  %v18035_v33 = vrot.slane %v13796_v13, 3 }
 0x403   :  { %v2589_v43 = vadd.f32 %v2377_v63, %v18033_v10  ;;  %v2590_v8 = vadd.f32 %v2379_v57, %v2089_v5  ;;  %v2090_v39 = vadd.f32 %v1880_v9, %v1589_v26  ;;  %v14064_v59 = vadd.f32 %v1882_v62, %v1590_v27  ;;  %v18041_v10 = vld [vmem:[#allocation145_spill] sm:$0xff] }
 0x404   :  { %v2875_v16 = vsel %vm2806_vm2, %v18034_v25, %v2874_v53  ;;  %v2877_v35 = vsel %vm2806_vm2, %v2874_v53, %v18035_v33  ;;  %v3674_v6 = vmul.f32 %v7929_v58, %v13928_v37  ;;  %v4175_v32 = vmul.f32 %v7933_v29, %v13928_v37 }
 0x405   :  { %v3087_v60 = vadd.f32 %v2875_v16, %v2589_v43  ;;  %v3088_v40 = vadd.f32 %v2877_v35, %v2590_v8  ;;  %v4677_v5 = vmul.f32 %v7947_v0, %v13928_v37  ;;  %v14074_v13 = vadd.f32 %v2381_v12, %v2090_v39 }
 0x406   :  { %v18037_v53 = vrot.slane %v13858_v7, 4  ;;  %v18038_v56 = vrot.slane %v13800_v17, 4  ;;  %v3871_v4 = vrot.slane %v3674_v6, 4  ;;  %v4373_v63 = vrot.slane %v4175_v32, 5  ;;  %v18042_v17 = vld [vmem:[#allocation85_spill] sm:$0xff] }
 0x407   :  { %v4875_v1 = vrot.slane %v4677_v5, 6  ;;  %v18039_v57 = vrot.slane %v13864_v36, 4  ;;  %v18040_v12 = vrot.slane %v13804_v52, 4  ;;  %v694_v43 = vadd.f32 %v18041_v10, %v17929_v42 }
 0x408   :  { %v3375_v27 = vsel %vm3306_vm4, %v18037_v53, %v3374_v19  ;;  %v3377_v9 = vsel %vm3306_vm4, %v3374_v19, %v18038_v56  ;;  %v686_v8 = vadd.f32 %v18042_v17, %v17929_v42  ;;  %v18043_v35 = vrot.slane %v13876_v46, 5 }
 0x409   :  { %v3589_v62 = vadd.f32 %v3375_v27, %v3087_v60  ;;  %v14082_v26 = vadd.f32 %v3377_v9, %v3088_v40  ;;  %v3872_v37 = vsel %vm3306_vm4, %v18039_v57, %v3871_v4  ;;  %v3874_v7 = vsel %vm3306_vm4, %v3871_v4, %v18040_v12 }
 0x40a   :  { %v4088_v25 = vadd.f32 %v3872_v37, %v3587_v49  ;;  %v4089_v16 = vadd.f32 %v3874_v7, %v13930_v38  ;;  %v4374_v36 = vsel %vm4309_vm5, %v18043_v35, %v4373_v63  ;;  %v18044_v39 = vrot.slane %v13816_v20, 5 }
 0x40b   :  { %v4090_v33 = vadd.f32 %v3876_v3, %v3589_v62  ;;  %v18045_v19 = vrot.slane %v13915_v41, 6  ;;  %v18046_v60 = vrot.slane %v13820_v48, 6  ;;  %v918_v49 = vmax.f32 %v694_v43, 0.0 }
 0x40c   :  { %v4376_v52 = vsel %vm4309_vm5, %v4373_v63, %v18044_v39  ;;  %v4590_v3 = vadd.f32 %v4374_v36, %v4088_v25  ;;  %v916_v53 = vmax.f32 %v686_v8, 0.0  ;;  %v18051_v38 = vrot.slane %v13933_v21, 2 }
 0x40d   :  { %v4876_v6 = vsel %vm4811_vm6, %v18045_v19, %v4875_v1  ;;  %v4878_v40 = vsel %vm4811_vm6, %v4875_v1, %v18046_v60  ;;  %v4591_v32 = vadd.f32 %v4376_v52, %v4089_v16  ;;  %v14108_v46 = vadd.f32 %v4378_v45, %v4090_v33 }
 0x40e   :  { %v14111_v5 = vmul.f32 %v17517_v55, %v918_v49  ;;  %v14114_v20 = vmul.f32 %v17520_v54, %v918_v49  ;;  %v14117_v41 = vmul.f32 %v7916_v44, %v918_v49  ;;  %v5092_v48 = vadd.f32 %v4876_v6, %v4590_v3 }
 0x40f   :  { %18047 = vst [vmem:[#allocation121_spill] sm:$0xff] %v14108_v46  ;;  %v5093_v27 = vadd.f32 %v4878_v40, %v4591_v32  ;;  %v14120_v56 = vmul.f32 %v17521_v47, %v918_v49  ;;  %v14123_v9 = vmul.f32 %v17628_v14, %v918_v49  ;;  %v14126_v45 = vmul.f32 %v7894_v34, %v918_v49 }
 0x410   :  { %v16291_v4 = vrot.slane %v14111_v5, 1  ;;  %v16295_v62 = vrot.slane %v14114_v20, 2  ;;  %v14131_v63 = vmul.f32 %v7929_v58, %v918_v49  ;;  %v5179_v1 = vadd.f32 %v16658_v61, %v5092_v48 }
 0x411   :  { %v14135_v57 = vadd.f32 %v16658_v61, %v5093_v27  ;;  %v16297_v37 = vrot.slane %v14117_v41, 2  ;;  %v14142_v43 = vmul.f32 %v7933_v29, %v918_v49  ;;  %v14145_v17 = vmul.f32 %v7947_v0, %v918_v49 }
 0x412   :  { %v5262_v8 = vmax.f32 %v5179_v1, 0.0  ;;  %v14148_v25 = vmul.f32 %v7894_v34, %v916_v53  ;;  %v14151_v16 = vmul.f32 %v17517_v55, %v916_v53  ;;  %v14154_v33 = vmul.f32 %v17520_v54, %v916_v53 }
 0x413   :  { %18048 = vst [vmem:[#allocation55_spill] sm:$0xff] %v14135_v57  ;;  %18049 = vst [vmem:[#allocation5_spill] sm:$0xff] %v14145_v17  ;;  %v14159_v39 = vmul.f32 %v7916_v44, %v916_v53  ;;  %v14162_v52 = vmul.f32 %v17521_v47, %v916_v53  ;;  %v14168_v40 = vmul.f32 %v17628_v14, %v916_v53  ;;  %v18050_v27 = vrot.slane %v13926_v30, 1 }
 0x414   :  { %v16289_v6 = vrot.slane %v14151_v16, 1  ;;  %v16282_v60 = vrot.slane %v14154_v33, 2  ;;  %v14173_v32 = vmul.f32 %v7929_v58, %v916_v53  ;;  %v14176_v48 = vmul.f32 %v7933_v29, %v916_v53 }
 0x415   :  { %v16284_v49 = vrot.slane %v14159_v39, 2  ;;  %v16283_v3 = vrot.slane %v14162_v52, 3  ;;  %v16286_v19 = vrot.slane %v14168_v40, 4  ;;  %v14190_v36 = vmul.f32 %v7947_v0, %v916_v53 }
 0x416   :  { %v1385_v1 = vsel %vm1304_vm3, %v18050_v27, %v16289_v6  ;;  %v1886_v35 = vsel %vm487_vm0, %v18051_v38, %v16282_v60  ;;  %v18052_v7 = vrot.slane %v13936_v23, 2  ;;  %v18053_v27 = vrot.slane %v13945_v15, 3 }
 0x417   :  { %v1592_v10 = vadd.f32 %v1385_v1, %v13996_v11  ;;  %v16285_v38 = vrot.slane %v14173_v32, 4  ;;  %v18054_v11 = vrot.slane %v13948_v22, 4  ;;  %v16288_v23 = vrot.slane %v14176_v48, 5 }
 0x418   :  { %v2383_v30 = vsel %vm487_vm0, %v18052_v7, %v16284_v49  ;;  %v2881_v21 = vsel %vm2806_vm2, %v18053_v27, %v16283_v3  ;;  %v16287_v7 = vrot.slane %v14190_v36, 6  ;;  %v18055_v15 = vrot.slane %v13953_v2, 4  ;;  %v18057_v3 = vld [vmem:[#allocation86_spill] sm:$0xff] }
 0x419   :  { %v2592_v60 = vadd.f32 %v2383_v30, %v14064_v59  ;;  %v3381_v53 = vsel %vm3306_vm4, %v18054_v11, %v16286_v19  ;;  %v14212_v1 = vadd.f32 %v1886_v35, %v1592_v10  ;;  %v18056_v59 = vld [vmem:[#allocation152_spill] sm:$0xff]  ;;  %v689_v22 = vadd.f32 %v18057_v3, %v17929_v42 }
 0x41a   :  { %v3878_v27 = vsel %vm3306_vm4, %v18055_v15, %v16285_v38  ;;  %v697_v30 = vadd.f32 %v18056_v59, %v17929_v42  ;;  %v18058_v10 = vrot.slane %v13965_v24, 5  ;;  %v18059_v2 = vrot.slane %v14001_v28, 6  ;;  %v18060_v38 = vld [vmem:[#allocation16_spill] sm:$0xff]  ;;  %v18063_v28 = vld [vmem:[#allocation117_spill] sm:$0xff] }
 0x41b   :  { %v3090_v49 = vadd.f32 %v2881_v21, %v2592_v60  ;;  %v4091_v11 = vadd.f32 %v3878_v27, %v14082_v26  ;;  %v14235_v59 = vmul.f32 %v18060_v38, %v5262_v8  ;;  %v14237_v3 = vmax.f32 %v689_v22, 0.0  ;;  %v18062_v21 = vld [vmem:[#allocation74_spill] sm:$0xff] }
 0x41c   :  { %v4380_v35 = vsel %vm4309_vm5, %v18058_v10, %v16288_v23  ;;  %v4882_v15 = vsel %vm4811_vm6, %v18059_v2, %v16287_v7  ;;  %v919_v19 = vmax.f32 %v697_v30, 0.0  ;;  %v3089_v26 = vadd.f32 %v13984_v51, %v14074_v13  ;;  %v18064_v51 = vld [vmem:[#allocation36_spill] sm:$0xff] }
 0x41d   :  { %18061 = vst [vmem:[#allocation134_spill] sm:$0xff] %v14235_v59  ;;  %v14241_v60 = vadd.f32 %v3381_v53, %v3090_v49  ;;  %v4593_v24 = vadd.f32 %v4380_v35, %v4091_v11  ;;  %v14245_v27 = vadd.f32 %v18062_v21, %v17929_v42  ;;  %v14249_v10 = vadd.f32 %v18063_v28, %v17929_v42 }
 0x41e   :  { %v14252_v8 = vmul.f32 %v17517_v55, %v919_v19  ;;  %v14255_v38 = vmul.f32 %v17520_v54, %v919_v19  ;;  %v14258_v30 = vmul.f32 %v7916_v44, %v919_v19  ;;  %v14262_v13 = vadd.f32 %v18064_v51, %v17929_v42 }
 0x41f   :  { %v14264_v49 = vadd.f32 %v4882_v15, %v4593_v24  ;;  %v14267_v53 = vmul.f32 %v17521_v47, %v919_v19  ;;  %v14270_v22 = vmul.f32 %v17628_v14, %v919_v19  ;;  %v14273_v11 = vmul.f32 %v7929_v58, %v919_v19 }
 0x420   :  { %v16290_v35 = vrot.slane %v14252_v8, 1  ;;  %v16294_v2 = vrot.slane %v14255_v38, 2  ;;  %v16296_v21 = vrot.slane %v14258_v30, 2  ;;  %v14279_v28 = vmul.f32 %v7933_v29, %v919_v19 }
 0x421   :  { %18065 = vst [vmem:[#allocation27_spill] sm:$0xff] %v14264_v49  ;;  %v14282_v15 = vmul.f32 %v7894_v34, %v919_v19  ;;  %v16298_v24 = vrot.slane %v14267_v53, 3  ;;  %v18069_v50 = vrot.slane %v14270_v22, 4  ;;  %v3591_v57 = vadd.f32 %v13991_v31, %v3089_v26 }
 0x422   :  { %18066 = vst [vmem:[#allocation62_spill] sm:$0xff] %v14279_v28  ;;  %v1391_v23 = vsel %vm1304_vm3, %v16291_v4, %v16290_v35  ;;  %v1892_v6 = vsel %vm487_vm0, %v16295_v62, %v16294_v2  ;;  %v2389_v51 = vsel %vm487_vm0, %v16297_v37, %v16296_v21  ;;  %v16299_v7 = vrot.slane %v14279_v28, 5 }
 0x423   :  { %v1595_v12 = vadd.f32 %v1391_v23, %v14126_v45  ;;  %v18067_v35 = vrot.slane %v14120_v56, 3  ;;  %v18070_v2 = vrot.slane %v14123_v9, 4  ;;  %v18072_v21 = vrot.slane %v14273_v11, 4 }
 0x424   :  { %v18073_v37 = vrot.slane %v14131_v63, 4  ;;  %v18075_v23 = vrot.slane %v14142_v43, 5  ;;  %v3678_v49 = vmul.f32 %v7929_v58, %v14237_v3  ;;  %v18078_v28 = vrot.slane %v14151_v16, 1 }
 0x425   :  { %v14309_v4 = vsel %vm2806_vm2, %v18067_v35, %v16298_v24  ;;  %v14316_v62 = vsel %vm3306_vm4, %v18070_v2, %v18069_v50  ;;  %v14333_v24 = vmul.f32 %v7947_v0, %v919_v19  ;;  %v1009_v50 = vmul.f32 %v7894_v34, %v14237_v3 }
 0x426   :  { %18068 = vst [vmem:[#allocation146_spill] sm:$0xff] %v14309_v4  ;;  %18071 = vst [vmem:[#allocation10_spill] sm:$0xff] %v14316_v62  ;;  %v14323_v45 = vsel %vm3306_vm4, %v18073_v37, %v18072_v21  ;;  %v14330_v35 = vsel %vm4309_vm5, %v18075_v23, %v16299_v7  ;;  %v1179_v2 = vmul.f32 %v17517_v55, %v14237_v3  ;;  %v3879_v18 = vrot.slane %v3678_v49, 4 }
 0x427   :  { %18074 = vst [vmem:[#allocation6_spill] sm:$0xff] %v14323_v45  ;;  %18076 = vst [vmem:[#allocation137_spill] sm:$0xff] %v14330_v35  ;;  %v14339_v59 = vadd.f32 %v1892_v6, %v1595_v12  ;;  %v1681_v37 = vmul.f32 %v17520_v54, %v14237_v3  ;;  %v2180_v21 = vmul.f32 %v7916_v44, %v14237_v3  ;;  %v18082_v16 = vrot.slane %v14159_v39, 2 }
 0x428   :  { %18077 = vst [vmem:[#allocation111_spill] sm:$0xff] %v14333_v24  ;;  %v2680_v23 = vmul.f32 %v17521_v47, %v14237_v3  ;;  %v1386_v7 = vrot.slane %v1179_v2, 1  ;;  %v3178_v19 = vmul.f32 %v17628_v14, %v14237_v3  ;;  %v4179_v35 = vmul.f32 %v7933_v29, %v14237_v3 }
 0x429   :  { %v1887_v12 = vrot.slane %v1681_v37, 2  ;;  %v2384_v6 = vrot.slane %v2180_v21, 2  ;;  %v18079_v2 = vrot.slane %v14111_v5, 1  ;;  %v18080_v37 = vrot.slane %v14154_v33, 2 }
 0x42a   :  { %v2882_v46 = vrot.slane %v2680_v23, 3  ;;  %v1387_v45 = vsel %vm1304_vm3, %v18078_v28, %v1386_v7  ;;  %v3382_v4 = vrot.slane %v3178_v19, 4  ;;  %v18081_v23 = vrot.slane %v14114_v20, 2 }
 0x42b   :  { %v1389_v62 = vsel %vm1304_vm3, %v1386_v7, %v18079_v2  ;;  %v1593_v31 = vadd.f32 %v1387_v45, %v14148_v25  ;;  %v1888_v21 = vsel %vm487_vm0, %v18080_v37, %v1887_v12  ;;  %v2385_v28 = vsel %vm487_vm0, %v18082_v16, %v2384_v6 }
 0x42c   :  { %v1594_v26 = vadd.f32 %v1389_v62, %v1009_v50  ;;  %v1890_v61 = vsel %vm487_vm0, %v1887_v12, %v18081_v23  ;;  %v18083_v5 = vrot.slane %v14117_v41, 2  ;;  %v18084_v49 = vrot.slane %v14162_v52, 3  ;;  %v18086_v50 = vld [vmem:[#allocation142_spill] sm:$0xff] }
 0x42d   :  { %v18085_v25 = vrot.slane %v14120_v56, 3  ;;  %v2094_v45 = vadd.f32 %v1888_v21, %v1593_v31  ;;  %v2593_v19 = vadd.f32 %v2385_v28, %v18086_v50  ;;  %v18087_v12 = vrot.slane %v14168_v40, 4 }
 0x42e   :  { %v2387_v7 = vsel %vm487_vm0, %v2384_v6, %v18083_v5  ;;  %v2883_v62 = vsel %vm2806_vm2, %v18084_v49, %v2882_v46  ;;  %v14379_v20 = vadd.f32 %v1890_v61, %v1594_v26  ;;  %v18088_v6 = vrot.slane %v14123_v9, 4 }
 0x42f   :  { %v2885_v33 = vsel %vm2806_vm2, %v2882_v46, %v18085_v25  ;;  %v2594_v39 = vadd.f32 %v2387_v7, %v14212_v1  ;;  %v3383_v41 = vsel %vm3306_vm4, %v18087_v12, %v3382_v4  ;;  %v18089_v2 = vrot.slane %v14173_v32, 4 }
 0x430   :  { %v3385_v52 = vsel %vm3306_vm4, %v3382_v4, %v18088_v6  ;;  %v18090_v46 = vrot.slane %v14131_v63, 4  ;;  %v14395_v31 = vadd.f32 %v2389_v51, %v2094_v45  ;;  %v3091_v26 = vadd.f32 %v2883_v62, %v2593_v19 }
 0x431   :  { %v3880_v56 = vsel %vm3306_vm4, %v18089_v2, %v3879_v18  ;;  %v3092_v1 = vadd.f32 %v2885_v33, %v2594_v39  ;;  %v4381_v21 = vrot.slane %v4179_v35, 5  ;;  %v4681_v9 = vmul.f32 %v7947_v0, %v14237_v3 }
 0x432   :  { %v3882_v61 = vsel %vm3306_vm4, %v3879_v18, %v18090_v46  ;;  %18091 = vst [vmem:[#allocation42_spill] sm:$0xff] %v14395_v31  ;;  %v4092_v37 = vadd.f32 %v3880_v56, %v3591_v57  ;;  %v922_v4 = vmax.f32 %v14245_v27, 0.0  ;;  %v14402_v23 = vadd.f32 %v3383_v41, %v3091_v26 }
 0x433   :  { %v4093_v40 = vadd.f32 %v3882_v61, %v14241_v60  ;;  %v14404_v63 = vadd.f32 %v3385_v52, %v3092_v1  ;;  %v920_v18 = vmax.f32 %v14249_v10, 0.0  ;;  %v18094_v51 = vrot.slane %v14176_v48, 5 }
 0x434   :  { %18092 = vst [vmem:[#allocation50_spill] sm:$0xff] %v14402_v23  ;;  %v18095_v60 = vrot.slane %v14142_v43, 5  ;;  %v4883_v16 = vrot.slane %v4681_v9, 6  ;;  %v14414_v3 = vmax.f32 %v14262_v13, 0.0  ;;  %v14419_v5 = vmul.f32 %v17517_v55, %v922_v4 }
 0x435   :  { %18093 = vst [vmem:[#allocation112_spill] sm:$0xff] %v14404_v63  ;;  %v4382_v57 = vsel %vm4309_vm5, %v18094_v51, %v4381_v21  ;;  %v14422_v10 = vmul.f32 %v17520_v54, %v922_v4  ;;  %v18097_v48 = vrot.slane %v14190_v36, 6  ;;  %v18098_v43 = vrot.slane %v14145_v17, 6  ;;  %v18127_v17 = vld [vmem:[#allocation105_spill] sm:$0xff] }
 0x436   :  { %v4384_v35 = vsel %vm4309_vm5, %v4381_v21, %v18095_v60  ;;  %v4594_v27 = vadd.f32 %v4382_v57, %v4092_v37  ;;  %v14433_v13 = vmul.f32 %v7916_v44, %v922_v4  ;;  %v14436_v62 = vmul.f32 %v17521_v47, %v922_v4 }
 0x437   :  { %v14416_v28 = vadd.f32 %v4384_v35, %v4093_v40  ;;  %v4884_v7 = vsel %vm4811_vm6, %v18097_v48, %v4883_v16  ;;  %v14430_v49 = vsel %vm4811_vm6, %v4883_v16, %v18098_v43  ;;  %v1014_v33 = vmul.f32 %v7894_v34, %v922_v4 }
 0x438   :  { %18099 = vst [vmem:[#allocation7_spill] sm:$0xff] %v14430_v49  ;;  %v14438_v25 = vadd.f32 %v4884_v7, %v4594_v27  ;;  %v16312_v45 = vrot.slane %v14419_v5, 1  ;;  %v14443_v36 = vmul.f32 %v17628_v14, %v922_v4  ;;  %v16311_v50 = vrot.slane %v14422_v10, 2 }
 0x439   :  { %18096 = vst [vmem:[#allocation18_spill] sm:$0xff] %v14416_v28  ;;  %v16314_v19 = vrot.slane %v14433_v13, 2  ;;  %v14448_v39 = vmul.f32 %v7929_v58, %v922_v4  ;;  %v14451_v12 = vmul.f32 %v7933_v29, %v922_v4  ;;  %v16316_v41 = vrot.slane %v14436_v62, 3  ;;  %v18125_v28 = vld [vmem:[#allocation51_spill] sm:$0xff] }
 0x43a   :  { %18100 = vst [vmem:[#allocation125_spill] sm:$0xff] %v14438_v25  ;;  %v14456_v52 = vmul.f32 %v7947_v0, %v922_v4  ;;  %v14459_v2 = vmul.f32 %v17517_v55, %v920_v18  ;;  %v14463_v46 = vmul.f32 %v7894_v34, %v920_v18  ;;  %v14466_v61 = vmul.f32 %v17520_v54, %v920_v18 }
 0x43b   :  { %18101 = vst [vmem:[#allocation52_spill] sm:$0xff] %v14448_v39  ;;  %18102 = vst [vmem:[#allocation140_spill] sm:$0xff] %v14451_v12  ;;  %v14469_v26 = vmul.f32 %v7916_v44, %v920_v18  ;;  %v14474_v40 = vmul.f32 %v17521_v47, %v920_v18  ;;  %v14477_v21 = vmul.f32 %v17628_v14, %v920_v18  ;;  %v18106_v60 = vrot.slane %v14252_v8, 1 }
 0x43c   :  { %18103 = vst [vmem:[#allocation46_spill] sm:$0xff] %v14456_v52  ;;  %v16303_v37 = vrot.slane %v14459_v2, 1  ;;  %v16308_v9 = vrot.slane %v14466_v61, 2  ;;  %v14482_v51 = vmul.f32 %v7929_v58, %v920_v18  ;;  %v14485_v57 = vmul.f32 %v7933_v29, %v920_v18 }
 0x43d   :  { %v16307_v4 = vrot.slane %v14469_v26, 2  ;;  %v16306_v16 = vrot.slane %v14474_v40, 3  ;;  %v16305_v27 = vrot.slane %v14477_v21, 4  ;;  %v14495_v48 = vmul.f32 %v7947_v0, %v920_v18 }
 0x43e   :  { %18104 = vst [vmem:[#allocation131_spill] sm:$0xff] %v14482_v51  ;;  %18105 = vst [vmem:[#allocation156_spill] sm:$0xff] %v14485_v57  ;;  %v1393_v35 = vsel %vm1304_vm3, %v18106_v60, %v16303_v37  ;;  %v18108_v43 = vrot.slane %v14255_v38, 2  ;;  %v18109_v8 = vrot.slane %v14258_v30, 2  ;;  %v16304_v37 = vrot.slane %v14482_v51, 4 }
 0x43f   :  { %18107 = vst [vmem:[#allocation148_spill] sm:$0xff] %v14495_v48  ;;  %v1596_v7 = vadd.f32 %v1393_v35, %v14282_v15  ;;  %v18110_v15 = vrot.slane %v14267_v53, 3  ;;  %v18111_v35 = vrot.slane %v14270_v22, 4  ;;  %v14538_v22 = vmul.f32 %v17517_v55, %v14414_v3 }
 0x440   :  { %v1894_v32 = vsel %vm487_vm0, %v18108_v43, %v16308_v9  ;;  %v2391_v60 = vsel %vm487_vm0, %v18109_v8, %v16307_v4  ;;  %v18113_v8 = vrot.slane %v14273_v11, 4  ;;  %v14546_v11 = vmul.f32 %v7916_v44, %v14414_v3 }
 0x441   :  { %v2596_v18 = vadd.f32 %v2391_v60, %v14379_v20  ;;  %v2889_v38 = vsel %vm2806_vm2, %v18110_v15, %v16306_v16  ;;  %v14521_v30 = vsel %vm3306_vm4, %v18111_v35, %v16305_v27  ;;  %v14523_v43 = vadd.f32 %v1894_v32, %v1596_v7 }
 0x442   :  { %18112 = vst [vmem:[#allocation59_spill] sm:$0xff] %v14521_v30  ;;  %v14530_v20 = vsel %vm3306_vm4, %v18113_v8, %v16304_v37  ;;  %v14542_v32 = vmul.f32 %v17520_v54, %v14414_v3  ;;  %v14550_v7 = vmul.f32 %v17521_v47, %v14414_v3  ;;  %v14562_v35 = vmul.f32 %v7933_v29, %v14414_v3 }
 0x443   :  { %18114 = vst [vmem:[#allocation113_spill] sm:$0xff] %v14530_v20  ;;  %v14534_v15 = vadd.f32 %v2889_v38, %v2596_v18  ;;  %v14554_v18 = vmul.f32 %v17628_v14, %v14414_v3  ;;  %v14558_v38 = vmul.f32 %v7929_v58, %v14414_v3  ;;  %v16309_v8 = vrot.slane %v14538_v22, 1 }
 0x444   :  { %v16310_v60 = vrot.slane %v14542_v32, 2  ;;  %v16313_v53 = vrot.slane %v14546_v11, 2  ;;  %v14569_v37 = vmul.f32 %v7947_v0, %v14414_v3  ;;  %v16315_v27 = vrot.slane %v14550_v7, 3 }
 0x445   :  { %18115 = vst [vmem:[#allocation130_spill] sm:$0xff] %v14534_v15  ;;  %v16317_v16 = vrot.slane %v14554_v18, 4  ;;  %v1399_v1 = vsel %vm1304_vm3, %v16312_v45, %v16309_v8  ;;  %v18117_v45 = vrot.slane %v14558_v38, 4  ;;  %v718_v48 = vadd.f32 %v18125_v28, %v17929_v42 }
 0x446   :  { %v1900_v56 = vsel %vm487_vm0, %v16311_v50, %v16310_v60  ;;  %v2397_v4 = vsel %vm487_vm0, %v16314_v19, %v16313_v53  ;;  %v16322_v9 = vrot.slane %v14569_v37, 6  ;;  %v1599_v6 = vadd.f32 %v1399_v1, %v1014_v33 }
 0x447   :  { %v14596_v8 = vsel %vm2806_vm2, %v16316_v41, %v16315_v27  ;;  %v18116_v60 = vrot.slane %v14443_v36, 4  ;;  %v18118_v53 = vrot.slane %v14448_v39, 4  ;;  %v18119_v1 = vrot.slane %v14562_v35, 5 }
 0x448   :  { %v18120_v19 = vrot.slane %v14451_v12, 5  ;;  %v18121_v41 = vrot.slane %v14456_v52, 6  ;;  %v14630_v49 = vadd.f32 %v1900_v56, %v1599_v6  ;;  %v721_v52 = vadd.f32 %v18127_v17, %v17929_v42 }
 0x449   :  { %v14603_v50 = vsel %vm3306_vm4, %v18116_v60, %v16317_v16  ;;  %v14610_v33 = vsel %vm3306_vm4, %v18118_v53, %v18117_v45  ;;  %v18123_v16 = vld [vmem:[#allocation136_spill] sm:$0xff]  ;;  %v18124_v45 = vld [vmem:[#allocation63_spill] sm:$0xff]  ;;  %v14646_v6 = vmax.f32 %v718_v48, 0.0  ;;  %v18134_v30 = vrot.slane %v14459_v2, 1 }
 0x44a   :  { %v14617_v27 = vsel %vm4309_vm5, %v18120_v19, %v18119_v1  ;;  %v14624_v60 = vsel %vm4811_vm6, %v18121_v41, %v16322_v9  ;;  %v705_v25 = vadd.f32 %v18123_v16, %v17929_v42  ;;  %v726_v53 = vadd.f32 %v18124_v45, %v17929_v42  ;;  %v18126_v19 = vld [vmem:[#allocation141_spill] sm:$0xff] }
 0x44b   :  { %18122 = vst [vmem:[#allocation83_spill] sm:$0xff] %v14624_v60  ;;  %v729_v1 = vadd.f32 %v18126_v19, %v17929_v42  ;;  %v14640_v41 = vmul.f32 %v7894_v34, %v14414_v3  ;;  %v18128_v60 = vld [vmem:[#allocation40_spill] sm:$0xff]  ;;  %v14650_v28 = vmax.f32 %v721_v52, 0.0  ;;  %v18129_v19 = vld [vmem:[#allocation58_spill] sm:$0xff]  ;;  %v18135_v31 = vrot.slane %v14419_v5, 1 }
 0x44c   :  { %v921_v9 = vmax.f32 %v705_v25, 0.0  ;;  %v926_v16 = vmax.f32 %v726_v53, 0.0  ;;  %v14644_v45 = vadd.f32 %v18128_v60, %v17929_v42  ;;  %v14654_v24 = vadd.f32 %v18129_v19, %v17929_v42  ;;  %v18130_v53 = vld [vmem:[#allocation138_spill] sm:$0xff] }
 0x44d   :  { %v14648_v56 = vmax.f32 %v729_v1, 0.0  ;;  %v14661_v60 = vadd.f32 %v18130_v53, %v17929_v42 }
 0x44e   :  { %v1183_v17 = vmul.f32 %v17517_v55, %v921_v9  ;;  %v1685_v3 = vmul.f32 %v17520_v54, %v921_v9  ;;  %v2184_v25 = vmul.f32 %v7916_v44, %v921_v9  ;;  %v1013_v48 = vmul.f32 %v7894_v34, %v921_v9 }
 0x44f   :  { %v2684_v1 = vmul.f32 %v17521_v47, %v921_v9  ;;  %v3182_v52 = vmul.f32 %v17628_v14, %v921_v9  ;;  %v14667_v12 = vmul.f32 %v7929_v58, %v921_v9  ;;  %v14670_v63 = vmul.f32 %v7933_v29, %v921_v9 }
 0x450   :  { %v1394_v19 = vrot.slane %v1183_v17, 1  ;;  %v1895_v57 = vrot.slane %v1685_v3, 2  ;;  %v2392_v20 = vrot.slane %v2184_v25, 2  ;;  %v14674_v51 = vmul.f32 %v7947_v0, %v921_v9 }
 0x451   :  { %18131 = vst [vmem:[#allocation114_spill] sm:$0xff] %v14667_v12  ;;  %18132 = vst [vmem:[#allocation47_spill] sm:$0xff] %v14670_v63  ;;  %v2890_v23 = vrot.slane %v2684_v1, 3  ;;  %v3390_v39 = vrot.slane %v3182_v52, 4  ;;  %v18136_v3 = vrot.slane %v14466_v61, 2  ;;  %v18137_v1 = vrot.slane %v14422_v10, 2 }
 0x452   :  { %18133 = vst [vmem:[#allocation149_spill] sm:$0xff] %v14674_v51  ;;  %v1395_v15 = vsel %vm1304_vm3, %v18134_v30, %v1394_v19  ;;  %v1397_v17 = vsel %vm1304_vm3, %v1394_v19, %v18135_v31  ;;  %v18138_v12 = vrot.slane %v14469_v26, 2  ;;  %v18139_v30 = vrot.slane %v14433_v13, 2 }
 0x453   :  { %v1896_v25 = vsel %vm487_vm0, %v18136_v3, %v1895_v57  ;;  %v1898_v52 = vsel %vm487_vm0, %v1895_v57, %v18137_v1  ;;  %v1597_v53 = vadd.f32 %v1395_v15, %v14463_v46  ;;  %v1598_v9 = vadd.f32 %v1397_v17, %v1013_v48 }
 0x454   :  { %v2393_v2 = vsel %vm487_vm0, %v18138_v12, %v2392_v20  ;;  %v2395_v5 = vsel %vm487_vm0, %v2392_v20, %v18139_v30  ;;  %v18140_v19 = vrot.slane %v14474_v40, 3  ;;  %v18141_v57 = vrot.slane %v14436_v62, 3 }
 0x455   :  { %v2597_v31 = vadd.f32 %v2393_v2, %v14339_v59  ;;  %v2598_v61 = vadd.f32 %v2395_v5, %v14523_v43  ;;  %v2098_v15 = vadd.f32 %v1896_v25, %v1597_v53  ;;  %v2099_v26 = vadd.f32 %v1898_v52, %v1598_v9 }
 0x456   :  { %v2891_v10 = vsel %vm2806_vm2, %v18140_v19, %v2890_v23  ;;  %v2893_v46 = vsel %vm2806_vm2, %v2890_v23, %v18141_v57  ;;  %v18142_v12 = vrot.slane %v14477_v21, 4  ;;  %v18143_v20 = vrot.slane %v14443_v36, 4 }
 0x457   :  { %v3095_v48 = vadd.f32 %v2891_v10, %v2597_v31  ;;  %v3096_v43 = vadd.f32 %v2893_v46, %v2598_v61  ;;  %v14711_v3 = vadd.f32 %v2397_v4, %v2098_v15  ;;  %v14714_v23 = vmul.f32 %v17517_v55, %v926_v16 }
 0x458   :  { %v3391_v13 = vsel %vm3306_vm4, %v18142_v12, %v3390_v39  ;;  %v3393_v59 = vsel %vm3306_vm4, %v3390_v39, %v18143_v20  ;;  %v14717_v62 = vmul.f32 %v17520_v54, %v926_v16  ;;  %v14720_v21 = vmul.f32 %v7916_v44, %v926_v16 }
 0x459   :  { %v3597_v36 = vadd.f32 %v3391_v13, %v3095_v48  ;;  %v3598_v53 = vadd.f32 %v3393_v59, %v3096_v43  ;;  %v14723_v39 = vmul.f32 %v17521_v47, %v926_v16  ;;  %v14726_v25 = vmul.f32 %v17628_v14, %v926_v16 }
 0x45a   :  { %v1018_v4 = vmul.f32 %v7894_v34, %v926_v16  ;;  %v16343_v1 = vrot.slane %v14714_v23, 1  ;;  %v14732_v9 = vmul.f32 %v7929_v58, %v926_v16  ;;  %v14738_v31 = vmul.f32 %v7933_v29, %v926_v16 }
 0x45b   :  { %v4098_v2 = vadd.f32 %v14610_v33, %v3597_v36  ;;  %v14743_v10 = vmul.f32 %v7947_v0, %v926_v16  ;;  %v14747_v57 = vmul.f32 %v17517_v55, %v14646_v6  ;;  %v14754_v46 = vmul.f32 %v7894_v34, %v14646_v6 }
 0x45c   :  { %v14758_v15 = vmul.f32 %v17520_v54, %v14646_v6  ;;  %v14762_v12 = vmul.f32 %v7916_v44, %v14646_v6  ;;  %v14772_v20 = vmul.f32 %v17628_v14, %v14646_v6  ;;  %v14778_v43 = vmul.f32 %v7929_v58, %v14646_v6 }
 0x45d   :  { %v14750_v33 = vadd.f32 %v14617_v27, %v4098_v2  ;;  %v16332_v13 = vrot.slane %v14747_v57, 1  ;;  %v14768_v27 = vmul.f32 %v17521_v47, %v14646_v6  ;;  %v14782_v36 = vmul.f32 %v7933_v29, %v14646_v6 }
 0x45e   :  { %v16340_v59 = vrot.slane %v14758_v15, 2  ;;  %v16338_v48 = vrot.slane %v14762_v12, 2  ;;  %v18145_v2 = vrot.slane %v14538_v22, 1  ;;  %v16334_v16 = vrot.slane %v14772_v20, 4 }
 0x45f   :  { %18144 = vst [vmem:[#allocation153_spill] sm:$0xff] %v14750_v33  ;;  %v16333_v40 = vrot.slane %v14768_v27, 3  ;;  %v14793_v19 = vmul.f32 %v7947_v0, %v14646_v6  ;;  %v18146_v5 = vrot.slane %v14542_v32, 2  ;;  %v18147_v22 = vrot.slane %v14546_v11, 2 }
 0x460   :  { %v1401_v17 = vsel %vm1304_vm3, %v18145_v2, %v16332_v13  ;;  %v16337_v13 = vrot.slane %v14778_v43, 4  ;;  %v18148_v6 = vrot.slane %v14550_v7, 3  ;;  %v18149_v32 = vrot.slane %v14554_v18, 4 }
 0x461   :  { %v1600_v61 = vadd.f32 %v1401_v17, %v14640_v41  ;;  %v1902_v30 = vsel %vm487_vm0, %v18146_v5, %v16340_v59  ;;  %v2399_v2 = vsel %vm487_vm0, %v18147_v22, %v16338_v48  ;;  %v16336_v5 = vrot.slane %v14782_v36, 5 }
 0x462   :  { %v2600_v52 = vadd.f32 %v2399_v2, %v2099_v26  ;;  %v2897_v41 = vsel %vm2806_vm2, %v18148_v6, %v16333_v40  ;;  %v3397_v17 = vsel %vm3306_vm4, %v18149_v32, %v16334_v16  ;;  %v18150_v26 = vrot.slane %v14558_v38, 4 }
 0x463   :  { %v2101_v22 = vadd.f32 %v1902_v30, %v1600_v61  ;;  %v16335_v7 = vrot.slane %v14793_v19, 6  ;;  %v18151_v18 = vrot.slane %v14562_v35, 5  ;;  %v14832_v16 = vmul.f32 %v17517_v55, %v14648_v56 }
 0x464   :  { %v3894_v2 = vsel %vm3306_vm4, %v18150_v26, %v16337_v13  ;;  %v3098_v6 = vadd.f32 %v2897_v41, %v2600_v52  ;;  %v18152_v38 = vrot.slane %v14569_v37, 6  ;;  %v14841_v52 = vmul.f32 %v17520_v54, %v14648_v56 }
 0x465   :  { %v4099_v40 = vadd.f32 %v3894_v2, %v3598_v53  ;;  %v4396_v32 = vsel %vm4309_vm5, %v18151_v18, %v16336_v5  ;;  %v14845_v53 = vmul.f32 %v7916_v44, %v14648_v56  ;;  %v14849_v35 = vmul.f32 %v17521_v47, %v14648_v56 }
 0x466   :  { %v4898_v30 = vsel %vm4811_vm6, %v18152_v38, %v16335_v7  ;;  %v14851_v61 = vadd.f32 %v3397_v17, %v3098_v6  ;;  %v16339_v26 = vrot.slane %v14832_v16, 1  ;;  %v14856_v37 = vmul.f32 %v17628_v14, %v14648_v56 }
 0x467   :  { %18153 = vst [vmem:[#allocation48_spill] sm:$0xff] %v14849_v35  ;;  %v4601_v41 = vadd.f32 %v4396_v32, %v4099_v40  ;;  %v16342_v2 = vrot.slane %v14841_v52, 2  ;;  %v16341_v18 = vrot.slane %v14845_v53, 2  ;;  %v16344_v38 = vrot.slane %v14849_v35, 3 }
 0x468   :  { %18154 = vst [vmem:[#allocation70_spill] sm:$0xff] %v14856_v37  ;;  %v14863_v7 = vmul.f32 %v7929_v58, %v14648_v56  ;;  %v1407_v40 = vsel %vm1304_vm3, %v16343_v1, %v16339_v26  ;;  %v16345_v17 = vrot.slane %v14856_v37, 4  ;;  %v14873_v6 = vmul.f32 %v7933_v29, %v14648_v56 }
 0x469   :  { %v5103_v5 = vadd.f32 %v4898_v30, %v4601_v41  ;;  %v1603_v32 = vadd.f32 %v1407_v40, %v1018_v4  ;;  %v18157_v13 = vrot.slane %v14717_v62, 2  ;;  %v18158_v30 = vrot.slane %v14720_v21, 2 }
 0x46a   :  { %18155 = vst [vmem:[#allocation76_spill] sm:$0xff] %v14863_v7  ;;  %18156 = vst [vmem:[#allocation38_spill] sm:$0xff] %v14873_v6  ;;  %v18159_v26 = vrot.slane %v14723_v39, 3  ;;  %v14894_v4 = vmul.f32 %v7894_v34, %v14648_v56  ;;  %v1187_v11 = vmul.f32 %v17517_v55, %v14650_v28  ;;  %v2188_v63 = vmul.f32 %v7916_v44, %v14650_v28 }
 0x46b   :  { %v1908_v48 = vsel %vm487_vm0, %v18157_v13, %v16342_v2  ;;  %v2405_v41 = vsel %vm487_vm0, %v18158_v30, %v16341_v18  ;;  %v18161_v13 = vrot.slane %v14726_v25, 4  ;;  %v16350_v30 = vrot.slane %v14863_v7, 4  ;;  %v18163_v2 = vld [vmem:[#allocation49_spill] sm:$0xff] }
 0x46c   :  { %v14890_v59 = vsel %vm2806_vm2, %v18159_v26, %v16344_v38  ;;  %v16351_v18 = vrot.slane %v14873_v6, 5  ;;  %v14906_v1 = vadd.f32 %v18163_v2, %v5103_v5  ;;  %v14908_v26 = vadd.f32 %v1908_v48, %v1603_v32 }
 0x46d   :  { %18160 = vst [vmem:[#allocation128_spill] sm:$0xff] %v14890_v59  ;;  %v14901_v40 = vsel %vm3306_vm4, %v18161_v13, %v16345_v17  ;;  %v14912_v38 = vmul.f32 %v7947_v0, %v14648_v56  ;;  %v18166_v13 = vrot.slane %v14732_v9, 4  ;;  %v18167_v5 = vrot.slane %v14738_v31, 5 }
 0x46e   :  { %18162 = vst [vmem:[#allocation14_spill] sm:$0xff] %v14901_v40  ;;  %18164 = vst [vmem:[#allocation122_spill] sm:$0xff] %v14908_v26  ;;  %v1017_v32 = vmul.f32 %v7894_v34, %v14650_v28  ;;  %v1689_v56 = vmul.f32 %v17520_v54, %v14650_v28  ;;  %v1402_v51 = vrot.slane %v1187_v11, 1  ;;  %v3097_v26 = vadd.f32 %v14596_v8, %v14711_v3 }
 0x46f   :  { %18165 = vst [vmem:[#allocation81_spill] sm:$0xff] %v14912_v38  ;;  %v3900_v17 = vsel %vm3306_vm4, %v18166_v13, %v16350_v30  ;;  %v4402_v48 = vsel %vm4309_vm5, %v18167_v5, %v16351_v18  ;;  %v4903_v33 = vrot.slane %v14912_v38, 6  ;;  %v2688_v13 = vmul.f32 %v17521_v47, %v14650_v28 }
 0x470   :  { %v1903_v30 = vrot.slane %v1689_v56, 2  ;;  %v3186_v5 = vmul.f32 %v17628_v14, %v14650_v28  ;;  %v3686_v18 = vmul.f32 %v7929_v58, %v14650_v28  ;;  %v18168_v11 = vrot.slane %v14743_v10, 6 }
 0x471   :  { %v18169_v59 = vrot.slane %v14747_v57, 1  ;;  %v18170_v56 = vrot.slane %v14714_v23, 1  ;;  %v2400_v3 = vrot.slane %v2188_v63, 2  ;;  %v18171_v37 = vrot.slane %v14758_v15, 2 }
 0x472   :  { %v4904_v40 = vsel %vm4811_vm6, %v18168_v11, %v4903_v33  ;;  %v18172_v35 = vrot.slane %v14717_v62, 2  ;;  %v18173_v57 = vrot.slane %v14762_v12, 2  ;;  %v18174_v23 = vrot.slane %v14720_v21, 2 }
 0x473   :  { %v1403_v42 = vsel %vm1304_vm3, %v18169_v59, %v1402_v51  ;;  %v1405_v8 = vsel %vm1304_vm3, %v1402_v51, %v18170_v56  ;;  %v1904_v38 = vsel %vm487_vm0, %v18171_v37, %v1903_v30  ;;  %v2898_v63 = vrot.slane %v2688_v13, 3 }
 0x474   :  { %v1601_v6 = vadd.f32 %v1403_v42, %v14754_v46  ;;  %v1602_v7 = vadd.f32 %v1405_v8, %v1017_v32  ;;  %v1906_v11 = vsel %vm487_vm0, %v1903_v30, %v18172_v35  ;;  %v2401_v59 = vsel %vm487_vm0, %v18173_v57, %v2400_v3 }
 0x475   :  { %v2403_v51 = vsel %vm487_vm0, %v2400_v3, %v18174_v23  ;;  %v3398_v56 = vrot.slane %v3186_v5, 4  ;;  %v2601_v15 = vadd.f32 %v2401_v59, %v14630_v49  ;;  %v18175_v62 = vrot.slane %v14768_v27, 3 }
 0x476   :  { %v2102_v42 = vadd.f32 %v1904_v38, %v1601_v6  ;;  %v14965_v46 = vadd.f32 %v1906_v11, %v1602_v7  ;;  %v2602_v37 = vadd.f32 %v2403_v51, %v2101_v22  ;;  %v18176_v12 = vrot.slane %v14723_v39, 3 }
 0x477   :  { %v2899_v35 = vsel %vm2806_vm2, %v18175_v62, %v2898_v63  ;;  %v18177_v21 = vrot.slane %v14772_v20, 4  ;;  %v18178_v13 = vrot.slane %v14726_v25, 4  ;;  %v3599_v27 = vadd.f32 %v14603_v50, %v3097_v26 }
 0x478   :  { %v2901_v30 = vsel %vm2806_vm2, %v2898_v63, %v18176_v12  ;;  %v14980_v38 = vadd.f32 %v2405_v41, %v2102_v42  ;;  %v3099_v49 = vadd.f32 %v2899_v35, %v2601_v15  ;;  %v3895_v5 = vrot.slane %v3686_v18, 4 }
 0x479   :  { %v3399_v32 = vsel %vm3306_vm4, %v18177_v21, %v3398_v56  ;;  %v3401_v7 = vsel %vm3306_vm4, %v3398_v56, %v18178_v13  ;;  %v3100_v22 = vadd.f32 %v2901_v30, %v2602_v37  ;;  %v4187_v39 = vmul.f32 %v7933_v29, %v14650_v28 }
 0x47a   :  { %v4689_v20 = vmul.f32 %v7947_v0, %v14650_v28  ;;  %v3601_v8 = vadd.f32 %v3399_v32, %v3099_v49  ;;  %v930_v25 = vmax.f32 %v14644_v45, 0.0  ;;  %v14992_v41 = vmax.f32 %v14654_v24, 0.0 }
 0x47b   :  { %v14988_v3 = vadd.f32 %v3401_v7, %v3100_v22  ;;  %v18179_v11 = vrot.slane %v14778_v43, 4  ;;  %v18180_v18 = vrot.slane %v14732_v9, 4  ;;  %v4397_v57 = vrot.slane %v4187_v39, 5 }
 0x47c   :  { %v4899_v59 = vrot.slane %v4689_v20, 6  ;;  %v4102_v51 = vadd.f32 %v3900_v17, %v3601_v8  ;;  %v15002_v63 = vmax.f32 %v14661_v60, 0.0  ;;  %v18181_v24 = vrot.slane %v14782_v36, 5 }
 0x47d   :  { %v3896_v50 = vsel %vm3306_vm4, %v18179_v11, %v3895_v5  ;;  %v3898_v26 = vsel %vm3306_vm4, %v3895_v5, %v18180_v18  ;;  %v18182_v43 = vrot.slane %v14738_v31, 5  ;;  %v18183_v9 = vrot.slane %v14793_v19, 6 }
 0x47e   :  { %v4100_v23 = vadd.f32 %v3896_v50, %v3599_v27  ;;  %v4101_v28 = vadd.f32 %v3898_v26, %v14851_v61  ;;  %v4398_v45 = vsel %vm4309_vm5, %v18181_v24, %v4397_v57  ;;  %v18184_v15 = vrot.slane %v14743_v10, 6 }
 0x47f   :  { %v4400_v56 = vsel %vm4309_vm5, %v4397_v57, %v18182_v43  ;;  %v4900_v42 = vsel %vm4811_vm6, %v18183_v9, %v4899_v59  ;;  %v4604_v60 = vadd.f32 %v4402_v48, %v4102_v51  ;;  %v15017_v62 = vmul.f32 %v17517_v55, %v930_v25 }
 0x480   :  { %v4902_v61 = vsel %vm4811_vm6, %v4899_v59, %v18184_v15  ;;  %v4602_v17 = vadd.f32 %v4398_v45, %v4100_v23  ;;  %v4603_v37 = vadd.f32 %v4400_v56, %v4101_v28  ;;  %v15020_v36 = vmul.f32 %v17520_v54, %v930_v25  ;;  %v18185_v28 = vld [vmem:[#allocation15_spill] sm:$0xff] }
 0x481   :  { %v15023_v31 = vmul.f32 %v7916_v44, %v930_v25  ;;  %v15026_v19 = vmul.f32 %v17521_v47, %v930_v25  ;;  %v15029_v35 = vmul.f32 %v17628_v14, %v930_v25  ;;  %v5106_v30 = vadd.f32 %v4904_v40, %v4604_v60 }
 0x482   :  { %v5104_v10 = vadd.f32 %v4900_v42, %v4602_v17  ;;  %v5105_v12 = vadd.f32 %v4902_v61, %v4603_v37  ;;  %v15032_v48 = vmul.f32 %v7894_v34, %v930_v25  ;;  %v16370_v21 = vrot.slane %v15017_v62, 1 }
 0x483   :  { %v16369_v32 = vrot.slane %v15020_v36, 2  ;;  %v16368_v13 = vrot.slane %v15023_v31, 2  ;;  %v16367_v7 = vrot.slane %v15026_v19, 3  ;;  %v15043_v27 = vadd.f32 %v18163_v2, %v5106_v30 }
 0x484   :  { %v15039_v49 = vadd.f32 %v18163_v2, %v5104_v10  ;;  %v5192_v22 = vadd.f32 %v18163_v2, %v5105_v12  ;;  %v15046_v40 = vmul.f32 %v7929_v58, %v930_v25  ;;  %v16366_v5 = vrot.slane %v15029_v35, 4 }
 0x485   :  { %v15050_v39 = vmul.f32 %v7933_v29, %v930_v25  ;;  %v15053_v20 = vmul.f32 %v7947_v0, %v930_v25  ;;  %v15057_v8 = vmul.f32 %v17517_v55, %v14992_v41  ;;  %v15063_v26 = vmul.f32 %v7894_v34, %v14992_v41 }
 0x486   :  { %v5275_v50 = vmax.f32 %v5192_v22, 0.0  ;;  %v16371_v57 = vrot.slane %v15046_v40, 4  ;;  %v15070_v23 = vmul.f32 %v17520_v54, %v14992_v41  ;;  %v15077_v24 = vmul.f32 %v7916_v44, %v14992_v41 }
 0x487   :  { %v16364_v25 = vrot.slane %v15057_v8, 1  ;;  %v15081_v45 = vmul.f32 %v17521_v47, %v14992_v41  ;;  %v15085_v43 = vmul.f32 %v17628_v14, %v14992_v41  ;;  %v18187_v56 = vrot.slane %v14832_v16, 1 }
 0x488   :  { %v15073_v51 = vmul.f32 %v18185_v28, %v5275_v50  ;;  %v16363_v42 = vrot.slane %v15070_v23, 2  ;;  %v15095_v15 = vmul.f32 %v7929_v58, %v14992_v41  ;;  %v15099_v61 = vmul.f32 %v7933_v29, %v14992_v41 }
 0x489   :  { %v1409_v9 = vsel %vm1304_vm3, %v18187_v56, %v16364_v25  ;;  %v16362_v60 = vrot.slane %v15077_v24, 2  ;;  %v16358_v16 = vrot.slane %v15081_v45, 3  ;;  %v18188_v10 = vrot.slane %v14841_v52, 2 }
 0x48a   :  { %18186 = vst [vmem:[#allocation104_spill] sm:$0xff] %v15073_v51  ;;  %v1604_v37 = vadd.f32 %v1409_v9, %v14894_v4  ;;  %v16359_v30 = vrot.slane %v15085_v43, 4  ;;  %v16361_v22 = vrot.slane %v15095_v15, 4  ;;  %v16360_v50 = vrot.slane %v15099_v61, 5  ;;  %v18190_v9 = vld [vmem:[#allocation48_spill] sm:$0xff] }
 0x48b   :  { %v1910_v12 = vsel %vm487_vm0, %v18188_v10, %v16363_v42  ;;  %v18189_v4 = vrot.slane %v14845_v53, 2  ;;  %v18191_v52 = vrot.slane %v18190_v9, 3  ;;  %v15127_v18 = vmul.f32 %v7947_v0, %v14992_v41 }
 0x48c   :  { %v15113_v28 = vadd.f32 %v1910_v12, %v1604_v37  ;;  %v18192_v37 = vld [vmem:[#allocation70_spill] sm:$0xff] }
 0x48d   :  { %v2407_v56 = vsel %vm487_vm0, %v18189_v4, %v16362_v60  ;;  %v2905_v10 = vsel %vm2806_vm2, %v18191_v52, %v16358_v16  ;;  %v18193_v12 = vrot.slane %v18192_v37, 4  ;;  %v18194_v4 = vld [vmem:[#allocation76_spill] sm:$0xff]  ;;  %v18196_v52 = vld [vmem:[#allocation38_spill] sm:$0xff]  ;;  %v1023_v37 = vmul.f32 %v7894_v34, %v15002_v63 }
 0x48e   :  { %v2604_v11 = vadd.f32 %v2407_v56, %v14965_v46  ;;  %v18195_v6 = vrot.slane %v18194_v4, 4  ;;  %v18197_v16 = vrot.slane %v18196_v52, 5  ;;  %v16365_v56 = vrot.slane %v15127_v18, 6 }
 0x48f   :  { %v3405_v53 = vsel %vm3306_vm4, %v18193_v12, %v16359_v30  ;;  %v1193_v12 = vmul.f32 %v17517_v55, %v15002_v63  ;;  %v2194_v4 = vmul.f32 %v7916_v44, %v15002_v63 }
 0x490   :  { %v3902_v9 = vsel %vm3306_vm4, %v18195_v6, %v16361_v22  ;;  %v4404_v41 = vsel %vm4309_vm5, %v18197_v16, %v16360_v50  ;;  %v3102_v30 = vadd.f32 %v2905_v10, %v2604_v11  ;;  %v1695_v6 = vmul.f32 %v17520_v54, %v15002_v63 }
 0x491   :  { %v4103_v46 = vadd.f32 %v3902_v9, %v14988_v3  ;;  %v2694_v16 = vmul.f32 %v17521_v47, %v15002_v63  ;;  %v4906_v9 = vsel %vm4811_vm6, %v4903_v33, %v16365_v56  ;;  %v1414_v50 = vrot.slane %v1193_v12, 1 }
 0x492   :  { %v3192_v11 = vmul.f32 %v17628_v14, %v15002_v63  ;;  %v15164_v10 = vadd.f32 %v3405_v53, %v3102_v30  ;;  %v1915_v22 = vrot.slane %v1695_v6, 2  ;;  %v2412_v60 = vrot.slane %v2194_v4, 2  ;;  %v18201_v53 = vld [vmem:[#allocation61_spill] sm:$0xff] }
 0x493   :  { %v4605_v52 = vadd.f32 %v4404_v41, %v4103_v46  ;;  %v2910_v42 = vrot.slane %v2694_v16, 3  ;;  %v1415_v41 = vsel %vm1304_vm3, %v16370_v21, %v1414_v50  ;;  %v18199_v46 = vld [vmem:[#allocation60_spill] sm:$0xff]  ;;  %v18202_v6 = vrot.slane %v18201_v53, 2 }
 0x494   :  { %v18200_v17 = vrot.slane %v18199_v46, 1  ;;  %v3410_v59 = vrot.slane %v3192_v11, 4  ;;  %v1607_v33 = vadd.f32 %v1415_v41, %v15032_v48  ;;  %v1916_v30 = vsel %vm487_vm0, %v16369_v32, %v1915_v22  ;;  %v18216_v21 = vld [vmem:[#allocation96_spill] sm:$0xff] }
 0x495   :  { %v5107_v25 = vadd.f32 %v4906_v9, %v4605_v52  ;;  %v1918_v4 = vsel %vm487_vm0, %v1915_v22, %v18202_v6  ;;  %v15183_v52 = vsel %vm487_vm0, %v16368_v13, %v2412_v60  ;;  %v18205_v22 = vld [vmem:[#allocation65_spill] sm:$0xff]  ;;  %v18215_v13 = vld [vmem:[#allocation95_spill] sm:$0xff] }
 0x496   :  { %v1417_v3 = vsel %vm1304_vm3, %v1414_v50, %v18200_v17  ;;  %v18203_v17 = vld [vmem:[#allocation64_spill] sm:$0xff]  ;;  %v2108_v9 = vadd.f32 %v1916_v30, %v1607_v33  ;;  %v18206_v41 = vrot.slane %v18205_v22, 3  ;;  %v15203_v46 = vsel %vm3306_vm4, %v16366_v5, %v3410_v59  ;;  %v18209_v30 = vld [vmem:[#allocation93_spill] sm:$0xff] }
 0x497   :  { %v1608_v12 = vadd.f32 %v1417_v3, %v1023_v37  ;;  %v5194_v16 = vadd.f32 %v18163_v2, %v5107_v25  ;;  %v18204_v50 = vrot.slane %v18203_v17, 2  ;;  %v15193_v37 = vsel %vm2806_vm2, %v16367_v7, %v2910_v42  ;;  %v18211_v22 = vld [vmem:[#allocation25_spill] sm:$0xff]  ;;  %v18214_v5 = vld [vmem:[#allocation128_spill] sm:$0xff] }
 0x498   :  { %v15198_v25 = vsel %vm2806_vm2, %v2910_v42, %v18206_v41  ;;  %v3692_v33 = vmul.f32 %v7929_v58, %v15002_v63  ;;  %v2609_v42 = vadd.f32 %v18209_v30, %v2108_v9  ;;  %v3101_v7 = vadd.f32 %v18214_v5, %v14980_v38 }
 0x499   :  { %v15188_v48 = vsel %vm487_vm0, %v2412_v60, %v18204_v50  ;;  %v2109_v11 = vadd.f32 %v1918_v4, %v1608_v12  ;;  %v5277_v3 = vmax.f32 %v5194_v16, 0.0  ;;  %v18207_v60 = vld [vmem:[#allocation66_spill] sm:$0xff]  ;;  %v4193_v12 = vmul.f32 %v7933_v29, %v15002_v63  ;;  %v18212_v16 = vld [vmem:[#allocation28_spill] sm:$0xff] }
 0x49a   :  { %v18208_v53 = vrot.slane %v18207_v60, 4  ;;  %v18210_v4 = vld [vmem:[#allocation94_spill] sm:$0xff]  ;;  %v4695_v50 = vmul.f32 %v7947_v0, %v15002_v63  ;;  %v737_v41 = vadd.f32 %v18212_v16, %v18211_v22  ;;  %v18213_v60 = vld [vmem:[#allocation19_spill] sm:$0xff]  ;;  %v3107_v32 = vadd.f32 %v18215_v13, %v2609_v42 }
 0x49b   :  { %v2610_v17 = vadd.f32 %v18210_v4, %v2109_v11  ;;  %v15221_v56 = vmul.f32 %v18213_v60, %v5277_v3  ;;  %v18217_v3 = vld [vmem:[#allocation67_spill] sm:$0xff]  ;;  %v18219_v38 = vrot.slane %v15050_v39, 5  ;;  %v18221_v42 = vld [vmem:[#allocation98_spill] sm:$0xff] }
 0x49c   :  { %v15208_v6 = vsel %vm3306_vm4, %v3410_v59, %v18208_v53  ;;  %v3907_v59 = vrot.slane %v3692_v33, 4  ;;  %v4409_v53 = vrot.slane %v4193_v12, 5  ;;  %v4911_v30 = vrot.slane %v4695_v50, 6  ;;  %v18222_v50 = vld [vmem:[#allocation68_spill] sm:$0xff]  ;;  %v18230_v63 = vld [vmem:[#allocation91_spill] sm:$0xff] }
 0x49d   :  { %v3108_v9 = vadd.f32 %v18216_v21, %v2610_v17  ;;  %v15227_v11 = vmax.f32 %v737_v41, 0.0  ;;  %v18218_v33 = vrot.slane %v18217_v3, 4  ;;  %v18220_v21 = vld [vmem:[#allocation97_spill] sm:$0xff]  ;;  %v18223_v22 = vrot.slane %v18222_v50, 5 }
 0x49e   :  { %v15233_v4 = vsel %vm3306_vm4, %v16371_v57, %v3907_v59  ;;  %v15243_v13 = vsel %vm4309_vm5, %v18219_v38, %v4409_v53  ;;  %v3609_v5 = vadd.f32 %v18220_v21, %v3107_v32  ;;  %v18224_v41 = vrot.slane %v15053_v20, 6  ;;  %v18227_v38 = vld [vmem:[#allocation90_spill] sm:$0xff] }
 0x49f   :  { %v15238_v12 = vsel %vm3306_vm4, %v3907_v59, %v18218_v33  ;;  %v3610_v17 = vadd.f32 %v18221_v42, %v3108_v9  ;;  %v15250_v16 = vsel %vm4309_vm5, %v4409_v53, %v18223_v22  ;;  %v18225_v59 = vld [vmem:[#allocation71_spill] sm:$0xff]  ;;  %v1021_v32 = vmul.f32 %v7894_v34, %v15227_v11  ;;  %v18228_v42 = vld [vmem:[#allocation78_spill] sm:$0xff] }
 0x4a0   :  { %v15255_v60 = vsel %vm4811_vm6, %v18224_v41, %v4911_v30  ;;  %v18226_v3 = vrot.slane %v18225_v59, 6  ;;  %v1191_v9 = vmul.f32 %v17517_v55, %v15227_v11  ;;  %v1693_v53 = vmul.f32 %v17520_v54, %v15227_v11  ;;  %v18231_v54 = vld [vmem:[#allocation87_spill] sm:$0xff] }
 0x4a1   :  { %v4110_v21 = vadd.f32 %v18227_v38, %v3609_v5  ;;  %v4111_v50 = vadd.f32 %v18228_v42, %v3610_v17  ;;  %v2192_v22 = vmul.f32 %v7916_v44, %v15227_v11  ;;  %v3190_v34 = vmul.f32 %v17628_v14, %v15227_v11 }
 0x4a2   :  { %v15260_v33 = vsel %vm4811_vm6, %v4911_v30, %v18226_v3  ;;  %v2692_v30 = vmul.f32 %v17521_v47, %v15227_v11  ;;  %v1410_v41 = vrot.slane %v1191_v9, 1  ;;  %v1911_v59 = vrot.slane %v1693_v53, 2  ;;  %v18229_v3 = vld [vmem:[#allocation14_spill] sm:$0xff]  ;;  %v18236_v53 = vld [vmem:[#allocation92_spill] sm:$0xff] }
 0x4a3   :  { %v3603_v55 = vadd.f32 %v18229_v3, %v3101_v7  ;;  %v4612_v57 = vadd.f32 %v18230_v63, %v4110_v21  ;;  %v4613_v51 = vadd.f32 %v18231_v54, %v4111_v50  ;;  %v2408_v5 = vrot.slane %v2192_v22, 2  ;;  %v18237_v50 = vld [vmem:[#allocation88_spill] sm:$0xff] }
 0x4a4   :  { %v2906_v38 = vrot.slane %v2692_v30, 3  ;;  %v18232_v17 = vrot.slane %v15057_v8, 1  ;;  %v18233_v42 = vrot.slane %v15017_v62, 1  ;;  %v18234_v9 = vrot.slane %v15070_v23, 2 }
 0x4a5   :  { %v18235_v7 = vrot.slane %v15020_v36, 2  ;;  %v5114_v21 = vadd.f32 %v18236_v53, %v4612_v57  ;;  %v5115_v22 = vadd.f32 %v18237_v50, %v4613_v51  ;;  %v18238_v3 = vrot.slane %v15077_v24, 2 }
 0x4a6   :  { %v1411_v44 = vsel %vm1304_vm3, %v18232_v17, %v1410_v41  ;;  %v1413_v47 = vsel %vm1304_vm3, %v1410_v41, %v18233_v42  ;;  %v1912_v14 = vsel %vm487_vm0, %v18234_v9, %v1911_v59  ;;  %v18239_v41 = vrot.slane %v15023_v31, 2  ;;  %v18242_v17 = vld [vmem:[#allocation122_spill] sm:$0xff] }
 0x4a7   :  { %v1914_v63 = vsel %vm487_vm0, %v1911_v59, %v18235_v7  ;;  %v1605_v8 = vadd.f32 %v1411_v44, %v15063_v26  ;;  %v1606_v30 = vadd.f32 %v1413_v47, %v1021_v32  ;;  %v2409_v62 = vsel %vm487_vm0, %v18238_v3, %v2408_v5 }
 0x4a8   :  { %v2411_v23 = vsel %vm487_vm0, %v2408_v5, %v18239_v41  ;;  %v18240_v54 = vrot.slane %v15081_v45, 3  ;;  %v18241_v59 = vrot.slane %v15026_v19, 3  ;;  %v5201_v51 = vadd.f32 %v18163_v2, %v5114_v21 }
 0x4a9   :  { %v5202_v26 = vadd.f32 %v18163_v2, %v5115_v22  ;;  %v2106_v32 = vadd.f32 %v1912_v14, %v1605_v8  ;;  %v2107_v24 = vadd.f32 %v1914_v63, %v1606_v30  ;;  %v2605_v44 = vadd.f32 %v2409_v62, %v18242_v17 }
 0x4aa   :  { %v2907_v36 = vsel %vm2806_vm2, %v18240_v54, %v2906_v38  ;;  %v2909_v57 = vsel %vm2806_vm2, %v2906_v38, %v18241_v59  ;;  %v2606_v31 = vadd.f32 %v2411_v23, %v15113_v28  ;;  %v3406_v42 = vrot.slane %v3190_v34, 4  ;;  %v18245_v34 = vld [vmem:[#allocation43_spill] sm:$0xff] }
 0x4ab   :  { %v3690_v45 = vmul.f32 %v7929_v58, %v15227_v11  ;;  %v5284_v5 = vmax.f32 %v5201_v51, 0.0  ;;  %v5285_v47 = vmax.f32 %v5202_v26, 0.0  ;;  %v2607_v19 = vadd.f32 %v15183_v52, %v2106_v32  ;;  %v18246_v58 = vld [vmem:[#allocation45_spill] sm:$0xff]  ;;  %v18251_v26 = vld [vmem:[#allocation99_spill] sm:$0xff] }
 0x4ac   :  { %v2608_v38 = vadd.f32 %v15188_v48, %v2107_v24  ;;  %v3103_v9 = vadd.f32 %v2907_v36, %v2605_v44  ;;  %v3104_v7 = vadd.f32 %v2909_v57, %v2606_v31  ;;  %v18243_v53 = vrot.slane %v15085_v43, 4  ;;  %v18252_v24 = vld [vmem:[#allocation101_spill] sm:$0xff] }
 0x4ad   :  { %v18244_v63 = vrot.slane %v15029_v35, 4  ;;  %v15321_v21 = vmul.f32 %v18245_v34, %v5284_v5  ;;  %v6024_v50 = vmul.f32 %v18246_v58, %v5285_v47  ;;  %v3105_v22 = vadd.f32 %v15193_v37, %v2607_v19  ;;  %v18258_v34 = vld [vmem:[#allocation108_spill] sm:$0xff] }
 0x4ae   :  { %v3407_v14 = vsel %vm3306_vm4, %v18243_v53, %v3406_v42  ;;  %v3106_v52 = vadd.f32 %v15198_v25, %v2608_v38  ;;  %v3903_v30 = vrot.slane %v3690_v45, 4  ;;  %v4191_v43 = vmul.f32 %v7933_v29, %v15227_v11  ;;  %v6559_v29 = vld [vmem:[%s15805_s4] sm:$0xff]  ;;  %v18255_v38 = vld [vmem:[#allocation106_spill] sm:$0xff] }
 0x4af   :  { %v3409_v28 = vsel %vm3306_vm4, %v3406_v42, %v18244_v63  ;;  %v3605_v48 = vadd.f32 %v3407_v14, %v3103_v9  ;;  %v6242_v3 = vrot.slane %v15321_v21, 5  ;;  %v6244_v35 = vrot.slane %v6024_v50, 5  ;;  %v18257_v63 = vld [vmem:[#allocation56_spill] sm:$0xff] }
 0x4b0   :  { %v3606_v8 = vadd.f32 %v3409_v28, %v3104_v7  ;;  %v3607_v62 = vadd.f32 %v15203_v46, %v3105_v22  ;;  %v3608_v41 = vadd.f32 %v15208_v6, %v3106_v52  ;;  %v18247_v23 = vrot.slane %v15095_v15, 4  ;;  %v6563_v46 = vld [vmem:[%s15805_s4 + $0x20] sm:$0xff]  ;;  %v18356_v21 = vld [vmem:[#allocation72_spill] sm:$0xff] }
 0x4b1   :  { %v18248_v37 = vrot.slane %v15046_v40, 4  ;;  %v4106_v36 = vadd.f32 %v15233_v4, %v3605_v48  ;;  %v15348_v15 = vsel %vm4309_vm5, %v6242_v3, %v6244_v35  ;;  %v18249_v40 = vld [vmem:[#allocation8_spill] sm:$0xff]  ;;  %v6228_v51 = vrot.slane %v15221_v56, 5  ;;  %v18256_v7 = vld [vmem:[#allocation107_spill] sm:$0xff] }
 0x4b2   :  { %v3904_v54 = vsel %vm3306_vm4, %v18247_v23, %v3903_v30  ;;  %v4107_v59 = vadd.f32 %v15238_v12, %v3606_v8  ;;  %v18250_v6 = vrot.slane %v18249_v40, 5  ;;  %v4108_v32 = vadd.f32 %v18251_v26, %v3607_v62  ;;  %v6575_v22 = vld [vmem:[%s15805_s4 + $0x80] sm:$0xff] }
 0x4b3   :  { %v3906_v25 = vsel %vm3306_vm4, %v3903_v30, %v18248_v37  ;;  %v4104_v4 = vadd.f32 %v3904_v54, %v3603_v55  ;;  %v4109_v17 = vadd.f32 %v18252_v24, %v3608_v41  ;;  %v4405_v44 = vrot.slane %v4191_v43, 5  ;;  %v6579_v52 = vld [vmem:[%s15805_s4 + $0xa0] sm:$0xff] }
 0x4b4   :  { %v15353_v57 = vsel %vm4309_vm5, %v6244_v35, %v18250_v6  ;;  %v4105_v12 = vadd.f32 %v3906_v25, %v15164_v10  ;;  %v4608_v31 = vadd.f32 %v15243_v13, %v4106_v36  ;;  %v4609_v42 = vadd.f32 %v15250_v16, %v4107_v59  ;;  %v6567_v13 = vld [vmem:[%s15805_s4 + $0x40] sm:$0xff] }
 0x4b5   :  { %v4693_v45 = vmul.f32 %v7947_v0, %v15227_v11  ;;  %v7069_v5 = vcombine.low %v6559_v29, %v6563_v46  ;;  %v18253_v47 = vrot.slane %v15099_v61, 5  ;;  %v18254_v10 = vrot.slane %v15050_v39, 5  ;;  %v6571_v0 = vld [vmem:[%s15805_s4 + $0x60] sm:$0xff] }
 0x4b6   :  { %v4610_v9 = vadd.f32 %v18255_v38, %v4108_v32  ;;  %v4611_v53 = vadd.f32 %v18256_v7, %v4109_v17  ;;  %v5110_v14 = vadd.f32 %v15255_v60, %v4608_v31  ;;  %v5111_v39 = vadd.f32 %v15260_v33, %v4609_v42  ;;  %v18263_v42 = vld [vmem:[#allocation39_spill] sm:$0xff]  ;;  %v18266_v38 = vld [vmem:[#allocation146_spill] sm:$0xff]  ;;  %v18267_v7 = vld [vmem:[#allocation21_spill] sm:$0xff] }
 0x4b7   :  { %v4406_v55 = vsel %vm4309_vm5, %v18253_v47, %v4405_v44  ;;  %v4408_v19 = vsel %vm4309_vm5, %v4405_v44, %v18254_v10  ;;  %v4907_v16 = vrot.slane %v4693_v45, 6  ;;  %v7070_v50 = vcombine.high %v6559_v29, %v6563_v46  ;;  %v18262_v44 = vld [vmem:[#allocation37_spill] sm:$0xff] }
 0x4b8   :  { %v4606_v11 = vadd.f32 %v4406_v55, %v4104_v4  ;;  %v4607_v61 = vadd.f32 %v4408_v19, %v4105_v12  ;;  %v5112_v28 = vadd.f32 %v18257_v63, %v4610_v9  ;;  %v5113_v58 = vadd.f32 %v18258_v34, %v4611_v53  ;;  %v18261_v4 = vld [vmem:[#allocation35_spill] sm:$0xff]  ;;  %v18265_v19 = vld [vmem:[#allocation42_spill] sm:$0xff] }
 0x4b9   :  { %v18259_v48 = vrot.slane %v15127_v18, 6  ;;  %v18260_v60 = vrot.slane %v15053_v20, 6  ;;  %v5197_v30 = vadd.f32 %v18163_v2, %v5110_v14  ;;  %v7077_v43 = vcombine.low %v6567_v13, %v6571_v0  ;;  %6755 = vmatprep.subr.bf16.mxu1 %v7070_v50  ;;  %v15399_v18 = vld [vmem:[%s15805_s4 + $0x8] sm:$0xff]  ;;  %v18269_v14 = vld [vmem:[#allocation10_spill] sm:$0xff] }
 0x4ba   :  { %v5198_v41 = vadd.f32 %v18163_v2, %v5111_v39  ;;  %v5199_v23 = vadd.f32 %v18163_v2, %v5112_v28  ;;  %v15404_v20 = vld [vmem:[%s15805_s4 + $0x28] sm:$0xff]  ;;  %v5200_v54 = vadd.f32 %v18163_v2, %v5113_v58  ;;  %6756 = vmatpush1.bf16.msra.mxu1 %v7069_v5  ;;  %v7078_v25 = vcombine.high %v6567_v13, %v6571_v0  ;;  %v18264_v5 = vld [vmem:[#allocation41_spill] sm:$0xff]  ;;  %v18270_v63 = vld [vmem:[#allocation130_spill] sm:$0xff] }
 0x4bb   :  { %v4908_v8 = vsel %vm4811_vm6, %v18259_v48, %v4907_v16  ;;  %v4910_v33 = vsel %vm4811_vm6, %v4907_v16, %v18260_v60  ;;  %v5280_v37 = vmax.f32 %v5197_v30, 0.0  ;;  %v7085_v36 = vcombine.low %v6575_v22, %v6579_v52  ;;  %v18268_v13 = vld [vmem:[#allocation33_spill] sm:$0xff]  ;;  %v18271_v28 = vld [vmem:[#allocation59_spill] sm:$0xff]  ;;  %v18272_v58 = vld [vmem:[#allocation114_spill] sm:$0xff] }
 0x4bc   :  { %v5108_v35 = vadd.f32 %v4908_v8, %v4606_v11  ;;  %v5109_v62 = vadd.f32 %v4910_v33, %v4607_v61  ;;  %v5281_v46 = vmax.f32 %v5198_v41, 0.0  ;;  %v5282_v40 = vmax.f32 %v5199_v23, 0.0  ;;  %6757 = vmatprep.subr.bf16.mxu1 %v7078_v25  ;;  %v18276_v33 = vld [vmem:[#allocation52_spill] sm:$0xff]  ;;  %v18280_v41 = vld [vmem:[#allocation6_spill] sm:$0xff] }
 0x4bd   :  { %v5283_v6 = vmax.f32 %v5200_v54, 0.0  ;;  %v15410_v12 = vmul.f32 %v18261_v4, %v5280_v37  ;;  %v7086_v26 = vcombine.high %v6575_v22, %v6579_v52  ;;  %v7071_v32 = vcombine.low %v15399_v18, %v15404_v20  ;;  %v18274_v22 = vld [vmem:[#allocation131_spill] sm:$0xff]  ;;  %v18281_v54 = vld [vmem:[#allocation112_spill] sm:$0xff]  ;;  %v18282_v37 = vld [vmem:[#allocation113_spill] sm:$0xff] }
 0x4be   :  { %v5195_v59 = vadd.f32 %v18163_v2, %v5108_v35  ;;  %v5196_v29 = vadd.f32 %v18163_v2, %v5109_v62  ;;  %v15415_v31 = vmul.f32 %v18262_v44, %v5281_v46  ;;  %v15418_v45 = vmul.f32 %v18263_v42, %v5282_v40  ;;  %6758 = vmatpush1.bf16.msra.mxu1 %v7077_v43  ;;  %v18279_v62 = vld [vmem:[#allocation50_spill] sm:$0xff]  ;;  %v18283_v46 = vld [vmem:[#allocation156_spill] sm:$0xff] }
 0x4bf   :  { %v15421_v47 = vmul.f32 %v18264_v5, %v5283_v6  ;;  %v6234_v55 = vrot.slane %v15410_v12, 5  ;;  %v7072_v10 = vcombine.high %v15399_v18, %v15404_v20  ;;  %v3093_v9 = vadd.f32 %v18266_v38, %v18265_v19  ;;  %6759 = vmatprep.subr.bf16.mxu1 %v7086_v26  ;;  %v18285_v6 = vld [vmem:[#allocation62_spill] sm:$0xff]  ;;  %v18290_v5 = vld [vmem:[#allocation140_spill] sm:$0xff]  ;;  %v6569_v18 = vld [vmem:[%s15805_s4 + $0x50] sm:$0xff] }
 0x4c0   :  { %v5278_v24 = vmax.f32 %v5195_v59, 0.0  ;;  %v5279_v17 = vmax.f32 %v5196_v29, 0.0  ;;  %v6236_v11 = vrot.slane %v15415_v31, 5  ;;  %v6238_v61 = vrot.slane %v15418_v45, 5  ;;  %v6573_v20 = vld [vmem:[%s15805_s4 + $0x70] sm:$0xff] }
 0x4c1   :  { %v6240_v16 = vrot.slane %v15421_v47, 5  ;;  %v3595_v39 = vadd.f32 %v18269_v14, %v3093_v9  ;;  %v3596_v34 = vadd.f32 %v18271_v28, %v18270_v63  ;;  %v18273_v50 = vrot.slane %v18272_v58, 4  ;;  %v18294_v28 = vld [vmem:[#allocation111_spill] sm:$0xff] }
 0x4c2   :  { %v15429_v53 = vmul.f32 %v18267_v7, %v5278_v24  ;;  %v15432_v0 = vmul.f32 %v18268_v13, %v5279_v17  ;;  %v18275_v52 = vrot.slane %v18274_v22, 4  ;;  %v18277_v30 = vrot.slane %v18276_v33, 4  ;;  %6760 = vmatpush1.bf16.msra.mxu1 %v7085_v36  ;;  %v18287_v36 = vld [vmem:[#allocation47_spill] sm:$0xff]  ;;  %v18293_v7 = vld [vmem:[#allocation137_spill] sm:$0xff]  ;;  %v18298_v22 = vld [vmem:[#allocation148_spill] sm:$0xff] }
 0x4c3   :  { %v18278_v43 = vmov %v18273_v50  ;;  %v4094_v23 = vadd.f32 %v18280_v41, %v18279_v62  ;;  %v4095_v25 = vadd.f32 %v18282_v37, %v18281_v54  ;;  %v18284_v40 = vrot.slane %v18283_v46, 5  ;;  %6796 = vmatprep.subr.bf16.mxu1 %v7072_v10  ;;  %v18296_v10 = vld [vmem:[#allocation5_spill] sm:$0xff]  ;;  %v18304_v41 = vld [vmem:[#allocation46_spill] sm:$0xff] }
 0x4c4   :  { %v3888_v48 = vsel %vm3306_vm4, %v18275_v52, %v18273_v50  ;;  %v6230_v8 = vrot.slane %v15429_v53, 5  ;;  %v6232_v60 = vrot.slane %v15432_v0, 5  ;;  %v3890_v35 = vsel %vm3306_vm4, %v18278_v43, %v18277_v30  ;;  %v18301_v30 = vld [vmem:[#allocation149_spill] sm:$0xff]  ;;  %v18309_v46 = vld [vmem:[#allocation18_spill] sm:$0xff]  ;;  %v18348_v53 = vld [vmem:[#allocation103_spill] sm:$0xff] }
 0x4c5   :  { %v4096_v59 = vadd.f32 %v3888_v48, %v3595_v39  ;;  %v4097_v29 = vadd.f32 %v3890_v35, %v3596_v34  ;;  %v18286_v4 = vrot.slane %v18285_v6, 5  ;;  %v18288_v17 = vrot.slane %v18287_v36, 5  ;;  %v18349_v0 = vld [vmem:[#allocation29_spill] sm:$0xff] }
 0x4c6   :  { %v15466_v24 = vsel %vm4309_vm5, %v6232_v60, %v6234_v55  ;;  %v18289_v44 = vmov %v18284_v40  ;;  %v18291_v19 = vrot.slane %v18290_v5, 5  ;;  %v4596_v13 = vadd.f32 %v18293_v7, %v4094_v23  ;;  %v18314_v7 = vld [vmem:[#allocation125_spill] sm:$0xff] }
 0x4c7   :  { %v4388_v26 = vsel %vm4309_vm5, %v18286_v4, %v18284_v40  ;;  %v4390_v42 = vsel %vm4309_vm5, %v18289_v44, %v18288_v17  ;;  %v18292_v38 = vmov %v18288_v17  ;;  %v18295_v34 = vrot.slane %v18294_v28, 6  ;;  %v18310_v40 = vld [vmem:[#allocation7_spill] sm:$0xff]  ;;  %v18311_v44 = vld [vmem:[#allocation153_spill] sm:$0xff] }
 0x4c8   :  { %v4392_v9 = vsel %vm4309_vm5, %v18292_v38, %v18291_v19  ;;  %v4597_v14 = vadd.f32 %v4388_v26, %v4095_v25  ;;  %v4598_v39 = vadd.f32 %v4390_v42, %v4096_v59  ;;  %v18297_v58 = vrot.slane %v18296_v10, 6  ;;  %v18307_v25 = vld [vmem:[#allocation121_spill] sm:$0xff]  ;;  %v18308_v59 = vld [vmem:[#allocation135_spill] sm:$0xff] }
 0x4c9   :  { %v4599_v63 = vadd.f32 %v4392_v9, %v4097_v29  ;;  %v18299_v52 = vrot.slane %v18298_v22, 6  ;;  %v18300_v48 = vmov %v18295_v34  ;;  %v18302_v43 = vrot.slane %v18301_v30, 6  ;;  %v18312_v42 = vld [vmem:[#allocation83_spill] sm:$0xff] }
 0x4ca   :  { %v4888_v50 = vsel %vm4811_vm6, %v18297_v58, %v18295_v34  ;;  %v18305_v23 = vrot.slane %v18304_v41, 6  ;;  %v5094_v29 = vadd.f32 %v18308_v59, %v18307_v25  ;;  %v5097_v6 = vadd.f32 %v18310_v40, %v18309_v46  ;;  %v18313_v38 = vld [vmem:[#allocation27_spill] sm:$0xff]  ;;  %v18320_v59 = vld [vmem:[#allocation100_spill] sm:$0xff] }
 0x4cb   :  { %v4890_v33 = vsel %vm4811_vm6, %v18300_v48, %v18299_v52  ;;  %v18303_v35 = vmov %v18299_v52  ;;  %v18306_v54 = vmov %v18302_v43  ;;  %v5098_v4 = vadd.f32 %v4888_v50, %v4596_v13  ;;  %v18321_v46 = vld [vmem:[#allocation119_spill] sm:$0xff] }
 0x4cc   :  { %v4892_v62 = vsel %vm4811_vm6, %v18303_v35, %v18302_v43  ;;  %v4894_v37 = vsel %vm4811_vm6, %v18306_v54, %v18305_v23  ;;  %v5099_v26 = vadd.f32 %v4890_v33, %v4597_v14  ;;  %v5102_v5 = vadd.f32 %v18312_v42, %v18311_v44  ;;  %v18317_v23 = vld [vmem:[#allocation116_spill] sm:$0xff] }
 0x4cd   :  { %v5100_v36 = vadd.f32 %v4892_v62, %v4598_v39  ;;  %v5101_v17 = vadd.f32 %v4894_v37, %v4599_v63  ;;  %v5181_v19 = vadd.f32 %v18163_v2, %v5094_v29  ;;  %v5182_v9 = vadd.f32 %v18163_v2, %v18313_v38  ;;  %v18315_v62 = vld [vmem:[#allocation30_spill] sm:$0xff]  ;;  %v18318_v37 = vld [vmem:[#allocation55_spill] sm:$0xff]  ;;  %v18325_v44 = vld [vmem:[#allocation80_spill] sm:$0xff] }
 0x4ce   :  { %v5183_v28 = vadd.f32 %v18163_v2, %v18314_v7  ;;  %v5184_v34 = vadd.f32 %v18163_v2, %v5097_v6  ;;  %v5185_v10 = vadd.f32 %v18163_v2, %v5098_v4  ;;  %v5186_v13 = vadd.f32 %v18163_v2, %v5099_v26  ;;  %v18323_v4 = vld [vmem:[#allocation34_spill] sm:$0xff]  ;;  %v18327_v38 = vld [vmem:[#allocation124_spill] sm:$0xff]  ;;  %v18328_v7 = vld [vmem:[#allocation31_spill] sm:$0xff] }
 0x4cf   :  { %v5187_v14 = vadd.f32 %v18163_v2, %v5100_v36  ;;  %v5188_v39 = vadd.f32 %v18163_v2, %v5101_v17  ;;  %v5189_v63 = vadd.f32 %v18163_v2, %v5102_v5  ;;  %v5264_v58 = vmax.f32 %v5181_v19, 0.0  ;;  %v18322_v2 = vld [vmem:[#allocation157_spill] sm:$0xff]  ;;  %v18324_v36 = vld [vmem:[#allocation126_spill] sm:$0xff] }
 0x4d0   :  { %v5265_v50 = vmax.f32 %v5182_v9, 0.0  ;;  %v5266_v22 = vmax.f32 %v5183_v28, 0.0  ;;  %v5267_v52 = vmax.f32 %v5184_v34, 0.0  ;;  %v5268_v48 = vmax.f32 %v5185_v10, 0.0  ;;  %v18326_v5 = vld [vmem:[#allocation118_spill] sm:$0xff]  ;;  %v18329_v34 = vld [vmem:[#allocation9_spill] sm:$0xff] }
 0x4d1   :  { %v5269_v33 = vmax.f32 %v5186_v13, 0.0  ;;  %v5270_v30 = vmax.f32 %v5187_v14, 0.0  ;;  %v5271_v43 = vmax.f32 %v5188_v39, 0.0  ;;  %v5272_v35 = vmax.f32 %v5189_v63, 0.0  ;;  %v18331_v14 = vld [vmem:[#allocation11_spill] sm:$0xff] }
 0x4d2   :  { %v18316_v41 = vmax.f32 %v18315_v62, 0.0  ;;  %v18319_v25 = vmax.f32 %v18318_v37, 0.0  ;;  %v6003_v40 = vmul.f32 %v18321_v46, %v5264_v58  ;;  %v6004_v6 = vmul.f32 %v18322_v2, %v5265_v50  ;;  %v18333_v58 = vld [vmem:[#allocation13_spill] sm:$0xff]  ;;  %v18336_v62 = vld [vmem:[#allocation139_spill] sm:$0xff]  ;;  %v18342_v2 = vld [vmem:[#allocation102_spill] sm:$0xff] }
 0x4d3   :  { %v6005_v26 = vmul.f32 %v18323_v4, %v5266_v22  ;;  %v6006_v17 = vmul.f32 %v18324_v36, %v5267_v52  ;;  %v6007_v42 = vmul.f32 %v18325_v44, %v5268_v48  ;;  %v6008_v19 = vmul.f32 %v18326_v5, %v5269_v33  ;;  %v18335_v52 = vld [vmem:[#allocation17_spill] sm:$0xff] }
 0x4d4   :  { %v5999_v54 = vmul.f32 %v18317_v23, %v18316_v41  ;;  %v6002_v29 = vmul.f32 %v18320_v59, %v18319_v25  ;;  %v6009_v9 = vmul.f32 %v18327_v38, %v5270_v30  ;;  %v6010_v28 = vmul.f32 %v18328_v7, %v5271_v43  ;;  %v18338_v41 = vld [vmem:[#allocation133_spill] sm:$0xff] }
 0x4d5   :  { %v6011_v10 = vmul.f32 %v18329_v34, %v5272_v35  ;;  %v18330_v13 = vmax.f32 %v14906_v1, 0.0  ;;  %v18332_v63 = vmax.f32 %v15039_v49, 0.0  ;;  %v18334_v22 = vmax.f32 %v15043_v27, 0.0  ;;  %v18340_v35 = vld [vmem:[#allocation134_spill] sm:$0xff] }
 0x4d6   :  { %v18337_v33 = vrot.slane %v18336_v62, 5  ;;  %v18339_v30 = vrot.slane %v18338_v41, 5  ;;  %v6194_v23 = vrot.slane %v5999_v54, 5  ;;  %v6198_v37 = vrot.slane %v18340_v35, 5 }
 0x4d7   :  { %v6012_v39 = vmul.f32 %v18331_v14, %v18330_v13  ;;  %v6013_v50 = vmul.f32 %v18333_v58, %v18332_v63  ;;  %v6015_v48 = vmul.f32 %v18335_v52, %v18334_v22  ;;  %v6200_v1 = vrot.slane %v6002_v29, 5 }
 0x4d8   :  { %v6193_v43 = vsel %vm4309_vm5, %v18339_v30, %v18337_v33  ;;  %v6202_v25 = vrot.slane %v6003_v40, 5  ;;  %v6204_v59 = vrot.slane %v6004_v6, 5  ;;  %v18341_v49 = vmov %v18337_v33 }
 0x4d9   :  { %v6195_v46 = vsel %vm4309_vm5, %v18341_v49, %v6194_v23  ;;  %v18343_v27 = vrot.slane %v18342_v2, 5  ;;  %v6206_v36 = vrot.slane %v6005_v26, 5  ;;  %v6208_v44 = vrot.slane %v6006_v17, 5 }
 0x4da   :  { %v6201_v54 = vsel %vm4309_vm5, %v6198_v37, %v6200_v1  ;;  %v6203_v29 = vsel %vm4309_vm5, %v6200_v1, %v6202_v25  ;;  %v6205_v40 = vsel %vm4309_vm5, %v6202_v25, %v6204_v59  ;;  %v6210_v34 = vrot.slane %v6007_v42, 5  ;;  %v18353_v1 = vld [vmem:[#allocation82_spill] sm:$0xff]  ;;  %v18354_v25 = vld [vmem:[#allocation151_spill] sm:$0xff] }
 0x4db   :  { %v6197_v4 = vsel %vm4309_vm5, %v6194_v23, %v18343_v27  ;;  %v18344_v5 = vmov %v18343_v27  ;;  %v6207_v6 = vsel %vm4309_vm5, %v6204_v59, %v6206_v36  ;;  %v6209_v7 = vsel %vm4309_vm5, %v6206_v36, %v6208_v44  ;;  %v18355_v59 = vld [vmem:[#allocation129_spill] sm:$0xff] }
 0x4dc   :  { %v6199_v38 = vsel %vm4309_vm5, %v18344_v5, %v6198_v37  ;;  %v6212_v13 = vrot.slane %v6008_v19, 5  ;;  %v6214_v14 = vrot.slane %v6009_v9, 5  ;;  %v6216_v63 = vrot.slane %v6010_v28, 5  ;;  %v18345_v9 = vld [vmem:[#allocation104_spill] sm:$0xff] }
 0x4dd   :  { %v6218_v26 = vrot.slane %v6011_v10, 5  ;;  %v6220_v17 = vrot.slane %v6012_v39, 5  ;;  %v6211_v58 = vsel %vm4309_vm5, %v6208_v44, %v6210_v34  ;;  %v6222_v52 = vrot.slane %v6013_v50, 5 }
 0x4de   :  { %v6213_v22 = vsel %vm4309_vm5, %v6210_v34, %v6212_v13  ;;  %v6226_v62 = vrot.slane %v6015_v48, 5  ;;  %v6215_v33 = vsel %vm4309_vm5, %v6212_v13, %v6214_v14  ;;  %v15564_v41 = vsel %vm4309_vm5, %v6214_v14, %v6216_v63 }
 0x4df   :  { %v6219_v30 = vsel %vm4309_vm5, %v6216_v63, %v6218_v26  ;;  %v6221_v42 = vsel %vm4309_vm5, %v6218_v26, %v6220_v17  ;;  %v6223_v19 = vsel %vm4309_vm5, %v6220_v17, %v6222_v52  ;;  %v18346_v28 = vrot.slane %v18345_v9, 5 }
 0x4e0   :  { %v6229_v48 = vsel %vm4309_vm5, %v6226_v62, %v6228_v51  ;;  %v6231_v23 = vsel %vm4309_vm5, %v6228_v51, %v6230_v8  ;;  %v6233_v35 = vsel %vm4309_vm5, %v6230_v8, %v6232_v60  ;;  %v6237_v37 = vsel %vm4309_vm5, %v6234_v55, %v6236_v11  ;;  %v18351_v60 = vld [vmem:[#allocation54_spill] sm:$0xff] }
 0x4e1   :  { %v6225_v10 = vsel %vm4309_vm5, %v6222_v52, %v18346_v28  ;;  %v18347_v39 = vmov %v18346_v28  ;;  %v6239_v56 = vsel %vm4309_vm5, %v6236_v11, %v6238_v61  ;;  %v6241_v51 = vsel %vm4309_vm5, %v6238_v61, %v6240_v16 }
 0x4e2   :  { %v6227_v50 = vsel %vm4309_vm5, %v18347_v39, %v6226_v62  ;;  %v6243_v12 = vsel %vm4309_vm5, %v6240_v16, %v6242_v3  ;;  %v6274_v55 = vrot.slane %v18348_v53, 5  ;;  %v18350_v8 = vrot.slane %v18349_v0, 5 }
 0x4e3   :  { %v18352_v31 = vrot.slane %v18351_v60, 5  ;;  %v6435_v45 = vadd.f32 %v18354_v25, %v18353_v1  ;;  %v6436_v61 = vsel %vm6382_vm7, %v18355_v59, 0.0  ;;  %v18357_v49 = vrot.slane %v18356_v21, 5 }
 0x4e4   :  { %v6438_v2 = vsel %vm6382_vm7, %v6193_v43, 0.0  ;;  %v6440_v36 = vsel %vm6382_vm7, %v6195_v46, 0.0  ;;  %v6442_v5 = vsel %vm6382_vm7, %v6197_v4, 0.0  ;;  %v6470_v34 = vsel %vm6382_vm7, %v6219_v30, 0.0 }
 0x4e5   :  { %v15614_v11 = vsel %vm4309_vm5, %v18352_v31, %v18350_v8  ;;  %v15623_v47 = vsel %vm4309_vm5, %v18357_v49, %v6274_v55  ;;  %v18358_v3 = vmov %v18352_v31  ;;  %v6437_v27 = vadd.f32 %v6436_v61, %v6435_v45 }
 0x4e6   :  { %v15628_v16 = vsel %vm4309_vm5, %v6274_v55, %v18358_v3  ;;  %v6471_v13 = vsel %vm6382_vm7, %v6221_v42, 0.0  ;;  %v6473_v14 = vsel %vm6382_vm7, %v6223_v19, 0.0  ;;  %v6444_v17 = vsel %vm6382_vm7, %v6199_v38, 0.0 }
 0x4e7   :  { %v6439_v44 = vadd.f32 %v6438_v2, %v6437_v27  ;;  %v6472_v26 = vadd.f32 %v6471_v13, %v6470_v34  ;;  %v6475_v52 = vsel %vm6382_vm7, %v6225_v10, 0.0  ;;  %v6446_v9 = vsel %vm6382_vm7, %v6201_v54, 0.0  ;;  %v18360_v34 = vld [vmem:[#allocation77_spill] sm:$0xff] }
 0x4e8   :  { %v6477_v46 = vsel %vm6382_vm7, %v6227_v50, 0.0  ;;  %v6448_v30 = vsel %vm6382_vm7, %v6203_v29, 0.0  ;;  %v6479_v42 = vsel %vm6382_vm7, %v6229_v48, 0.0  ;;  %v6450_v53 = vsel %vm6382_vm7, %v6205_v40, 0.0 }
 0x4e9   :  { %v6441_v63 = vadd.f32 %v6440_v36, %v6439_v44  ;;  %v6474_v43 = vadd.f32 %v6473_v14, %v6472_v26  ;;  %v6481_v38 = vsel %vm6382_vm7, %v6231_v23, 0.0  ;;  %v6452_v0 = vsel %vm6382_vm7, %v6207_v6, 0.0  ;;  %v18359_v44 = vld [vmem:[#allocation75_spill] sm:$0xff]  ;;  %v18361_v14 = vld [vmem:[#allocation144_spill] sm:$0xff]  ;;  %v18362_v26 = vld [vmem:[#allocation109_spill] sm:$0xff] }
 0x4ea   :  { %v6483_v54 = vsel %vm6382_vm7, %v6233_v35, 0.0  ;;  %v6454_v60 = vsel %vm6382_vm7, %v6209_v7, 0.0  ;;  %v6485_v29 = vsel %vm6382_vm7, %v15466_v24, 0.0  ;;  %v6456_v1 = vsel %vm6382_vm7, %v6211_v58, 0.0 }
 0x4eb   :  { %v6443_v62 = vadd.f32 %v6442_v5, %v6441_v63  ;;  %v6476_v4 = vadd.f32 %v6475_v52, %v6474_v43  ;;  %v6487_v40 = vsel %vm6382_vm7, %v6237_v37, 0.0  ;;  %v6458_v45 = vsel %vm6382_vm7, %v6213_v22, 0.0  ;;  %v18363_v52 = vld [vmem:[#allocation115_spill] sm:$0xff]  ;;  %v18364_v43 = vld [vmem:[#allocation12_spill] sm:$0xff] }
 0x4ec   :  { %v6489_v6 = vsel %vm6382_vm7, %v6239_v56, 0.0  ;;  %v6460_v61 = vsel %vm6382_vm7, %v6215_v33, 0.0  ;;  %v6462_v24 = vsel %vm6382_vm7, %v15564_v41, 0.0  ;;  %v6491_v49 = vsel %vm6382_vm7, %v6241_v51, 0.0 }
 0x4ed   :  { %v6445_v28 = vadd.f32 %v6444_v17, %v6443_v62  ;;  %v6478_v19 = vadd.f32 %v6477_v46, %v6476_v4  ;;  %v6493_v37 = vsel %vm6382_vm7, %v6243_v12, 0.0  ;;  %v6495_v22 = vsel %vm6382_vm7, %v15348_v15, 0.0 }
 0x4ee   :  { %v6497_v33 = vsel %vm6382_vm7, %v15353_v57, 0.0  ;;  %v6499_v5 = vsel %vm6382_vm7, %v18359_v44, 0.0  ;;  %v6501_v51 = vsel %vm6382_vm7, %v18360_v34, 0.0  ;;  %v6503_v12 = vsel %vm6382_vm7, %v18361_v14, 0.0 }
 0x4ef   :  { %v6447_v39 = vadd.f32 %v6446_v9, %v6445_v28  ;;  %v6480_v10 = vadd.f32 %v6479_v42, %v6478_v19  ;;  %v6505_v15 = vsel %vm6382_vm7, %v18362_v26, 0.0  ;;  %v6507_v57 = vsel %vm6382_vm7, %v18363_v52, 0.0  ;;  %v18365_v28 = vld [vmem:[#allocation89_spill] sm:$0xff]  ;;  %v18366_v42 = vld [vmem:[#allocation79_spill] sm:$0xff]  ;;  %v18380_v52 = vld [vmem:[#allocation150_spill] sm:$0xff] }
 0x4f0   :  { %v6509_v9 = vsel %vm6382_vm7, %v18364_v43, 0.0  ;;  %v6511_v4 = vsel %vm6382_vm7, %v18365_v28, 0.0  ;;  %v18381_v43 = vld [vmem:[#allocation110_spill] sm:$0xff] }
 0x4f1   :  { %v6449_v55 = vadd.f32 %v6448_v30, %v6447_v39  ;;  %v6482_v50 = vadd.f32 %v6481_v38, %v6480_v10  ;;  %v6513_v39 = vsel %vm6382_vm7, %v18366_v42, 0.0  ;;  %v18368_v10 = vld [vmem:[#allocation32_spill] sm:$0xff] }
 0x4f3   :  { %v6451_v8 = vadd.f32 %v6450_v53, %v6449_v55  ;;  %v6484_v31 = vadd.f32 %v6483_v54, %v6482_v50  ;;  %v18367_v53 = vld [vmem:[#allocation20_spill] sm:$0xff] }
 0x4f4   :  { %v6515_v38 = vsel %vm6382_vm7, %v18367_v53, 0.0 }
 0x4f5   :  { %v6453_v48 = vadd.f32 %v6452_v0, %v6451_v8  ;;  %v6486_v25 = vadd.f32 %v6485_v29, %v6484_v31  ;;  %v6517_v0 = vsel %vm6382_vm7, %v18368_v10, 0.0  ;;  %v18369_v8 = vld [vmem:[#allocation57_spill] sm:$0xff]  ;;  %v18370_v29 = vld [vmem:[#allocation127_spill] sm:$0xff] }
 0x4f6   :  { %v6519_v50 = vsel %vm6382_vm7, %v18369_v8, 0.0  ;;  %v6568_v8 = vld [vmem:[%s15805_s4 + $0x48] sm:$0xff] }
 0x4f7   :  { %v6455_v23 = vadd.f32 %v6454_v60, %v6453_v48  ;;  %v6488_v59 = vadd.f32 %v6487_v40, %v6486_v25  ;;  %v6521_v48 = vsel %vm6382_vm7, %v18370_v29, 0.0  ;;  %v6525_v25 = vsel %vm6382_vm7, %v15623_v47, 0.0 }
 0x4f9   :  { %v6457_v35 = vadd.f32 %v6456_v1, %v6455_v23  ;;  %v6490_v21 = vadd.f32 %v6489_v6, %v6488_v59  ;;  %v18371_v1 = vld [vmem:[#allocation154_spill] sm:$0xff]  ;;  %v6527_v6 = vsel %vm6382_vm7, %v15628_v16, 0.0  ;;  %v6529_v59 = vsel %vm6382_vm7, %v15614_v11, 0.0 }
 0x4fa   :  { %v6523_v40 = vsel %vm6382_vm7, %v18371_v1, 0.0  ;;  %v6580_v1 = vld [vmem:[%s15805_s4 + $0xa8] sm:$0xff] }
 0x4fb   :  { %v6459_v7 = vadd.f32 %v6458_v45, %v6457_v35  ;;  %v6492_v3 = vadd.f32 %v6491_v49, %v6490_v21  ;;  %v18373_v49 = vld [vmem:[#allocation132_spill] sm:$0xff] }
 0x4fd   :  { %v6461_v58 = vadd.f32 %v6460_v61, %v6459_v7  ;;  %v6494_v27 = vadd.f32 %v6493_v37, %v6492_v3  ;;  %v18372_v7 = vld [vmem:[#allocation155_spill] sm:$0xff] }
 0x4fe   :  { %v6531_v21 = vsel %vm6382_vm7, %v18372_v7, 0.0  ;;  %v18374_v37 = vld [vmem:[#allocation143_spill] sm:$0xff]  ;;  %v6577_v7 = vld [vmem:[%s15805_s4 + $0x90] sm:$0xff] }
 0x4ff   :  { %v6463_v2 = vadd.f32 %v6462_v24, %v6461_v58  ;;  %v6496_v56 = vadd.f32 %v6495_v22, %v6494_v27  ;;  %v6533_v58 = vsel %vm6382_vm7, %v18373_v49, 0.0  ;;  %v6535_v47 = vsel %vm6382_vm7, %v18374_v37, 0.0  ;;  %v18375_v22 = vld [vmem:[#allocation73_spill] sm:$0xff] }
 0x500   :  { %v6537_v16 = vsel %vm6382_vm7, %v18375_v22, 0.0  ;;  %v6574_v22 = vld [vmem:[%s15805_s4 + $0x78] sm:$0xff] }
 0x501   :  { %v6498_v36 = vadd.f32 %v6497_v33, %v6496_v56  ;;  %v6464_v56 = vrot.slane %v6463_v2, 4 }
 0x503   :  { %v6500_v41 = vadd.f32 %v6499_v5, %v6498_v36  ;;  %v18376_v36 = vld [vmem:[#allocation53_spill] sm:$0xff]  ;;  %v18377_v5 = vld [vmem:[#allocation44_spill] sm:$0xff]  ;;  %v6465_v34 = vadd.f32 %v6464_v56, %v6463_v2 }
 0x504   :  { %v6539_v11 = vsel %vm6382_vm7, %v18376_v36, 0.0  ;;  %v6582_v36 = vld [vmem:[%s15805_s4 + $0xb8] sm:$0xff] }
 0x505   :  { %v6502_v13 = vadd.f32 %v6501_v51, %v6500_v41  ;;  %v6541_v41 = vsel %vm6382_vm7, %v18377_v5, 0.0 }
 0x507   :  { %v6504_v63 = vadd.f32 %v6503_v12, %v6502_v13  ;;  %v18378_v13 = vld [vmem:[#allocation84_spill] sm:$0xff] }
 0x508   :  { %v6543_v14 = vsel %vm6382_vm7, %v18378_v13, 0.0  ;;  %v18384_v13 = vld [vmem:[#allocation26_spill] sm:$0xff] }
 0x509   :  { %v6506_v17 = vadd.f32 %v6505_v15, %v6504_v63  ;;  %v18379_v63 = vld [vmem:[#allocation120_spill] sm:$0xff]  ;;  %v6466_v15 = vrot.slane %v6465_v34, 2 }
 0x50a   :  { %v6545_v26 = vsel %vm6382_vm7, %v18379_v63, 0.0 }
 0x50b   :  { %v6508_v62 = vadd.f32 %v6507_v57, %v6506_v17  ;;  %v6547_v57 = vsel %vm6382_vm7, %v18380_v52, 0.0 }
 0x50d   :  { %v6510_v46 = vadd.f32 %v6509_v9, %v6508_v62  ;;  %v6549_v9 = vsel %vm6382_vm7, %v18381_v43, 0.0 }
 0x50f   :  { %v6512_v30 = vadd.f32 %v6511_v4, %v6510_v46  ;;  %v6467_v46 = vadd.f32 %v6466_v15, %v6465_v34  ;;  %v18383_v34 = vld [vmem:[#allocation23_spill] sm:$0xff] }
 0x511   :  { %v6514_v19 = vadd.f32 %v6513_v39, %v6512_v30  ;;  %v6468_v4 = vrot.slane %v6467_v46, 1 }
 0x513   :  { %v6516_v55 = vadd.f32 %v6515_v38, %v6514_v19  ;;  %v6469_v39 = vadd.f32 %v6468_v4, %v6467_v46 }
 0x515   :  { %v6518_v54 = vadd.f32 %v6517_v0, %v6516_v55  ;;  %v6557_v55 = vpack.c.bf16 %v6469_v39, %v6469_v39 }
 0x517   :  { %v6520_v60 = vadd.f32 %v6519_v50, %v6518_v54  ;;  %v6627_v0 = vunpack.c.l.b16 %v6557_v55  ;;  %v6572_v50 = vld [vmem:[%s15805_s4 + $0x68] sm:$0xff] }
 0x519   :  { %v6522_v31 = vadd.f32 %v6521_v48, %v6520_v60  ;;  %v7080_v48 = vcombine.high %v6568_v8, %v6572_v50 }
 0x51b   :  { %v6524_v23 = vadd.f32 %v6523_v40, %v6522_v31  ;;  %v6576_v31 = vld [vmem:[%s15805_s4 + $0x88] sm:$0xff]  ;;  %v7079_v40 = vcombine.low %v6568_v8, %v6572_v50 }
 0x51d   :  { %v6526_v45 = vadd.f32 %v6525_v25, %v6524_v23  ;;  %v18382_v23 = vmov 0   ;;  %v7088_v25 = vcombine.high %v6576_v31, %v6580_v1 }
 0x51f   :  { %v6528_v35 = vadd.f32 %v6527_v6, %v6526_v45  ;;  %v6561_v45 = vld [vmem:[%s15805_s4 + $0x10] sm:$0xff] }
 0x520   :  { %v6565_v6 = vld [vmem:[%s15805_s4 + $0x30] sm:$0xff] }
 0x521   :  { %v6530_v61 = vadd.f32 %v6529_v59, %v6528_v35  ;;  %v7087_v35 = vcombine.low %v6576_v31, %v6580_v1  ;;  %v7074_v59 = vcombine.high %v6561_v45, %v6565_v6 }
 0x523   :  { %v6532_v24 = vadd.f32 %v6531_v21, %v6530_v61  ;;  %v7082_v61 = vcombine.high %v6569_v18, %v6573_v20  ;;  %v6581_v21 = vld [vmem:[%s15805_s4 + $0xb0] sm:$0xff] }
 0x524   :  { %v7090_v49 = vcombine.high %v6577_v7, %v6581_v21  ;;  %v7089_v37 = vcombine.low %v6577_v7, %v6581_v21 }
 0x525   :  { %v6534_v3 = vadd.f32 %v6533_v58, %v6532_v24  ;;  %v7081_v24 = vcombine.low %v6569_v18, %v6573_v20  ;;  %v6562_v58 = vld [vmem:[%s15805_s4 + $0x18] sm:$0xff] }
 0x527   :  { %v6536_v27 = vadd.f32 %v6535_v47, %v6534_v3  ;;  %v6566_v3 = vld [vmem:[%s15805_s4 + $0x38] sm:$0xff] }
 0x528   :  { %v7076_v47 = vcombine.high %v6562_v58, %v6566_v3 }
 0x529   :  { %v6538_v33 = vadd.f32 %v6537_v16, %v6536_v27  ;;  %v6570_v27 = vld [vmem:[%s15805_s4 + $0x58] sm:$0xff]  ;;  %v7075_v16 = vcombine.low %v6562_v58, %v6566_v3 }
 0x52a   :  { %v7084_v56 = vcombine.high %v6570_v27, %v6574_v22 }
 0x52b   :  { %v6540_v44 = vadd.f32 %v6539_v11, %v6538_v33  ;;  %v6578_v33 = vld [vmem:[%s15805_s4 + $0x98] sm:$0xff]  ;;  %v7083_v11 = vcombine.low %v6570_v27, %v6574_v22  ;;  %s7318_s4 = smov [#allocation2]  }
 0x52c   :  { %v7091_v5 = vcombine.low %v6578_v33, %v6582_v36 }
 0x52d   :  { %v6542_v51 = vadd.f32 %v6541_v41, %v6540_v44  ;;  %v7092_v44 = vcombine.high %v6578_v33, %v6582_v36  ;;  %v6583_v41 = vld [vmem:[%s15806_s5] sm:$0xff]  ;;  %s6971_s5 = sshll.u32 %s7318_s4, 4  ;;  %s6972_s5 = int_to_ptr.vmem [resolvable:$true] %s6971_s5 }
 0x52e   :  { %s7292_s23 = scalar_lea.vmem %s6972_s5, 256  ;;  %p7297_p1 = scmp.lt.s32.totalorder %s6972_s5, %s6972_s5 }
 0x52f   :  { %v6544_v12 = vadd.f32 %v6543_v14, %v6542_v51  ;;  %v6588_v51 = vrot.slane %v6583_v41, %v18383_v34  ;;  %v6592_v14 = vrot.slane %v6583_v41, %v18384_v13  ;;  %p7293_p0 = scmp.ne.s32.totalorder %s6972_s5, %s7292_s23  ;;  %p7298_p2 = scmp.lt.s32.totalorder %s7292_s23, %s7292_s23 }
 0x531   :  { %v6546_v17 = vadd.f32 %v6545_v26, %v6544_v12  ;;  %p7299_p3 = por %p7298_p2, %p7297_p1 }
 0x533   :  { %v6548_v62 = vadd.f32 %v6547_v57, %v6546_v17  ;;  %p7300_p4 = pnand %p7299_p3, %p7293_p0 }
 0x535   :  { %v6550_v28 = vadd.f32 %v6549_v9, %v6548_v62  ;;  %v7317_v62 = vmov 1983009808   ;;  %v18385_v9 = vld [vmem:[#allocation24_spill] sm:$0xff] }
 0x536   :  { %v6930_v43 = vunpack.c.l.s4 %v7317_v62  ;;  %v6596_v46 = vrot.slane %v6583_v41, %v18385_v9 }
 0x537   :  { %v6551_v2 = vrot.slane %v6550_v28, 4 }
 0x539   :  { %v6552_v30 = vadd.f32 %v6551_v2, %v6550_v28  ;;  %v6931_v28 = vunpack.c.0.s8 %v6930_v43  ;;  %v18386_v2 = vld [vmem:[#allocation22_spill] sm:$0xff] }
 0x53a   :  { %v18387_v4 = vsub.s32 3, %v18386_v2  ;;  %v18391_v20 = vsub.s32 7, %v18386_v2 }
 0x53b   :  { %v6553_v42 = vrot.slane %v6552_v30, 2 }
 0x53d   :  { %v6554_v19 = vadd.f32 %v6553_v42, %v6552_v30  ;;  %v6600_v30 = vrot.slane %v6583_v41, %v18387_v4 }
 0x53f   :  { %v6555_v53 = vrot.slane %v6554_v19, 1 }
 0x541   :  { %v6556_v38 = vadd.f32 %v6555_v53, %v6554_v19  ;;  %v6934_v53 = vsub.s32 %v6931_v28, %v18386_v2 }
 0x543   :  { %v6558_v10 = vpack.c.bf16 %v6556_v38, %v6556_v38 }
 0x545   :  { %v6628_v54 = vunpack.c.l.b16 %v6558_v10 }
 0x547   :  { %v6630_v60 = vsel %vm6629_vm8, %v6628_v54, %v6627_v0 }
 0x548   :  { %v6631_v29 = vpack.c.b16 %v6630_v60, %v6630_v60  ;;  %v18388_v60 = vsub.s32 4, %v18386_v2 }
 0x54a   :  { %7093 = vmatmul.mubr.msk.bf16.vlgmr.msra.gmra.mrb[32].mxu1 %vm6382_vm7, %v6631_v29 }
 0x54b   :  { %6797 = vmatpush1.bf16.msra.mxu1 %v7071_v32  ;;  %6828 = vmatprep.mubr.bf16.mxu1 %v18382_v23  ;;  %v7073_v32 = vcombine.low %v6561_v45, %v6565_v6 }
 0x54c   :  { %6798 = vmatprep.subr.bf16.mxu1 %v7080_v48  ;;  %v18389_v48 = vsub.s32 5, %v18386_v2 }
 0x54e   :  { %v6608_v31 = vrot.slane %v6583_v41, %v18389_v48 }
 0x54f   :  { %6799 = vmatpush1.bf16.msra.mxu1 %v7079_v40 }
 0x550   :  { %6800 = vmatprep.subr.bf16.mxu1 %v7088_v25 }
 0x553   :  { %6801 = vmatpush1.bf16.msra.mxu1 %v7087_v35 }
 0x554   :  { %6837 = vmatprep.subr.bf16.mxu1 %v7074_v59  ;;  %v18390_v59 = vsub.s32 6, %v18386_v2 }
 0x556   :  { %7094 = vmatmul.mubr.msk.bf16.vlgmr.msra.gmra.mrb[36].mxu1 %vm6382_vm7, %v6631_v29  ;;  %v6612_v18 = vrot.slane %v6583_v41, %v18390_v59 }
 0x557   :  { %6838 = vmatpush1.bf16.msra.mxu1 %v7073_v32  ;;  %6869 = vmatprep.mubr.bf16.mxu1 %v18382_v23  ;;  %v6616_v32 = vrot.slane %v6583_v41, %v18391_v20 }
 0x558   :  { %6839 = vmatprep.subr.bf16.mxu1 %v7082_v61 }
 0x55b   :  { %6840 = vmatpush1.bf16.msra.mxu1 %v7081_v24 }
 0x55c   :  { %6841 = vmatprep.subr.bf16.mxu1 %v7090_v49 }
 0x55f   :  { %6842 = vmatpush1.bf16.msra.mxu1 %v7089_v37 }
 0x560   :  { %6878 = vmatprep.subr.bf16.mxu1 %v7076_v47 }
 0x562   :  { %7095 = vmatmul.mubr.msk.bf16.vlgmr.msra.gmra.mrb[40].mxu1 %vm6382_vm7, %v6631_v29 }
 0x563   :  { %6879 = vmatpush1.bf16.msra.mxu1 %v7075_v16  ;;  %6910 = vmatprep.mubr.bf16.mxu1 %v18382_v23 }
 0x564   :  { %6880 = vmatprep.subr.bf16.mxu1 %v7084_v56 }
 0x567   :  { %6881 = vmatpush1.bf16.msra.mxu1 %v7083_v11 }
 0x568   :  { %6882 = vmatprep.subr.bf16.mxu1 %v7092_v44 }
 0x56b   :  { %6883 = vmatpush1.bf16.msra.mxu1 %v7091_v5 }
 0x56e   :  { %7096 = vmatmul.mubr.msk.bf16.vlgmr.msra.gmra.mrb[44].mxu1 %vm6382_vm7, %v6631_v29  ;;  %v6604_v29 = vrot.slane %v6583_v41, %v18388_v60 }
 0x61d   :  { %v6789_v12 = vpop.f32.mrb[32].mxu1 }
 0x61e   :  { %v6790_v63 = vadd.f32 %v6789_v12, %v6588_v51  ;;  %v6791_v26 = vpop.f32.mrb[33].mxu1 }
 0x61f   :  { %v6792_v15 = vadd.f32 %v6791_v26, %v6592_v14  ;;  %v6793_v17 = vpop.f32.mrb[34].mxu1 }
 0x620   :  { %v6794_v52 = vpop.f32.mrb[35].mxu1 }
 0x621   :  { %v6927_v57 = vcombine.low %v6790_v63, %v6792_v15 }
 0x623   :  { %v6935_v54 = vrot.slane %v6927_v57, %v6934_v53 }
 0x629   :  { %v6830_v42 = vpop.f32.mrb[36].mxu1 }
 0x62a   :  { %v6831_v39 = vadd.f32 %v6830_v42, %v6596_v46  ;;  %v6832_v19 = vpop.f32.mrb[37].mxu1 }
 0x62b   :  { %v6833_v38 = vadd.f32 %v6832_v19, %v6600_v30  ;;  %v6834_v55 = vpop.f32.mrb[38].mxu1 }
 0x62c   :  { %v6835_v10 = vpop.f32.mrb[39].mxu1 }
 0x62d   :  { %v6928_v0 = vcombine.low %v6831_v39, %v6833_v38 }
 0x62f   :  { %v6942_v8 = vrot.slane %v6928_v0, %v6934_v53 }
 0x631   :  { %v6943_v50 = vcombine.low %v6935_v54, %v6942_v8 }
 0x633   :  { %6963 = vst [vmem:[#allocation2] sm:$0xff] %v6943_v50 }
 0x635   :  { %v6871_v1 = vpop.f32.mrb[40].mxu1 }
 0x636   :  { %v6872_v40 = vadd.f32 %v6871_v1, %v6604_v29  ;;  %v6873_v23 = vpop.f32.mrb[41].mxu1 }
 0x637   :  { %v6874_v25 = vadd.f32 %v6873_v23, %v6608_v31  ;;  %v6875_v45 = vpop.f32.mrb[42].mxu1 }
 0x638   :  { %v6876_v6 = vpop.f32.mrb[43].mxu1 }
 0x639   :  { %v6944_v35 = vcombine.low %v6872_v40, %v6874_v25 }
 0x63b   :  { %v6952_v37 = vrot.slane %v6944_v35, %v6934_v53 }
 0x641   :  { %v6912_v61 = vpop.f32.mrb[44].mxu1 }
 0x642   :  { %v6913_v7 = vadd.f32 %v6912_v61, %v6612_v18  ;;  %v6914_v21 = vpop.f32.mrb[45].mxu1 }
 0x643   :  { %v6915_v24 = vadd.f32 %v6914_v21, %v6616_v32  ;;  %v6916_v49 = vpop.f32.mrb[46].mxu1 }
 0x644   :  { %v6917_v58 = vpop.f32.mrb[47].mxu1 }
 0x645   :  { %v6945_v3 = vcombine.low %v6913_v7, %v6915_v24 }
 0x647   :  { %v6959_v47 = vrot.slane %v6945_v3, %v6934_v53 }
 0x649   :  { %v6960_v27 = vcombine.low %v6952_v37, %v6959_v47 }
 0x64b   :  { %6964 = vst [vmem:[#allocation2 + $0x8] sm:$0xff] %v6960_v27 }
 0x64c   :  { %7303 = shalt.err (!%p7300_p4)
}
 0x64d   :  { %s7304_s25 = scalar_lea.hbm %s15807_s6, 256 }
 0x64e   :  { %p7305_p5 = scmp.ne.s32.totalorder %s15807_s6, %s7304_s25  ;;  %p7308_p6 = scmp.lt.u32.totalorder %s7304_s25, %s15807_s6 }
 0x650   :  { %p7310_p7 = pnand %p7308_p6, %p7305_p5 }
 0x652   :  { %7313 = shalt.err (!%p7310_p7)
}
 0x653   :  { %6974 = dma.vmem_to_hbm [thread:$0]  %s6972_s5, 256, %s15807_s6, [#allocation3]  }
 0x654   :  { %7314 = dma.done.wait [#allocation3], 256  }
 0x655   :  { %7315 = vsyncadd [#allocation3], 4294967040 }
 0x656   :  { %6978 = vsyncpa [#allocation3], 1 }

</bundles_post_ra>
